<compile_context>
chip_gen: v7x
topology: tpu7x:2x2x1
jax: 0.10.0
libtpu: 0.0.40
codegen_flags: <defaults>
</compile_context>

<pallas_src>
import functools

import jax
import jax.numpy as jnp
from jax.experimental import pallas as pl
from jax.experimental.pallas import tpu as pltpu

BN_EPS = 1e-5
LANE = 128


def _round_up(n, m):
    return ((n + m - 1) // m) * m


def _conv3x3_bn_relu_kernel(x_ref, w_ref, shift_ref, o_ref, xflat_ref, acc_ref,
                            *, upsample):
    """One (batch, Cout-tile) grid step.

    x_ref:     (1, Hin, Win, Cp)   bf16  un-padded (and un-upsampled for layer 1)
    w_ref:     (3, 3, Cp, TCo)     bf16  BN scale already folded in
    shift_ref: (1, TCo)            f32   folded conv-bias + BN shift
    o_ref:     (1, H, W, TCo)      bf16
    xflat_ref: ((H+3)*(W+2), Cp)   bf16  zero-padded, row-flattened input (scratch)
    acc_ref:   (H*(W+2), TCo)      f32   accumulator (scratch)
    """
    _, H, W, _ = o_ref.shape
    Wp = W + 2
    R = H * Wp

    # (1) Build the zero-padded image in VMEM (fuses the pad and, for the first
    #     layer, the nearest-2x upsample -> no HBM round trips for either).
    #     Image pixel (a, b) lives at flattened row (a+1)*Wp + (b+1).
    xflat_ref[...] = jnp.zeros_like(xflat_ref)
    if upsample:
        xup = jnp.repeat(jnp.repeat(x_ref[0], 2, axis=0), 2, axis=1)  # (H, W, Cp)
    for a in range(H):
        row = xup[a] if upsample else x_ref[0, a]                      # (W, Cp)
        base = (a + 1) * Wp + 1
        xflat_ref[base:base + W, :] = row

    # (2) Accumulator starts at the folded BN/bias shift (saves one VPU add).
    acc_ref[...] = jnp.broadcast_to(shift_ref[...], acc_ref.shape)

    # (3) 3x3 conv = 9 shifted (R, Cp) x (Cp, TCo) bf16 MXU matmuls, f32 acc.
    #     Output row r = h*Wp + w needs flattened input row r + kh*Wp + kw.
    for kh in range(3):
        for kw in range(3):
            s = kh * Wp + kw
            acc_ref[...] += jnp.dot(xflat_ref[s:s + R, :], w_ref[kh, kw],
                                    preferred_element_type=jnp.float32)

    # (4) ReLU and store the W valid columns of each output row (TCo = 128 lanes,
    #     fully lane-dense store; the 2 pad columns per row are junk and dropped).
    for h in range(H):
        r0 = h * Wp
        o_ref[0, h, :, :] = jnp.maximum(acc_ref[r0:r0 + W, :], 0.0).astype(o_ref.dtype)


def conv3x3_bn_relu(x, w, shift, *, upsample):
    """x: (N, Hin, Win, Cp) bf16; w: (3, 3, Cp, Cop) bf16; shift: (1, Cop) f32."""
    N, Hin, Win, Cp = x.shape
    Cop = w.shape[-1]
    H, W = (2 * Hin, 2 * Win) if upsample else (Hin, Win)
    Wp = W + 2
    tco = min(Cop, LANE)                       # Cout tile (one lane-tile wide)

    kernel = functools.partial(_conv3x3_bn_relu_kernel, upsample=upsample)
    return pl.pallas_call(
        kernel,
        out_shape=jax.ShapeDtypeStruct((N, H, W, Cop), jnp.bfloat16),
        grid=(N, Cop // tco),
        in_specs=[
            pl.BlockSpec((1, Hin, Win, Cp), lambda n, j: (n, 0, 0, 0)),
            pl.BlockSpec((3, 3, Cp, tco), lambda n, j: (0, 0, 0, j)),
            pl.BlockSpec((1, tco), lambda n, j: (0, j)),
        ],
        out_specs=pl.BlockSpec((1, H, W, tco), lambda n, j: (n, 0, 0, j)),
        scratch_shapes=[
            pltpu.VMEM(((H + 3) * Wp, Cp), jnp.bfloat16),   # padded flat image
            pltpu.VMEM((H * Wp, tco), jnp.float32),          # f32 accumulator
        ],
        compiler_params=pltpu.CompilerParams(
            dimension_semantics=("parallel", "parallel"),
            vmem_limit_bytes=32 * 1024 * 1024),
    )(x, w, shift)


def make_cbr_params(key, cin, cout):
    """f32 reference params for one conv2DBatchNormRelu block (eval-mode BN)."""
    k_w, k_b, k_g, k_be, k_m, k_v = jax.random.split(key, 6)
    w = 0.1 * jax.random.normal(k_w, (3, 3, cin, cout), jnp.float32)   # HWIO
    bias = 0.1 * jax.random.normal(k_b, (cout,), jnp.float32)
    gamma = jax.random.uniform(k_g, (cout,), jnp.float32, 0.5, 1.5)
    beta = 0.1 * jax.random.normal(k_be, (cout,), jnp.float32)
    r_mean = 0.1 * jax.random.normal(k_m, (cout,), jnp.float32)
    r_var = jax.random.uniform(k_v, (cout,), jnp.float32, 0.5, 1.5)
    scale = gamma / jnp.sqrt(r_var + BN_EPS)
    shift = beta + (bias - r_mean) * scale
    return {"w": w, "scale": scale, "shift": shift}


def prep_kernel_params(p):
    """Fold BN scale into the conv weights, pad channels to 128, cast to bf16."""
    w, scale, shift = p["w"], p["scale"], p["shift"]
    ci, co = w.shape[2], w.shape[3]
    cip, cop = _round_up(ci, LANE), _round_up(co, LANE)
    w_folded = w * scale[None, None, None, :]
    w_pad = jnp.zeros((3, 3, cip, cop), jnp.float32).at[:, :, :ci, :co].set(w_folded)
    shift_pad = jnp.zeros((1, cop), jnp.float32).at[0, :co].set(shift)
    return {"w": w_pad.astype(jnp.bfloat16), "shift": shift_pad}


@functools.partial(jax.jit, static_argnames=("out_channels",))
def segnet_up3_forward(x_nchw, p1, p2, p3, *, out_channels):
    """segnetUp3.forward(inputs, indices=None, output_shape=None); NCHW in/out."""
    n, c, _, _ = x_nchw.shape
    cin_pad = p1["w"].shape[2]
    x = jnp.transpose(x_nchw, (0, 2, 3, 1))                            # NCHW -> NHWC
    x = jnp.pad(x, ((0, 0), (0, 0), (0, 0), (0, cin_pad - c))).astype(jnp.bfloat16)
    x = conv3x3_bn_relu(x, p1["w"], p1["shift"], upsample=True)        # fused 2x up
    x = conv3x3_bn_relu(x, p2["w"], p2["shift"], upsample=False)
    x = conv3x3_bn_relu(x, p3["w"], p3["shift"], upsample=False)
    x = x[..., :out_channels].astype(jnp.float32)
    return jnp.transpose(x, (0, 3, 1, 2))                              # NHWC -> NCHW


def _reference_forward(x_nchw, p1, p2, p3):
    """Pure-JAX (XLA, f32) reference for correctness checking."""
    x = jnp.transpose(x_nchw, (0, 2, 3, 1))
    x = jnp.repeat(jnp.repeat(x, 2, axis=1), 2, axis=2)
    for p in (p1, p2, p3):
        y = jax.lax.conv_general_dilated(
            x, p["w"], window_strides=(1, 1), padding="SAME",
            dimension_numbers=("NHWC", "HWIO", "NHWC"))
        x = jnp.maximum(y * p["scale"] + p["shift"], 0.0)
    return jnp.transpose(x, (0, 3, 1, 2))


if __name__ == "__main__":
    key = jax.random.PRNGKey(0)
    k_x, k1, k2, k3 = jax.random.split(key, 4)

    in_size, out_size = 4, 2
    N, H, W = 2, 8, 8
    x = jax.random.normal(k_x, (N, in_size, H, W), jnp.float32)        # NCHW like PyTorch

    ref_p1 = make_cbr_params(k1, in_size, in_size)    # conv1: in_size -> in_size
    ref_p2 = make_cbr_params(k2, in_size, in_size)    # conv2: in_size -> in_size
    ref_p3 = make_cbr_params(k3, in_size, out_size)   # conv3: in_size -> out_size
    p1, p2, p3 = (prep_kernel_params(p) for p in (ref_p1, ref_p2, ref_p3))

    out = segnet_up3_forward(x, p1, p2, p3, out_channels=out_size)
    out = jax.block_until_ready(out)

    ref = jax.block_until_ready(_reference_forward(x, ref_p1, ref_p2, ref_p3))
    assert out.shape == (N, out_size, 2 * H, 2 * W), out.shape
    # bf16 MXU inputs with f32 accumulation -> looser tolerance than pure f32.
    assert jnp.allclose(out, ref, rtol=5e-2, atol=5e-2), \
        float(jnp.max(jnp.abs(out - ref)))

    print("KERNEL_OK")
</pallas_src>

<mosaic_0001>
module attributes {stable_mosaic.version = 11 : i64} {
  func.func @_conv3x3_bn_relu_kernel(%arg0: i32, %arg1: i32, %arg2: memref<1x8x8x128xbf16, #tpu.memory_space<vmem>>, %arg3: memref<3x3x128x128xbf16, #tpu.memory_space<vmem>>, %arg4: memref<1x128xf32, #tpu.memory_space<vmem>>, %arg5: memref<1x16x16x128xbf16, #tpu.memory_space<vmem>>, %arg6: memref<342x128xbf16, #tpu.memory_space<vmem>>, %arg7: memref<288x128xf32, #tpu.memory_space<vmem>>) attributes {dimension_semantics = [#tpu.dimension_semantics<parallel>, #tpu.dimension_semantics<parallel>], iteration_bounds = array<i64: 2, 1>, scalar_prefetch = 0 : i64, scratch_operands = 2 : i64, tpu.core_type = #tpu.core_type<tc>, window_params = [{transform_indices = @transform_0, window_bounds = array<i64: 1, 8, 8, 128>}, {transform_indices = @transform_1, window_bounds = array<i64: 3, 3, 128, 128>}, {transform_indices = @transform_2, window_bounds = array<i64: 1, 128>}, {transform_indices = @transform_3, window_bounds = array<i64: 1, 16, 16, 128>}]} {
    %cst = arith.constant 0.000000e+00 : bf16
    %0 = vector.broadcast %cst : bf16 to vector<342x128xbf16>
    %c0 = arith.constant 0 : index
    %c0_0 = arith.constant 0 : index
    %1 = vector.load %arg6[%c0, %c0_0] : memref<342x128xbf16, #tpu.memory_space<vmem>>, vector<342x128xbf16>
    tpu.vector_store %arg6[%c0, %c0_0], %0 {strides = array<i32>} : memref<342x128xbf16, #tpu.memory_space<vmem>>, vector<342x128xbf16>,
    %c0_1 = arith.constant 0 : index
    %c0_2 = arith.constant 0 : index
    %c0_3 = arith.constant 0 : index
    %c0_4 = arith.constant 0 : index
    %2 = vector.load %arg2[%c0_1, %c0_2, %c0_3, %c0_4] : memref<1x8x8x128xbf16, #tpu.memory_space<vmem>>, vector<1x8x8x128xbf16>
    %3 = vector.shape_cast %2 : vector<1x8x8x128xbf16> to vector<8x8x128xbf16>
    %4 = vector.shape_cast %3 : vector<8x8x128xbf16> to vector<8x1x8x128xbf16>
    %5 = vector.broadcast %4 : vector<8x1x8x128xbf16> to vector<8x2x8x128xbf16>
    %6 = vector.shape_cast %5 : vector<8x2x8x128xbf16> to vector<16x8x128xbf16>
    %7 = vector.shape_cast %6 : vector<16x8x128xbf16> to vector<16x8x1x128xbf16>
    %8 = vector.broadcast %7 : vector<16x8x1x128xbf16> to vector<16x8x2x128xbf16>
    %9 = vector.shape_cast %8 : vector<16x8x2x128xbf16> to vector<16x16x128xbf16>
    %10 = vector.extract_strided_slice %9 {offsets = [0, 0, 0], sizes = [1, 16, 128], strides = [1, 1, 1]} : vector<16x16x128xbf16> to vector<1x16x128xbf16>
    %11 = vector.shape_cast %10 : vector<1x16x128xbf16> to vector<16x128xbf16>
    %c19 = arith.constant 19 : index
    %c0_5 = arith.constant 0 : index
    %12 = vector.load %arg6[%c19, %c0_5] : memref<342x128xbf16, #tpu.memory_space<vmem>>, vector<16x128xbf16>
    tpu.vector_store %arg6[%c19, %c0_5], %11 {strides = array<i32>} : memref<342x128xbf16, #tpu.memory_space<vmem>>, vector<16x128xbf16>,
    %13 = vector.extract_strided_slice %9 {offsets = [1, 0, 0], sizes = [1, 16, 128], strides = [1, 1, 1]} : vector<16x16x128xbf16> to vector<1x16x128xbf16>
    %14 = vector.shape_cast %13 : vector<1x16x128xbf16> to vector<16x128xbf16>
    %c37 = arith.constant 37 : index
    %c0_6 = arith.constant 0 : index
    %15 = vector.load %arg6[%c37, %c0_6] : memref<342x128xbf16, #tpu.memory_space<vmem>>, vector<16x128xbf16>
    tpu.vector_store %arg6[%c37, %c0_6], %14 {strides = array<i32>} : memref<342x128xbf16, #tpu.memory_space<vmem>>, vector<16x128xbf16>,
    %16 = vector.extract_strided_slice %9 {offsets = [2, 0, 0], sizes = [1, 16, 128], strides = [1, 1, 1]} : vector<16x16x128xbf16> to vector<1x16x128xbf16>
    %17 = vector.shape_cast %16 : vector<1x16x128xbf16> to vector<16x128xbf16>
    %c55 = arith.constant 55 : index
    %c0_7 = arith.constant 0 : index
    %18 = vector.load %arg6[%c55, %c0_7] : memref<342x128xbf16, #tpu.memory_space<vmem>>, vector<16x128xbf16>
    tpu.vector_store %arg6[%c55, %c0_7], %17 {strides = array<i32>} : memref<342x128xbf16, #tpu.memory_space<vmem>>, vector<16x128xbf16>,
    %19 = vector.extract_strided_slice %9 {offsets = [3, 0, 0], sizes = [1, 16, 128], strides = [1, 1, 1]} : vector<16x16x128xbf16> to vector<1x16x128xbf16>
    %20 = vector.shape_cast %19 : vector<1x16x128xbf16> to vector<16x128xbf16>
    %c73 = arith.constant 73 : index
    %c0_8 = arith.constant 0 : index
    %21 = vector.load %arg6[%c73, %c0_8] : memref<342x128xbf16, #tpu.memory_space<vmem>>, vector<16x128xbf16>
    tpu.vector_store %arg6[%c73, %c0_8], %20 {strides = array<i32>} : memref<342x128xbf16, #tpu.memory_space<vmem>>, vector<16x128xbf16>,
    %22 = vector.extract_strided_slice %9 {offsets = [4, 0, 0], sizes = [1, 16, 128], strides = [1, 1, 1]} : vector<16x16x128xbf16> to vector<1x16x128xbf16>
    %23 = vector.shape_cast %22 : vector<1x16x128xbf16> to vector<16x128xbf16>
    %c91 = arith.constant 91 : index
    %c0_9 = arith.constant 0 : index
    %24 = vector.load %arg6[%c91, %c0_9] : memref<342x128xbf16, #tpu.memory_space<vmem>>, vector<16x128xbf16>
    tpu.vector_store %arg6[%c91, %c0_9], %23 {strides = array<i32>} : memref<342x128xbf16, #tpu.memory_space<vmem>>, vector<16x128xbf16>,
    %25 = vector.extract_strided_slice %9 {offsets = [5, 0, 0], sizes = [1, 16, 128], strides = [1, 1, 1]} : vector<16x16x128xbf16> to vector<1x16x128xbf16>
    %26 = vector.shape_cast %25 : vector<1x16x128xbf16> to vector<16x128xbf16>
    %c109 = arith.constant 109 : index
    %c0_10 = arith.constant 0 : index
    %27 = vector.load %arg6[%c109, %c0_10] : memref<342x128xbf16, #tpu.memory_space<vmem>>, vector<16x128xbf16>
    tpu.vector_store %arg6[%c109, %c0_10], %26 {strides = array<i32>} : memref<342x128xbf16, #tpu.memory_space<vmem>>, vector<16x128xbf16>,
    %28 = vector.extract_strided_slice %9 {offsets = [6, 0, 0], sizes = [1, 16, 128], strides = [1, 1, 1]} : vector<16x16x128xbf16> to vector<1x16x128xbf16>
    %29 = vector.shape_cast %28 : vector<1x16x128xbf16> to vector<16x128xbf16>
    %c127 = arith.constant 127 : index
    %c0_11 = arith.constant 0 : index
    %30 = vector.load %arg6[%c127, %c0_11] : memref<342x128xbf16, #tpu.memory_space<vmem>>, vector<16x128xbf16>
    tpu.vector_store %arg6[%c127, %c0_11], %29 {strides = array<i32>} : memref<342x128xbf16, #tpu.memory_space<vmem>>, vector<16x128xbf16>,
    %31 = vector.extract_strided_slice %9 {offsets = [7, 0, 0], sizes = [1, 16, 128], strides = [1, 1, 1]} : vector<16x16x128xbf16> to vector<1x16x128xbf16>
    %32 = vector.shape_cast %31 : vector<1x16x128xbf16> to vector<16x128xbf16>
    %c145 = arith.constant 145 : index
    %c0_12 = arith.constant 0 : index
    %33 = vector.load %arg6[%c145, %c0_12] : memref<342x128xbf16, #tpu.memory_space<vmem>>, vector<16x128xbf16>
    tpu.vector_store %arg6[%c145, %c0_12], %32 {strides = array<i32>} : memref<342x128xbf16, #tpu.memory_space<vmem>>, vector<16x128xbf16>,
    %34 = vector.extract_strided_slice %9 {offsets = [8, 0, 0], sizes = [1, 16, 128], strides = [1, 1, 1]} : vector<16x16x128xbf16> to vector<1x16x128xbf16>
    %35 = vector.shape_cast %34 : vector<1x16x128xbf16> to vector<16x128xbf16>
    %c163 = arith.constant 163 : index
    %c0_13 = arith.constant 0 : index
    %36 = vector.load %arg6[%c163, %c0_13] : memref<342x128xbf16, #tpu.memory_space<vmem>>, vector<16x128xbf16>
    tpu.vector_store %arg6[%c163, %c0_13], %35 {strides = array<i32>} : memref<342x128xbf16, #tpu.memory_space<vmem>>, vector<16x128xbf16>,
    %37 = vector.extract_strided_slice %9 {offsets = [9, 0, 0], sizes = [1, 16, 128], strides = [1, 1, 1]} : vector<16x16x128xbf16> to vector<1x16x128xbf16>
    %38 = vector.shape_cast %37 : vector<1x16x128xbf16> to vector<16x128xbf16>
    %c181 = arith.constant 181 : index
    %c0_14 = arith.constant 0 : index
    %39 = vector.load %arg6[%c181, %c0_14] : memref<342x128xbf16, #tpu.memory_space<vmem>>, vector<16x128xbf16>
    tpu.vector_store %arg6[%c181, %c0_14], %38 {strides = array<i32>} : memref<342x128xbf16, #tpu.memory_space<vmem>>, vector<16x128xbf16>,
    %40 = vector.extract_strided_slice %9 {offsets = [10, 0, 0], sizes = [1, 16, 128], strides = [1, 1, 1]} : vector<16x16x128xbf16> to vector<1x16x128xbf16>
    %41 = vector.shape_cast %40 : vector<1x16x128xbf16> to vector<16x128xbf16>
    %c199 = arith.constant 199 : index
    %c0_15 = arith.constant 0 : index
    %42 = vector.load %arg6[%c199, %c0_15] : memref<342x128xbf16, #tpu.memory_space<vmem>>, vector<16x128xbf16>
    tpu.vector_store %arg6[%c199, %c0_15], %41 {strides = array<i32>} : memref<342x128xbf16, #tpu.memory_space<vmem>>, vector<16x128xbf16>,
    %43 = vector.extract_strided_slice %9 {offsets = [11, 0, 0], sizes = [1, 16, 128], strides = [1, 1, 1]} : vector<16x16x128xbf16> to vector<1x16x128xbf16>
    %44 = vector.shape_cast %43 : vector<1x16x128xbf16> to vector<16x128xbf16>
    %c217 = arith.constant 217 : index
    %c0_16 = arith.constant 0 : index
    %45 = vector.load %arg6[%c217, %c0_16] : memref<342x128xbf16, #tpu.memory_space<vmem>>, vector<16x128xbf16>
    tpu.vector_store %arg6[%c217, %c0_16], %44 {strides = array<i32>} : memref<342x128xbf16, #tpu.memory_space<vmem>>, vector<16x128xbf16>,
    %46 = vector.extract_strided_slice %9 {offsets = [12, 0, 0], sizes = [1, 16, 128], strides = [1, 1, 1]} : vector<16x16x128xbf16> to vector<1x16x128xbf16>
    %47 = vector.shape_cast %46 : vector<1x16x128xbf16> to vector<16x128xbf16>
    %c235 = arith.constant 235 : index
    %c0_17 = arith.constant 0 : index
    %48 = vector.load %arg6[%c235, %c0_17] : memref<342x128xbf16, #tpu.memory_space<vmem>>, vector<16x128xbf16>
    tpu.vector_store %arg6[%c235, %c0_17], %47 {strides = array<i32>} : memref<342x128xbf16, #tpu.memory_space<vmem>>, vector<16x128xbf16>,
    %49 = vector.extract_strided_slice %9 {offsets = [13, 0, 0], sizes = [1, 16, 128], strides = [1, 1, 1]} : vector<16x16x128xbf16> to vector<1x16x128xbf16>
    %50 = vector.shape_cast %49 : vector<1x16x128xbf16> to vector<16x128xbf16>
    %c253 = arith.constant 253 : index
    %c0_18 = arith.constant 0 : index
    %51 = vector.load %arg6[%c253, %c0_18] : memref<342x128xbf16, #tpu.memory_space<vmem>>, vector<16x128xbf16>
    tpu.vector_store %arg6[%c253, %c0_18], %50 {strides = array<i32>} : memref<342x128xbf16, #tpu.memory_space<vmem>>, vector<16x128xbf16>,
    %52 = vector.extract_strided_slice %9 {offsets = [14, 0, 0], sizes = [1, 16, 128], strides = [1, 1, 1]} : vector<16x16x128xbf16> to vector<1x16x128xbf16>
    %53 = vector.shape_cast %52 : vector<1x16x128xbf16> to vector<16x128xbf16>
    %c271 = arith.constant 271 : index
    %c0_19 = arith.constant 0 : index
    %54 = vector.load %arg6[%c271, %c0_19] : memref<342x128xbf16, #tpu.memory_space<vmem>>, vector<16x128xbf16>
    tpu.vector_store %arg6[%c271, %c0_19], %53 {strides = array<i32>} : memref<342x128xbf16, #tpu.memory_space<vmem>>, vector<16x128xbf16>,
    %55 = vector.extract_strided_slice %9 {offsets = [15, 0, 0], sizes = [1, 16, 128], strides = [1, 1, 1]} : vector<16x16x128xbf16> to vector<1x16x128xbf16>
    %56 = vector.shape_cast %55 : vector<1x16x128xbf16> to vector<16x128xbf16>
    %c289 = arith.constant 289 : index
    %c0_20 = arith.constant 0 : index
    %57 = vector.load %arg6[%c289, %c0_20] : memref<342x128xbf16, #tpu.memory_space<vmem>>, vector<16x128xbf16>
    tpu.vector_store %arg6[%c289, %c0_20], %56 {strides = array<i32>} : memref<342x128xbf16, #tpu.memory_space<vmem>>, vector<16x128xbf16>,
    %c0_21 = arith.constant 0 : index
    %c0_22 = arith.constant 0 : index
    %58 = vector.load %arg4[%c0_21, %c0_22] : memref<1x128xf32, #tpu.memory_space<vmem>>, vector<1x128xf32>
    %59 = vector.shape_cast %58 : vector<1x128xf32> to vector<1x128xf32>
    %60 = vector.broadcast %59 : vector<1x128xf32> to vector<288x128xf32>
    %c0_23 = arith.constant 0 : index
    %c0_24 = arith.constant 0 : index
    %61 = vector.load %arg7[%c0_23, %c0_24] : memref<288x128xf32, #tpu.memory_space<vmem>>, vector<288x128xf32>
    tpu.vector_store %arg7[%c0_23, %c0_24], %60 {strides = array<i32>} : memref<288x128xf32, #tpu.memory_space<vmem>>, vector<288x128xf32>,
    %c0_25 = arith.constant 0 : index
    %c0_26 = arith.constant 0 : index
    %62 = vector.load %arg7[%c0_25, %c0_26] : memref<288x128xf32, #tpu.memory_space<vmem>>, vector<288x128xf32>
    %c0_27 = arith.constant 0 : index
    %c0_28 = arith.constant 0 : index
    %63 = vector.load %arg6[%c0_27, %c0_28] : memref<342x128xbf16, #tpu.memory_space<vmem>>, vector<288x128xbf16>
    %c0_29 = arith.constant 0 : index
    %c0_30 = arith.constant 0 : index
    %c0_31 = arith.constant 0 : index
    %c0_32 = arith.constant 0 : index
    %64 = vector.load %arg3[%c0_29, %c0_30, %c0_31, %c0_32] : memref<3x3x128x128xbf16, #tpu.memory_space<vmem>>, vector<1x1x128x128xbf16>
    %65 = vector.shape_cast %64 : vector<1x1x128x128xbf16> to vector<128x128xbf16>
    %cst_33 = arith.constant dense<0.000000e+00> : vector<288x128xf32>
    %66 = tpu.matmul %63, %65, %cst_33 {dimension_numbers = #tpu.dot_dimension_numbers<[1], [0], [0], [1], [0, 0, 1, 1], [], []>} : vector<288x128xbf16>, vector<128x128xbf16>, vector<288x128xf32> -> vector<288x128xf32>
    %67 = arith.addf %62, %66 : vector<288x128xf32>
    %c0_34 = arith.constant 0 : index
    %c0_35 = arith.constant 0 : index
    %68 = vector.load %arg7[%c0_34, %c0_35] : memref<288x128xf32, #tpu.memory_space<vmem>>, vector<288x128xf32>
    tpu.vector_store %arg7[%c0_34, %c0_35], %67 {strides = array<i32>} : memref<288x128xf32, #tpu.memory_space<vmem>>, vector<288x128xf32>,
    %c0_36 = arith.constant 0 : index
    %c0_37 = arith.constant 0 : index
    %69 = vector.load %arg7[%c0_36, %c0_37] : memref<288x128xf32, #tpu.memory_space<vmem>>, vector<288x128xf32>
    %c1 = arith.constant 1 : index
    %c0_38 = arith.constant 0 : index
    %70 = vector.load %arg6[%c1, %c0_38] : memref<342x128xbf16, #tpu.memory_space<vmem>>, vector<288x128xbf16>
    %c0_39 = arith.constant 0 : index
    %c1_40 = arith.constant 1 : index
    %c0_41 = arith.constant 0 : index
    %c0_42 = arith.constant 0 : index
    %71 = vector.load %arg3[%c0_39, %c1_40, %c0_41, %c0_42] : memref<3x3x128x128xbf16, #tpu.memory_space<vmem>>, vector<1x1x128x128xbf16>
    %72 = vector.shape_cast %71 : vector<1x1x128x128xbf16> to vector<128x128xbf16>
    %cst_43 = arith.constant dense<0.000000e+00> : vector<288x128xf32>
    %73 = tpu.matmul %70, %72, %cst_43 {dimension_numbers = #tpu.dot_dimension_numbers<[1], [0], [0], [1], [0, 0, 1, 1], [], []>} : vector<288x128xbf16>, vector<128x128xbf16>, vector<288x128xf32> -> vector<288x128xf32>
    %74 = arith.addf %69, %73 : vector<288x128xf32>
    %c0_44 = arith.constant 0 : index
    %c0_45 = arith.constant 0 : index
    %75 = vector.load %arg7[%c0_44, %c0_45] : memref<288x128xf32, #tpu.memory_space<vmem>>, vector<288x128xf32>
    tpu.vector_store %arg7[%c0_44, %c0_45], %74 {strides = array<i32>} : memref<288x128xf32, #tpu.memory_space<vmem>>, vector<288x128xf32>,
    %c0_46 = arith.constant 0 : index
    %c0_47 = arith.constant 0 : index
    %76 = vector.load %arg7[%c0_46, %c0_47] : memref<288x128xf32, #tpu.memory_space<vmem>>, vector<288x128xf32>
    %c2 = arith.constant 2 : index
    %c0_48 = arith.constant 0 : index
    %77 = vector.load %arg6[%c2, %c0_48] : memref<342x128xbf16, #tpu.memory_space<vmem>>, vector<288x128xbf16>
    %c0_49 = arith.constant 0 : index
    %c2_50 = arith.constant 2 : index
    %c0_51 = arith.constant 0 : index
    %c0_52 = arith.constant 0 : index
    %78 = vector.load %arg3[%c0_49, %c2_50, %c0_51, %c0_52] : memref<3x3x128x128xbf16, #tpu.memory_space<vmem>>, vector<1x1x128x128xbf16>
    %79 = vector.shape_cast %78 : vector<1x1x128x128xbf16> to vector<128x128xbf16>
    %cst_53 = arith.constant dense<0.000000e+00> : vector<288x128xf32>
    %80 = tpu.matmul %77, %79, %cst_53 {dimension_numbers = #tpu.dot_dimension_numbers<[1], [0], [0], [1], [0, 0, 1, 1], [], []>} : vector<288x128xbf16>, vector<128x128xbf16>, vector<288x128xf32> -> vector<288x128xf32>
    %81 = arith.addf %76, %80 : vector<288x128xf32>
    %c0_54 = arith.constant 0 : index
    %c0_55 = arith.constant 0 : index
    %82 = vector.load %arg7[%c0_54, %c0_55] : memref<288x128xf32, #tpu.memory_space<vmem>>, vector<288x128xf32>
    tpu.vector_store %arg7[%c0_54, %c0_55], %81 {strides = array<i32>} : memref<288x128xf32, #tpu.memory_space<vmem>>, vector<288x128xf32>,
    %c0_56 = arith.constant 0 : index
    %c0_57 = arith.constant 0 : index
    %83 = vector.load %arg7[%c0_56, %c0_57] : memref<288x128xf32, #tpu.memory_space<vmem>>, vector<288x128xf32>
    %c18 = arith.constant 18 : index
    %c0_58 = arith.constant 0 : index
    %84 = vector.load %arg6[%c18, %c0_58] : memref<342x128xbf16, #tpu.memory_space<vmem>>, vector<288x128xbf16>
    %c1_59 = arith.constant 1 : index
    %c0_60 = arith.constant 0 : index
    %c0_61 = arith.constant 0 : index
    %c0_62 = arith.constant 0 : index
    %85 = vector.load %arg3[%c1_59, %c0_60, %c0_61, %c0_62] : memref<3x3x128x128xbf16, #tpu.memory_space<vmem>>, vector<1x1x128x128xbf16>
    %86 = vector.shape_cast %85 : vector<1x1x128x128xbf16> to vector<128x128xbf16>
    %cst_63 = arith.constant dense<0.000000e+00> : vector<288x128xf32>
    %87 = tpu.matmul %84, %86, %cst_63 {dimension_numbers = #tpu.dot_dimension_numbers<[1], [0], [0], [1], [0, 0, 1, 1], [], []>} : vector<288x128xbf16>, vector<128x128xbf16>, vector<288x128xf32> -> vector<288x128xf32>
    %88 = arith.addf %83, %87 : vector<288x128xf32>
    %c0_64 = arith.constant 0 : index
    %c0_65 = arith.constant 0 : index
    %89 = vector.load %arg7[%c0_64, %c0_65] : memref<288x128xf32, #tpu.memory_space<vmem>>, vector<288x128xf32>
    tpu.vector_store %arg7[%c0_64, %c0_65], %88 {strides = array<i32>} : memref<288x128xf32, #tpu.memory_space<vmem>>, vector<288x128xf32>,
    %c0_66 = arith.constant 0 : index
    %c0_67 = arith.constant 0 : index
    %90 = vector.load %arg7[%c0_66, %c0_67] : memref<288x128xf32, #tpu.memory_space<vmem>>, vector<288x128xf32>
    %c19_68 = arith.constant 19 : index
    %c0_69 = arith.constant 0 : index
    %91 = vector.load %arg6[%c19_68, %c0_69] : memref<342x128xbf16, #tpu.memory_space<vmem>>, vector<288x128xbf16>
    %c1_70 = arith.constant 1 : index
    %c1_71 = arith.constant 1 : index
    %c0_72 = arith.constant 0 : index
    %c0_73 = arith.constant 0 : index
    %92 = vector.load %arg3[%c1_70, %c1_71, %c0_72, %c0_73] : memref<3x3x128x128xbf16, #tpu.memory_space<vmem>>, vector<1x1x128x128xbf16>
    %93 = vector.shape_cast %92 : vector<1x1x128x128xbf16> to vector<128x128xbf16>
    %cst_74 = arith.constant dense<0.000000e+00> : vector<288x128xf32>
    %94 = tpu.matmul %91, %93, %cst_74 {dimension_numbers = #tpu.dot_dimension_numbers<[1], [0], [0], [1], [0, 0, 1, 1], [], []>} : vector<288x128xbf16>, vector<128x128xbf16>, vector<288x128xf32> -> vector<288x128xf32>
    %95 = arith.addf %90, %94 : vector<288x128xf32>
    %c0_75 = arith.constant 0 : index
    %c0_76 = arith.constant 0 : index
    %96 = vector.load %arg7[%c0_75, %c0_76] : memref<288x128xf32, #tpu.memory_space<vmem>>, vector<288x128xf32>
    tpu.vector_store %arg7[%c0_75, %c0_76], %95 {strides = array<i32>} : memref<288x128xf32, #tpu.memory_space<vmem>>, vector<288x128xf32>,
    %c0_77 = arith.constant 0 : index
    %c0_78 = arith.constant 0 : index
    %97 = vector.load %arg7[%c0_77, %c0_78] : memref<288x128xf32, #tpu.memory_space<vmem>>, vector<288x128xf32>
    %c20 = arith.constant 20 : index
    %c0_79 = arith.constant 0 : index
    %98 = vector.load %arg6[%c20, %c0_79] : memref<342x128xbf16, #tpu.memory_space<vmem>>, vector<288x128xbf16>
    %c1_80 = arith.constant 1 : index
    %c2_81 = arith.constant 2 : index
    %c0_82 = arith.constant 0 : index
    %c0_83 = arith.constant 0 : index
    %99 = vector.load %arg3[%c1_80, %c2_81, %c0_82, %c0_83] : memref<3x3x128x128xbf16, #tpu.memory_space<vmem>>, vector<1x1x128x128xbf16>
    %100 = vector.shape_cast %99 : vector<1x1x128x128xbf16> to vector<128x128xbf16>
    %cst_84 = arith.constant dense<0.000000e+00> : vector<288x128xf32>
    %101 = tpu.matmul %98, %100, %cst_84 {dimension_numbers = #tpu.dot_dimension_numbers<[1], [0], [0], [1], [0, 0, 1, 1], [], []>} : vector<288x128xbf16>, vector<128x128xbf16>, vector<288x128xf32> -> vector<288x128xf32>
    %102 = arith.addf %97, %101 : vector<288x128xf32>
    %c0_85 = arith.constant 0 : index
    %c0_86 = arith.constant 0 : index
    %103 = vector.load %arg7[%c0_85, %c0_86] : memref<288x128xf32, #tpu.memory_space<vmem>>, vector<288x128xf32>
    tpu.vector_store %arg7[%c0_85, %c0_86], %102 {strides = array<i32>} : memref<288x128xf32, #tpu.memory_space<vmem>>, vector<288x128xf32>,
    %c0_87 = arith.constant 0 : index
    %c0_88 = arith.constant 0 : index
    %104 = vector.load %arg7[%c0_87, %c0_88] : memref<288x128xf32, #tpu.memory_space<vmem>>, vector<288x128xf32>
    %c36 = arith.constant 36 : index
    %c0_89 = arith.constant 0 : index
    %105 = vector.load %arg6[%c36, %c0_89] : memref<342x128xbf16, #tpu.memory_space<vmem>>, vector<288x128xbf16>
    %c2_90 = arith.constant 2 : index
    %c0_91 = arith.constant 0 : index
    %c0_92 = arith.constant 0 : index
    %c0_93 = arith.constant 0 : index
    %106 = vector.load %arg3[%c2_90, %c0_91, %c0_92, %c0_93] : memref<3x3x128x128xbf16, #tpu.memory_space<vmem>>, vector<1x1x128x128xbf16>
    %107 = vector.shape_cast %106 : vector<1x1x128x128xbf16> to vector<128x128xbf16>
    %cst_94 = arith.constant dense<0.000000e+00> : vector<288x128xf32>
    %108 = tpu.matmul %105, %107, %cst_94 {dimension_numbers = #tpu.dot_dimension_numbers<[1], [0], [0], [1], [0, 0, 1, 1], [], []>} : vector<288x128xbf16>, vector<128x128xbf16>, vector<288x128xf32> -> vector<288x128xf32>
    %109 = arith.addf %104, %108 : vector<288x128xf32>
    %c0_95 = arith.constant 0 : index
    %c0_96 = arith.constant 0 : index
    %110 = vector.load %arg7[%c0_95, %c0_96] : memref<288x128xf32, #tpu.memory_space<vmem>>, vector<288x128xf32>
    tpu.vector_store %arg7[%c0_95, %c0_96], %109 {strides = array<i32>} : memref<288x128xf32, #tpu.memory_space<vmem>>, vector<288x128xf32>,
    %c0_97 = arith.constant 0 : index
    %c0_98 = arith.constant 0 : index
    %111 = vector.load %arg7[%c0_97, %c0_98] : memref<288x128xf32, #tpu.memory_space<vmem>>, vector<288x128xf32>
    %c37_99 = arith.constant 37 : index
    %c0_100 = arith.constant 0 : index
    %112 = vector.load %arg6[%c37_99, %c0_100] : memref<342x128xbf16, #tpu.memory_space<vmem>>, vector<288x128xbf16>
    %c2_101 = arith.constant 2 : index
    %c1_102 = arith.constant 1 : index
    %c0_103 = arith.constant 0 : index
    %c0_104 = arith.constant 0 : index
    %113 = vector.load %arg3[%c2_101, %c1_102, %c0_103, %c0_104] : memref<3x3x128x128xbf16, #tpu.memory_space<vmem>>, vector<1x1x128x128xbf16>
    %114 = vector.shape_cast %113 : vector<1x1x128x128xbf16> to vector<128x128xbf16>
    %cst_105 = arith.constant dense<0.000000e+00> : vector<288x128xf32>
    %115 = tpu.matmul %112, %114, %cst_105 {dimension_numbers = #tpu.dot_dimension_numbers<[1], [0], [0], [1], [0, 0, 1, 1], [], []>} : vector<288x128xbf16>, vector<128x128xbf16>, vector<288x128xf32> -> vector<288x128xf32>
    %116 = arith.addf %111, %115 : vector<288x128xf32>
    %c0_106 = arith.constant 0 : index
    %c0_107 = arith.constant 0 : index
    %117 = vector.load %arg7[%c0_106, %c0_107] : memref<288x128xf32, #tpu.memory_space<vmem>>, vector<288x128xf32>
    tpu.vector_store %arg7[%c0_106, %c0_107], %116 {strides = array<i32>} : memref<288x128xf32, #tpu.memory_space<vmem>>, vector<288x128xf32>,
    %c0_108 = arith.constant 0 : index
    %c0_109 = arith.constant 0 : index
    %118 = vector.load %arg7[%c0_108, %c0_109] : memref<288x128xf32, #tpu.memory_space<vmem>>, vector<288x128xf32>
    %c38 = arith.constant 38 : index
    %c0_110 = arith.constant 0 : index
    %119 = vector.load %arg6[%c38, %c0_110] : memref<342x128xbf16, #tpu.memory_space<vmem>>, vector<288x128xbf16>
    %c2_111 = arith.constant 2 : index
    %c2_112 = arith.constant 2 : index
    %c0_113 = arith.constant 0 : index
    %c0_114 = arith.constant 0 : index
    %120 = vector.load %arg3[%c2_111, %c2_112, %c0_113, %c0_114] : memref<3x3x128x128xbf16, #tpu.memory_space<vmem>>, vector<1x1x128x128xbf16>
    %121 = vector.shape_cast %120 : vector<1x1x128x128xbf16> to vector<128x128xbf16>
    %cst_115 = arith.constant dense<0.000000e+00> : vector<288x128xf32>
    %122 = tpu.matmul %119, %121, %cst_115 {dimension_numbers = #tpu.dot_dimension_numbers<[1], [0], [0], [1], [0, 0, 1, 1], [], []>} : vector<288x128xbf16>, vector<128x128xbf16>, vector<288x128xf32> -> vector<288x128xf32>
    %123 = arith.addf %118, %122 : vector<288x128xf32>
    %c0_116 = arith.constant 0 : index
    %c0_117 = arith.constant 0 : index
    %124 = vector.load %arg7[%c0_116, %c0_117] : memref<288x128xf32, #tpu.memory_space<vmem>>, vector<288x128xf32>
    tpu.vector_store %arg7[%c0_116, %c0_117], %123 {strides = array<i32>} : memref<288x128xf32, #tpu.memory_space<vmem>>, vector<288x128xf32>,
    %c0_118 = arith.constant 0 : index
    %c0_119 = arith.constant 0 : index
    %125 = vector.load %arg7[%c0_118, %c0_119] : memref<288x128xf32, #tpu.memory_space<vmem>>, vector<16x128xf32>
    %cst_120 = arith.constant 0.000000e+00 : f32
    %126 = vector.broadcast %cst_120 : f32 to vector<16x128xf32>
    %127 = arith.maximumf %125, %126 : vector<16x128xf32>
    %128 = arith.truncf %127 : vector<16x128xf32> to vector<16x128xbf16>
    %c0_121 = arith.constant 0 : index
    %c0_122 = arith.constant 0 : index
    %c0_123 = arith.constant 0 : index
    %c0_124 = arith.constant 0 : index
    %129 = vector.load %arg5[%c0_121, %c0_122, %c0_123, %c0_124] : memref<1x16x16x128xbf16, #tpu.memory_space<vmem>>, vector<1x1x16x128xbf16>
    %130 = vector.shape_cast %129 : vector<1x1x16x128xbf16> to vector<16x128xbf16>
    %131 = vector.shape_cast %128 : vector<16x128xbf16> to vector<1x1x16x128xbf16>
    tpu.vector_store %arg5[%c0_121, %c0_122, %c0_123, %c0_124], %131 {strides = array<i32>} : memref<1x16x16x128xbf16, #tpu.memory_space<vmem>>, vector<1x1x16x128xbf16>,
    %c18_125 = arith.constant 18 : index
    %c0_126 = arith.constant 0 : index
    %132 = vector.load %arg7[%c18_125, %c0_126] : memref<288x128xf32, #tpu.memory_space<vmem>>, vector<16x128xf32>
    %cst_127 = arith.constant 0.000000e+00 : f32
    %133 = vector.broadcast %cst_127 : f32 to vector<16x128xf32>
    %134 = arith.maximumf %132, %133 : vector<16x128xf32>
    %135 = arith.truncf %134 : vector<16x128xf32> to vector<16x128xbf16>
    %c0_128 = arith.constant 0 : index
    %c1_129 = arith.constant 1 : index
    %c0_130 = arith.constant 0 : index
    %c0_131 = arith.constant 0 : index
    %136 = vector.load %arg5[%c0_128, %c1_129, %c0_130, %c0_131] : memref<1x16x16x128xbf16, #tpu.memory_space<vmem>>, vector<1x1x16x128xbf16>
    %137 = vector.shape_cast %136 : vector<1x1x16x128xbf16> to vector<16x128xbf16>
    %138 = vector.shape_cast %135 : vector<16x128xbf16> to vector<1x1x16x128xbf16>
    tpu.vector_store %arg5[%c0_128, %c1_129, %c0_130, %c0_131], %138 {strides = array<i32>} : memref<1x16x16x128xbf16, #tpu.memory_space<vmem>>, vector<1x1x16x128xbf16>,
    %c36_132 = arith.constant 36 : index
    %c0_133 = arith.constant 0 : index
    %139 = vector.load %arg7[%c36_132, %c0_133] : memref<288x128xf32, #tpu.memory_space<vmem>>, vector<16x128xf32>
    %cst_134 = arith.constant 0.000000e+00 : f32
    %140 = vector.broadcast %cst_134 : f32 to vector<16x128xf32>
    %141 = arith.maximumf %139, %140 : vector<16x128xf32>
    %142 = arith.truncf %141 : vector<16x128xf32> to vector<16x128xbf16>
    %c0_135 = arith.constant 0 : index
    %c2_136 = arith.constant 2 : index
    %c0_137 = arith.constant 0 : index
    %c0_138 = arith.constant 0 : index
    %143 = vector.load %arg5[%c0_135, %c2_136, %c0_137, %c0_138] : memref<1x16x16x128xbf16, #tpu.memory_space<vmem>>, vector<1x1x16x128xbf16>
    %144 = vector.shape_cast %143 : vector<1x1x16x128xbf16> to vector<16x128xbf16>
    %145 = vector.shape_cast %142 : vector<16x128xbf16> to vector<1x1x16x128xbf16>
    tpu.vector_store %arg5[%c0_135, %c2_136, %c0_137, %c0_138], %145 {strides = array<i32>} : memref<1x16x16x128xbf16, #tpu.memory_space<vmem>>, vector<1x1x16x128xbf16>,
    %c54 = arith.constant 54 : index
    %c0_139 = arith.constant 0 : index
    %146 = vector.load %arg7[%c54, %c0_139] : memref<288x128xf32, #tpu.memory_space<vmem>>, vector<16x128xf32>
    %cst_140 = arith.constant 0.000000e+00 : f32
    %147 = vector.broadcast %cst_140 : f32 to vector<16x128xf32>
    %148 = arith.maximumf %146, %147 : vector<16x128xf32>
    %149 = arith.truncf %148 : vector<16x128xf32> to vector<16x128xbf16>
    %c0_141 = arith.constant 0 : index
    %c3 = arith.constant 3 : index
    %c0_142 = arith.constant 0 : index
    %c0_143 = arith.constant 0 : index
    %150 = vector.load %arg5[%c0_141, %c3, %c0_142, %c0_143] : memref<1x16x16x128xbf16, #tpu.memory_space<vmem>>, vector<1x1x16x128xbf16>
    %151 = vector.shape_cast %150 : vector<1x1x16x128xbf16> to vector<16x128xbf16>
    %152 = vector.shape_cast %149 : vector<16x128xbf16> to vector<1x1x16x128xbf16>
    tpu.vector_store %arg5[%c0_141, %c3, %c0_142, %c0_143], %152 {strides = array<i32>} : memref<1x16x16x128xbf16, #tpu.memory_space<vmem>>, vector<1x1x16x128xbf16>,
    %c72 = arith.constant 72 : index
    %c0_144 = arith.constant 0 : index
    %153 = vector.load %arg7[%c72, %c0_144] : memref<288x128xf32, #tpu.memory_space<vmem>>, vector<16x128xf32>
    %cst_145 = arith.constant 0.000000e+00 : f32
    %154 = vector.broadcast %cst_145 : f32 to vector<16x128xf32>
    %155 = arith.maximumf %153, %154 : vector<16x128xf32>
    %156 = arith.truncf %155 : vector<16x128xf32> to vector<16x128xbf16>
    %c0_146 = arith.constant 0 : index
    %c4 = arith.constant 4 : index
    %c0_147 = arith.constant 0 : index
    %c0_148 = arith.constant 0 : index
    %157 = vector.load %arg5[%c0_146, %c4, %c0_147, %c0_148] : memref<1x16x16x128xbf16, #tpu.memory_space<vmem>>, vector<1x1x16x128xbf16>
    %158 = vector.shape_cast %157 : vector<1x1x16x128xbf16> to vector<16x128xbf16>
    %159 = vector.shape_cast %156 : vector<16x128xbf16> to vector<1x1x16x128xbf16>
    tpu.vector_store %arg5[%c0_146, %c4, %c0_147, %c0_148], %159 {strides = array<i32>} : memref<1x16x16x128xbf16, #tpu.memory_space<vmem>>, vector<1x1x16x128xbf16>,
    %c90 = arith.constant 90 : index
    %c0_149 = arith.constant 0 : index
    %160 = vector.load %arg7[%c90, %c0_149] : memref<288x128xf32, #tpu.memory_space<vmem>>, vector<16x128xf32>
    %cst_150 = arith.constant 0.000000e+00 : f32
    %161 = vector.broadcast %cst_150 : f32 to vector<16x128xf32>
    %162 = arith.maximumf %160, %161 : vector<16x128xf32>
    %163 = arith.truncf %162 : vector<16x128xf32> to vector<16x128xbf16>
    %c0_151 = arith.constant 0 : index
    %c5 = arith.constant 5 : index
    %c0_152 = arith.constant 0 : index
    %c0_153 = arith.constant 0 : index
    %164 = vector.load %arg5[%c0_151, %c5, %c0_152, %c0_153] : memref<1x16x16x128xbf16, #tpu.memory_space<vmem>>, vector<1x1x16x128xbf16>
    %165 = vector.shape_cast %164 : vector<1x1x16x128xbf16> to vector<16x128xbf16>
    %166 = vector.shape_cast %163 : vector<16x128xbf16> to vector<1x1x16x128xbf16>
    tpu.vector_store %arg5[%c0_151, %c5, %c0_152, %c0_153], %166 {strides = array<i32>} : memref<1x16x16x128xbf16, #tpu.memory_space<vmem>>, vector<1x1x16x128xbf16>,
    %c108 = arith.constant 108 : index
    %c0_154 = arith.constant 0 : index
    %167 = vector.load %arg7[%c108, %c0_154] : memref<288x128xf32, #tpu.memory_space<vmem>>, vector<16x128xf32>
    %cst_155 = arith.constant 0.000000e+00 : f32
    %168 = vector.broadcast %cst_155 : f32 to vector<16x128xf32>
    %169 = arith.maximumf %167, %168 : vector<16x128xf32>
    %170 = arith.truncf %169 : vector<16x128xf32> to vector<16x128xbf16>
    %c0_156 = arith.constant 0 : index
    %c6 = arith.constant 6 : index
    %c0_157 = arith.constant 0 : index
    %c0_158 = arith.constant 0 : index
    %171 = vector.load %arg5[%c0_156, %c6, %c0_157, %c0_158] : memref<1x16x16x128xbf16, #tpu.memory_space<vmem>>, vector<1x1x16x128xbf16>
    %172 = vector.shape_cast %171 : vector<1x1x16x128xbf16> to vector<16x128xbf16>
    %173 = vector.shape_cast %170 : vector<16x128xbf16> to vector<1x1x16x128xbf16>
    tpu.vector_store %arg5[%c0_156, %c6, %c0_157, %c0_158], %173 {strides = array<i32>} : memref<1x16x16x128xbf16, #tpu.memory_space<vmem>>, vector<1x1x16x128xbf16>,
    %c126 = arith.constant 126 : index
    %c0_159 = arith.constant 0 : index
    %174 = vector.load %arg7[%c126, %c0_159] : memref<288x128xf32, #tpu.memory_space<vmem>>, vector<16x128xf32>
    %cst_160 = arith.constant 0.000000e+00 : f32
    %175 = vector.broadcast %cst_160 : f32 to vector<16x128xf32>
    %176 = arith.maximumf %174, %175 : vector<16x128xf32>
    %177 = arith.truncf %176 : vector<16x128xf32> to vector<16x128xbf16>
    %c0_161 = arith.constant 0 : index
    %c7 = arith.constant 7 : index
    %c0_162 = arith.constant 0 : index
    %c0_163 = arith.constant 0 : index
    %178 = vector.load %arg5[%c0_161, %c7, %c0_162, %c0_163] : memref<1x16x16x128xbf16, #tpu.memory_space<vmem>>, vector<1x1x16x128xbf16>
    %179 = vector.shape_cast %178 : vector<1x1x16x128xbf16> to vector<16x128xbf16>
    %180 = vector.shape_cast %177 : vector<16x128xbf16> to vector<1x1x16x128xbf16>
    tpu.vector_store %arg5[%c0_161, %c7, %c0_162, %c0_163], %180 {strides = array<i32>} : memref<1x16x16x128xbf16, #tpu.memory_space<vmem>>, vector<1x1x16x128xbf16>,
    %c144 = arith.constant 144 : index
    %c0_164 = arith.constant 0 : index
    %181 = vector.load %arg7[%c144, %c0_164] : memref<288x128xf32, #tpu.memory_space<vmem>>, vector<16x128xf32>
    %cst_165 = arith.constant 0.000000e+00 : f32
    %182 = vector.broadcast %cst_165 : f32 to vector<16x128xf32>
    %183 = arith.maximumf %181, %182 : vector<16x128xf32>
    %184 = arith.truncf %183 : vector<16x128xf32> to vector<16x128xbf16>
    %c0_166 = arith.constant 0 : index
    %c8 = arith.constant 8 : index
    %c0_167 = arith.constant 0 : index
    %c0_168 = arith.constant 0 : index
    %185 = vector.load %arg5[%c0_166, %c8, %c0_167, %c0_168] : memref<1x16x16x128xbf16, #tpu.memory_space<vmem>>, vector<1x1x16x128xbf16>
    %186 = vector.shape_cast %185 : vector<1x1x16x128xbf16> to vector<16x128xbf16>
    %187 = vector.shape_cast %184 : vector<16x128xbf16> to vector<1x1x16x128xbf16>
    tpu.vector_store %arg5[%c0_166, %c8, %c0_167, %c0_168], %187 {strides = array<i32>} : memref<1x16x16x128xbf16, #tpu.memory_space<vmem>>, vector<1x1x16x128xbf16>,
    %c162 = arith.constant 162 : index
    %c0_169 = arith.constant 0 : index
    %188 = vector.load %arg7[%c162, %c0_169] : memref<288x128xf32, #tpu.memory_space<vmem>>, vector<16x128xf32>
    %cst_170 = arith.constant 0.000000e+00 : f32
    %189 = vector.broadcast %cst_170 : f32 to vector<16x128xf32>
    %190 = arith.maximumf %188, %189 : vector<16x128xf32>
    %191 = arith.truncf %190 : vector<16x128xf32> to vector<16x128xbf16>
    %c0_171 = arith.constant 0 : index
    %c9 = arith.constant 9 : index
    %c0_172 = arith.constant 0 : index
    %c0_173 = arith.constant 0 : index
    %192 = vector.load %arg5[%c0_171, %c9, %c0_172, %c0_173] : memref<1x16x16x128xbf16, #tpu.memory_space<vmem>>, vector<1x1x16x128xbf16>
    %193 = vector.shape_cast %192 : vector<1x1x16x128xbf16> to vector<16x128xbf16>
    %194 = vector.shape_cast %191 : vector<16x128xbf16> to vector<1x1x16x128xbf16>
    tpu.vector_store %arg5[%c0_171, %c9, %c0_172, %c0_173], %194 {strides = array<i32>} : memref<1x16x16x128xbf16, #tpu.memory_space<vmem>>, vector<1x1x16x128xbf16>,
    %c180 = arith.constant 180 : index
    %c0_174 = arith.constant 0 : index
    %195 = vector.load %arg7[%c180, %c0_174] : memref<288x128xf32, #tpu.memory_space<vmem>>, vector<16x128xf32>
    %cst_175 = arith.constant 0.000000e+00 : f32
    %196 = vector.broadcast %cst_175 : f32 to vector<16x128xf32>
    %197 = arith.maximumf %195, %196 : vector<16x128xf32>
    %198 = arith.truncf %197 : vector<16x128xf32> to vector<16x128xbf16>
    %c0_176 = arith.constant 0 : index
    %c10 = arith.constant 10 : index
    %c0_177 = arith.constant 0 : index
    %c0_178 = arith.constant 0 : index
    %199 = vector.load %arg5[%c0_176, %c10, %c0_177, %c0_178] : memref<1x16x16x128xbf16, #tpu.memory_space<vmem>>, vector<1x1x16x128xbf16>
    %200 = vector.shape_cast %199 : vector<1x1x16x128xbf16> to vector<16x128xbf16>
    %201 = vector.shape_cast %198 : vector<16x128xbf16> to vector<1x1x16x128xbf16>
    tpu.vector_store %arg5[%c0_176, %c10, %c0_177, %c0_178], %201 {strides = array<i32>} : memref<1x16x16x128xbf16, #tpu.memory_space<vmem>>, vector<1x1x16x128xbf16>,
    %c198 = arith.constant 198 : index
    %c0_179 = arith.constant 0 : index
    %202 = vector.load %arg7[%c198, %c0_179] : memref<288x128xf32, #tpu.memory_space<vmem>>, vector<16x128xf32>
    %cst_180 = arith.constant 0.000000e+00 : f32
    %203 = vector.broadcast %cst_180 : f32 to vector<16x128xf32>
    %204 = arith.maximumf %202, %203 : vector<16x128xf32>
    %205 = arith.truncf %204 : vector<16x128xf32> to vector<16x128xbf16>
    %c0_181 = arith.constant 0 : index
    %c11 = arith.constant 11 : index
    %c0_182 = arith.constant 0 : index
    %c0_183 = arith.constant 0 : index
    %206 = vector.load %arg5[%c0_181, %c11, %c0_182, %c0_183] : memref<1x16x16x128xbf16, #tpu.memory_space<vmem>>, vector<1x1x16x128xbf16>
    %207 = vector.shape_cast %206 : vector<1x1x16x128xbf16> to vector<16x128xbf16>
    %208 = vector.shape_cast %205 : vector<16x128xbf16> to vector<1x1x16x128xbf16>
    tpu.vector_store %arg5[%c0_181, %c11, %c0_182, %c0_183], %208 {strides = array<i32>} : memref<1x16x16x128xbf16, #tpu.memory_space<vmem>>, vector<1x1x16x128xbf16>,
    %c216 = arith.constant 216 : index
    %c0_184 = arith.constant 0 : index
    %209 = vector.load %arg7[%c216, %c0_184] : memref<288x128xf32, #tpu.memory_space<vmem>>, vector<16x128xf32>
    %cst_185 = arith.constant 0.000000e+00 : f32
    %210 = vector.broadcast %cst_185 : f32 to vector<16x128xf32>
    %211 = arith.maximumf %209, %210 : vector<16x128xf32>
    %212 = arith.truncf %211 : vector<16x128xf32> to vector<16x128xbf16>
    %c0_186 = arith.constant 0 : index
    %c12 = arith.constant 12 : index
    %c0_187 = arith.constant 0 : index
    %c0_188 = arith.constant 0 : index
    %213 = vector.load %arg5[%c0_186, %c12, %c0_187, %c0_188] : memref<1x16x16x128xbf16, #tpu.memory_space<vmem>>, vector<1x1x16x128xbf16>
    %214 = vector.shape_cast %213 : vector<1x1x16x128xbf16> to vector<16x128xbf16>
    %215 = vector.shape_cast %212 : vector<16x128xbf16> to vector<1x1x16x128xbf16>
    tpu.vector_store %arg5[%c0_186, %c12, %c0_187, %c0_188], %215 {strides = array<i32>} : memref<1x16x16x128xbf16, #tpu.memory_space<vmem>>, vector<1x1x16x128xbf16>,
    %c234 = arith.constant 234 : index
    %c0_189 = arith.constant 0 : index
    %216 = vector.load %arg7[%c234, %c0_189] : memref<288x128xf32, #tpu.memory_space<vmem>>, vector<16x128xf32>
    %cst_190 = arith.constant 0.000000e+00 : f32
    %217 = vector.broadcast %cst_190 : f32 to vector<16x128xf32>
    %218 = arith.maximumf %216, %217 : vector<16x128xf32>
    %219 = arith.truncf %218 : vector<16x128xf32> to vector<16x128xbf16>
    %c0_191 = arith.constant 0 : index
    %c13 = arith.constant 13 : index
    %c0_192 = arith.constant 0 : index
    %c0_193 = arith.constant 0 : index
    %220 = vector.load %arg5[%c0_191, %c13, %c0_192, %c0_193] : memref<1x16x16x128xbf16, #tpu.memory_space<vmem>>, vector<1x1x16x128xbf16>
    %221 = vector.shape_cast %220 : vector<1x1x16x128xbf16> to vector<16x128xbf16>
    %222 = vector.shape_cast %219 : vector<16x128xbf16> to vector<1x1x16x128xbf16>
    tpu.vector_store %arg5[%c0_191, %c13, %c0_192, %c0_193], %222 {strides = array<i32>} : memref<1x16x16x128xbf16, #tpu.memory_space<vmem>>, vector<1x1x16x128xbf16>,
    %c252 = arith.constant 252 : index
    %c0_194 = arith.constant 0 : index
    %223 = vector.load %arg7[%c252, %c0_194] : memref<288x128xf32, #tpu.memory_space<vmem>>, vector<16x128xf32>
    %cst_195 = arith.constant 0.000000e+00 : f32
    %224 = vector.broadcast %cst_195 : f32 to vector<16x128xf32>
    %225 = arith.maximumf %223, %224 : vector<16x128xf32>
    %226 = arith.truncf %225 : vector<16x128xf32> to vector<16x128xbf16>
    %c0_196 = arith.constant 0 : index
    %c14 = arith.constant 14 : index
    %c0_197 = arith.constant 0 : index
    %c0_198 = arith.constant 0 : index
    %227 = vector.load %arg5[%c0_196, %c14, %c0_197, %c0_198] : memref<1x16x16x128xbf16, #tpu.memory_space<vmem>>, vector<1x1x16x128xbf16>
    %228 = vector.shape_cast %227 : vector<1x1x16x128xbf16> to vector<16x128xbf16>
    %229 = vector.shape_cast %226 : vector<16x128xbf16> to vector<1x1x16x128xbf16>
    tpu.vector_store %arg5[%c0_196, %c14, %c0_197, %c0_198], %229 {strides = array<i32>} : memref<1x16x16x128xbf16, #tpu.memory_space<vmem>>, vector<1x1x16x128xbf16>,
    %c270 = arith.constant 270 : index
    %c0_199 = arith.constant 0 : index
    %230 = vector.load %arg7[%c270, %c0_199] : memref<288x128xf32, #tpu.memory_space<vmem>>, vector<16x128xf32>
    %cst_200 = arith.constant 0.000000e+00 : f32
    %231 = vector.broadcast %cst_200 : f32 to vector<16x128xf32>
    %232 = arith.maximumf %230, %231 : vector<16x128xf32>
    %233 = arith.truncf %232 : vector<16x128xf32> to vector<16x128xbf16>
    %c0_201 = arith.constant 0 : index
    %c15 = arith.constant 15 : index
    %c0_202 = arith.constant 0 : index
    %c0_203 = arith.constant 0 : index
    %234 = vector.load %arg5[%c0_201, %c15, %c0_202, %c0_203] : memref<1x16x16x128xbf16, #tpu.memory_space<vmem>>, vector<1x1x16x128xbf16>
    %235 = vector.shape_cast %234 : vector<1x1x16x128xbf16> to vector<16x128xbf16>
    %236 = vector.shape_cast %233 : vector<16x128xbf16> to vector<1x1x16x128xbf16>
    tpu.vector_store %arg5[%c0_201, %c15, %c0_202, %c0_203], %236 {strides = array<i32>} : memref<1x16x16x128xbf16, #tpu.memory_space<vmem>>, vector<1x1x16x128xbf16>,
    return
  }
  func.func @transform_0(%arg0: i32, %arg1: i32) -> (i32, i32, i32, i32) {
    %c0_i32 = arith.constant 0 : i32
    %c0_i32_0 = arith.constant 0 : i32
    %c0_i32_1 = arith.constant 0 : i32
    %c0_i32_2 = arith.constant 0 : i32
    return %arg0, %c0_i32, %c0_i32_0, %c0_i32_1 : i32, i32, i32, i32
  }
  func.func @transform_1(%arg0: i32, %arg1: i32) -> (i32, i32, i32, i32) {
    %c0_i32 = arith.constant 0 : i32
    %c0_i32_0 = arith.constant 0 : i32
    %c0_i32_1 = arith.constant 0 : i32
    %c0_i32_2 = arith.constant 0 : i32
    return %c0_i32, %c0_i32_0, %c0_i32_1, %arg1 : i32, i32, i32, i32
  }
  func.func @transform_2(%arg0: i32, %arg1: i32) -> (i32, i32) {
    %c0_i32 = arith.constant 0 : i32
    %c0_i32_0 = arith.constant 0 : i32
    return %c0_i32, %arg1 : i32, i32
  }
  func.func @transform_3(%arg0: i32, %arg1: i32) -> (i32, i32, i32, i32) {
    %c0_i32 = arith.constant 0 : i32
    %c0_i32_0 = arith.constant 0 : i32
    %c0_i32_1 = arith.constant 0 : i32
    return %arg0, %c0_i32, %c0_i32_0, %arg1 : i32, i32, i32, i32
  }
}

module attributes {stable_mosaic.version = 11 : i64} {
  func.func @_conv3x3_bn_relu_kernel(%arg0: i32, %arg1: i32, %arg2: memref<1x16x16x128xbf16, #tpu.memory_space<vmem>>, %arg3: memref<3x3x128x128xbf16, #tpu.memory_space<vmem>>, %arg4: memref<1x128xf32, #tpu.memory_space<vmem>>, %arg5: memref<1x16x16x128xbf16, #tpu.memory_space<vmem>>, %arg6: memref<342x128xbf16, #tpu.memory_space<vmem>>, %arg7: memref<288x128xf32, #tpu.memory_space<vmem>>) attributes {dimension_semantics = [#tpu.dimension_semantics<parallel>, #tpu.dimension_semantics<parallel>], iteration_bounds = array<i64: 2, 1>, scalar_prefetch = 0 : i64, scratch_operands = 2 : i64, tpu.core_type = #tpu.core_type<tc>, window_params = [{transform_indices = @transform_0, window_bounds = array<i64: 1, 16, 16, 128>}, {transform_indices = @transform_1, window_bounds = array<i64: 3, 3, 128, 128>}, {transform_indices = @transform_2, window_bounds = array<i64: 1, 128>}, {transform_indices = @transform_3, window_bounds = array<i64: 1, 16, 16, 128>}]} {
    %cst = arith.constant 0.000000e+00 : bf16
    %0 = vector.broadcast %cst : bf16 to vector<342x128xbf16>
    %c0 = arith.constant 0 : index
    %c0_0 = arith.constant 0 : index
    %1 = vector.load %arg6[%c0, %c0_0] : memref<342x128xbf16, #tpu.memory_space<vmem>>, vector<342x128xbf16>
    tpu.vector_store %arg6[%c0, %c0_0], %0 {strides = array<i32>} : memref<342x128xbf16, #tpu.memory_space<vmem>>, vector<342x128xbf16>,
    %c0_1 = arith.constant 0 : index
    %c0_2 = arith.constant 0 : index
    %c0_3 = arith.constant 0 : index
    %c0_4 = arith.constant 0 : index
    %2 = vector.load %arg2[%c0_1, %c0_2, %c0_3, %c0_4] : memref<1x16x16x128xbf16, #tpu.memory_space<vmem>>, vector<1x1x16x128xbf16>
    %3 = vector.shape_cast %2 : vector<1x1x16x128xbf16> to vector<16x128xbf16>
    %c19 = arith.constant 19 : index
    %c0_5 = arith.constant 0 : index
    %4 = vector.load %arg6[%c19, %c0_5] : memref<342x128xbf16, #tpu.memory_space<vmem>>, vector<16x128xbf16>
    tpu.vector_store %arg6[%c19, %c0_5], %3 {strides = array<i32>} : memref<342x128xbf16, #tpu.memory_space<vmem>>, vector<16x128xbf16>,
    %c0_6 = arith.constant 0 : index
    %c1 = arith.constant 1 : index
    %c0_7 = arith.constant 0 : index
    %c0_8 = arith.constant 0 : index
    %5 = vector.load %arg2[%c0_6, %c1, %c0_7, %c0_8] : memref<1x16x16x128xbf16, #tpu.memory_space<vmem>>, vector<1x1x16x128xbf16>
    %6 = vector.shape_cast %5 : vector<1x1x16x128xbf16> to vector<16x128xbf16>
    %c37 = arith.constant 37 : index
    %c0_9 = arith.constant 0 : index
    %7 = vector.load %arg6[%c37, %c0_9] : memref<342x128xbf16, #tpu.memory_space<vmem>>, vector<16x128xbf16>
    tpu.vector_store %arg6[%c37, %c0_9], %6 {strides = array<i32>} : memref<342x128xbf16, #tpu.memory_space<vmem>>, vector<16x128xbf16>,
    %c0_10 = arith.constant 0 : index
    %c2 = arith.constant 2 : index
    %c0_11 = arith.constant 0 : index
    %c0_12 = arith.constant 0 : index
    %8 = vector.load %arg2[%c0_10, %c2, %c0_11, %c0_12] : memref<1x16x16x128xbf16, #tpu.memory_space<vmem>>, vector<1x1x16x128xbf16>
    %9 = vector.shape_cast %8 : vector<1x1x16x128xbf16> to vector<16x128xbf16>
    %c55 = arith.constant 55 : index
    %c0_13 = arith.constant 0 : index
    %10 = vector.load %arg6[%c55, %c0_13] : memref<342x128xbf16, #tpu.memory_space<vmem>>, vector<16x128xbf16>
    tpu.vector_store %arg6[%c55, %c0_13], %9 {strides = array<i32>} : memref<342x128xbf16, #tpu.memory_space<vmem>>, vector<16x128xbf16>,
    %c0_14 = arith.constant 0 : index
    %c3 = arith.constant 3 : index
    %c0_15 = arith.constant 0 : index
    %c0_16 = arith.constant 0 : index
    %11 = vector.load %arg2[%c0_14, %c3, %c0_15, %c0_16] : memref<1x16x16x128xbf16, #tpu.memory_space<vmem>>, vector<1x1x16x128xbf16>
    %12 = vector.shape_cast %11 : vector<1x1x16x128xbf16> to vector<16x128xbf16>
    %c73 = arith.constant 73 : index
    %c0_17 = arith.constant 0 : index
    %13 = vector.load %arg6[%c73, %c0_17] : memref<342x128xbf16, #tpu.memory_space<vmem>>, vector<16x128xbf16>
    tpu.vector_store %arg6[%c73, %c0_17], %12 {strides = array<i32>} : memref<342x128xbf16, #tpu.memory_space<vmem>>, vector<16x128xbf16>,
    %c0_18 = arith.constant 0 : index
    %c4 = arith.constant 4 : index
    %c0_19 = arith.constant 0 : index
    %c0_20 = arith.constant 0 : index
    %14 = vector.load %arg2[%c0_18, %c4, %c0_19, %c0_20] : memref<1x16x16x128xbf16, #tpu.memory_space<vmem>>, vector<1x1x16x128xbf16>
    %15 = vector.shape_cast %14 : vector<1x1x16x128xbf16> to vector<16x128xbf16>
    %c91 = arith.constant 91 : index
    %c0_21 = arith.constant 0 : index
    %16 = vector.load %arg6[%c91, %c0_21] : memref<342x128xbf16, #tpu.memory_space<vmem>>, vector<16x128xbf16>
    tpu.vector_store %arg6[%c91, %c0_21], %15 {strides = array<i32>} : memref<342x128xbf16, #tpu.memory_space<vmem>>, vector<16x128xbf16>,
    %c0_22 = arith.constant 0 : index
    %c5 = arith.constant 5 : index
    %c0_23 = arith.constant 0 : index
    %c0_24 = arith.constant 0 : index
    %17 = vector.load %arg2[%c0_22, %c5, %c0_23, %c0_24] : memref<1x16x16x128xbf16, #tpu.memory_space<vmem>>, vector<1x1x16x128xbf16>
    %18 = vector.shape_cast %17 : vector<1x1x16x128xbf16> to vector<16x128xbf16>
    %c109 = arith.constant 109 : index
    %c0_25 = arith.constant 0 : index
    %19 = vector.load %arg6[%c109, %c0_25] : memref<342x128xbf16, #tpu.memory_space<vmem>>, vector<16x128xbf16>
    tpu.vector_store %arg6[%c109, %c0_25], %18 {strides = array<i32>} : memref<342x128xbf16, #tpu.memory_space<vmem>>, vector<16x128xbf16>,
    %c0_26 = arith.constant 0 : index
    %c6 = arith.constant 6 : index
    %c0_27 = arith.constant 0 : index
    %c0_28 = arith.constant 0 : index
    %20 = vector.load %arg2[%c0_26, %c6, %c0_27, %c0_28] : memref<1x16x16x128xbf16, #tpu.memory_space<vmem>>, vector<1x1x16x128xbf16>
    %21 = vector.shape_cast %20 : vector<1x1x16x128xbf16> to vector<16x128xbf16>
    %c127 = arith.constant 127 : index
    %c0_29 = arith.constant 0 : index
    %22 = vector.load %arg6[%c127, %c0_29] : memref<342x128xbf16, #tpu.memory_space<vmem>>, vector<16x128xbf16>
    tpu.vector_store %arg6[%c127, %c0_29], %21 {strides = array<i32>} : memref<342x128xbf16, #tpu.memory_space<vmem>>, vector<16x128xbf16>,
    %c0_30 = arith.constant 0 : index
    %c7 = arith.constant 7 : index
    %c0_31 = arith.constant 0 : index
    %c0_32 = arith.constant 0 : index
    %23 = vector.load %arg2[%c0_30, %c7, %c0_31, %c0_32] : memref<1x16x16x128xbf16, #tpu.memory_space<vmem>>, vector<1x1x16x128xbf16>
    %24 = vector.shape_cast %23 : vector<1x1x16x128xbf16> to vector<16x128xbf16>
    %c145 = arith.constant 145 : index
    %c0_33 = arith.constant 0 : index
    %25 = vector.load %arg6[%c145, %c0_33] : memref<342x128xbf16, #tpu.memory_space<vmem>>, vector<16x128xbf16>
    tpu.vector_store %arg6[%c145, %c0_33], %24 {strides = array<i32>} : memref<342x128xbf16, #tpu.memory_space<vmem>>, vector<16x128xbf16>,
    %c0_34 = arith.constant 0 : index
    %c8 = arith.constant 8 : index
    %c0_35 = arith.constant 0 : index
    %c0_36 = arith.constant 0 : index
    %26 = vector.load %arg2[%c0_34, %c8, %c0_35, %c0_36] : memref<1x16x16x128xbf16, #tpu.memory_space<vmem>>, vector<1x1x16x128xbf16>
    %27 = vector.shape_cast %26 : vector<1x1x16x128xbf16> to vector<16x128xbf16>
    %c163 = arith.constant 163 : index
    %c0_37 = arith.constant 0 : index
    %28 = vector.load %arg6[%c163, %c0_37] : memref<342x128xbf16, #tpu.memory_space<vmem>>, vector<16x128xbf16>
    tpu.vector_store %arg6[%c163, %c0_37], %27 {strides = array<i32>} : memref<342x128xbf16, #tpu.memory_space<vmem>>, vector<16x128xbf16>,
    %c0_38 = arith.constant 0 : index
    %c9 = arith.constant 9 : index
    %c0_39 = arith.constant 0 : index
    %c0_40 = arith.constant 0 : index
    %29 = vector.load %arg2[%c0_38, %c9, %c0_39, %c0_40] : memref<1x16x16x128xbf16, #tpu.memory_space<vmem>>, vector<1x1x16x128xbf16>
    %30 = vector.shape_cast %29 : vector<1x1x16x128xbf16> to vector<16x128xbf16>
    %c181 = arith.constant 181 : index
    %c0_41 = arith.constant 0 : index
    %31 = vector.load %arg6[%c181, %c0_41] : memref<342x128xbf16, #tpu.memory_space<vmem>>, vector<16x128xbf16>
    tpu.vector_store %arg6[%c181, %c0_41], %30 {strides = array<i32>} : memref<342x128xbf16, #tpu.memory_space<vmem>>, vector<16x128xbf16>,
    %c0_42 = arith.constant 0 : index
    %c10 = arith.constant 10 : index
    %c0_43 = arith.constant 0 : index
    %c0_44 = arith.constant 0 : index
    %32 = vector.load %arg2[%c0_42, %c10, %c0_43, %c0_44] : memref<1x16x16x128xbf16, #tpu.memory_space<vmem>>, vector<1x1x16x128xbf16>
    %33 = vector.shape_cast %32 : vector<1x1x16x128xbf16> to vector<16x128xbf16>
    %c199 = arith.constant 199 : index
    %c0_45 = arith.constant 0 : index
    %34 = vector.load %arg6[%c199, %c0_45] : memref<342x128xbf16, #tpu.memory_space<vmem>>, vector<16x128xbf16>
    tpu.vector_store %arg6[%c199, %c0_45], %33 {strides = array<i32>} : memref<342x128xbf16, #tpu.memory_space<vmem>>, vector<16x128xbf16>,
    %c0_46 = arith.constant 0 : index
    %c11 = arith.constant 11 : index
    %c0_47 = arith.constant 0 : index
    %c0_48 = arith.constant 0 : index
    %35 = vector.load %arg2[%c0_46, %c11, %c0_47, %c0_48] : memref<1x16x16x128xbf16, #tpu.memory_space<vmem>>, vector<1x1x16x128xbf16>
    %36 = vector.shape_cast %35 : vector<1x1x16x128xbf16> to vector<16x128xbf16>
    %c217 = arith.constant 217 : index
    %c0_49 = arith.constant 0 : index
    %37 = vector.load %arg6[%c217, %c0_49] : memref<342x128xbf16, #tpu.memory_space<vmem>>, vector<16x128xbf16>
    tpu.vector_store %arg6[%c217, %c0_49], %36 {strides = array<i32>} : memref<342x128xbf16, #tpu.memory_space<vmem>>, vector<16x128xbf16>,
    %c0_50 = arith.constant 0 : index
    %c12 = arith.constant 12 : index
    %c0_51 = arith.constant 0 : index
    %c0_52 = arith.constant 0 : index
    %38 = vector.load %arg2[%c0_50, %c12, %c0_51, %c0_52] : memref<1x16x16x128xbf16, #tpu.memory_space<vmem>>, vector<1x1x16x128xbf16>
    %39 = vector.shape_cast %38 : vector<1x1x16x128xbf16> to vector<16x128xbf16>
    %c235 = arith.constant 235 : index
    %c0_53 = arith.constant 0 : index
    %40 = vector.load %arg6[%c235, %c0_53] : memref<342x128xbf16, #tpu.memory_space<vmem>>, vector<16x128xbf16>
    tpu.vector_store %arg6[%c235, %c0_53], %39 {strides = array<i32>} : memref<342x128xbf16, #tpu.memory_space<vmem>>, vector<16x128xbf16>,
    %c0_54 = arith.constant 0 : index
    %c13 = arith.constant 13 : index
    %c0_55 = arith.constant 0 : index
    %c0_56 = arith.constant 0 : index
    %41 = vector.load %arg2[%c0_54, %c13, %c0_55, %c0_56] : memref<1x16x16x128xbf16, #tpu.memory_space<vmem>>, vector<1x1x16x128xbf16>
    %42 = vector.shape_cast %41 : vector<1x1x16x128xbf16> to vector<16x128xbf16>
    %c253 = arith.constant 253 : index
    %c0_57 = arith.constant 0 : index
    %43 = vector.load %arg6[%c253, %c0_57] : memref<342x128xbf16, #tpu.memory_space<vmem>>, vector<16x128xbf16>
    tpu.vector_store %arg6[%c253, %c0_57], %42 {strides = array<i32>} : memref<342x128xbf16, #tpu.memory_space<vmem>>, vector<16x128xbf16>,
    %c0_58 = arith.constant 0 : index
    %c14 = arith.constant 14 : index
    %c0_59 = arith.constant 0 : index
    %c0_60 = arith.constant 0 : index
    %44 = vector.load %arg2[%c0_58, %c14, %c0_59, %c0_60] : memref<1x16x16x128xbf16, #tpu.memory_space<vmem>>, vector<1x1x16x128xbf16>
    %45 = vector.shape_cast %44 : vector<1x1x16x128xbf16> to vector<16x128xbf16>
    %c271 = arith.constant 271 : index
    %c0_61 = arith.constant 0 : index
    %46 = vector.load %arg6[%c271, %c0_61] : memref<342x128xbf16, #tpu.memory_space<vmem>>, vector<16x128xbf16>
    tpu.vector_store %arg6[%c271, %c0_61], %45 {strides = array<i32>} : memref<342x128xbf16, #tpu.memory_space<vmem>>, vector<16x128xbf16>,
    %c0_62 = arith.constant 0 : index
    %c15 = arith.constant 15 : index
    %c0_63 = arith.constant 0 : index
    %c0_64 = arith.constant 0 : index
    %47 = vector.load %arg2[%c0_62, %c15, %c0_63, %c0_64] : memref<1x16x16x128xbf16, #tpu.memory_space<vmem>>, vector<1x1x16x128xbf16>
    %48 = vector.shape_cast %47 : vector<1x1x16x128xbf16> to vector<16x128xbf16>
    %c289 = arith.constant 289 : index
    %c0_65 = arith.constant 0 : index
    %49 = vector.load %arg6[%c289, %c0_65] : memref<342x128xbf16, #tpu.memory_space<vmem>>, vector<16x128xbf16>
    tpu.vector_store %arg6[%c289, %c0_65], %48 {strides = array<i32>} : memref<342x128xbf16, #tpu.memory_space<vmem>>, vector<16x128xbf16>,
    %c0_66 = arith.constant 0 : index
    %c0_67 = arith.constant 0 : index
    %50 = vector.load %arg4[%c0_66, %c0_67] : memref<1x128xf32, #tpu.memory_space<vmem>>, vector<1x128xf32>
    %51 = vector.shape_cast %50 : vector<1x128xf32> to vector<1x128xf32>
    %52 = vector.broadcast %51 : vector<1x128xf32> to vector<288x128xf32>
    %c0_68 = arith.constant 0 : index
    %c0_69 = arith.constant 0 : index
    %53 = vector.load %arg7[%c0_68, %c0_69] : memref<288x128xf32, #tpu.memory_space<vmem>>, vector<288x128xf32>
    tpu.vector_store %arg7[%c0_68, %c0_69], %52 {strides = array<i32>} : memref<288x128xf32, #tpu.memory_space<vmem>>, vector<288x128xf32>,
    %c0_70 = arith.constant 0 : index
    %c0_71 = arith.constant 0 : index
    %54 = vector.load %arg7[%c0_70, %c0_71] : memref<288x128xf32, #tpu.memory_space<vmem>>, vector<288x128xf32>
    %c0_72 = arith.constant 0 : index
    %c0_73 = arith.constant 0 : index
    %55 = vector.load %arg6[%c0_72, %c0_73] : memref<342x128xbf16, #tpu.memory_space<vmem>>, vector<288x128xbf16>
    %c0_74 = arith.constant 0 : index
    %c0_75 = arith.constant 0 : index
    %c0_76 = arith.constant 0 : index
    %c0_77 = arith.constant 0 : index
    %56 = vector.load %arg3[%c0_74, %c0_75, %c0_76, %c0_77] : memref<3x3x128x128xbf16, #tpu.memory_space<vmem>>, vector<1x1x128x128xbf16>
    %57 = vector.shape_cast %56 : vector<1x1x128x128xbf16> to vector<128x128xbf16>
    %cst_78 = arith.constant dense<0.000000e+00> : vector<288x128xf32>
    %58 = tpu.matmul %55, %57, %cst_78 {dimension_numbers = #tpu.dot_dimension_numbers<[1], [0], [0], [1], [0, 0, 1, 1], [], []>} : vector<288x128xbf16>, vector<128x128xbf16>, vector<288x128xf32> -> vector<288x128xf32>
    %59 = arith.addf %54, %58 : vector<288x128xf32>
    %c0_79 = arith.constant 0 : index
    %c0_80 = arith.constant 0 : index
    %60 = vector.load %arg7[%c0_79, %c0_80] : memref<288x128xf32, #tpu.memory_space<vmem>>, vector<288x128xf32>
    tpu.vector_store %arg7[%c0_79, %c0_80], %59 {strides = array<i32>} : memref<288x128xf32, #tpu.memory_space<vmem>>, vector<288x128xf32>,
    %c0_81 = arith.constant 0 : index
    %c0_82 = arith.constant 0 : index
    %61 = vector.load %arg7[%c0_81, %c0_82] : memref<288x128xf32, #tpu.memory_space<vmem>>, vector<288x128xf32>
    %c1_83 = arith.constant 1 : index
    %c0_84 = arith.constant 0 : index
    %62 = vector.load %arg6[%c1_83, %c0_84] : memref<342x128xbf16, #tpu.memory_space<vmem>>, vector<288x128xbf16>
    %c0_85 = arith.constant 0 : index
    %c1_86 = arith.constant 1 : index
    %c0_87 = arith.constant 0 : index
    %c0_88 = arith.constant 0 : index
    %63 = vector.load %arg3[%c0_85, %c1_86, %c0_87, %c0_88] : memref<3x3x128x128xbf16, #tpu.memory_space<vmem>>, vector<1x1x128x128xbf16>
    %64 = vector.shape_cast %63 : vector<1x1x128x128xbf16> to vector<128x128xbf16>
    %cst_89 = arith.constant dense<0.000000e+00> : vector<288x128xf32>
    %65 = tpu.matmul %62, %64, %cst_89 {dimension_numbers = #tpu.dot_dimension_numbers<[1], [0], [0], [1], [0, 0, 1, 1], [], []>} : vector<288x128xbf16>, vector<128x128xbf16>, vector<288x128xf32> -> vector<288x128xf32>
    %66 = arith.addf %61, %65 : vector<288x128xf32>
    %c0_90 = arith.constant 0 : index
    %c0_91 = arith.constant 0 : index
    %67 = vector.load %arg7[%c0_90, %c0_91] : memref<288x128xf32, #tpu.memory_space<vmem>>, vector<288x128xf32>
    tpu.vector_store %arg7[%c0_90, %c0_91], %66 {strides = array<i32>} : memref<288x128xf32, #tpu.memory_space<vmem>>, vector<288x128xf32>,
    %c0_92 = arith.constant 0 : index
    %c0_93 = arith.constant 0 : index
    %68 = vector.load %arg7[%c0_92, %c0_93] : memref<288x128xf32, #tpu.memory_space<vmem>>, vector<288x128xf32>
    %c2_94 = arith.constant 2 : index
    %c0_95 = arith.constant 0 : index
    %69 = vector.load %arg6[%c2_94, %c0_95] : memref<342x128xbf16, #tpu.memory_space<vmem>>, vector<288x128xbf16>
    %c0_96 = arith.constant 0 : index
    %c2_97 = arith.constant 2 : index
    %c0_98 = arith.constant 0 : index
    %c0_99 = arith.constant 0 : index
    %70 = vector.load %arg3[%c0_96, %c2_97, %c0_98, %c0_99] : memref<3x3x128x128xbf16, #tpu.memory_space<vmem>>, vector<1x1x128x128xbf16>
    %71 = vector.shape_cast %70 : vector<1x1x128x128xbf16> to vector<128x128xbf16>
    %cst_100 = arith.constant dense<0.000000e+00> : vector<288x128xf32>
    %72 = tpu.matmul %69, %71, %cst_100 {dimension_numbers = #tpu.dot_dimension_numbers<[1], [0], [0], [1], [0, 0, 1, 1], [], []>} : vector<288x128xbf16>, vector<128x128xbf16>, vector<288x128xf32> -> vector<288x128xf32>
    %73 = arith.addf %68, %72 : vector<288x128xf32>
    %c0_101 = arith.constant 0 : index
    %c0_102 = arith.constant 0 : index
    %74 = vector.load %arg7[%c0_101, %c0_102] : memref<288x128xf32, #tpu.memory_space<vmem>>, vector<288x128xf32>
    tpu.vector_store %arg7[%c0_101, %c0_102], %73 {strides = array<i32>} : memref<288x128xf32, #tpu.memory_space<vmem>>, vector<288x128xf32>,
    %c0_103 = arith.constant 0 : index
    %c0_104 = arith.constant 0 : index
    %75 = vector.load %arg7[%c0_103, %c0_104] : memref<288x128xf32, #tpu.memory_space<vmem>>, vector<288x128xf32>
    %c18 = arith.constant 18 : index
    %c0_105 = arith.constant 0 : index
    %76 = vector.load %arg6[%c18, %c0_105] : memref<342x128xbf16, #tpu.memory_space<vmem>>, vector<288x128xbf16>
    %c1_106 = arith.constant 1 : index
    %c0_107 = arith.constant 0 : index
    %c0_108 = arith.constant 0 : index
    %c0_109 = arith.constant 0 : index
    %77 = vector.load %arg3[%c1_106, %c0_107, %c0_108, %c0_109] : memref<3x3x128x128xbf16, #tpu.memory_space<vmem>>, vector<1x1x128x128xbf16>
    %78 = vector.shape_cast %77 : vector<1x1x128x128xbf16> to vector<128x128xbf16>
    %cst_110 = arith.constant dense<0.000000e+00> : vector<288x128xf32>
    %79 = tpu.matmul %76, %78, %cst_110 {dimension_numbers = #tpu.dot_dimension_numbers<[1], [0], [0], [1], [0, 0, 1, 1], [], []>} : vector<288x128xbf16>, vector<128x128xbf16>, vector<288x128xf32> -> vector<288x128xf32>
    %80 = arith.addf %75, %79 : vector<288x128xf32>
    %c0_111 = arith.constant 0 : index
    %c0_112 = arith.constant 0 : index
    %81 = vector.load %arg7[%c0_111, %c0_112] : memref<288x128xf32, #tpu.memory_space<vmem>>, vector<288x128xf32>
    tpu.vector_store %arg7[%c0_111, %c0_112], %80 {strides = array<i32>} : memref<288x128xf32, #tpu.memory_space<vmem>>, vector<288x128xf32>,
    %c0_113 = arith.constant 0 : index
    %c0_114 = arith.constant 0 : index
    %82 = vector.load %arg7[%c0_113, %c0_114] : memref<288x128xf32, #tpu.memory_space<vmem>>, vector<288x128xf32>
    %c19_115 = arith.constant 19 : index
    %c0_116 = arith.constant 0 : index
    %83 = vector.load %arg6[%c19_115, %c0_116] : memref<342x128xbf16, #tpu.memory_space<vmem>>, vector<288x128xbf16>
    %c1_117 = arith.constant 1 : index
    %c1_118 = arith.constant 1 : index
    %c0_119 = arith.constant 0 : index
    %c0_120 = arith.constant 0 : index
    %84 = vector.load %arg3[%c1_117, %c1_118, %c0_119, %c0_120] : memref<3x3x128x128xbf16, #tpu.memory_space<vmem>>, vector<1x1x128x128xbf16>
    %85 = vector.shape_cast %84 : vector<1x1x128x128xbf16> to vector<128x128xbf16>
    %cst_121 = arith.constant dense<0.000000e+00> : vector<288x128xf32>
    %86 = tpu.matmul %83, %85, %cst_121 {dimension_numbers = #tpu.dot_dimension_numbers<[1], [0], [0], [1], [0, 0, 1, 1], [], []>} : vector<288x128xbf16>, vector<128x128xbf16>, vector<288x128xf32> -> vector<288x128xf32>
    %87 = arith.addf %82, %86 : vector<288x128xf32>
    %c0_122 = arith.constant 0 : index
    %c0_123 = arith.constant 0 : index
    %88 = vector.load %arg7[%c0_122, %c0_123] : memref<288x128xf32, #tpu.memory_space<vmem>>, vector<288x128xf32>
    tpu.vector_store %arg7[%c0_122, %c0_123], %87 {strides = array<i32>} : memref<288x128xf32, #tpu.memory_space<vmem>>, vector<288x128xf32>,
    %c0_124 = arith.constant 0 : index
    %c0_125 = arith.constant 0 : index
    %89 = vector.load %arg7[%c0_124, %c0_125] : memref<288x128xf32, #tpu.memory_space<vmem>>, vector<288x128xf32>
    %c20 = arith.constant 20 : index
    %c0_126 = arith.constant 0 : index
    %90 = vector.load %arg6[%c20, %c0_126] : memref<342x128xbf16, #tpu.memory_space<vmem>>, vector<288x128xbf16>
    %c1_127 = arith.constant 1 : index
    %c2_128 = arith.constant 2 : index
    %c0_129 = arith.constant 0 : index
    %c0_130 = arith.constant 0 : index
    %91 = vector.load %arg3[%c1_127, %c2_128, %c0_129, %c0_130] : memref<3x3x128x128xbf16, #tpu.memory_space<vmem>>, vector<1x1x128x128xbf16>
    %92 = vector.shape_cast %91 : vector<1x1x128x128xbf16> to vector<128x128xbf16>
    %cst_131 = arith.constant dense<0.000000e+00> : vector<288x128xf32>
    %93 = tpu.matmul %90, %92, %cst_131 {dimension_numbers = #tpu.dot_dimension_numbers<[1], [0], [0], [1], [0, 0, 1, 1], [], []>} : vector<288x128xbf16>, vector<128x128xbf16>, vector<288x128xf32> -> vector<288x128xf32>
    %94 = arith.addf %89, %93 : vector<288x128xf32>
    %c0_132 = arith.constant 0 : index
    %c0_133 = arith.constant 0 : index
    %95 = vector.load %arg7[%c0_132, %c0_133] : memref<288x128xf32, #tpu.memory_space<vmem>>, vector<288x128xf32>
    tpu.vector_store %arg7[%c0_132, %c0_133], %94 {strides = array<i32>} : memref<288x128xf32, #tpu.memory_space<vmem>>, vector<288x128xf32>,
    %c0_134 = arith.constant 0 : index
    %c0_135 = arith.constant 0 : index
    %96 = vector.load %arg7[%c0_134, %c0_135] : memref<288x128xf32, #tpu.memory_space<vmem>>, vector<288x128xf32>
    %c36 = arith.constant 36 : index
    %c0_136 = arith.constant 0 : index
    %97 = vector.load %arg6[%c36, %c0_136] : memref<342x128xbf16, #tpu.memory_space<vmem>>, vector<288x128xbf16>
    %c2_137 = arith.constant 2 : index
    %c0_138 = arith.constant 0 : index
    %c0_139 = arith.constant 0 : index
    %c0_140 = arith.constant 0 : index
    %98 = vector.load %arg3[%c2_137, %c0_138, %c0_139, %c0_140] : memref<3x3x128x128xbf16, #tpu.memory_space<vmem>>, vector<1x1x128x128xbf16>
    %99 = vector.shape_cast %98 : vector<1x1x128x128xbf16> to vector<128x128xbf16>
    %cst_141 = arith.constant dense<0.000000e+00> : vector<288x128xf32>
    %100 = tpu.matmul %97, %99, %cst_141 {dimension_numbers = #tpu.dot_dimension_numbers<[1], [0], [0], [1], [0, 0, 1, 1], [], []>} : vector<288x128xbf16>, vector<128x128xbf16>, vector<288x128xf32> -> vector<288x128xf32>
    %101 = arith.addf %96, %100 : vector<288x128xf32>
    %c0_142 = arith.constant 0 : index
    %c0_143 = arith.constant 0 : index
    %102 = vector.load %arg7[%c0_142, %c0_143] : memref<288x128xf32, #tpu.memory_space<vmem>>, vector<288x128xf32>
    tpu.vector_store %arg7[%c0_142, %c0_143], %101 {strides = array<i32>} : memref<288x128xf32, #tpu.memory_space<vmem>>, vector<288x128xf32>,
    %c0_144 = arith.constant 0 : index
    %c0_145 = arith.constant 0 : index
    %103 = vector.load %arg7[%c0_144, %c0_145] : memref<288x128xf32, #tpu.memory_space<vmem>>, vector<288x128xf32>
    %c37_146 = arith.constant 37 : index
    %c0_147 = arith.constant 0 : index
    %104 = vector.load %arg6[%c37_146, %c0_147] : memref<342x128xbf16, #tpu.memory_space<vmem>>, vector<288x128xbf16>
    %c2_148 = arith.constant 2 : index
    %c1_149 = arith.constant 1 : index
    %c0_150 = arith.constant 0 : index
    %c0_151 = arith.constant 0 : index
    %105 = vector.load %arg3[%c2_148, %c1_149, %c0_150, %c0_151] : memref<3x3x128x128xbf16, #tpu.memory_space<vmem>>, vector<1x1x128x128xbf16>
    %106 = vector.shape_cast %105 : vector<1x1x128x128xbf16> to vector<128x128xbf16>
    %cst_152 = arith.constant dense<0.000000e+00> : vector<288x128xf32>
    %107 = tpu.matmul %104, %106, %cst_152 {dimension_numbers = #tpu.dot_dimension_numbers<[1], [0], [0], [1], [0, 0, 1, 1], [], []>} : vector<288x128xbf16>, vector<128x128xbf16>, vector<288x128xf32> -> vector<288x128xf32>
    %108 = arith.addf %103, %107 : vector<288x128xf32>
    %c0_153 = arith.constant 0 : index
    %c0_154 = arith.constant 0 : index
    %109 = vector.load %arg7[%c0_153, %c0_154] : memref<288x128xf32, #tpu.memory_space<vmem>>, vector<288x128xf32>
    tpu.vector_store %arg7[%c0_153, %c0_154], %108 {strides = array<i32>} : memref<288x128xf32, #tpu.memory_space<vmem>>, vector<288x128xf32>,
    %c0_155 = arith.constant 0 : index
    %c0_156 = arith.constant 0 : index
    %110 = vector.load %arg7[%c0_155, %c0_156] : memref<288x128xf32, #tpu.memory_space<vmem>>, vector<288x128xf32>
    %c38 = arith.constant 38 : index
    %c0_157 = arith.constant 0 : index
    %111 = vector.load %arg6[%c38, %c0_157] : memref<342x128xbf16, #tpu.memory_space<vmem>>, vector<288x128xbf16>
    %c2_158 = arith.constant 2 : index
    %c2_159 = arith.constant 2 : index
    %c0_160 = arith.constant 0 : index
    %c0_161 = arith.constant 0 : index
    %112 = vector.load %arg3[%c2_158, %c2_159, %c0_160, %c0_161] : memref<3x3x128x128xbf16, #tpu.memory_space<vmem>>, vector<1x1x128x128xbf16>
    %113 = vector.shape_cast %112 : vector<1x1x128x128xbf16> to vector<128x128xbf16>
    %cst_162 = arith.constant dense<0.000000e+00> : vector<288x128xf32>
    %114 = tpu.matmul %111, %113, %cst_162 {dimension_numbers = #tpu.dot_dimension_numbers<[1], [0], [0], [1], [0, 0, 1, 1], [], []>} : vector<288x128xbf16>, vector<128x128xbf16>, vector<288x128xf32> -> vector<288x128xf32>
    %115 = arith.addf %110, %114 : vector<288x128xf32>
    %c0_163 = arith.constant 0 : index
    %c0_164 = arith.constant 0 : index
    %116 = vector.load %arg7[%c0_163, %c0_164] : memref<288x128xf32, #tpu.memory_space<vmem>>, vector<288x128xf32>
    tpu.vector_store %arg7[%c0_163, %c0_164], %115 {strides = array<i32>} : memref<288x128xf32, #tpu.memory_space<vmem>>, vector<288x128xf32>,
    %c0_165 = arith.constant 0 : index
    %c0_166 = arith.constant 0 : index
    %117 = vector.load %arg7[%c0_165, %c0_166] : memref<288x128xf32, #tpu.memory_space<vmem>>, vector<16x128xf32>
    %cst_167 = arith.constant 0.000000e+00 : f32
    %118 = vector.broadcast %cst_167 : f32 to vector<16x128xf32>
    %119 = arith.maximumf %117, %118 : vector<16x128xf32>
    %120 = arith.truncf %119 : vector<16x128xf32> to vector<16x128xbf16>
    %c0_168 = arith.constant 0 : index
    %c0_169 = arith.constant 0 : index
    %c0_170 = arith.constant 0 : index
    %c0_171 = arith.constant 0 : index
    %121 = vector.load %arg5[%c0_168, %c0_169, %c0_170, %c0_171] : memref<1x16x16x128xbf16, #tpu.memory_space<vmem>>, vector<1x1x16x128xbf16>
    %122 = vector.shape_cast %121 : vector<1x1x16x128xbf16> to vector<16x128xbf16>
    %123 = vector.shape_cast %120 : vector<16x128xbf16> to vector<1x1x16x128xbf16>
    tpu.vector_store %arg5[%c0_168, %c0_169, %c0_170, %c0_171], %123 {strides = array<i32>} : memref<1x16x16x128xbf16, #tpu.memory_space<vmem>>, vector<1x1x16x128xbf16>,
    %c18_172 = arith.constant 18 : index
    %c0_173 = arith.constant 0 : index
    %124 = vector.load %arg7[%c18_172, %c0_173] : memref<288x128xf32, #tpu.memory_space<vmem>>, vector<16x128xf32>
    %cst_174 = arith.constant 0.000000e+00 : f32
    %125 = vector.broadcast %cst_174 : f32 to vector<16x128xf32>
    %126 = arith.maximumf %124, %125 : vector<16x128xf32>
    %127 = arith.truncf %126 : vector<16x128xf32> to vector<16x128xbf16>
    %c0_175 = arith.constant 0 : index
    %c1_176 = arith.constant 1 : index
    %c0_177 = arith.constant 0 : index
    %c0_178 = arith.constant 0 : index
    %128 = vector.load %arg5[%c0_175, %c1_176, %c0_177, %c0_178] : memref<1x16x16x128xbf16, #tpu.memory_space<vmem>>, vector<1x1x16x128xbf16>
    %129 = vector.shape_cast %128 : vector<1x1x16x128xbf16> to vector<16x128xbf16>
    %130 = vector.shape_cast %127 : vector<16x128xbf16> to vector<1x1x16x128xbf16>
    tpu.vector_store %arg5[%c0_175, %c1_176, %c0_177, %c0_178], %130 {strides = array<i32>} : memref<1x16x16x128xbf16, #tpu.memory_space<vmem>>, vector<1x1x16x128xbf16>,
    %c36_179 = arith.constant 36 : index
    %c0_180 = arith.constant 0 : index
    %131 = vector.load %arg7[%c36_179, %c0_180] : memref<288x128xf32, #tpu.memory_space<vmem>>, vector<16x128xf32>
    %cst_181 = arith.constant 0.000000e+00 : f32
    %132 = vector.broadcast %cst_181 : f32 to vector<16x128xf32>
    %133 = arith.maximumf %131, %132 : vector<16x128xf32>
    %134 = arith.truncf %133 : vector<16x128xf32> to vector<16x128xbf16>
    %c0_182 = arith.constant 0 : index
    %c2_183 = arith.constant 2 : index
    %c0_184 = arith.constant 0 : index
    %c0_185 = arith.constant 0 : index
    %135 = vector.load %arg5[%c0_182, %c2_183, %c0_184, %c0_185] : memref<1x16x16x128xbf16, #tpu.memory_space<vmem>>, vector<1x1x16x128xbf16>
    %136 = vector.shape_cast %135 : vector<1x1x16x128xbf16> to vector<16x128xbf16>
    %137 = vector.shape_cast %134 : vector<16x128xbf16> to vector<1x1x16x128xbf16>
    tpu.vector_store %arg5[%c0_182, %c2_183, %c0_184, %c0_185], %137 {strides = array<i32>} : memref<1x16x16x128xbf16, #tpu.memory_space<vmem>>, vector<1x1x16x128xbf16>,
    %c54 = arith.constant 54 : index
    %c0_186 = arith.constant 0 : index
    %138 = vector.load %arg7[%c54, %c0_186] : memref<288x128xf32, #tpu.memory_space<vmem>>, vector<16x128xf32>
    %cst_187 = arith.constant 0.000000e+00 : f32
    %139 = vector.broadcast %cst_187 : f32 to vector<16x128xf32>
    %140 = arith.maximumf %138, %139 : vector<16x128xf32>
    %141 = arith.truncf %140 : vector<16x128xf32> to vector<16x128xbf16>
    %c0_188 = arith.constant 0 : index
    %c3_189 = arith.constant 3 : index
    %c0_190 = arith.constant 0 : index
    %c0_191 = arith.constant 0 : index
    %142 = vector.load %arg5[%c0_188, %c3_189, %c0_190, %c0_191] : memref<1x16x16x128xbf16, #tpu.memory_space<vmem>>, vector<1x1x16x128xbf16>
    %143 = vector.shape_cast %142 : vector<1x1x16x128xbf16> to vector<16x128xbf16>
    %144 = vector.shape_cast %141 : vector<16x128xbf16> to vector<1x1x16x128xbf16>
    tpu.vector_store %arg5[%c0_188, %c3_189, %c0_190, %c0_191], %144 {strides = array<i32>} : memref<1x16x16x128xbf16, #tpu.memory_space<vmem>>, vector<1x1x16x128xbf16>,
    %c72 = arith.constant 72 : index
    %c0_192 = arith.constant 0 : index
    %145 = vector.load %arg7[%c72, %c0_192] : memref<288x128xf32, #tpu.memory_space<vmem>>, vector<16x128xf32>
    %cst_193 = arith.constant 0.000000e+00 : f32
    %146 = vector.broadcast %cst_193 : f32 to vector<16x128xf32>
    %147 = arith.maximumf %145, %146 : vector<16x128xf32>
    %148 = arith.truncf %147 : vector<16x128xf32> to vector<16x128xbf16>
    %c0_194 = arith.constant 0 : index
    %c4_195 = arith.constant 4 : index
    %c0_196 = arith.constant 0 : index
    %c0_197 = arith.constant 0 : index
    %149 = vector.load %arg5[%c0_194, %c4_195, %c0_196, %c0_197] : memref<1x16x16x128xbf16, #tpu.memory_space<vmem>>, vector<1x1x16x128xbf16>
    %150 = vector.shape_cast %149 : vector<1x1x16x128xbf16> to vector<16x128xbf16>
    %151 = vector.shape_cast %148 : vector<16x128xbf16> to vector<1x1x16x128xbf16>
    tpu.vector_store %arg5[%c0_194, %c4_195, %c0_196, %c0_197], %151 {strides = array<i32>} : memref<1x16x16x128xbf16, #tpu.memory_space<vmem>>, vector<1x1x16x128xbf16>,
    %c90 = arith.constant 90 : index
    %c0_198 = arith.constant 0 : index
    %152 = vector.load %arg7[%c90, %c0_198] : memref<288x128xf32, #tpu.memory_space<vmem>>, vector<16x128xf32>
    %cst_199 = arith.constant 0.000000e+00 : f32
    %153 = vector.broadcast %cst_199 : f32 to vector<16x128xf32>
    %154 = arith.maximumf %152, %153 : vector<16x128xf32>
    %155 = arith.truncf %154 : vector<16x128xf32> to vector<16x128xbf16>
    %c0_200 = arith.constant 0 : index
    %c5_201 = arith.constant 5 : index
    %c0_202 = arith.constant 0 : index
    %c0_203 = arith.constant 0 : index
    %156 = vector.load %arg5[%c0_200, %c5_201, %c0_202, %c0_203] : memref<1x16x16x128xbf16, #tpu.memory_space<vmem>>, vector<1x1x16x128xbf16>
    %157 = vector.shape_cast %156 : vector<1x1x16x128xbf16> to vector<16x128xbf16>
    %158 = vector.shape_cast %155 : vector<16x128xbf16> to vector<1x1x16x128xbf16>
    tpu.vector_store %arg5[%c0_200, %c5_201, %c0_202, %c0_203], %158 {strides = array<i32>} : memref<1x16x16x128xbf16, #tpu.memory_space<vmem>>, vector<1x1x16x128xbf16>,
    %c108 = arith.constant 108 : index
    %c0_204 = arith.constant 0 : index
    %159 = vector.load %arg7[%c108, %c0_204] : memref<288x128xf32, #tpu.memory_space<vmem>>, vector<16x128xf32>
    %cst_205 = arith.constant 0.000000e+00 : f32
    %160 = vector.broadcast %cst_205 : f32 to vector<16x128xf32>
    %161 = arith.maximumf %159, %160 : vector<16x128xf32>
    %162 = arith.truncf %161 : vector<16x128xf32> to vector<16x128xbf16>
    %c0_206 = arith.constant 0 : index
    %c6_207 = arith.constant 6 : index
    %c0_208 = arith.constant 0 : index
    %c0_209 = arith.constant 0 : index
    %163 = vector.load %arg5[%c0_206, %c6_207, %c0_208, %c0_209] : memref<1x16x16x128xbf16, #tpu.memory_space<vmem>>, vector<1x1x16x128xbf16>
    %164 = vector.shape_cast %163 : vector<1x1x16x128xbf16> to vector<16x128xbf16>
    %165 = vector.shape_cast %162 : vector<16x128xbf16> to vector<1x1x16x128xbf16>
    tpu.vector_store %arg5[%c0_206, %c6_207, %c0_208, %c0_209], %165 {strides = array<i32>} : memref<1x16x16x128xbf16, #tpu.memory_space<vmem>>, vector<1x1x16x128xbf16>,
    %c126 = arith.constant 126 : index
    %c0_210 = arith.constant 0 : index
    %166 = vector.load %arg7[%c126, %c0_210] : memref<288x128xf32, #tpu.memory_space<vmem>>, vector<16x128xf32>
    %cst_211 = arith.constant 0.000000e+00 : f32
    %167 = vector.broadcast %cst_211 : f32 to vector<16x128xf32>
    %168 = arith.maximumf %166, %167 : vector<16x128xf32>
    %169 = arith.truncf %168 : vector<16x128xf32> to vector<16x128xbf16>
    %c0_212 = arith.constant 0 : index
    %c7_213 = arith.constant 7 : index
    %c0_214 = arith.constant 0 : index
    %c0_215 = arith.constant 0 : index
    %170 = vector.load %arg5[%c0_212, %c7_213, %c0_214, %c0_215] : memref<1x16x16x128xbf16, #tpu.memory_space<vmem>>, vector<1x1x16x128xbf16>
    %171 = vector.shape_cast %170 : vector<1x1x16x128xbf16> to vector<16x128xbf16>
    %172 = vector.shape_cast %169 : vector<16x128xbf16> to vector<1x1x16x128xbf16>
    tpu.vector_store %arg5[%c0_212, %c7_213, %c0_214, %c0_215], %172 {strides = array<i32>} : memref<1x16x16x128xbf16, #tpu.memory_space<vmem>>, vector<1x1x16x128xbf16>,
    %c144 = arith.constant 144 : index
    %c0_216 = arith.constant 0 : index
    %173 = vector.load %arg7[%c144, %c0_216] : memref<288x128xf32, #tpu.memory_space<vmem>>, vector<16x128xf32>
    %cst_217 = arith.constant 0.000000e+00 : f32
    %174 = vector.broadcast %cst_217 : f32 to vector<16x128xf32>
    %175 = arith.maximumf %173, %174 : vector<16x128xf32>
    %176 = arith.truncf %175 : vector<16x128xf32> to vector<16x128xbf16>
    %c0_218 = arith.constant 0 : index
    %c8_219 = arith.constant 8 : index
    %c0_220 = arith.constant 0 : index
    %c0_221 = arith.constant 0 : index
    %177 = vector.load %arg5[%c0_218, %c8_219, %c0_220, %c0_221] : memref<1x16x16x128xbf16, #tpu.memory_space<vmem>>, vector<1x1x16x128xbf16>
    %178 = vector.shape_cast %177 : vector<1x1x16x128xbf16> to vector<16x128xbf16>
    %179 = vector.shape_cast %176 : vector<16x128xbf16> to vector<1x1x16x128xbf16>
    tpu.vector_store %arg5[%c0_218, %c8_219, %c0_220, %c0_221], %179 {strides = array<i32>} : memref<1x16x16x128xbf16, #tpu.memory_space<vmem>>, vector<1x1x16x128xbf16>,
    %c162 = arith.constant 162 : index
    %c0_222 = arith.constant 0 : index
    %180 = vector.load %arg7[%c162, %c0_222] : memref<288x128xf32, #tpu.memory_space<vmem>>, vector<16x128xf32>
    %cst_223 = arith.constant 0.000000e+00 : f32
    %181 = vector.broadcast %cst_223 : f32 to vector<16x128xf32>
    %182 = arith.maximumf %180, %181 : vector<16x128xf32>
    %183 = arith.truncf %182 : vector<16x128xf32> to vector<16x128xbf16>
    %c0_224 = arith.constant 0 : index
    %c9_225 = arith.constant 9 : index
    %c0_226 = arith.constant 0 : index
    %c0_227 = arith.constant 0 : index
    %184 = vector.load %arg5[%c0_224, %c9_225, %c0_226, %c0_227] : memref<1x16x16x128xbf16, #tpu.memory_space<vmem>>, vector<1x1x16x128xbf16>
    %185 = vector.shape_cast %184 : vector<1x1x16x128xbf16> to vector<16x128xbf16>
    %186 = vector.shape_cast %183 : vector<16x128xbf16> to vector<1x1x16x128xbf16>
    tpu.vector_store %arg5[%c0_224, %c9_225, %c0_226, %c0_227], %186 {strides = array<i32>} : memref<1x16x16x128xbf16, #tpu.memory_space<vmem>>, vector<1x1x16x128xbf16>,
    %c180 = arith.constant 180 : index
    %c0_228 = arith.constant 0 : index
    %187 = vector.load %arg7[%c180, %c0_228] : memref<288x128xf32, #tpu.memory_space<vmem>>, vector<16x128xf32>
    %cst_229 = arith.constant 0.000000e+00 : f32
    %188 = vector.broadcast %cst_229 : f32 to vector<16x128xf32>
    %189 = arith.maximumf %187, %188 : vector<16x128xf32>
    %190 = arith.truncf %189 : vector<16x128xf32> to vector<16x128xbf16>
    %c0_230 = arith.constant 0 : index
    %c10_231 = arith.constant 10 : index
    %c0_232 = arith.constant 0 : index
    %c0_233 = arith.constant 0 : index
    %191 = vector.load %arg5[%c0_230, %c10_231, %c0_232, %c0_233] : memref<1x16x16x128xbf16, #tpu.memory_space<vmem>>, vector<1x1x16x128xbf16>
    %192 = vector.shape_cast %191 : vector<1x1x16x128xbf16> to vector<16x128xbf16>
    %193 = vector.shape_cast %190 : vector<16x128xbf16> to vector<1x1x16x128xbf16>
    tpu.vector_store %arg5[%c0_230, %c10_231, %c0_232, %c0_233], %193 {strides = array<i32>} : memref<1x16x16x128xbf16, #tpu.memory_space<vmem>>, vector<1x1x16x128xbf16>,
    %c198 = arith.constant 198 : index
    %c0_234 = arith.constant 0 : index
    %194 = vector.load %arg7[%c198, %c0_234] : memref<288x128xf32, #tpu.memory_space<vmem>>, vector<16x128xf32>
    %cst_235 = arith.constant 0.000000e+00 : f32
    %195 = vector.broadcast %cst_235 : f32 to vector<16x128xf32>
    %196 = arith.maximumf %194, %195 : vector<16x128xf32>
    %197 = arith.truncf %196 : vector<16x128xf32> to vector<16x128xbf16>
    %c0_236 = arith.constant 0 : index
    %c11_237 = arith.constant 11 : index
    %c0_238 = arith.constant 0 : index
    %c0_239 = arith.constant 0 : index
    %198 = vector.load %arg5[%c0_236, %c11_237, %c0_238, %c0_239] : memref<1x16x16x128xbf16, #tpu.memory_space<vmem>>, vector<1x1x16x128xbf16>
    %199 = vector.shape_cast %198 : vector<1x1x16x128xbf16> to vector<16x128xbf16>
    %200 = vector.shape_cast %197 : vector<16x128xbf16> to vector<1x1x16x128xbf16>
    tpu.vector_store %arg5[%c0_236, %c11_237, %c0_238, %c0_239], %200 {strides = array<i32>} : memref<1x16x16x128xbf16, #tpu.memory_space<vmem>>, vector<1x1x16x128xbf16>,
    %c216 = arith.constant 216 : index
    %c0_240 = arith.constant 0 : index
    %201 = vector.load %arg7[%c216, %c0_240] : memref<288x128xf32, #tpu.memory_space<vmem>>, vector<16x128xf32>
    %cst_241 = arith.constant 0.000000e+00 : f32
    %202 = vector.broadcast %cst_241 : f32 to vector<16x128xf32>
    %203 = arith.maximumf %201, %202 : vector<16x128xf32>
    %204 = arith.truncf %203 : vector<16x128xf32> to vector<16x128xbf16>
    %c0_242 = arith.constant 0 : index
    %c12_243 = arith.constant 12 : index
    %c0_244 = arith.constant 0 : index
    %c0_245 = arith.constant 0 : index
    %205 = vector.load %arg5[%c0_242, %c12_243, %c0_244, %c0_245] : memref<1x16x16x128xbf16, #tpu.memory_space<vmem>>, vector<1x1x16x128xbf16>
    %206 = vector.shape_cast %205 : vector<1x1x16x128xbf16> to vector<16x128xbf16>
    %207 = vector.shape_cast %204 : vector<16x128xbf16> to vector<1x1x16x128xbf16>
    tpu.vector_store %arg5[%c0_242, %c12_243, %c0_244, %c0_245], %207 {strides = array<i32>} : memref<1x16x16x128xbf16, #tpu.memory_space<vmem>>, vector<1x1x16x128xbf16>,
    %c234 = arith.constant 234 : index
    %c0_246 = arith.constant 0 : index
    %208 = vector.load %arg7[%c234, %c0_246] : memref<288x128xf32, #tpu.memory_space<vmem>>, vector<16x128xf32>
    %cst_247 = arith.constant 0.000000e+00 : f32
    %209 = vector.broadcast %cst_247 : f32 to vector<16x128xf32>
    %210 = arith.maximumf %208, %209 : vector<16x128xf32>
    %211 = arith.truncf %210 : vector<16x128xf32> to vector<16x128xbf16>
    %c0_248 = arith.constant 0 : index
    %c13_249 = arith.constant 13 : index
    %c0_250 = arith.constant 0 : index
    %c0_251 = arith.constant 0 : index
    %212 = vector.load %arg5[%c0_248, %c13_249, %c0_250, %c0_251] : memref<1x16x16x128xbf16, #tpu.memory_space<vmem>>, vector<1x1x16x128xbf16>
    %213 = vector.shape_cast %212 : vector<1x1x16x128xbf16> to vector<16x128xbf16>
    %214 = vector.shape_cast %211 : vector<16x128xbf16> to vector<1x1x16x128xbf16>
    tpu.vector_store %arg5[%c0_248, %c13_249, %c0_250, %c0_251], %214 {strides = array<i32>} : memref<1x16x16x128xbf16, #tpu.memory_space<vmem>>, vector<1x1x16x128xbf16>,
    %c252 = arith.constant 252 : index
    %c0_252 = arith.constant 0 : index
    %215 = vector.load %arg7[%c252, %c0_252] : memref<288x128xf32, #tpu.memory_space<vmem>>, vector<16x128xf32>
    %cst_253 = arith.constant 0.000000e+00 : f32
    %216 = vector.broadcast %cst_253 : f32 to vector<16x128xf32>
    %217 = arith.maximumf %215, %216 : vector<16x128xf32>
    %218 = arith.truncf %217 : vector<16x128xf32> to vector<16x128xbf16>
    %c0_254 = arith.constant 0 : index
    %c14_255 = arith.constant 14 : index
    %c0_256 = arith.constant 0 : index
    %c0_257 = arith.constant 0 : index
    %219 = vector.load %arg5[%c0_254, %c14_255, %c0_256, %c0_257] : memref<1x16x16x128xbf16, #tpu.memory_space<vmem>>, vector<1x1x16x128xbf16>
    %220 = vector.shape_cast %219 : vector<1x1x16x128xbf16> to vector<16x128xbf16>
    %221 = vector.shape_cast %218 : vector<16x128xbf16> to vector<1x1x16x128xbf16>
    tpu.vector_store %arg5[%c0_254, %c14_255, %c0_256, %c0_257], %221 {strides = array<i32>} : memref<1x16x16x128xbf16, #tpu.memory_space<vmem>>, vector<1x1x16x128xbf16>,
    %c270 = arith.constant 270 : index
    %c0_258 = arith.constant 0 : index
    %222 = vector.load %arg7[%c270, %c0_258] : memref<288x128xf32, #tpu.memory_space<vmem>>, vector<16x128xf32>
    %cst_259 = arith.constant 0.000000e+00 : f32
    %223 = vector.broadcast %cst_259 : f32 to vector<16x128xf32>
    %224 = arith.maximumf %222, %223 : vector<16x128xf32>
    %225 = arith.truncf %224 : vector<16x128xf32> to vector<16x128xbf16>
    %c0_260 = arith.constant 0 : index
    %c15_261 = arith.constant 15 : index
    %c0_262 = arith.constant 0 : index
    %c0_263 = arith.constant 0 : index
    %226 = vector.load %arg5[%c0_260, %c15_261, %c0_262, %c0_263] : memref<1x16x16x128xbf16, #tpu.memory_space<vmem>>, vector<1x1x16x128xbf16>
    %227 = vector.shape_cast %226 : vector<1x1x16x128xbf16> to vector<16x128xbf16>
    %228 = vector.shape_cast %225 : vector<16x128xbf16> to vector<1x1x16x128xbf16>
    tpu.vector_store %arg5[%c0_260, %c15_261, %c0_262, %c0_263], %228 {strides = array<i32>} : memref<1x16x16x128xbf16, #tpu.memory_space<vmem>>, vector<1x1x16x128xbf16>,
    return
  }
  func.func @transform_0(%arg0: i32, %arg1: i32) -> (i32, i32, i32, i32) {
    %c0_i32 = arith.constant 0 : i32
    %c0_i32_0 = arith.constant 0 : i32
    %c0_i32_1 = arith.constant 0 : i32
    %c0_i32_2 = arith.constant 0 : i32
    return %arg0, %c0_i32, %c0_i32_0, %c0_i32_1 : i32, i32, i32, i32
  }
  func.func @transform_1(%arg0: i32, %arg1: i32) -> (i32, i32, i32, i32) {
    %c0_i32 = arith.constant 0 : i32
    %c0_i32_0 = arith.constant 0 : i32
    %c0_i32_1 = arith.constant 0 : i32
    %c0_i32_2 = arith.constant 0 : i32
    return %c0_i32, %c0_i32_0, %c0_i32_1, %arg1 : i32, i32, i32, i32
  }
  func.func @transform_2(%arg0: i32, %arg1: i32) -> (i32, i32) {
    %c0_i32 = arith.constant 0 : i32
    %c0_i32_0 = arith.constant 0 : i32
    return %c0_i32, %arg1 : i32, i32
  }
  func.func @transform_3(%arg0: i32, %arg1: i32) -> (i32, i32, i32, i32) {
    %c0_i32 = arith.constant 0 : i32
    %c0_i32_0 = arith.constant 0 : i32
    %c0_i32_1 = arith.constant 0 : i32
    return %arg0, %c0_i32, %c0_i32_0, %arg1 : i32, i32, i32, i32
  }
}

</mosaic_0001>

<bundles_post_ra>
// kernel: segnet_up3_forward.4
= control target key start
LH: loop header
LB: loop body
LE: loop exit
PB: predicated region body
PF: predicated region fallthrough
CT: control target
= control target key end

     0   :  { %s8454_s12 = smov 0   ;;  %s8456_s13 = smov 0   ;;  %s9249_s0 = inlined_call_operand.vmem [shape: bf16[2,16,16,128], index: 0, kind: input, shape index: {}]   ;;  %s9250_s1 = inlined_call_operand.vmem [shape: bf16[3,3,128,128], index: 1, kind: input, shape index: {}]   ;;  %s9251_s2 = inlined_call_operand.vmem [shape: f32[1,128], index: 2, kind: input, shape index: {}]   ;;  %s9252_s3 = inlined_call_operand.vmem [shape: bf16[2,16,16,128], index: 3, kind: output, shape index: {}]  }
   0x1   :  { %s8458_s14 = smov 0  }
   0x2 LB: > { %s25_s15 = sadd.s32 1, %s8427_s13  ;;  %p6349_p0 = scmp.ge.s32.totalorder %s8431_s14, 1  ;;  %s8431_s14 = sphi %s8458_s14, %s13_s14   ;;  %s8427_s13 = sphi %s8456_s13, %s9278_s13   ;;  %s8423_s12 = sphi %s8454_s12, %s9277_s12  }
   0x3   : > { %p27_p1 = scmp.ge.s32.totalorder %s25_s15, 2  ;;  %p168_p2 = scmp.lt.s32.totalorder %s8431_s14, 3 }
   0x5   : > { %s9280_s15 = smov (%p27_p1, %s25_s15), 0  ;;  %p169_p3 = pnand %p6349_p0, %p168_p2 }
   0x6   : > { %v8159_v0 = vld [vmem:[%s9250_s1] sm:$0xff] (!%p169_p3)   ;;  %v8433_v2 = vmov (!%p169_p3), 0   ;;  %v8161_v3 = vld [vmem:[%s9250_s1 + $0x8] sm:$0xff] (!%p169_p3)   ;;  %p202_p4 = scmp.lt.s32.totalorder (!%p169_p3), %s8423_s12, 1  ;;  %v8163_v5 = vld [vmem:[%s9250_s1 + $0x10] sm:$0xff] (!%p169_p3)   ;;  %vm293_vm0 = vcmask (!%p169_p3), 1043457  }
   0x7   : > { %172 = sbr.rel (%p169_p3) target bundleno = 610 (0x262), region = 32  ;;  %v8160_v1 = vld [vmem:[%s9250_s1 + $0x100] sm:$0xff] (!%p169_p3)   ;;  %223 = vst [vmem:[#allocation2] sm:$0xf] (!%p169_p3), %v8433_v2  ;;  %224 = vst [vmem:[#allocation2 + $0x4] sm:$0xf] (!%p169_p3), %v8433_v2  ;;  %7182 = vmatprep.subr.bf16.mxu1 (!%p169_p3), %v8159_v0 }
   0x8   : > { %225 = vst [vmem:[#allocation2 + $0x8] sm:$0xf] (!%p169_p3), %v8433_v2  ;;  %226 = vst [vmem:[#allocation2 + $0xc] sm:$0xf] (!%p169_p3), %v8433_v2  ;;  %7390 = vmatprep.subr.bf16.mxu0 (!%p169_p3), %v8160_v1  ;;  %7183 = vmatpush3.bf16.msra.mxu1 (!%p169_p3), %v8159_v0  ;;  %v8162_v4 = vld [vmem:[%s9250_s1 + $0x108] sm:$0xff] (!%p169_p3)   ;;  %v8164_v6 = vld [vmem:[%s9250_s1 + $0x110] sm:$0xff] (!%p169_p3)  }
   0x9   : > { %227 = vst [vmem:[#allocation2 + $0x10] sm:$0xf] (!%p169_p3), %v8433_v2  ;;  %228 = vst [vmem:[#allocation2 + $0x14] sm:$0xf] (!%p169_p3), %v8433_v2  ;;  %7391 = vmatpush3.bf16.msra.mxu0 (!%p169_p3), %v8160_v1  ;;  %7184 = vmatprep.subr.bf16.mxu1 (!%p169_p3), %v8161_v3  ;;  %v8165_v7 = vld [vmem:[%s9250_s1 + $0x18] sm:$0xff] (!%p169_p3)   ;;  %v8167_v9 = vld [vmem:[%s9250_s1 + $0x20] sm:$0xff] (!%p169_p3)  }
   0xa   : > { %229 = vst [vmem:[#allocation2 + $0x18] sm:$0xf] (!%p169_p3), %v8433_v2  ;;  %230 = vst [vmem:[#allocation2 + $0x1c] sm:$0xf] (!%p169_p3), %v8433_v2  ;;  %7392 = vmatprep.subr.bf16.mxu0 (!%p169_p3), %v8162_v4  ;;  %v8166_v8 = vld [vmem:[%s9250_s1 + $0x118] sm:$0xff] (!%p169_p3)   ;;  %v8168_v10 = vld [vmem:[%s9250_s1 + $0x120] sm:$0xff] (!%p169_p3)  }
   0xb   : > { %231 = vst [vmem:[#allocation2 + $0x20] sm:$0xf] (!%p169_p3), %v8433_v2  ;;  %232 = vst [vmem:[#allocation2 + $0x24] sm:$0xf] (!%p169_p3), %v8433_v2  ;;  %v8169_v11 = vld [vmem:[%s9250_s1 + $0x28] sm:$0xff] (!%p169_p3)   ;;  %vm300_vm1 = vcmask (!%p169_p3), 1041408  }
   0xc   : > { %233 = vst [vmem:[#allocation2 + $0x28] sm:$0xf] (!%p169_p3), %v8433_v2  ;;  %234 = vst [vmem:[#allocation2 + $0x2c] sm:$0xf] (!%p169_p3), %v8433_v2  ;;  %7185 = vmatpush3.bf16.msra.mxu1 (!%p169_p3), %v8161_v3  ;;  %v8170_v13 = vld [vmem:[%s9250_s1 + $0x128] sm:$0xff] (!%p169_p3)   ;;  %vm333_vm2 = vcmask (!%p169_p3), 1043458  }
   0xd   : > { %235 = vst [vmem:[#allocation2 + $0x30] sm:$0xf] (!%p169_p3), %v8433_v2  ;;  %236 = vst [vmem:[#allocation2 + $0x34] sm:$0xf] (!%p169_p3), %v8433_v2  ;;  %7393 = vmatpush3.bf16.msra.mxu0 (!%p169_p3), %v8162_v4  ;;  %7186 = vmatprep.subr.bf16.mxu1 (!%p169_p3), %v8163_v5  ;;  %vm268_vm3 = vsmask.f32 (!%p169_p3), 1280 }
   0xe   : > { %237 = vst [vmem:[#allocation2 + $0x38] sm:$0xf] %v8433_v2  ;;  %238 = vst [vmem:[#allocation2 + $0x3c] sm:$0xf] %v8433_v2  ;;  %s9282_s12 = smov (!%p202_p4, %s8423_s12), 1  ;;  %7394 = vmatprep.subr.bf16.mxu0 %v8164_v6  ;;  %v8175_v12 = vld [vmem:[#allocation2] sm:$0xff]  }
   0xf   : > { %239 = vst [vmem:[#allocation2 + $0x40] sm:$0xf] %v8433_v2  ;;  %240 = vst [vmem:[#allocation2 + $0x44] sm:$0xf] %v8433_v2  ;;  %s6819_s5 = sshll.u32 %s9282_s12, 7  ;;  %7198 = vmatprep.mubr.bf16.mxu1 %v8175_v12  ;;  %v8171_v19 = vld [vmem:[%s9250_s1 + $0x30] sm:$0xff]  }
  0x10   : > { %241 = vst [vmem:[#allocation2 + $0x48] sm:$0xf] %v8433_v2  ;;  %242 = vst [vmem:[#allocation2 + $0x4c] sm:$0xf] %v8433_v2  ;;  %7187 = vmatpush3.bf16.msra.mxu1 %v8163_v5  ;;  %s8514_s16 = scalar_lea.vmem %s9249_s0, %s6819_s5  ;;  %vm269_vm4 = vsmask.f32 5392  ;;  %s9187_s4 = scalar_lea.vmem %s9252_s3, %s6819_s5 }
  0x11   : > { %243 = vst [vmem:[#allocation2 + $0x50] sm:$0xf] %v8433_v2  ;;  %244 = vst [vmem:[#allocation2 + $0x54] sm:$0xf] %v8433_v2  ;;  %7395 = vmatpush3.bf16.msra.mxu0 %v8164_v6  ;;  %7188 = vmatprep.subr.bf16.mxu1 %v8165_v7  ;;  %v266_v14 = vld [vmem:[%s8514_s16] sm:$0xf] }
  0x12   : > { %245 = vst [vmem:[#allocation2 + $0x58] sm:$0xf] %v8433_v2  ;;  %246 = vst [vmem:[#allocation2 + $0x5c] sm:$0xf] %v8433_v2  ;;  %7396 = vmatprep.subr.bf16.mxu0 %v8166_v8  ;;  %v267_v15 = vld [vmem:[%s8514_s16 + $0x4] sm:$0xf] }
  0x13   : > { %247 = vst [vmem:[#allocation2 + $0x60] sm:$0xf] %v8433_v2  ;;  %248 = vst [vmem:[#allocation2 + $0x64] sm:$0xf] %v8433_v2  ;;  %v272_v16 = vshrl.u32 %v266_v14, 16  ;;  %v275_v17 = vshll.u32 %v266_v14, 16 }
  0x14   : > { %249 = vst [vmem:[#allocation2 + $0x68] sm:$0xf] %v8433_v2  ;;  %250 = vst [vmem:[#allocation2 + $0x6c] sm:$0xf] %v8433_v2  ;;  %7189 = vmatpush3.bf16.msra.mxu1 %v8165_v7  ;;  %v281_v18 = vshrl.u32 %v267_v15, 16  ;;  %v284_v20 = vshll.u32 %v267_v15, 16 }
  0x15   : > { %251 = vst [vmem:[#allocation2 + $0x70] sm:$0xf] %v8433_v2  ;;  %252 = vst [vmem:[#allocation2 + $0x74] sm:$0xf] %v8433_v2  ;;  %7397 = vmatpush3.bf16.msra.mxu0 %v8166_v8  ;;  %7190 = vmatprep.subr.bf16.mxu1 %v8167_v9  ;;  %vm294_vm5 = vsmask.f32 7942 }
  0x16   : > { %253 = vst [vmem:[#allocation2 + $0x78] sm:$0xf] %v8433_v2  ;;  %254 = vst [vmem:[#allocation2 + $0x7c] sm:$0xf] %v8433_v2  ;;  %7398 = vmatprep.subr.bf16.mxu0 %v8168_v10  ;;  %v8172_v21 = vld [vmem:[%s9250_s1 + $0x130] sm:$0xff]   ;;  %v274_v22 = vrot.slane %v272_v16, 6 }
  0x17   : > { %255 = vst [vmem:[#allocation2 + $0x80] sm:$0xf] %v8433_v2  ;;  %256 = vst [vmem:[#allocation2 + $0x84] sm:$0xf] %v8433_v2  ;;  %v277_v23 = vrot.slane %v275_v17, 7  ;;  %v283_v24 = vrot.slane %v281_v18, 6 }
  0x18   : > { %257 = vst [vmem:[#allocation2 + $0x88] sm:$0xf] %v8433_v2  ;;  %258 = vst [vmem:[#allocation2 + $0x8c] sm:$0xf] %v8433_v2  ;;  %7191 = vmatpush3.bf16.msra.mxu1 %v8167_v9  ;;  %v296_v25 = vld [vmem:[#allocation2 + $0x8] sm:$0xe] }
  0x19   : > { %259 = vst [vmem:[#allocation2 + $0x90] sm:$0xf] %v8433_v2  ;;  %260 = vst [vmem:[#allocation2 + $0x94] sm:$0xf] %v8433_v2  ;;  %7399 = vmatpush3.bf16.msra.mxu0 %v8168_v10  ;;  %7192 = vmatprep.subr.bf16.mxu1 %v8169_v11  ;;  %v286_v26 = vrot.slane %v284_v20, 7  ;;  %vm340_vm7 = vcmask 1042432   ;;  %v278_v31 = vor.u32 %v277_v23, %v274_v22 }
  0x1a   : > { %261 = vst [vmem:[#allocation2 + $0x98] sm:$0xf] %v8433_v2  ;;  %262 = vst [vmem:[#allocation2 + $0x9c] sm:$0xf] %v8433_v2  ;;  %7400 = vmatprep.subr.bf16.mxu0 %v8170_v13  ;;  %v6354_v28 = vld [vmem:[%s8514_s16 + $0x8] sm:$0xf] }
  0x1b   : > { %263 = vst [vmem:[#allocation2 + $0xa0] sm:$0xf] %v8433_v2  ;;  %vm8531_vm6 = vmand %vm293_vm0, %vm294_vm5  ;;  %v6355_v29 = vld [vmem:[%s8514_s16 + $0xc] sm:$0xf]  ;;  %v8173_v30 = vld [vmem:[%s9250_s1 + $0x38] sm:$0xff]   ;;  %v312_v32 = vshrl.u32 %v6354_v28, 16  ;;  %v287_v35 = vor.u32 %v286_v26, %v283_v24 }
  0x1c   : > { %vm308_vm8 = vsmask.f32 2304  ;;  %vm309_vm9 = vsmask.f32 6416  ;;  %7193 = vmatpush3.bf16.msra.mxu1 %v8169_v11  ;;  %v8174_v33 = vld [vmem:[%s9250_s1 + $0x138] sm:$0xff]   ;;  %vm8545_vm10 = vmor %vm268_vm3, %vm269_vm4  ;;  %v315_v37 = vshll.u32 %v6354_v28, 16  ;;  %v297_v41 = vsel %vm8531_vm6, %v278_v31, %v296_v25 }
  0x1d   : > { %v302_v36 = vld [vmem:[#allocation2 + $0x10] sm:$0x3]  ;;  %v321_v38 = vshrl.u32 %v6355_v29, 16  ;;  %v324_v39 = vshll.u32 %v6355_v29, 16  ;;  %7401 = vmatpush3.bf16.msra.mxu0 %v8170_v13  ;;  %7194 = vmatprep.subr.bf16.mxu1 %v8171_v19  ;;  %v279_v40 = vrot.slane %v278_v31, 4  ;;  %vm8553_vm11 = vmand %vm300_vm1, %vm268_vm3  ;;  %v314_v43 = vrot.slane %v312_v32, 5 }
  0x1e   : > { %vm334_vm12 = vsmask.f32 7946  ;;  %7402 = vmatprep.subr.bf16.mxu0 %v8172_v21  ;;  %v289_v44 = vrot.slane %v287_v35, 4  ;;  %298 = vst [vmem:[#allocation2 + $0x8] sm:$0xe] %v297_v41  ;;  %v317_v45 = vrot.slane %v315_v37, 6  ;;  %vm8569_vm0 = vmor %vm308_vm8, %vm309_vm9 }
  0x1f   : > { %v323_v46 = vrot.slane %v321_v38, 5  ;;  %v326_v47 = vrot.slane %v324_v39, 6  ;;  %v288_v48 = vsel %vm8545_vm10, %v279_v40, %v287_v35  ;;  %vm8560_vm13 = vmand %vm333_vm2, %vm334_vm12  ;;  %v336_v50 = vld [vmem:[#allocation2 + $0x10] sm:$0xc]  ;;  %vm373_vm14 = vcmask 1043459   ;;  %v8179_v59 = vld [vmem:[%s9250_s1 + $0x40] sm:$0xff]  }
  0x20   : > { %v6356_v51 = vld [vmem:[%s8514_s16 + $0x10] sm:$0xf]  ;;  %vm380_vm15 = vcmask 1043456   ;;  %7195 = vmatpush3.bf16.msra.mxu1 %v8171_v19  ;;  %299 = vst [vmem:[#allocation2 + $0xc] sm:$0xf] %v288_v48  ;;  %v303_v52 = vsel %vm8553_vm11, %v289_v44, %v302_v36  ;;  %v318_v54 = vor.u32 %v317_v45, %v314_v43  ;;  %vm8576_vm2 = vmand %vm340_vm7, %vm308_vm8  ;;  %v8588_v4 = vld [vmem:[%s9250_s1 + $0x140] sm:$0xff]  }
  0x21   : > { %v327_v55 = vor.u32 %v326_v47, %v323_v46  ;;  %v342_v56 = vld [vmem:[#allocation2 + $0x18] sm:$0x7]  ;;  %v6357_v57 = vld [vmem:[%s8514_s16 + $0x14] sm:$0xf]  ;;  %vm348_vm1 = vsmask.f32 3328  ;;  %7403 = vmatpush3.bf16.msra.mxu0 %v8172_v21  ;;  %7196 = vmatprep.subr.bf16.mxu1 %v8173_v30 }
  0x22   : > { %304 = vst [vmem:[#allocation2 + $0x10] sm:$0x3] %v303_v52  ;;  %v352_v60 = vshll.u32 %v6356_v51, 16  ;;  %v355_v61 = vshrl.u32 %v6356_v51, 16  ;;  %v361_v62 = vshll.u32 %v6357_v57, 16  ;;  %7404 = vmatprep.subr.bf16.mxu0 %v8174_v33  ;;  %v319_v0 = vrot.slane %v318_v54, 4  ;;  %vm8592_vm5 = vmand %vm380_vm15, %vm348_vm1 }
  0x23   : > { %v376_v63 = vld [vmem:[#allocation2 + $0x18] sm:$0x8]  ;;  %v329_v1 = vrot.slane %v327_v55, 4  ;;  %v337_v2 = vsel %vm8560_vm13, %v318_v54, %v336_v50  ;;  %v365_v3 = vshrl.u32 %v6357_v57, 16  ;;  %vm349_vm3 = vsmask.f32 7440 }
  0x24   : > { %338 = vst [vmem:[#allocation2 + $0x10] sm:$0xc] %v337_v2  ;;  %v354_v5 = vrot.slane %v352_v60, 5  ;;  %v357_v6 = vrot.slane %v355_v61, 4  ;;  %vm374_vm4 = vsmask.f32 7950  ;;  %7197 = vmatpush3.bf16.msra.mxu1 %v8173_v30  ;;  %v328_v8 = vsel %vm8569_vm0, %v319_v0, %v327_v55  ;;  %vm8609_vm9 = vmor %vm348_vm1, %vm349_vm3 }
  0x25   : > { %v343_v9 = vsel %vm8576_vm2, %v329_v1, %v342_v56  ;;  %v363_v10 = vrot.slane %v361_v62, 5  ;;  %v367_v11 = vrot.slane %v365_v3, 4  ;;  %vm8601_vm7 = vmand %vm373_vm14, %vm374_vm4  ;;  %vm417_vm8 = vcmask 1040384   ;;  %7405 = vmatpush3.bf16.msra.mxu0 %v8174_v33  ;;  %339 = vst [vmem:[#allocation2 + $0x14] sm:$0xf] %v328_v8  ;;  %7234 = vmatprep.subr.bf16.mxu1 %v8179_v59  ;;  %v8188_v25 = vld [vmem:[%s9250_s1 + $0x48] sm:$0xff]  }
  0x26   : > { %344 = vst [vmem:[#allocation2 + $0x18] sm:$0x7] %v343_v9  ;;  %v358_v13 = vor.u32 %v357_v6, %v354_v5  ;;  %v377_v14 = vsel %vm8601_vm7, %v354_v5, %v376_v63  ;;  %7442 = vmatprep.subr.bf16.mxu0 %v8588_v4  ;;  %v382_v17 = vld [vmem:[#allocation2 + $0x20] sm:$0xf]  ;;  %v6358_v18 = vld [vmem:[%s8514_s16 + $0x18] sm:$0xf] }
  0x27   : > { %378 = vst [vmem:[#allocation2 + $0x18] sm:$0x8] %v377_v14  ;;  %v368_v16 = vor.u32 %v367_v11, %v363_v10  ;;  %vm411_vm12 = vsmask.f32 7938  ;;  %v8176_v19 = vld [vmem:[#allocation2 + $0x8] sm:$0xfe]  }
  0x28   : > { %v8178_v20 = vld [vmem:[#allocation2 + $0x8] sm:$0xff]   ;;  %v359_v21 = vrot.slane %v358_v13, 4  ;;  %v392_v23 = vshrl.u32 %v6358_v18, 16  ;;  %v395_v24 = vshll.u32 %v6358_v18, 16  ;;  %v3239_v26 = vshrl.u32 %v8176_v19, 16  ;;  %v8195_v36 = vld [vmem:[%s9250_s1 + $0x50] sm:$0xff]   ;;  %vm8628_vm14 = vmand %vm380_vm15, %vm411_vm12 }
  0x29   : > { %v369_v22 = vrot.slane %v368_v16, 4  ;;  %v3242_v28 = vshll.u32 %v8176_v19, 16  ;;  %v413_v29 = vld [vmem:[#allocation2 + $0x24] sm:$0xf]  ;;  %v6359_v30 = vld [vmem:[%s8514_s16 + $0x1c] sm:$0xf]  ;;  %7199 = vmatmul.mubr.bf16.vlgmr.msra.gmra.mrb[0].mxu1 %v8178_v20 }
  0x2a   : > { %v364_v31 = vsel %vm8609_vm9, %v359_v21, %v363_v10  ;;  %v394_v33 = vrot.slane %v392_v23, 7  ;;  %v400_v35 = vshrl.u32 %v6359_v30, 16  ;;  %v3241_v37 = vrot.slane %v3239_v26, 1  ;;  %7235 = vmatpush3.bf16.msra.mxu1 %v8179_v59  ;;  %v419_v52 = vld [vmem:[#allocation2 + $0x2c] sm:$0x1]  ;;  %v8202_v63 = vld [vmem:[%s9250_s1 + $0x58] sm:$0xff]  }
  0x2b   : > { %v383_v32 = vsel %vm8592_vm5, %v369_v22, %v382_v17  ;;  %v3244_v38 = vrot.slane %v3242_v28, 2  ;;  %379 = vst [vmem:[#allocation2 + $0x1c] sm:$0xf] %v364_v31  ;;  %vm388_vm1 = vsmask.f32 256  ;;  %7236 = vmatprep.subr.bf16.mxu1 %v8188_v25  ;;  %v403_v51 = vshll.u32 %v6359_v30, 16 }
  0x2c   : > { %384 = vst [vmem:[#allocation2 + $0x20] sm:$0xf] %v383_v32  ;;  %vm389_vm3 = vsmask.f32 4368  ;;  %v8177_v40 = vld [vmem:[#allocation2 + $0x10] sm:$0xff]   ;;  %v397_v41 = vor.u32 %v395_v24, %v394_v33  ;;  %v398_v43 = vrot.slane %v394_v33, 4  ;;  %vm8641_vm12 = vmand %vm417_vm8, %vm388_vm1 }
  0x2d   : > { %v8183_v44 = vld [vmem:[#allocation2 + $0x10] sm:$0xff]   ;;  %v402_v45 = vrot.slane %v400_v35, 7  ;;  %v3247_v46 = vshrl.u32 %v8177_v40, 16  ;;  %v3250_v47 = vshll.u32 %v8177_v40, 16  ;;  %vm8635_vm4 = vmor %vm388_vm1, %vm389_vm3  ;;  %vm3237_vm15 = vsmask.f32 6400 }
  0x2e   : > { %v414_v48 = vsel %vm8628_vm14, %v397_v41, %v413_v29  ;;  %v3245_v54 = vor.u32 %v3244_v38, %v3241_v37  ;;  %7202 = vmatprep.mubr.bf16.mxu1 %v8183_v44  ;;  %v6360_v57 = vld [vmem:[%s8514_s16 + $0x20] sm:$0xf]  ;;  %7237 = vmatpush3.bf16.msra.mxu1 %v8188_v25  ;;  %v447_v8 = vld [vmem:[#allocation2 + $0x2c] sm:$0xe]  ;;  %v6361_v17 = vld [vmem:[%s8514_s16 + $0x24] sm:$0xf] }
  0x2f   : > { %415 = vst [vmem:[#allocation2 + $0x24] sm:$0xf] %v414_v48  ;;  %v407_v55 = vrot.slane %v402_v45, 4  ;;  %v3249_v59 = vrot.slane %v3247_v46, 1  ;;  %v3252_v60 = vrot.slane %v3250_v47, 2  ;;  %v405_v61 = vor.u32 %v403_v51, %v402_v45  ;;  %7238 = vmatprep.subr.bf16.mxu1 %v8195_v36  ;;  %v8182_v26 = vld [vmem:[%s9250_s1 + $0x148] sm:$0xff]  }
  0x30   : > { %v426_v62 = vshrl.u32 %v6360_v57, 16  ;;  %v429_v1 = vshll.u32 %v6360_v57, 16  ;;  %v435_v23 = vshrl.u32 %v6361_v17, 16  ;;  %v438_v24 = vshll.u32 %v6361_v17, 16  ;;  %v6362_v31 = vld [vmem:[%s8514_s16 + $0x28] sm:$0xf] }
  0x31   : > { %v420_v0 = vsel %vm8641_vm12, %v407_v55, %v419_v52  ;;  %v3253_v2 = vor.u32 %v3252_v60, %v3249_v59  ;;  %v406_v5 = vsel %vm8635_vm4, %v398_v43, %v405_v61  ;;  %v458_v35 = vshrl.u32 %v6362_v31, 16  ;;  %v6363_v37 = vld [vmem:[%s8514_s16 + $0x2c] sm:$0xf]  ;;  %v451_v44 = vld [vmem:[#allocation2 + $0x34] sm:$0x3]  ;;  %v8209_v48 = vld [vmem:[%s9250_s1 + $0x60] sm:$0xff]  }
  0x32   : > { %v8180_v3 = vld [vmem:[#allocation2 + $0x18] sm:$0xff]   ;;  %421 = vst [vmem:[#allocation2 + $0x2c] sm:$0x1] %v420_v0  ;;  %v428_v6 = vrot.slane %v426_v62, 6  ;;  %416 = vst [vmem:[#allocation2 + $0x28] sm:$0xf] %v406_v5  ;;  %7239 = vmatpush3.bf16.msra.mxu1 %v8195_v36 }
  0x33   : > { %v8185_v9 = vld [vmem:[#allocation2 + $0x18] sm:$0xff]   ;;  %v431_v10 = vrot.slane %v429_v1, 7  ;;  %v3254_v11 = vsel %vm3237_vm15, %v3245_v54, %v3253_v2  ;;  %v3256_v13 = vshrl.u32 %v8180_v3, 16  ;;  %v3259_v14 = vshll.u32 %v8180_v3, 16  ;;  %7240 = vmatprep.subr.bf16.mxu1 %v8202_v63  ;;  %v8187_v52 = vld [vmem:[%s9250_s1 + $0x150] sm:$0xff]  }
  0x34   : > { %7406 = vmatprep.mubr.bf16.mxu0 %v3254_v11  ;;  %7203 = vmatmul.mubr.bf16.gmra.mrb[4].mxu1 %v8185_v9  ;;  %v437_v32 = vrot.slane %v435_v23, 6  ;;  %v440_v33 = vrot.slane %v438_v24, 7  ;;  %v461_v36 = vshll.u32 %v6362_v31, 16  ;;  %v460_v45 = vrot.slane %v458_v35, 5  ;;  %v479_v54 = vld [vmem:[#allocation2 + $0x34] sm:$0xc] }
  0x35   : > { %v432_v16 = vor.u32 %v431_v10, %v428_v6  ;;  %v3258_v18 = vrot.slane %v3256_v13, 1  ;;  %v3261_v19 = vrot.slane %v3259_v14, 2  ;;  %v467_v47 = vshrl.u32 %v6363_v37, 16  ;;  %v6364_v57 = vld [vmem:[%s8514_s16 + $0x30] sm:$0xf]  ;;  %v8194_v31 = vld [vmem:[%s9250_s1 + $0x160] sm:$0xff]  }
  0x36   : > { %v8184_v20 = vld [vmem:[#allocation2 + $0x20] sm:$0xff]   ;;  %7241 = vmatpush3.bf16.msra.mxu1 %v8202_v63  ;;  %v441_v43 = vor.u32 %v440_v33, %v437_v32  ;;  %v463_v46 = vrot.slane %v461_v36, 6  ;;  %v470_v55 = vshll.u32 %v6363_v37, 16  ;;  %v511_v63 = vld [vmem:[#allocation2 + $0x3c] sm:$0x8]  ;;  %v490_v1 = vshll.u32 %v6364_v57, 16 }
  0x37   : > { %v8190_v21 = vld [vmem:[#allocation2 + $0x20] sm:$0xff]   ;;  %v448_v22 = vsel %vm8531_vm6, %v432_v16, %v447_v8  ;;  %v3262_v25 = vor.u32 %v3261_v19, %v3258_v18  ;;  %v3265_v28 = vshrl.u32 %v8184_v20, 16  ;;  %v3268_v29 = vshll.u32 %v8184_v20, 16  ;;  %7242 = vmatprep.subr.bf16.mxu1 %v8209_v48  ;;  %v483_v8 = vld [vmem:[#allocation2 + $0x3c] sm:$0x7]  ;;  %v8696_v36 = vld [vmem:[#allocation2 + $0x10] sm:$0xff]  }
  0x38   : > { %449 = vst [vmem:[#allocation2 + $0x2c] sm:$0xe] %v448_v22  ;;  %7206 = vmatprep.mubr.bf16.mxu1 %v8190_v21  ;;  %v433_v30 = vrot.slane %v432_v16, 4  ;;  %v443_v60 = vrot.slane %v441_v43, 4  ;;  %v464_v61 = vor.u32 %v463_v46, %v460_v45  ;;  %v469_v62 = vrot.slane %v467_v47, 5  ;;  %v8189_v16 = vld [vmem:[%s9250_s1 + $0x158] sm:$0xff]  }
  0x39   : > { %v3263_v38 = vsel %vm3237_vm15, %v3253_v2, %v3262_v25  ;;  %v3267_v40 = vrot.slane %v3265_v28, 1  ;;  %v3270_v41 = vrot.slane %v3268_v29, 2  ;;  %v472_v0 = vrot.slane %v470_v55, 6  ;;  %v6365_v17 = vld [vmem:[%s8514_s16 + $0x34] sm:$0xf]  ;;  %v8698_v47 = vld [vmem:[#allocation2 + $0x18] sm:$0xff]  }
  0x3a   : > { %7407 = vmatmul.mubr.bf16.vlgmr.msra.gmra.mrb[0].mxu0 %v3263_v38  ;;  %v442_v59 = vsel %vm8545_vm10, %v433_v30, %v441_v43  ;;  %7243 = vmatpush3.bf16.msra.mxu1 %v8209_v48  ;;  %v452_v3 = vsel %vm8553_vm11, %v443_v60, %v451_v44  ;;  %v480_v5 = vsel %vm8560_vm13, %v464_v61, %v479_v54  ;;  %v465_v6 = vrot.slane %v464_v61, 4  ;;  %v6366_v23 = vld [vmem:[%s8514_s16 + $0x38] sm:$0xf]  ;;  %v6367_v29 = vld [vmem:[%s8514_s16 + $0x3c] sm:$0xf] }
  0x3b   : > { %7443 = vmatpush3.bf16.msra.mxu0 %v8588_v4  ;;  %v8667_v51 = vor.u32 %v3270_v41, %v3267_v40  ;;  %450 = vst [vmem:[#allocation2 + $0x30] sm:$0xf] %v442_v59  ;;  %453 = vst [vmem:[#allocation2 + $0x34] sm:$0x3] %v452_v3  ;;  %v473_v10 = vor.u32 %v472_v0, %v469_v62  ;;  %v492_v11 = vrot.slane %v490_v1, 5  ;;  %v493_v18 = vshrl.u32 %v6364_v57, 16 }
  0x3c   : > { %7444 = vmatprep.subr.bf16.mxu0 %v8182_v26  ;;  %481 = vst [vmem:[#allocation2 + $0x34] sm:$0xc] %v480_v5  ;;  %v499_v22 = vshll.u32 %v6365_v17, 16  ;;  %v503_v28 = vshrl.u32 %v6365_v17, 16  ;;  %v522_v33 = vshrl.u32 %v6366_v23, 16  ;;  %v525_v35 = vshll.u32 %v6366_v23, 16 }
  0x3d   : > { %v3272_v4 = vsel %vm3237_vm15, %v3262_v25, %v8667_v51  ;;  %v474_v19 = vsel %vm8569_vm0, %v465_v6, %v473_v10  ;;  %v475_v20 = vrot.slane %v473_v10, 4  ;;  %v512_v21 = vsel %vm8601_vm7, %v492_v11, %v511_v63  ;;  %v541_v43 = vld [vmem:[#allocation2 + $0x48] sm:$0xf]  ;;  %v515_v44 = vld [vmem:[#allocation2 + $0x44] sm:$0xf]  ;;  %v8238_v7 = vld [vmem:[%s9250_s1 + $0x198] sm:$0xff]  }
  0x3e   : > { %7410 = vmatprep.mubr.bf16.mxu0 %v3272_v4  ;;  %482 = vst [vmem:[#allocation2 + $0x38] sm:$0xf] %v474_v19  ;;  %513 = vst [vmem:[#allocation2 + $0x3c] sm:$0x8] %v512_v21  ;;  %v501_v32 = vrot.slane %v499_v22, 5  ;;  %v505_v40 = vrot.slane %v503_v28, 4 }
  0x3f   : > { %v8186_v2 = vld [vmem:[#allocation2 + $0x28] sm:$0xff]   ;;  %7445 = vmatpush3.bf16.msra.mxu0 %v8182_v26  ;;  %v495_v26 = vrot.slane %v493_v18, 4  ;;  %v484_v30 = vsel %vm8576_vm2, %v475_v20, %v483_v8  ;;  %v530_v41 = vshrl.u32 %v6367_v29, 16  ;;  %v524_v45 = vrot.slane %v522_v33, 7  ;;  %v545_v28 = vld [vmem:[#allocation2 + $0x50] sm:$0x1] }
  0x40   : > { %v8192_v9 = vld [vmem:[#allocation2 + $0x28] sm:$0xff]   ;;  %v3274_v13 = vshrl.u32 %v8186_v2, 16  ;;  %v3277_v14 = vshll.u32 %v8186_v2, 16  ;;  %7446 = vmatprep.subr.bf16.mxu0 %v8187_v52  ;;  %485 = vst [vmem:[#allocation2 + $0x3c] sm:$0x7] %v484_v30  ;;  %v533_v46 = vshll.u32 %v6367_v29, 16  ;;  %v506_v55 = vor.u32 %v505_v40, %v501_v32 }
  0x41   : > { %7207 = vmatmul.mubr.bf16.gmra.mrb[8].mxu1 %v8192_v9  ;;  %v496_v38 = vor.u32 %v495_v26, %v492_v11  ;;  %v527_v59 = vor.u32 %v525_v35, %v524_v45  ;;  %v528_v60 = vrot.slane %v524_v45, 4  ;;  %v532_v61 = vrot.slane %v530_v41, 7  ;;  %v8196_v0 = vld [vmem:[%s9250_s1 + $0x168] sm:$0xff]   ;;  %v8201_v11 = vld [vmem:[%s9250_s1 + $0x170] sm:$0xff]   ;;  %v8203_v26 = vld [vmem:[%s9250_s1 + $0x178] sm:$0xff]  }
  0x42   : > { %v3276_v24 = vrot.slane %v3274_v13, 1  ;;  %v3279_v25 = vrot.slane %v3277_v14, 2  ;;  %v3908_v62 = vrot.slane %v8696_v36, 2  ;;  %v507_v1 = vrot.slane %v506_v55, 4  ;;  %v8205_v20 = vld [vmem:[#allocation2 + $0x8] sm:$0xfc]  }
  0x43   : > { %7447 = vmatpush3.bf16.msra.mxu0 %v8187_v52  ;;  %v8191_v52 = vld [vmem:[#allocation2 + $0x30] sm:$0xff]   ;;  %v497_v54 = vrot.slane %v496_v38, 4  ;;  %v535_v2 = vor.u32 %v533_v46, %v532_v61  ;;  %v542_v3 = vsel %vm8628_vm14, %v527_v59, %v541_v43  ;;  %v3910_v13 = vrot.slane %v8698_v47, 2  ;;  %v8219_v47 = vld [vmem:[%s9250_s1 + $0x180] sm:$0xff]  }
  0x44   : > { %v3280_v37 = vor.u32 %v3279_v25, %v3276_v24  ;;  %7448 = vmatprep.subr.bf16.mxu0 %v8189_v16  ;;  %v8197_v57 = vld [vmem:[#allocation2 + $0x30] sm:$0xff]   ;;  %v3283_v63 = vshrl.u32 %v8191_v52, 16  ;;  %v3286_v4 = vshll.u32 %v8191_v52, 16  ;;  %v516_v8 = vsel %vm8592_vm5, %v507_v1, %v515_v44  ;;  %543 = vst [vmem:[#allocation2 + $0x48] sm:$0xf] %v542_v3  ;;  %v8719_v24 = vld [vmem:[#allocation2 + $0x20] sm:$0xff]  }
  0x45   : > { %7210 = vmatprep.mubr.bf16.mxu1 %v8197_v57  ;;  %517 = vst [vmem:[#allocation2 + $0x44] sm:$0xf] %v516_v8  ;;  %v536_v10 = vsel %vm8635_vm4, %v528_v60, %v535_v2  ;;  %v537_v17 = vrot.slane %v532_v61, 4  ;;  %vm3906_vm8 = vcmask 1045504   ;;  %v8214_v25 = vld [vmem:[%s9250_s1 + $0x68] sm:$0xff]   ;;  %v3907_v40 = vrot.slane %v8205_v20, 2 }
  0x46   : > { %v3281_v48 = vsel %vm3237_vm15, %v8667_v51, %v3280_v37  ;;  %v502_v51 = vsel %vm8609_vm9, %v497_v54, %v501_v32  ;;  %v3285_v5 = vrot.slane %v3283_v63, 1  ;;  %v3288_v6 = vrot.slane %v3286_v4, 2  ;;  %544 = vst [vmem:[#allocation2 + $0x4c] sm:$0xf] %v536_v10  ;;  %7244 = vmatprep.subr.bf16.mxu1 %v8214_v25  ;;  %v6369_v54 = vld [vmem:[%s8514_s16 + $0x44] sm:$0xf] }
  0x47   : > { %7411 = vmatmul.mubr.bf16.gmra.mrb[4].mxu0 %v3281_v48  ;;  %514 = vst [vmem:[#allocation2 + $0x40] sm:$0xf] %v502_v51  ;;  %v8193_v9 = vld [vmem:[#allocation2 + $0x38] sm:$0xff]   ;;  %v546_v30 = vsel %vm8641_vm12, %v537_v17, %v545_v28  ;;  %7245 = vmatpush3.bf16.msra.mxu1 %v8214_v25  ;;  %v3912_v57 = vrot.slane %v8719_v24, 2  ;;  %v561_v61 = vshrl.u32 %v6369_v54, 16  ;;  %v564_v63 = vshll.u32 %v6369_v54, 16 }
  0x48   : > { %7449 = vmatpush3.bf16.msra.mxu0 %v8189_v16  ;;  %v3289_v14 = vor.u32 %v3288_v6, %v3285_v5  ;;  %v8199_v16 = vld [vmem:[#allocation2 + $0x38] sm:$0xff]   ;;  %v3292_v18 = vshrl.u32 %v8193_v9, 16  ;;  %v3295_v19 = vshll.u32 %v8193_v9, 16  ;;  %547 = vst [vmem:[#allocation2 + $0x50] sm:$0x1] %v546_v30  ;;  %v3909_v3 = vsel %vm3906_vm8, %v3907_v40, %v3908_v62 }
  0x49   : > { %7450 = vmatprep.subr.bf16.mxu0 %v8194_v31  ;;  %7211 = vmatmul.mubr.bf16.gmra.mrb[12].mxu1 %v8199_v16  ;;  %v573_v4 = vld [vmem:[#allocation2 + $0x50] sm:$0xe]  ;;  %v563_v5 = vrot.slane %v561_v61, 6  ;;  %v566_v6 = vrot.slane %v564_v63, 7  ;;  %v6370_v8 = vld [vmem:[%s8514_s16 + $0x48] sm:$0xf]  ;;  %v3913_v36 = vsel %vm3906_vm8, %v3910_v13, %v3912_v57 }
  0x4a   : > { %v3290_v21 = vsel %vm3237_vm15, %v3280_v37, %v3289_v14  ;;  %v3294_v22 = vrot.slane %v3292_v18, 1  ;;  %v3297_v23 = vrot.slane %v3295_v19, 2  ;;  %v6371_v16 = vld [vmem:[%s8514_s16 + $0x4c] sm:$0xf]  ;;  %v584_v17 = vshrl.u32 %v6370_v8, 16  ;;  %v8765_v61 = vld [vmem:[#allocation2 + $0x30] sm:$0xff]  }
  0x4b   : > { %7414 = vmatprep.mubr.bf16.mxu0 %v3290_v21  ;;  %v567_v19 = vor.u32 %v566_v6, %v563_v5  ;;  %v587_v20 = vshll.u32 %v6370_v8, 16  ;;  %v593_v21 = vshrl.u32 %v6371_v16, 16  ;;  %v596_v25 = vshll.u32 %v6371_v16, 16  ;;  %v6374_v63 = vld [vmem:[%s8514_s16 + $0x58] sm:$0xf] }
  0x4c   : > { %7451 = vmatpush3.bf16.msra.mxu0 %v8194_v31  ;;  %v3298_v29 = vor.u32 %v3297_v23, %v3294_v22  ;;  %v6368_v31 = vld [vmem:[%s8514_s16 + $0x40] sm:$0xf]  ;;  %v586_v23 = vrot.slane %v584_v17, 5  ;;  %v641_v5 = vld [vmem:[#allocation2 + $0x68] sm:$0xf]  ;;  %v651_v6 = vshll.u32 %v6374_v63, 16 }
  0x4d   : > { %7452 = vmatprep.subr.bf16.mxu0 %v8196_v0  ;;  %v552_v33 = vshrl.u32 %v6368_v31, 16  ;;  %v8200_v37 = vld [vmem:[#allocation2 + $0x48] sm:$0xff]   ;;  %v555_v41 = vshll.u32 %v6368_v31, 16  ;;  %v569_v28 = vrot.slane %v567_v19, 4  ;;  %v589_v30 = vrot.slane %v587_v20, 6 }
  0x4e   : > { %v8198_v32 = vld [vmem:[#allocation2 + $0x40] sm:$0xff]   ;;  %v3299_v35 = vsel %vm3237_vm15, %v3289_v14, %v3298_v29  ;;  %v8207_v45 = vld [vmem:[#allocation2 + $0x48] sm:$0xff]   ;;  %v3310_v48 = vshrl.u32 %v8200_v37, 16  ;;  %v3313_v52 = vshll.u32 %v8200_v37, 16  ;;  %v577_v14 = vld [vmem:[#allocation2 + $0x58] sm:$0x3] }
  0x4f   : > { %v8204_v38 = vld [vmem:[#allocation2 + $0x40] sm:$0xff]   ;;  %7415 = vmatmul.mubr.bf16.gmra.mrb[8].mxu0 %v3299_v35  ;;  %v3301_v43 = vshrl.u32 %v8198_v32, 16  ;;  %v3304_v44 = vshll.u32 %v8198_v32, 16  ;;  %v554_v46 = vrot.slane %v552_v33, 6  ;;  %v557_v55 = vrot.slane %v555_v41, 7 }
  0x50   : > { %7453 = vmatpush3.bf16.msra.mxu0 %v8196_v0  ;;  %7214 = vmatprep.mubr.bf16.mxu1 %v8204_v38  ;;  %v3312_v0 = vrot.slane %v3310_v48, 1  ;;  %v3315_v51 = vrot.slane %v3313_v52, 2  ;;  %v595_v31 = vrot.slane %v593_v21, 5  ;;  %v3911_v32 = vsel %vm3906_vm8, %v3908_v62, %v3910_v13  ;;  %v6372_v35 = vld [vmem:[%s8514_s16 + $0x50] sm:$0xf] }
  0x51   : > { %7454 = vmatprep.subr.bf16.mxu0 %v8201_v11  ;;  %v3303_v59 = vrot.slane %v3301_v43, 1  ;;  %v3306_v60 = vrot.slane %v3304_v44, 2  ;;  %7215 = vmatmul.mubr.bf16.gmra.mrb[16].mxu1 %v8207_v45  ;;  %v558_v1 = vor.u32 %v557_v55, %v554_v46  ;;  %v598_v33 = vrot.slane %v596_v25, 6  ;;  %v6373_v37 = vld [vmem:[%s8514_s16 + $0x54] sm:$0xf]  ;;  %v8761_v45 = vld [vmem:[#allocation2 + $0x28] sm:$0xff]  }
  0x52   : > { %v8737_v9 = vor.u32 %v3315_v51, %v3312_v0  ;;  %v578_v38 = vsel %vm8553_vm11, %v569_v28, %v577_v14  ;;  %v590_v40 = vor.u32 %v589_v30, %v586_v23  ;;  %v609_v41 = vld [vmem:[#allocation2 + $0x60] sm:$0x7]  ;;  %v616_v43 = vshll.u32 %v6372_v35, 16  ;;  %v637_v52 = vld [vmem:[#allocation2 + $0x60] sm:$0x8] }
  0x53   : > { %v3307_v2 = vor.u32 %v3306_v60, %v3303_v59  ;;  %v559_v10 = vrot.slane %v558_v1, 4  ;;  %v619_v44 = vshrl.u32 %v6372_v35, 16  ;;  %579 = vst [vmem:[#allocation2 + $0x58] sm:$0x3] %v578_v38  ;;  %v599_v62 = vor.u32 %v598_v33, %v595_v31  ;;  %v667_v8 = vld [vmem:[#allocation2 + $0x6c] sm:$0xf] }
  0x54   : > { %7455 = vmatpush3.bf16.msra.mxu0 %v8201_v11  ;;  %v574_v11 = vsel %vm8531_vm6, %v558_v1, %v573_v4  ;;  %v625_v46 = vshll.u32 %v6373_v37, 16  ;;  %v629_v48 = vshrl.u32 %v6373_v37, 16  ;;  %v591_v54 = vrot.slane %v590_v40, 4  ;;  %v6375_v25 = vld [vmem:[%s8514_s16 + $0x5c] sm:$0xf] }
  0x55   : > { %7456 = vmatprep.subr.bf16.mxu0 %v8203_v26  ;;  %v3308_v18 = vsel %vm3237_vm15, %v3298_v29, %v3307_v2  ;;  %575 = vst [vmem:[#allocation2 + $0x50] sm:$0xe] %v574_v11  ;;  %v3317_v22 = vsel %vm3237_vm15, %v3307_v2, %v8737_v9  ;;  %v605_v29 = vld [vmem:[#allocation2 + $0x58] sm:$0xc]  ;;  %v618_v59 = vrot.slane %v616_v43, 5  ;;  %v621_v60 = vrot.slane %v619_v44, 4 }
  0x56   : > { %7418 = vmatprep.mubr.bf16.mxu0 %v3308_v18  ;;  %v606_v55 = vsel %vm8560_vm13, %v590_v40, %v605_v29  ;;  %v601_v13 = vrot.slane %v599_v62, 4  ;;  %v627_v4 = vrot.slane %v625_v46, 5  ;;  %v631_v0 = vrot.slane %v629_v48, 4  ;;  %v6376_v28 = vld [vmem:[%s8514_s16 + $0x60] sm:$0xf]  ;;  %v8218_v29 = vld [vmem:[#allocation2 + $0x38] sm:$0xff]  }
  0x57   : > { %7419 = vmatmul.mubr.bf16.gmra.mrb[12].mxu0 %v3317_v22  ;;  %607 = vst [vmem:[#allocation2 + $0x58] sm:$0xc] %v606_v55  ;;  %v648_v51 = vshrl.u32 %v6374_v63, 16  ;;  %v600_v1 = vsel %vm8569_vm0, %v591_v54, %v599_v62  ;;  %v622_v2 = vor.u32 %v621_v60, %v618_v59  ;;  %v3916_v23 = vrot.slane %v8765_v61, 2  ;;  %v8793_v43 = vld [vmem:[#allocation2 + $0x40] sm:$0xff]  }
  0x58   : > { %7457 = vmatpush3.bf16.msra.mxu0 %v8203_v26  ;;  %v568_v26 = vsel %vm8545_vm10, %v559_v10, %v567_v19  ;;  %7458 = vmatprep.mubr.bf16.mxu0 %v3909_v3  ;;  %v638_v3 = vsel %vm8601_vm7, %v618_v59, %v637_v52  ;;  %v8220_v10 = vld [vmem:[%s9250_s1 + $0x70] sm:$0xff]   ;;  %608 = vst [vmem:[#allocation2 + $0x5c] sm:$0xf] %v600_v1  ;;  %v3914_v19 = vrot.slane %v8761_v45, 2  ;;  %v659_v33 = vshll.u32 %v6375_v25, 16  ;;  %v8227_v1 = vld [vmem:[%s9250_s1 + $0x78] sm:$0xff]  }
  0x59   : > { %576 = vst [vmem:[#allocation2 + $0x54] sm:$0xf] %v568_v26  ;;  %7494 = vmatprep.subr.bf16.mxu0 %v8219_v47  ;;  %v610_v11 = vsel %vm8576_vm2, %v601_v13, %v609_v41  ;;  %639 = vst [vmem:[#allocation2 + $0x60] sm:$0x8] %v638_v3  ;;  %v632_v14 = vor.u32 %v631_v0, %v627_v4  ;;  %v650_v16 = vrot.slane %v648_v51, 7  ;;  %v623_v18 = vrot.slane %v622_v2, 4 }
  0x5a   : > { %611 = vst [vmem:[#allocation2 + $0x60] sm:$0x7] %v610_v11  ;;  %7246 = vmatprep.subr.bf16.mxu1 %v8220_v10  ;;  %v678_v35 = vshrl.u32 %v6376_v28, 16  ;;  %v681_v37 = vshll.u32 %v6376_v28, 16  ;;  %v3915_v38 = vsel %vm3906_vm8, %v3912_v57, %v3914_v19  ;;  %v671_v41 = vld [vmem:[#allocation2 + $0x74] sm:$0x1]  ;;  %v3917_v62 = vsel %vm3906_vm8, %v3914_v19, %v3916_v23 }
  0x5b   : > { %v633_v20 = vrot.slane %v632_v14, 4  ;;  %v653_v21 = vor.u32 %v651_v6, %v650_v16  ;;  %v628_v22 = vsel %vm8609_vm9, %v623_v18, %v627_v4  ;;  %v654_v26 = vrot.slane %v650_v16, 4  ;;  %7247 = vmatpush3.bf16.msra.mxu1 %v8220_v10  ;;  %v6377_v44 = vld [vmem:[%s8514_s16 + $0x64] sm:$0xf]  ;;  %v699_v55 = vld [vmem:[#allocation2 + $0x74] sm:$0xe] }
  0x5c   : > { %640 = vst [vmem:[#allocation2 + $0x64] sm:$0xf] %v628_v22  ;;  %v680_v45 = vrot.slane %v678_v35, 6  ;;  %v683_v46 = vrot.slane %v681_v37, 7  ;;  %v687_v48 = vshrl.u32 %v6377_v44, 16  ;;  %v690_v59 = vshll.u32 %v6377_v44, 16  ;;  %7248 = vmatprep.subr.bf16.mxu1 %v8227_v1 }
  0x5d   : > { %v642_v30 = vsel %vm8592_vm5, %v633_v20, %v641_v5  ;;  %v668_v31 = vsel %vm8628_vm14, %v653_v21, %v667_v8  ;;  %v3918_v24 = vrot.slane %v8218_v29, 2  ;;  %v3920_v60 = vrot.slane %v8793_v43, 2  ;;  %v6378_v63 = vld [vmem:[%s8514_s16 + $0x68] sm:$0xf]  ;;  %v703_v6 = vld [vmem:[#allocation2 + $0x7c] sm:$0x3] }
  0x5e   : > { %643 = vst [vmem:[#allocation2 + $0x68] sm:$0xf] %v642_v30  ;;  %669 = vst [vmem:[#allocation2 + $0x6c] sm:$0xf] %v668_v31  ;;  %v684_v57 = vor.u32 %v683_v46, %v680_v45  ;;  %v689_v61 = vrot.slane %v687_v48, 6  ;;  %v692_v0 = vrot.slane %v690_v59, 7 }
  0x5f   : > { %7459 = vmatmul.mubr.bf16.vlgmr.msra.gmra.mrb[0].mxu0 %v3911_v32  ;;  %v656_v32 = vshrl.u32 %v6375_v25, 16  ;;  %v8806_v51 = vld [vmem:[#allocation2 + $0x48] sm:$0xff]   ;;  %v710_v8 = vshrl.u32 %v6378_v63, 16  ;;  %v713_v10 = vshll.u32 %v6378_v63, 16  ;;  %7249 = vmatpush3.bf16.msra.mxu1 %v8227_v1  ;;  %v3919_v18 = vsel %vm3906_vm8, %v3916_v23, %v3918_v24  ;;  %v731_v20 = vld [vmem:[#allocation2 + $0x7c] sm:$0xc] }
  0x60   : > { %v8210_v17 = vld [vmem:[#allocation2 + $0x50] sm:$0xff]   ;;  %7462 = vmatprep.mubr.bf16.mxu0 %v3913_v36  ;;  %7495 = vmatpush3.bf16.msra.mxu0 %v8219_v47  ;;  %v8212_v36 = vld [vmem:[#allocation2 + $0x58] sm:$0xff]   ;;  %v8225_v47 = vld [vmem:[%s9250_s1 + $0x188] sm:$0xff]   ;;  %v700_v3 = vsel %vm8531_vm6, %v684_v57, %v699_v55  ;;  %v685_v5 = vrot.slane %v684_v57, 4  ;;  %v693_v14 = vor.u32 %v692_v0, %v689_v61  ;;  %v3921_v25 = vsel %vm3906_vm8, %v3918_v24, %v3920_v60 }
  0x61   : > { %7218 = vmatprep.mubr.bf16.mxu1 %v8210_v17  ;;  %v658_v40 = vrot.slane %v656_v32, 7  ;;  %7496 = vmatprep.subr.bf16.mxu0 %v8225_v47  ;;  %701 = vst [vmem:[#allocation2 + $0x74] sm:$0xe] %v700_v3  ;;  %v712_v16 = vrot.slane %v710_v8, 5  ;;  %v715_v17 = vrot.slane %v713_v10, 6  ;;  %v8817_v22 = vld [vmem:[#allocation2 + $0x50] sm:$0xff]  }
  0x62   : > { %7219 = vmatmul.mubr.bf16.gmra.mrb[20].mxu1 %v8212_v36  ;;  %v694_v27 = vsel %vm8545_vm10, %v685_v5, %v693_v14  ;;  %v695_v19 = vrot.slane %v693_v14, 4  ;;  %v6379_v21 = vld [vmem:[%s8514_s16 + $0x6c] sm:$0xf]  ;;  %v6380_v31 = vld [vmem:[%s8514_s16 + $0x70] sm:$0xf]  ;;  %v3922_v34 = vrot.slane %v8806_v51, 2 }
  0x63   : > { %v661_v52 = vor.u32 %v659_v33, %v658_v40  ;;  %v663_v54 = vrot.slane %v658_v40, 4  ;;  %v8215_v2 = vld [vmem:[#allocation2 + $0x60] sm:$0xff]   ;;  %702 = vst [vmem:[#allocation2 + $0x78] sm:$0xf] %v694_v27  ;;  %v719_v28 = vshrl.u32 %v6379_v21, 16  ;;  %v722_v30 = vshll.u32 %v6379_v21, 16 }
  0x64   : > { %7497 = vmatpush3.bf16.msra.mxu0 %v8225_v47  ;;  %7222 = vmatprep.mubr.bf16.mxu1 %v8215_v2  ;;  %v763_v29 = vld [vmem:[#allocation2 + $0x84] sm:$0x8]  ;;  %v704_v23 = vsel %vm8553_vm11, %v695_v19, %v703_v6  ;;  %v742_v32 = vshll.u32 %v6380_v31, 16  ;;  %v735_v40 = vld [vmem:[#allocation2 + $0x84] sm:$0x7]  ;;  %v745_v44 = vshrl.u32 %v6380_v31, 16  ;;  %v3923_v12 = vsel %vm3906_vm8, %v3920_v60, %v3922_v34 }
  0x65   : > { %v662_v13 = vsel %vm8635_vm4, %v654_v26, %v661_v52  ;;  %v672_v4 = vsel %vm8641_vm12, %v663_v54, %v671_v41  ;;  %v8217_v11 = vld [vmem:[#allocation2 + $0x68] sm:$0xff]   ;;  %v716_v26 = vor.u32 %v715_v17, %v712_v16  ;;  %705 = vst [vmem:[#allocation2 + $0x7c] sm:$0x3] %v704_v23  ;;  %v721_v37 = vrot.slane %v719_v28, 5  ;;  %v6381_v45 = vld [vmem:[%s8514_s16 + $0x74] sm:$0xf] }
  0x66   : > { %670 = vst [vmem:[#allocation2 + $0x70] sm:$0xf] %v662_v13  ;;  %673 = vst [vmem:[#allocation2 + $0x74] sm:$0x1] %v672_v4  ;;  %v744_v41 = vrot.slane %v742_v32, 5  ;;  %v747_v48 = vrot.slane %v745_v44, 4 }
  0x67   : > { %7463 = vmatmul.mubr.bf16.gmra.mrb[4].mxu0 %v3915_v38  ;;  %v732_v33 = vsel %vm8560_vm13, %v716_v26, %v731_v20  ;;  %v717_v35 = vrot.slane %v716_v26, 4  ;;  %v724_v38 = vrot.slane %v722_v30, 6  ;;  %v751_v52 = vshll.u32 %v6381_v45, 16  ;;  %v8230_v54 = vld [vmem:[#allocation2 + $0x58] sm:$0xff]   ;;  %v8231_v55 = vld [vmem:[%s9250_s1 + $0x190] sm:$0xff]   ;;  %v8232_v57 = vld [vmem:[#allocation2] sm:$0xff]  }
  0x68   : > { %7466 = vmatprep.mubr.bf16.mxu0 %v3917_v62  ;;  %733 = vst [vmem:[#allocation2 + $0x7c] sm:$0xc] %v732_v33  ;;  %v3924_v62 = vrot.slane %v8817_v22, 2  ;;  %v764_v46 = vsel %vm8601_vm7, %v744_v41, %v763_v29  ;;  %v755_v49 = vshrl.u32 %v6381_v45, 16  ;;  %v748_v61 = vor.u32 %v747_v48, %v744_v41  ;;  %7498 = vmatprep.subr.bf16.mxu0 %v8231_v55  ;;  %v767_v0 = vld [vmem:[#allocation2 + $0x8c] sm:$0xf] }
  0x69   : > { %v725_v36 = vor.u32 %v724_v38, %v721_v37  ;;  %765 = vst [vmem:[#allocation2 + $0x84] sm:$0x8] %v764_v46  ;;  %v753_v63 = vrot.slane %v751_v52, 5  ;;  %7499 = vmatpush3.bf16.msra.mxu0 %v8231_v55  ;;  %v8233_v1 = vld [vmem:[#allocation2 + $0x8] sm:$0xff]   ;;  %vm1519_vm6 = vsmask.f32 7424 }
  0x6a   : > { %7223 = vmatmul.mubr.bf16.gmra.mrb[24].mxu1 %v8217_v11  ;;  %v757_v47 = vrot.slane %v755_v49, 4  ;;  %v3925_v4 = vsel %vm3906_vm8, %v3922_v34, %v3924_v62  ;;  %v749_v53 = vrot.slane %v748_v61, 4  ;;  %v3926_v3 = vrot.slane %v8230_v54, 2  ;;  %v8234_v58 = vld [vmem:[#allocation2 + $0x60] sm:$0xff]   ;;  %v8235_v16 = vld [vmem:[#allocation2 + $0x10] sm:$0xff]   ;;  %v8237_v15 = vld [vmem:[#allocation2 + $0x68] sm:$0xff]   ;;  %7500 = vmatprep.subr.bf16.mxu0 %v8238_v7 }
  0x6b   : > { %v726_v59 = vsel %vm8569_vm0, %v717_v35, %v725_v36  ;;  %v727_v24 = vrot.slane %v725_v36, 4  ;;  %v1523_v5 = vshll.u32 %v8232_v57, 16  ;;  %v1521_v6 = vshrl.u32 %v8232_v57, 16  ;;  %v8236_v17 = vld [vmem:[%s9250_s1 + $0x80] sm:$0xff]   ;;  %v8861_v46 = vld [vmem:[#allocation2 + $0x28] sm:$0xff]   ;;  %v8863_v54 = vld [vmem:[#allocation2 + $0x30] sm:$0xff]  }
  0x6c   : > { %734 = vst [vmem:[#allocation2 + $0x80] sm:$0xf] %v726_v59  ;;  %v758_v51 = vor.u32 %v757_v47, %v753_v63  ;;  %v754_v43 = vsel %vm8609_vm9, %v749_v53, %v753_v63  ;;  %v1528_v8 = vshll.u32 %v8233_v1, 16  ;;  %v3928_v14 = vrot.slane %v8234_v58, 2  ;;  %7286 = vmatprep.subr.bf16.mxu1 %v8236_v17  ;;  %v8241_v33 = vld [vmem:[#allocation2 + $0x20] sm:$0xff]   ;;  %v8243_v61 = vld [vmem:[%s9250_s1 + $0x88] sm:$0xff]  }
  0x6d   : > { %v8221_v42 = vld [vmem:[#allocation2 + $0x70] sm:$0xff]   ;;  %v736_v13 = vsel %vm8576_vm2, %v727_v24, %v735_v40  ;;  %766 = vst [vmem:[#allocation2 + $0x88] sm:$0xf] %v754_v43  ;;  %v1525_v11 = vrot.slane %v1523_v5, 1  ;;  %v1536_v22 = vshll.u32 %v8235_v16, 16  ;;  %v3930_v26 = vrot.slane %v8237_v15, 2  ;;  %7501 = vmatpush3.bf16.msra.mxu0 %v8238_v7 }
  0x6e   : > { %7226 = vmatprep.mubr.bf16.mxu1 %v8221_v42  ;;  %737 = vst [vmem:[#allocation2 + $0x84] sm:$0x7] %v736_v13  ;;  %v759_v60 = vrot.slane %v758_v51, 4  ;;  %v1530_v19 = vrot.slane %v1528_v8, 1  ;;  %v3929_v20 = vsel %vm3906_vm8, %v3926_v3, %v3928_v14  ;;  %v8240_v28 = vld [vmem:[#allocation2 + $0x70] sm:$0xff]   ;;  %v1532_v30 = vshrl.u32 %v8233_v1, 16 }
  0x6f   : > { %7467 = vmatmul.mubr.bf16.gmra.mrb[8].mxu0 %v3919_v18  ;;  %v8223_v2 = vld [vmem:[#allocation2 + $0x78] sm:$0xff]   ;;  %v3927_v18 = vsel %vm3906_vm8, %v3924_v62, %v3926_v3  ;;  %v1526_v21 = vor.u32 %v1525_v11, %v1521_v6  ;;  %v1540_v34 = vshrl.u32 %v8235_v16, 16  ;;  %v3932_v32 = vrot.slane %v8240_v28, 2  ;;  %v8244_v36 = vld [vmem:[%s9250_s1 + $0x1a0] sm:$0xff]  }
  0x70   : > { %7470 = vmatprep.mubr.bf16.mxu0 %v3921_v25  ;;  %v768_v10 = vsel %vm8592_vm5, %v759_v60, %v767_v0  ;;  %v8239_v25 = vld [vmem:[#allocation2 + $0x18] sm:$0xff]   ;;  %v1538_v37 = vrot.slane %v1536_v22, 1  ;;  %v3931_v38 = vsel %vm3906_vm8, %v3928_v14, %v3930_v26  ;;  %v1534_v41 = vor.u32 %v1532_v30, %v1530_v19  ;;  %7502 = vmatprep.subr.bf16.mxu0 %v8244_v36  ;;  %v8250_v0 = vld [vmem:[%s9250_s1 + $0x1a8] sm:$0xff]   ;;  %v8249_v60 = vld [vmem:[%s9250_s1 + $0x90] sm:$0xff]  }
  0x71   : > { %769 = vst [vmem:[#allocation2 + $0x8c] sm:$0xf] %v768_v10  ;;  %v1544_v31 = vshll.u32 %v8239_v25, 16  ;;  %v1531_v23 = vsel %vm1519_vm6, %v1526_v21, %v1530_v19  ;;  %v8242_v35 = vld [vmem:[#allocation2 + $0x78] sm:$0xff]   ;;  %v1548_v40 = vshrl.u32 %v8239_v25, 16  ;;  %v3933_v42 = vsel %vm3906_vm8, %v3930_v26, %v3932_v32  ;;  %7503 = vmatpush3.bf16.msra.mxu0 %v8244_v36 }
  0x72   : > { %7227 = vmatmul.mubr.bf16.gmra.mrb[28].mxu1 %v8223_v2  ;;  %v1542_v62 = vor.u32 %v1540_v34, %v1538_v37  ;;  %v1552_v45 = vshll.u32 %v8241_v33, 16  ;;  %v3934_v48 = vrot.slane %v8242_v35, 2  ;;  %v1556_v49 = vshrl.u32 %v8241_v33, 16  ;;  %v8879_v53 = vld [vmem:[#allocation2 + $0x38] sm:$0xff]   ;;  %7504 = vmatprep.subr.bf16.mxu0 %v8250_v0 }
  0x73   : > { %v1546_v44 = vrot.slane %v1544_v31, 1  ;;  %v1539_v55 = vsel %vm1519_vm6, %v1534_v41, %v1538_v37  ;;  %v1560_v59 = vshll.u32 %v8861_v46, 16  ;;  %v1568_v63 = vshll.u32 %v8863_v54, 16  ;;  %v6382_v3 = vld [vmem:[%s8514_s16 + $0x78] sm:$0xf]  ;;  %v8253_v31 = vld [vmem:[#allocation2 + $0x40] sm:$0xff]  }
  0x74   : > { %v3935_v13 = vsel %vm3906_vm8, %v3932_v32, %v3934_v48  ;;  %v1572_v6 = vshrl.u32 %v8863_v54, 16  ;;  %v6383_v8 = vld [vmem:[%s8514_s16 + $0x7c] sm:$0xf]  ;;  %v774_v10 = vshrl.u32 %v6382_v3, 16  ;;  %v777_v11 = vshll.u32 %v6382_v3, 16  ;;  %v8258_v37 = vld [vmem:[#allocation2 + $0x48] sm:$0xff]  }
  0x75   : > { %v8226_v27 = vld [vmem:[#allocation2 + $0x80] sm:$0xff]   ;;  %v1547_v57 = vsel %vm1519_vm6, %v1542_v62, %v1546_v44  ;;  %v1550_v51 = vor.u32 %v1548_v40, %v1546_v44  ;;  %v1562_v2 = vrot.slane %v1560_v59, 1  ;;  %v1570_v5 = vrot.slane %v1568_v63, 1  ;;  %7505 = vmatpush3.bf16.msra.mxu0 %v8250_v0  ;;  %v797_v7 = vld [vmem:[#allocation2 + $0x98] sm:$0x1] }
  0x76   : > { %7230 = vmatprep.mubr.bf16.mxu1 %v8226_v27  ;;  %v8246_v52 = vld [vmem:[#allocation2 + $0x80] sm:$0xff]   ;;  %v782_v14 = vshrl.u32 %v6383_v8, 16  ;;  %v785_v16 = vshll.u32 %v6383_v8, 16  ;;  %v1576_v15 = vshll.u32 %v8879_v53, 16  ;;  %v793_v27 = vld [vmem:[#allocation2 + $0x90] sm:$0xf] }
  0x77   : > { %7471 = vmatmul.mubr.bf16.gmra.mrb[12].mxu0 %v3923_v12  ;;  %v3936_v24 = vrot.slane %v8246_v52, 2  ;;  %v1554_v12 = vrot.slane %v1552_v45, 1  ;;  %v8256_v21 = vld [vmem:[%s9250_s1 + $0x98] sm:$0xff]   ;;  %v1584_v39 = vshll.u32 %v8253_v31, 16  ;;  %v1592_v41 = vshll.u32 %v8258_v37, 16  ;;  %v8263_v45 = vld [vmem:[%s9250_s1 + $0xa0] sm:$0xff]  }
  0x78   : > { %7474 = vmatprep.mubr.bf16.mxu0 %v3925_v4  ;;  %v8229_v29 = vld [vmem:[#allocation2 + $0x88] sm:$0xff]   ;;  %v1564_v4 = vshrl.u32 %v8861_v46, 16  ;;  %v8257_v28 = vld [vmem:[%s9250_s1 + $0x1b8] sm:$0xff]   ;;  %v1578_v40 = vrot.slane %v1576_v15, 1  ;;  %v8259_v44 = vld [vmem:[#allocation2 + $0x10] sm:$0xfc]  }
  0x79   : > { %v8872_v47 = vld [vmem:[#allocation2 + $0x88] sm:$0xff]   ;;  %v1558_v1 = vor.u32 %v1556_v49, %v1554_v12  ;;  %v3937_v43 = vsel %vm3906_vm8, %v3934_v48, %v3936_v24  ;;  %v1555_v19 = vsel %vm1519_vm6, %v1550_v51, %v1554_v12  ;;  %v1580_v50 = vshrl.u32 %v8879_v53, 16  ;;  %v8260_v36 = vld [vmem:[#allocation2 + $0x18] sm:$0xff]   ;;  %v8261_v48 = vld [vmem:[#allocation2 + $0x50] sm:$0xff]  }
  0x7a   : > { %7231 = vmatmul.mubr.bf16.gmra.mrb[32].mxu1 %v8229_v29  ;;  %v3938_v58 = vrot.slane %v8872_v47, 2  ;;  %v1566_v32 = vor.u32 %v1564_v4, %v1562_v2  ;;  %v1588_v62 = vshrl.u32 %v8253_v31, 16  ;;  %v1586_v46 = vrot.slane %v1584_v39, 1  ;;  %v8273_v15 = vld [vmem:[%s9250_s1 + $0x1c0] sm:$0xff]  }
  0x7b   : > { %7250 = vmatprep.mubr.bf16.mxu1 %v1531_v23  ;;  %v1563_v22 = vsel %vm1519_vm6, %v1558_v1, %v1562_v2  ;;  %v1594_v52 = vrot.slane %v1592_v41, 1  ;;  %v4442_v49 = vrot.slane %v8259_v44, 2  ;;  %v4443_v59 = vrot.slane %v8260_v36, 2  ;;  %v8281_v41 = vld [vmem:[%s9250_s1 + $0xb8] sm:$0xff]  }
  0x7c   : > { %v3939_v23 = vsel %vm3906_vm8, %v3936_v24, %v3938_v58  ;;  %v8262_v24 = vld [vmem:[#allocation2 + $0x20] sm:$0xff]   ;;  %v1590_v12 = vor.u32 %v1588_v62, %v1586_v46  ;;  %v1596_v0 = vshrl.u32 %v8258_v37, 16  ;;  %v1604_v2 = vshrl.u32 %v8261_v48, 16 }
  0x7d   : > { %v4444_v1 = vsel %vm3906_vm8, %v4442_v49, %v4443_v59  ;;  %v4445_v8 = vrot.slane %v8262_v24, 2  ;;  %v8272_v37 = vld [vmem:[#allocation2 + $0x40] sm:$0xff]   ;;  %vm2166_vm10 = vcmask 1046528   ;;  %vm4977_vm11 = vsmask.f32 5376 }
  0x7e   : > { %v1595_v3 = vsel %vm1519_vm6, %v1590_v12, %v1594_v52  ;;  %v8277_v49 = vld [vmem:[#allocation2 + $0x80] sm:$0xff]   ;;  %v8280_v12 = vld [vmem:[#allocation2 + $0x88] sm:$0xff]   ;;  %vm5646_vm13 = vcmask 1044480  }
  0x7f   : > { %7475 = vmatmul.mubr.bf16.gmra.mrb[16].mxu0 %v3927_v18  ;;  %v776_v18 = vrot.slane %v774_v10, 7  ;;  %v1598_v10 = vor.u32 %v1596_v0, %v1594_v52  ;;  %v4453_v52 = vrot.slane %v8272_v37, 2  ;;  %v8953_v0 = vld [vmem:[%s9250_s1 + $0xc0] sm:$0xff]  }
  0x80   : > { %7478 = vmatprep.mubr.bf16.mxu0 %v3929_v20  ;;  %v784_v20 = vrot.slane %v782_v14, 7  ;;  %v8269_v14 = vld [vmem:[#allocation2 + $0x68] sm:$0xff]  }
  0x81   : > { %v779_v25 = vor.u32 %v777_v11, %v776_v18  ;;  %v780_v26 = vrot.slane %v776_v18, 4  ;;  %v1628_v36 = vshrl.u32 %v8269_v14, 16 }
  0x82   : > { %7251 = vmatmul.mubr.bf16.vlgmr.msra.gmra.mrb[0].mxu1 %v1539_v55  ;;  %v787_v30 = vor.u32 %v785_v16, %v784_v20  ;;  %v789_v29 = vrot.slane %v784_v20, 4  ;;  %v1582_v55 = vor.u32 %v1580_v50, %v1578_v40  ;;  %v4446_v20 = vsel %vm3906_vm8, %v4443_v59, %v4445_v8 }
  0x83   : > { %7287 = vmatpush3.bf16.msra.mxu1 %v8236_v17  ;;  %7254 = vmatprep.mubr.bf16.mxu1 %v1547_v57  ;;  %v8255_v17 = vld [vmem:[%s9250_s1 + $0x1b0] sm:$0xff]   ;;  %v794_v34 = vsel %vm8628_vm14, %v779_v25, %v793_v27 }
  0x84   : > { %7288 = vmatprep.subr.bf16.mxu1 %v8243_v61  ;;  %7506 = vmatprep.subr.bf16.mxu0 %v8255_v17  ;;  %v788_v33 = vsel %vm8635_vm4, %v780_v26, %v787_v30  ;;  %795 = vst [vmem:[#allocation2 + $0x90] sm:$0xf] %v794_v34  ;;  %v798_v35 = vsel %vm8641_vm12, %v789_v29, %v797_v7  ;;  %v8267_v27 = vld [vmem:[#allocation2 + $0x30] sm:$0xff]   ;;  %v1624_v26 = vshll.u32 %v8269_v14, 16  ;;  %v8279_v34 = vld [vmem:[%s9250_s1 + $0x1c8] sm:$0xff]   ;;  %v8284_v14 = vld [vmem:[#allocation2 + $0x60] sm:$0xff]  }
  0x85   : > { %7507 = vmatpush3.bf16.msra.mxu0 %v8255_v17  ;;  %796 = vst [vmem:[#allocation2 + $0x94] sm:$0xf] %v788_v33  ;;  %799 = vst [vmem:[#allocation2 + $0x98] sm:$0x1] %v798_v35  ;;  %v1587_v51 = vsel %vm1519_vm6, %v1582_v55, %v1586_v46  ;;  %v8274_v7 = vld [vmem:[%s9250_s1 + $0xb0] sm:$0xff]  }
  0x86   : > { %7508 = vmatprep.subr.bf16.mxu0 %v8257_v28  ;;  %v8271_v29 = vld [vmem:[#allocation2 + $0x70] sm:$0xff]   ;;  %v1626_v33 = vrot.slane %v1624_v26, 1 }
  0x87   : > { %7479 = vmatmul.mubr.bf16.gmra.mrb[20].mxu0 %v3931_v38  ;;  %7289 = vmatpush3.bf16.msra.mxu1 %v8243_v61  ;;  %v1574_v38 = vor.u32 %v1572_v6, %v1570_v5  ;;  %v8264_v61 = vld [vmem:[#allocation2 + $0x58] sm:$0xff]   ;;  %v8268_v6 = vld [vmem:[%s9250_s1 + $0xa8] sm:$0xff]   ;;  %v1632_v39 = vshll.u32 %v8271_v29, 16 }
  0x88   : > { %7482 = vmatprep.mubr.bf16.mxu0 %v3933_v42  ;;  %7290 = vmatprep.subr.bf16.mxu1 %v8249_v60  ;;  %v1571_v42 = vsel %vm1519_vm6, %v1566_v32, %v1570_v5  ;;  %v1608_v5 = vshll.u32 %v8264_v61, 16  ;;  %v1630_v55 = vor.u32 %v1628_v36, %v1626_v33 }
  0x89   : > { %7509 = vmatpush3.bf16.msra.mxu0 %v8257_v28  ;;  %v1579_v56 = vsel %vm1519_vm6, %v1574_v38, %v1578_v40  ;;  %v8270_v28 = vld [vmem:[#allocation2 + $0x38] sm:$0xff]  }
  0x8a   : > { %7255 = vmatmul.mubr.bf16.gmra.mrb[4].mxu1 %v1555_v19  ;;  %v1610_v17 = vrot.slane %v1608_v5, 1  ;;  %7546 = vmatprep.subr.bf16.mxu0 %v8273_v15  ;;  %v4451_v35 = vrot.slane %v8270_v28, 2  ;;  %v8275_v38 = vld [vmem:[#allocation2 + $0x78] sm:$0xff]  }
  0x8b   : > { %7258 = vmatprep.mubr.bf16.mxu1 %v1563_v22  ;;  %7291 = vmatpush3.bf16.msra.mxu1 %v8249_v60  ;;  %v1612_v22 = vshrl.u32 %v8264_v61, 16  ;;  %v1640_v46 = vshll.u32 %v8275_v38, 16  ;;  %v1648_v61 = vshll.u32 %v8277_v49, 16 }
  0x8c   : > { %7292 = vmatprep.subr.bf16.mxu1 %v8256_v21  ;;  %v8252_v54 = vld [vmem:[#allocation2 + $0x90] sm:$0xff]   ;;  %v8254_v57 = vld [vmem:[#allocation2 + $0x98] ss:$0 sps:$4 sm:$0x33]  }
  0x8d   : > { %v3940_v63 = vrot.slane %v8252_v54, 2  ;;  %v3942_v4 = vrot.slane %v8254_v57, 2  ;;  %v1614_v32 = vor.u32 %v1612_v22, %v1610_v17  ;;  %v8285_v54 = vld [vmem:[%s9250_s1 + $0x1d0] sm:$0xff]   ;;  %v1642_v57 = vrot.slane %v1640_v46, 1  ;;  %v8287_v22 = vld [vmem:[#allocation2 + $0x8] sm:$0xff]  }
  0x8e   : > { %v1650_v5 = vrot.slane %v1648_v61, 1  ;;  %v8301_v61 = vld [vmem:[#allocation2 + $0x30] sm:$0xff]  }
  0x8f   : > { %7483 = vmatmul.mubr.bf16.gmra.mrb[24].mxu0 %v3935_v13  ;;  %7293 = vmatpush3.bf16.msra.mxu1 %v8256_v21  ;;  %v1600_v13 = vshll.u32 %v8261_v48, 16  ;;  %v3941_v53 = vsel %vm3906_vm8, %v3938_v58, %v3940_v63  ;;  %v3943_v60 = vsel %vm3906_vm8, %v3940_v63, %v3942_v4  ;;  %v8266_v58 = vld [vmem:[#allocation2 + $0x60] sm:$0xff]   ;;  %v1634_v48 = vrot.slane %v1632_v39, 1  ;;  %v8278_v63 = vld [vmem:[#allocation2 + $0x50] sm:$0xff]   ;;  %v8293_v39 = vld [vmem:[#allocation2 + $0x18] sm:$0xff]  }
  0x90   : > { %7486 = vmatprep.mubr.bf16.mxu0 %v3937_v43  ;;  %7294 = vmatprep.subr.bf16.mxu1 %v8263_v45  ;;  %v8265_v43 = vld [vmem:[#allocation2 + $0x28] sm:$0xff]   ;;  %v1616_v18 = vshll.u32 %v8266_v58, 16  ;;  %v1620_v25 = vshrl.u32 %v8266_v58, 16  ;;  %v1644_v4 = vshrl.u32 %v8275_v38, 16  ;;  %v8294_v38 = vld [vmem:[#allocation2 + $0x78] sm:$0xff]   ;;  %v2172_v36 = vrot.slane %v8293_v39, 1 }
  0x91   : > { %v1602_v47 = vrot.slane %v1600_v13, 1  ;;  %v4447_v11 = vrot.slane %v8265_v43, 2  ;;  %v4454_v13 = vsel %vm3906_vm8, %v4451_v35, %v4453_v52 }
  0x92   : > { %7259 = vmatmul.mubr.bf16.gmra.mrb[8].mxu1 %v1571_v42  ;;  %v1618_v31 = vrot.slane %v1616_v18, 1  ;;  %v8288_v18 = vld [vmem:[#allocation2 + $0x68] sm:$0xff]  }
  0x93   : > { %7262 = vmatprep.mubr.bf16.mxu1 %v1579_v56  ;;  %7295 = vmatpush3.bf16.msra.mxu1 %v8263_v45  ;;  %v1606_v16 = vor.u32 %v1604_v2, %v1602_v47  ;;  %v1603_v19 = vsel %vm1519_vm6, %v1598_v10, %v1602_v47  ;;  %v4448_v21 = vsel %vm3906_vm8, %v4445_v8, %v4447_v11  ;;  %v8276_v56 = vld [vmem:[#allocation2 + $0x48] sm:$0xff]   ;;  %v1636_v45 = vshrl.u32 %v8271_v29, 16  ;;  %v8282_v2 = vld [vmem:[#allocation2 + $0x58] sm:$0xff]   ;;  %v8283_v47 = vld [vmem:[#allocation2 + $0x90] ss:$0 sps:$4 sm:$0x11]  }
  0x94   : > { %7296 = vmatprep.subr.bf16.mxu1 %v8268_v6  ;;  %v1622_v40 = vor.u32 %v1620_v25, %v1618_v31  ;;  %v1619_v42 = vsel %vm1519_vm6, %v1614_v32, %v1618_v31  ;;  %v4455_v59 = vrot.slane %v8276_v56, 2  ;;  %v1646_v8 = vor.u32 %v1644_v4, %v1642_v57  ;;  %v8311_v56 = vld [vmem:[%s9250_s1 + $0x1f8] sm:$0xff]   ;;  %v8303_v4 = vld [vmem:[%s9250_s1 + $0xd0] sm:$0xff]  }
  0x95   : > { %v1611_v30 = vsel %vm1519_vm6, %v1606_v16, %v1610_v17  ;;  %v1638_v24 = vor.u32 %v1636_v45, %v1634_v48  ;;  %v4459_v58 = vrot.slane %v8282_v2, 2  ;;  %v1660_v17 = vshrl.u32 %v8280_v12, 16  ;;  %v8313_v2 = vld [vmem:[#allocation2 + $0x10] sm:$0xfc]  }
  0x96   : > { %v1627_v62 = vsel %vm1519_vm6, %v1622_v40, %v1626_v33  ;;  %v4461_v25 = vrot.slane %v8284_v14, 2  ;;  %v2168_v29 = vrot.slane %v8287_v22, 1  ;;  %v8291_v33 = vld [vmem:[#allocation2 + $0x70] sm:$0xff]   ;;  %v4982_v14 = vshll.u32 %v8313_v2, 16  ;;  %v8319_v22 = vld [vmem:[#allocation2 + $0x28] sm:$0xff]  }
  0x97   : > { %7487 = vmatmul.mubr.bf16.gmra.mrb[28].mxu0 %v3939_v23  ;;  %7297 = vmatpush3.bf16.msra.mxu1 %v8268_v6  ;;  %v4449_v23 = vrot.slane %v8267_v27, 2  ;;  %v1643_v43 = vsel %vm1519_vm6, %v1638_v24, %v1642_v57  ;;  %v4457_v6 = vrot.slane %v8278_v63, 2  ;;  %v1651_v27 = vsel %vm1519_vm6, %v1646_v8, %v1650_v5 }
  0x98   : > { %7490 = vmatprep.mubr.bf16.mxu0 %v3941_v53  ;;  %7298 = vmatprep.subr.bf16.mxu1 %v8274_v7  ;;  %v1635_v53 = vsel %vm1519_vm6, %v1630_v55, %v1634_v48  ;;  %v4462_v32 = vsel %vm3906_vm8, %v4459_v58, %v4461_v25 }
  0x99   : > { %v4450_v44 = vsel %vm3906_vm8, %v4447_v11, %v4449_v23  ;;  %v4452_v50 = vsel %vm3906_vm8, %v4449_v23, %v4451_v35  ;;  %v4458_v16 = vsel %vm3906_vm8, %v4455_v59, %v4457_v6  ;;  %v8289_v23 = vld [vmem:[#allocation2 + $0x10] sm:$0xff]  }
  0x9a   : > { %7263 = vmatmul.mubr.bf16.gmra.mrb[12].mxu1 %v1587_v51  ;;  %v4456_v51 = vsel %vm3906_vm8, %v4453_v52, %v4455_v59  ;;  %v8295_v52 = vld [vmem:[#allocation2 + $0x20] sm:$0xff]   ;;  %v8299_v59 = vld [vmem:[#allocation2 + $0x28] sm:$0xff]  }
  0x9b   : > { %7266 = vmatprep.mubr.bf16.mxu1 %v1595_v3  ;;  %7299 = vmatpush3.bf16.msra.mxu1 %v8274_v7  ;;  %v8292_v3 = vld [vmem:[%s9250_s1 + $0x1d8] sm:$0xff]   ;;  %v8298_v7 = vld [vmem:[%s9250_s1 + $0x1e0] sm:$0xff]   ;;  %v2174_v57 = vrot.slane %v8295_v52, 1  ;;  %v2176_v63 = vrot.slane %v8299_v59, 1 }
  0x9c   : > { %7300 = vmatprep.subr.bf16.mxu1 %v8281_v41  ;;  %v8335_v59 = vld [vmem:[%s9250_s1 + $0xf8] sm:$0xff]  }
  0x9f   : > { %7491 = vmatmul.mubr.bf16.gmra.mrb[32].mxu0 %v3943_v60  ;;  %7301 = vmatpush3.bf16.msra.mxu1 %v8281_v41  ;;  %v1656_v60 = vshll.u32 %v8280_v12, 16  ;;  %v4465_v41 = vrot.slane %v8291_v33, 2 }
  0xa0   : > { %7510 = vmatprep.mubr.bf16.mxu0 %v4444_v1  ;;  %v1652_v1 = vshrl.u32 %v8277_v49, 16  ;;  %7338 = vmatprep.subr.bf16.mxu1 %v8953_v0  ;;  %v8297_v49 = vld [vmem:[%s9250_s1 + $0xc8] sm:$0xff]  }
  0xa1   : > { %v1658_v11 = vrot.slane %v1656_v60, 1  ;;  %v8310_v60 = vld [vmem:[%s9250_s1 + $0xd8] sm:$0xff]  }
  0xa2   : > { %7267 = vmatmul.mubr.bf16.gmra.mrb[16].mxu1 %v1603_v19  ;;  %v1654_v10 = vor.u32 %v1652_v1, %v1650_v5  ;;  %v4460_v19 = vsel %vm3906_vm8, %v4457_v6, %v4459_v58  ;;  %v8996_v1 = vld [vmem:[#allocation2 + $0x38] sm:$0xff]   ;;  %v2177_v5 = vsel %vm2166_vm10, %v2174_v57, %v2176_v63  ;;  %v2178_v6 = vrot.slane %v8301_v61, 1  ;;  %v8307_v58 = vld [vmem:[#allocation2 + $0x40] sm:$0xff]  }
  0xa3   : > { %7270 = vmatprep.mubr.bf16.mxu1 %v1611_v30  ;;  %v1662_v26 = vor.u32 %v1660_v17, %v1658_v11  ;;  %v4463_v30 = vrot.slane %v8288_v18, 2  ;;  %v2180_v18 = vrot.slane %v8996_v1, 1 }
  0xa5   : > { %v4464_v37 = vsel %vm3906_vm8, %v4461_v25, %v4463_v30  ;;  %v4466_v45 = vsel %vm3906_vm8, %v4463_v30, %v4465_v41  ;;  %v9015_v25 = vld [vmem:[%s9250_s1 + $0x200] sm:$0xff]  }
  0xa7   : > { %7511 = vmatmul.mubr.bf16.vlgmr.msra.gmra.mrb[0].mxu0 %v4446_v20  ;;  %v1664_v20 = vshll.u32 %v8283_v47, 16 }
  0xa8   : > { %7514 = vmatprep.mubr.bf16.mxu0 %v4448_v21  ;;  %7547 = vmatpush3.bf16.msra.mxu0 %v8273_v15  ;;  %v8286_v15 = vld [vmem:[#allocation2] sm:$0xfe]   ;;  %v1659_v21 = vsel %vm1519_vm6, %v1654_v10, %v1658_v11  ;;  %v8308_v10 = vld [vmem:[#allocation2 + $0xa0] ss:$0 sps:$4 sm:$0x33]   ;;  %v4979_v11 = vshrl.u32 %v8313_v2, 16 }
  0xa9   : > { %7548 = vmatprep.subr.bf16.mxu0 %v8279_v34  ;;  %v1666_v28 = vrot.slane %v1664_v20, 1  ;;  %v2167_v31 = vrot.slane %v8286_v15, 1  ;;  %v8326_v2 = vld [vmem:[#allocation2 + $0x40] sm:$0xff]  }
  0xaa   : > { %7271 = vmatmul.mubr.bf16.gmra.mrb[20].mxu1 %v1619_v42  ;;  %v2170_v42 = vrot.slane %v8289_v23, 1  ;;  %v2182_v23 = vrot.slane %v8307_v58, 1 }
  0xab   : > { %7274 = vmatprep.mubr.bf16.mxu1 %v1627_v62  ;;  %v1667_v35 = vsel %vm1519_vm6, %v1662_v26, %v1666_v28  ;;  %v2169_v40 = vsel %vm2166_vm10, %v2167_v31, %v2168_v29  ;;  %v8296_v62 = vld [vmem:[#allocation2 + $0x80] sm:$0xff]   ;;  %v2179_v26 = vsel %vm2166_vm10, %v2176_v63, %v2178_v6 }
  0xac   : > { %7549 = vmatpush3.bf16.msra.mxu0 %v8279_v34  ;;  %v8304_v34 = vld [vmem:[%s9250_s1 + $0x1e8] sm:$0xff]   ;;  %v2171_v46 = vsel %vm2166_vm10, %v2168_v29, %v2170_v42  ;;  %v2173_v55 = vsel %vm2166_vm10, %v2170_v42, %v2172_v36  ;;  %v4469_v24 = vrot.slane %v8296_v62, 2  ;;  %v2181_v29 = vsel %vm2166_vm10, %v2178_v6, %v2180_v18  ;;  %v8315_v42 = vld [vmem:[#allocation2 + $0x50] sm:$0xff]  }
  0xad   : > { %7550 = vmatprep.subr.bf16.mxu0 %v8285_v54  ;;  %v8323_v6 = vld [vmem:[#allocation2 + $0x68] sm:$0xff]  }
  0xaf   : > { %7515 = vmatmul.mubr.bf16.gmra.mrb[4].mxu0 %v4450_v44  ;;  %v8309_v44 = vld [vmem:[%s9250_s1 + $0x1f0] sm:$0xff]  }
  0xb0   : > { %7518 = vmatprep.mubr.bf16.mxu0 %v4452_v50  ;;  %7551 = vmatpush3.bf16.msra.mxu0 %v8285_v54  ;;  %v4467_v50 = vrot.slane %v8294_v38, 2  ;;  %v8300_v54 = vld [vmem:[#allocation2 + $0x88] sm:$0xff]   ;;  %v5005_v38 = vshrl.u32 %v8319_v22, 16 }
  0xb1   : > { %7552 = vmatprep.subr.bf16.mxu0 %v8292_v3  ;;  %v4471_v12 = vrot.slane %v8300_v54, 2  ;;  %v8324_v54 = vld [vmem:[#allocation2 + $0x38] sm:$0xff]  }
  0xb2   : > { %7275 = vmatmul.mubr.bf16.gmra.mrb[24].mxu1 %v1635_v53  ;;  %v4468_v48 = vsel %vm3906_vm8, %v4465_v41, %v4467_v50  ;;  %v8993_v53 = vld [vmem:[#allocation2 + $0x98] sm:$0xff]   ;;  %v5008_v41 = vshll.u32 %v8319_v22, 16 }
  0xb3   : > { %7278 = vmatprep.mubr.bf16.mxu1 %v1643_v43  ;;  %v4472_v43 = vsel %vm3906_vm8, %v4469_v24, %v4471_v12  ;;  %v4475_v8 = vrot.slane %v8993_v53, 2 }
  0xb4   : > { %7553 = vmatpush3.bf16.msra.mxu0 %v8292_v3  ;;  %v8314_v3 = vld [vmem:[#allocation2 + $0x18] sm:$0xff]  }
  0xb5   : > { %7554 = vmatprep.subr.bf16.mxu0 %v8298_v7  ;;  %v4987_v17 = vshrl.u32 %v8314_v3, 16  ;;  %v4990_v15 = vshll.u32 %v8314_v3, 16 }
  0xb7   : > { %7519 = vmatmul.mubr.bf16.gmra.mrb[8].mxu0 %v4454_v13  ;;  %v8302_v13 = vld [vmem:[#allocation2 + $0x90] sm:$0xff]   ;;  %v4989_v30 = vrot.slane %v4987_v17, 2  ;;  %v4992_v31 = vrot.slane %v4990_v15, 3  ;;  %v5035_v15 = vshll.u32 %v8326_v2, 16 }
  0xb8   : > { %7522 = vmatprep.mubr.bf16.mxu0 %v4456_v51  ;;  %7555 = vmatpush3.bf16.msra.mxu0 %v8298_v7  ;;  %v4470_v51 = vsel %vm3906_vm8, %v4467_v50, %v4469_v24  ;;  %v4473_v47 = vrot.slane %v8302_v13, 2  ;;  %v4981_v7 = vrot.slane %v4979_v11, 2  ;;  %v5023_v13 = vshrl.u32 %v8324_v54, 16  ;;  %v9048_v11 = vld [vmem:[%s9250_s1 + $0x100] sm:$0xff]  }
  0xb9   : > { %7556 = vmatprep.subr.bf16.mxu0 %v8304_v34  ;;  %v4993_v39 = vor.u32 %v4992_v31, %v4989_v30  ;;  %v9056_v30 = vld [vmem:[#allocation2 + $0x78] sm:$0xff]   ;;  %v8332_v31 = vld [vmem:[#allocation2 + $0x50] sm:$0xff]  }
  0xba   : > { %7279 = vmatmul.mubr.bf16.gmra.mrb[28].mxu1 %v1651_v27  ;;  %v8317_v27 = vld [vmem:[%s9250_s1 + $0xe0] sm:$0xff]   ;;  %v4474_v20 = vsel %vm3906_vm8, %v4471_v12, %v4473_v47  ;;  %v4476_v28 = vsel %vm3906_vm8, %v4473_v47, %v4475_v8  ;;  %v5025_v47 = vrot.slane %v5023_v13, 2 }
  0xbb   : > { %7282 = vmatprep.mubr.bf16.mxu1 %v1659_v21  ;;  %v4984_v21 = vrot.slane %v4982_v14, 3 }
  0xbc   : > { %7557 = vmatpush3.bf16.msra.mxu0 %v8304_v34  ;;  %v4477_v34 = vrot.slane %v8308_v10, 2  ;;  %v8333_v10 = vld [vmem:[%s9250_s1 + $0x208] sm:$0xff]  }
  0xbd   : > { %7558 = vmatprep.subr.bf16.mxu0 %v8309_v44 }
  0xbf   : > { %7523 = vmatmul.mubr.bf16.gmra.mrb[12].mxu0 %v4458_v16  ;;  %v9005_v16 = vld [vmem:[#allocation2 + $0x48] sm:$0xff]  }
  0xc0   : > { %7526 = vmatprep.mubr.bf16.mxu0 %v4460_v19  ;;  %7559 = vmatpush3.bf16.msra.mxu0 %v8309_v44  ;;  %v8316_v19 = vld [vmem:[#allocation2 + $0x20] sm:$0xff]   ;;  %v2184_v33 = vrot.slane %v9005_v16, 1  ;;  %v8328_v44 = vld [vmem:[%s9250_s1 + $0xf0] sm:$0xff]   ;;  %v5032_v16 = vshrl.u32 %v8326_v2, 16 }
  0xc1   : > { %7560 = vmatprep.subr.bf16.mxu0 %v8311_v56 }
  0xc2   : > { %7283 = vmatmul.mubr.bf16.gmra.mrb[32].mxu1 %v1667_v35  ;;  %v4996_v35 = vshrl.u32 %v8316_v19, 16  ;;  %v5034_v22 = vrot.slane %v5032_v16, 2 }
  0xc3   : > { %7302 = vmatprep.mubr.bf16.mxu1 %v2169_v40  ;;  %v4985_v40 = vor.u32 %v4984_v21, %v4981_v7  ;;  %v8339_v7 = vld [vmem:[%s9250_s1 + $0x210] sm:$0xff]  }
  0xc4   : > { %7561 = vmatpush3.bf16.msra.mxu0 %v8311_v56  ;;  %v4998_v50 = vrot.slane %v4996_v35, 2  ;;  %v4478_v56 = vsel %vm3906_vm8, %v4475_v8, %v4477_v34  ;;  %v8325_v21 = vld [vmem:[#allocation2 + $0x70] sm:$0xff]  }
  0xc5   : > { %7598 = vmatprep.subr.bf16.mxu0 %v9015_v25  ;;  %v4994_v52 = vsel %vm4977_vm11, %v4985_v40, %v4993_v39  ;;  %v5050_v40 = vshrl.u32 %v8332_v31, 16 }
  0xc7   : > { %7527 = vmatmul.mubr.bf16.gmra.mrb[16].mxu0 %v4462_v32  ;;  %v8322_v32 = vld [vmem:[%s9250_s1 + $0xe8] sm:$0xff]  }
  0xc8   : > { %7530 = vmatprep.mubr.bf16.mxu0 %v4464_v37  ;;  %v4999_v37 = vshll.u32 %v8316_v19, 16 }
  0xca   : > { %7303 = vmatmul.mubr.bf16.vlgmr.msra.gmra.mrb[0].mxu1 %v2171_v46  ;;  %v5001_v62 = vrot.slane %v4999_v37, 3  ;;  %v5007_v46 = vrot.slane %v5005_v38, 2  ;;  %v2194_v37 = vrot.slane %v8325_v21, 1 }
  0xcb   : > { %7339 = vmatpush3.bf16.msra.mxu1 %v8953_v0  ;;  %7306 = vmatprep.mubr.bf16.mxu1 %v2173_v55  ;;  %v2175_v0 = vsel %vm2166_vm10, %v2172_v36, %v2174_v57  ;;  %v8321_v36 = vld [vmem:[#allocation2 + $0x30] sm:$0xff]   ;;  %v2185_v55 = vsel %vm2166_vm10, %v2182_v23, %v2184_v33  ;;  %v2186_v57 = vrot.slane %v8315_v42, 1 }
  0xcc   : > { %7340 = vmatprep.subr.bf16.mxu1 %v8297_v49  ;;  %v5014_v24 = vshrl.u32 %v8321_v36, 16  ;;  %v5002_v12 = vor.u32 %v5001_v62, %v4998_v50  ;;  %v5017_v61 = vshll.u32 %v8321_v36, 16  ;;  %v2196_v50 = vrot.slane %v9056_v30, 1  ;;  %v8350_v36 = vld [vmem:[%s9250_s1 + $0x220] sm:$0xff]  }
  0xcd   : > { %v2187_v3 = vsel %vm2166_vm10, %v2184_v33, %v2186_v57  ;;  %v8345_v33 = vld [vmem:[%s9250_s1 + $0x218] sm:$0xff]  }
  0xce   : > { %v5016_v1 = vrot.slane %v5014_v24, 2 }
  0xcf   : > { %7531 = vmatmul.mubr.bf16.gmra.mrb[20].mxu0 %v4466_v45  ;;  %7341 = vmatpush3.bf16.msra.mxu1 %v8297_v49  ;;  %v9029_v45 = vld [vmem:[#allocation2 + $0x58] sm:$0xff]   ;;  %v5010_v49 = vrot.slane %v5008_v41, 3 }
  0xd0   : > { %7534 = vmatprep.mubr.bf16.mxu0 %v4468_v48  ;;  %7342 = vmatprep.subr.bf16.mxu1 %v8303_v4  ;;  %v2183_v48 = vsel %vm2166_vm10, %v2180_v18, %v2182_v23  ;;  %v2188_v53 = vrot.slane %v9029_v45, 1  ;;  %v5052_v45 = vrot.slane %v5050_v40, 2 }
  0xd1   : > { %v5011_v63 = vor.u32 %v5010_v49, %v5007_v46 }
  0xd2   : > { %7307 = vmatmul.mubr.bf16.gmra.mrb[4].mxu1 %v2175_v0  ;;  %v5003_v0 = vsel %vm4977_vm11, %v4993_v39, %v5002_v12  ;;  %v2189_v58 = vsel %vm2166_vm10, %v2186_v57, %v2188_v53  ;;  %v5053_v39 = vshll.u32 %v8332_v31, 16  ;;  %v2197_v57 = vsel %vm2166_vm10, %v2194_v37, %v2196_v50  ;;  %v8343_v31 = vld [vmem:[#allocation2 + $0x18] sm:$0xff]  }
  0xd3   : > { %7310 = vmatprep.mubr.bf16.mxu1 %v2177_v5  ;;  %7343 = vmatpush3.bf16.msra.mxu1 %v8303_v4  ;;  %v5026_v4 = vshll.u32 %v8324_v54, 16  ;;  %v5012_v5 = vsel %vm4977_vm11, %v5002_v12, %v5011_v63  ;;  %v8331_v54 = vld [vmem:[#allocation2 + $0x80] sm:$0xff]   ;;  %v8355_v12 = vld [vmem:[%s9250_s1 + $0x228] sm:$0xff]  }
  0xd4   : > { %7344 = vmatprep.subr.bf16.mxu1 %v8310_v60  ;;  %v5055_v46 = vrot.slane %v5053_v39, 3  ;;  %v8346_v39 = vld [vmem:[#allocation2 + $0x20] sm:$0xff]  }
  0xd5   : > { %v5028_v8 = vrot.slane %v5026_v4, 3 }
  0xd7   : > { %7535 = vmatmul.mubr.bf16.gmra.mrb[24].mxu0 %v4470_v51  ;;  %7345 = vmatpush3.bf16.msra.mxu1 %v8310_v60  ;;  %v8320_v51 = vld [vmem:[#allocation2 + $0x60] sm:$0xff]   ;;  %v8330_v60 = vld [vmem:[#allocation2 + $0x48] sm:$0xff]   ;;  %v5029_v19 = vor.u32 %v5028_v8, %v5025_v47  ;;  %v8341_v47 = vld [vmem:[#allocation2 + $0x10] sm:$0xff]  }
  0xd8   : > { %7538 = vmatprep.mubr.bf16.mxu0 %v4472_v43  ;;  %7346 = vmatprep.subr.bf16.mxu1 %v8317_v27  ;;  %v5019_v43 = vrot.slane %v5017_v61, 3  ;;  %v2190_v14 = vrot.slane %v8320_v51, 1  ;;  %v5041_v18 = vshrl.u32 %v8330_v60, 16  ;;  %v2703_v30 = vrot.slane %v8341_v47, 1 }
  0xda   : > { %7311 = vmatmul.mubr.bf16.gmra.mrb[8].mxu1 %v2179_v26  ;;  %v5020_v17 = vor.u32 %v5019_v43, %v5016_v1  ;;  %v5043_v34 = vrot.slane %v5041_v18, 2  ;;  %v8361_v18 = vld [vmem:[%s9250_s1 + $0x238] sm:$0xff]  }
  0xdb   : > { %7314 = vmatprep.mubr.bf16.mxu1 %v2181_v29  ;;  %7347 = vmatpush3.bf16.msra.mxu1 %v8317_v27  ;;  %v5044_v27 = vshll.u32 %v8330_v60, 16  ;;  %v2191_v29 = vsel %vm2166_vm10, %v2188_v53, %v2190_v14  ;;  %v2198_v53 = vrot.slane %v8331_v54, 1  ;;  %v8344_v60 = vld [vmem:[#allocation2 + $0x70] sm:$0xff]  }
  0xdc   : > { %7348 = vmatprep.subr.bf16.mxu1 %v8322_v32  ;;  %v5021_v26 = vsel %vm4977_vm11, %v5011_v63, %v5020_v17  ;;  %v5030_v23 = vsel %vm4977_vm11, %v5020_v17, %v5029_v19  ;;  %v5056_v63 = vor.u32 %v5055_v46, %v5052_v45  ;;  %v8347_v17 = vld [vmem:[#allocation2 + $0x78] sm:$0xff]   ;;  %v2707_v45 = vrot.slane %v8346_v39, 1  ;;  %v8348_v46 = vld [vmem:[#allocation2 + $0x28] sm:$0xff]  }
  0xdf   : > { %7539 = vmatmul.mubr.bf16.gmra.mrb[28].mxu0 %v4474_v20  ;;  %7349 = vmatpush3.bf16.msra.mxu1 %v8322_v32  ;;  %v2192_v20 = vrot.slane %v8323_v6, 1  ;;  %v8336_v32 = vld [vmem:[#allocation2 + $0x58] sm:$0xff]   ;;  %v8340_v6 = vld [vmem:[#allocation2 + $0x8] sm:$0xfe]  }
  0xe0   : > { %7542 = vmatprep.mubr.bf16.mxu0 %v4476_v28  ;;  %7350 = vmatprep.subr.bf16.mxu1 %v8328_v44  ;;  %v5037_v28 = vrot.slane %v5035_v15, 3  ;;  %v5062_v42 = vshll.u32 %v8336_v32, 16 }
  0xe1   : > { %v2193_v35 = vsel %vm2166_vm10, %v2190_v14, %v2192_v20 }
  0xe2   : > { %7315 = vmatmul.mubr.bf16.gmra.mrb[12].mxu1 %v2183_v48  ;;  %v5038_v38 = vor.u32 %v5037_v28, %v5034_v22  ;;  %v8342_v48 = vld [vmem:[#allocation2 + $0x68] sm:$0xff]   ;;  %v5064_v24 = vrot.slane %v5062_v42, 3  ;;  %v5095_v22 = vshrl.u32 %v8347_v17, 16  ;;  %v2702_v28 = vrot.slane %v8340_v6, 1 }
  0xe3   : > { %7318 = vmatprep.mubr.bf16.mxu1 %v2185_v55  ;;  %7351 = vmatpush3.bf16.msra.mxu1 %v8328_v44  ;;  %v5059_v44 = vshrl.u32 %v8336_v32, 16  ;;  %v8334_v55 = vld [vmem:[#allocation2 + $0x88] sm:$0xff]   ;;  %v5077_v4 = vshrl.u32 %v8342_v48, 16  ;;  %v5080_v1 = vshll.u32 %v8342_v48, 16 }
  0xe4   : > { %7352 = vmatprep.subr.bf16.mxu1 %v8335_v59  ;;  %v5039_v62 = vsel %vm4977_vm11, %v5029_v19, %v5038_v38  ;;  %v2200_v2 = vrot.slane %v8334_v55, 1  ;;  %v8352_v32 = vld [vmem:[#allocation2 + $0x88] sm:$0xff]   ;;  %v2704_v40 = vsel %vm2166_vm10, %v2702_v28, %v2703_v30 }
  0xe5   : > { %v5079_v8 = vrot.slane %v5077_v4, 2  ;;  %v5082_v16 = vrot.slane %v5080_v1, 3 }
  0xe6   : > { %v2201_v15 = vsel %vm2166_vm10, %v2198_v53, %v2200_v2 }
  0xe7   : > { %7543 = vmatmul.mubr.bf16.gmra.mrb[32].mxu0 %v4478_v56  ;;  %7353 = vmatpush3.bf16.msra.mxu1 %v8335_v59  ;;  %v8338_v56 = vld [vmem:[#allocation2 + $0x60] sm:$0xff]   ;;  %v5061_v59 = vrot.slane %v5059_v44, 2  ;;  %v5083_v21 = vor.u32 %v5082_v16, %v5079_v8 }
  0xe8   : > { %7562 = vmatprep.mubr.bf16.mxu0 %v4994_v52  ;;  %7650 = vmatprep.subr.bf16.mxu1 %v9048_v11  ;;  %v2195_v52 = vsel %vm2166_vm10, %v2192_v20, %v2194_v37  ;;  %v5068_v61 = vshrl.u32 %v8338_v56, 16  ;;  %v5071_v13 = vshll.u32 %v8338_v56, 16  ;;  %v5097_v37 = vrot.slane %v5095_v22, 2  ;;  %v8404_v22 = vld [vmem:[%s9250_s1 + $0x118] sm:$0xff]  }
  0xe9   : > { %v5065_v51 = vor.u32 %v5064_v24, %v5061_v59 }
  0xea   : > { %7319 = vmatmul.mubr.bf16.gmra.mrb[16].mxu1 %v2187_v3  ;;  %v5070_v43 = vrot.slane %v5068_v61, 2 }
  0xeb   : > { %7322 = vmatprep.mubr.bf16.mxu1 %v2189_v58  ;;  %v8360_v58 = vld [vmem:[%s9250_s1 + $0x230] sm:$0xff]   ;;  %v5066_v14 = vsel %vm4977_vm11, %v5056_v63, %v5065_v51 }
  0xef   : > { %7563 = vmatmul.mubr.bf16.vlgmr.msra.gmra.mrb[0].mxu0 %v5003_v0  ;;  %v8337_v0 = vld [vmem:[#allocation2 + $0x90] ss:$0 sps:$4 sm:$0x11]  }
  0xf0   : > { %7566 = vmatprep.mubr.bf16.mxu0 %v5012_v5  ;;  %7599 = vmatpush3.bf16.msra.mxu0 %v9015_v25  ;;  %v5046_v25 = vrot.slane %v5044_v27, 3  ;;  %v5073_v5 = vrot.slane %v5071_v13, 3  ;;  %v5086_v27 = vshrl.u32 %v8344_v60, 16  ;;  %v2202_v19 = vrot.slane %v8337_v0, 1 }
  0xf1   : > { %7600 = vmatprep.subr.bf16.mxu0 %v8333_v10  ;;  %v2709_v13 = vrot.slane %v8348_v46, 1 }
  0xf2   : > { %7323 = vmatmul.mubr.bf16.gmra.mrb[20].mxu1 %v2191_v29  ;;  %v5047_v41 = vor.u32 %v5046_v25, %v5043_v34  ;;  %v5074_v20 = vor.u32 %v5073_v5, %v5070_v43  ;;  %v5088_v29 = vrot.slane %v5086_v27, 2  ;;  %v8402_v43 = vld [vmem:[%s9250_s1 + $0x108] sm:$0xff]   ;;  %v8353_v5 = vld [vmem:[#allocation2 + $0x38] sm:$0xff]  }
  0xf3   : > { %7326 = vmatprep.mubr.bf16.mxu1 %v2193_v35 }
  0xf4   : > { %7601 = vmatpush3.bf16.msra.mxu0 %v8333_v10  ;;  %v5048_v49 = vsel %vm4977_vm11, %v5038_v38, %v5047_v41  ;;  %v5057_v3 = vsel %vm4977_vm11, %v5047_v41, %v5056_v63  ;;  %v2199_v10 = vsel %vm2166_vm10, %v2196_v50, %v2198_v53  ;;  %v5075_v34 = vsel %vm4977_vm11, %v5065_v51, %v5074_v20  ;;  %v8351_v63 = vld [vmem:[#allocation2 + $0x30] sm:$0xff]  }
  0xf5   : > { %7602 = vmatprep.subr.bf16.mxu0 %v8339_v7  ;;  %v5084_v35 = vsel %vm4977_vm11, %v5074_v20, %v5083_v21  ;;  %v5113_v50 = vshrl.u32 %v8352_v32, 16  ;;  %v2713_v20 = vrot.slane %v8353_v5, 1 }
  0xf7   : > { %7567 = vmatmul.mubr.bf16.gmra.mrb[4].mxu0 %v5021_v26  ;;  %v5098_v26 = vshll.u32 %v8347_v17, 16  ;;  %v5115_v55 = vrot.slane %v5113_v50, 2  ;;  %v8403_v17 = vld [vmem:[%s9250_s1 + $0x110] sm:$0xff]   ;;  %v8366_v50 = vld [vmem:[#allocation2 + $0x20] sm:$0xff]  }
  0xf8   : > { %7570 = vmatprep.mubr.bf16.mxu0 %v5030_v23  ;;  %7603 = vmatpush3.bf16.msra.mxu0 %v8339_v7  ;;  %v5089_v7 = vshll.u32 %v8344_v60, 16  ;;  %v8349_v23 = vld [vmem:[#allocation2 + $0x80] sm:$0xff]   ;;  %v2711_v60 = vrot.slane %v8351_v63, 1 }
  0xf9   : > { %7604 = vmatprep.subr.bf16.mxu0 %v8345_v33  ;;  %v5100_v38 = vrot.slane %v5098_v26, 3  ;;  %v5104_v41 = vshrl.u32 %v8349_v23, 16  ;;  %v5107_v42 = vshll.u32 %v8349_v23, 16  ;;  %v8358_v26 = vld [vmem:[#allocation2 + $0x48] sm:$0xff]  }
  0xfa   : > { %7327 = vmatmul.mubr.bf16.gmra.mrb[24].mxu1 %v2195_v52  ;;  %v5091_v25 = vrot.slane %v5089_v7, 3  ;;  %v8354_v52 = vld [vmem:[#allocation2 + $0x90] sm:$0xff]   ;;  %v2712_v16 = vsel %vm2166_vm10, %v2709_v13, %v2711_v60  ;;  %v2714_v23 = vsel %vm2166_vm10, %v2711_v60, %v2713_v20 }
  0xfb   : > { %7330 = vmatprep.mubr.bf16.mxu1 %v2197_v57  ;;  %v5101_v56 = vor.u32 %v5100_v38, %v5097_v37  ;;  %v5106_v48 = vrot.slane %v5104_v41, 2  ;;  %v5109_v54 = vrot.slane %v5107_v42, 3  ;;  %v5122_v53 = vshrl.u32 %v8354_v52, 16 }
  0xfc   : > { %7605 = vmatpush3.bf16.msra.mxu0 %v8345_v33  ;;  %v2203_v33 = vsel %vm2166_vm10, %v2200_v2, %v2202_v19  ;;  %v5092_v44 = vor.u32 %v5091_v25, %v5088_v29  ;;  %v5125_v51 = vshll.u32 %v8354_v52, 16  ;;  %v8363_v29 = vld [vmem:[#allocation2 + $0x10] sm:$0xf8]   ;;  %v8364_v25 = vld [vmem:[#allocation2 + $0x18] sm:$0xff]   ;;  %v2717_v38 = vrot.slane %v8358_v26, 1 }
  0xfd   : > { %7606 = vmatprep.subr.bf16.mxu0 %v8350_v36  ;;  %v5110_v4 = vor.u32 %v5109_v54, %v5106_v48  ;;  %v5124_v47 = vrot.slane %v5122_v53, 2  ;;  %v5648_v39 = vrot.slane %v8364_v25, 3  ;;  %v8367_v48 = vld [vmem:[#allocation2 + $0x60] sm:$0xff]   ;;  %v8407_v52 = vld [vmem:[%s9250_s1 + $0x130] sm:$0xff]  }
  0xfe   : > { %v5102_v24 = vsel %vm4977_vm11, %v5092_v44, %v5101_v56  ;;  %v5127_v8 = vrot.slane %v5125_v51, 3  ;;  %v8371_v51 = vld [vmem:[#allocation2 + $0x70] sm:$0xff]  }
  0xff   : > { %7571 = vmatmul.mubr.bf16.gmra.mrb[8].mxu0 %v5039_v62  ;;  %v5116_v62 = vshll.u32 %v8352_v32, 16  ;;  %v5111_v6 = vsel %vm4977_vm11, %v5101_v56, %v5110_v4  ;;  %v8383_v26 = vld [vmem:[#allocation2 + $0x50] sm:$0xff]  }
 0x100   : > { %7574 = vmatprep.mubr.bf16.mxu0 %v5048_v49  ;;  %7607 = vmatpush3.bf16.msra.mxu0 %v8350_v36  ;;  %v2705_v36 = vrot.slane %v8343_v31, 1  ;;  %v5093_v49 = vsel %vm4977_vm11, %v5083_v21, %v5092_v44  ;;  %v5128_v19 = vor.u32 %v5127_v8, %v5124_v47  ;;  %v8406_v44 = vld [vmem:[%s9250_s1 + $0x128] sm:$0xff]   ;;  %v8373_v47 = vld [vmem:[#allocation2 + $0x78] sm:$0xff]  }
 0x101   : > { %7608 = vmatprep.subr.bf16.mxu0 %v8355_v12  ;;  %v5118_v57 = vrot.slane %v5116_v62, 3  ;;  %v8365_v62 = vld [vmem:[#allocation2 + $0x58] sm:$0xff]   ;;  %v8376_v8 = vld [vmem:[#allocation2 + $0x48] sm:$0xff]  }
 0x102   : > { %7331 = vmatmul.mubr.bf16.gmra.mrb[28].mxu1 %v2199_v10  ;;  %v2706_v59 = vsel %vm2166_vm10, %v2703_v30, %v2705_v36  ;;  %v2708_v61 = vsel %vm2166_vm10, %v2705_v36, %v2707_v45  ;;  %v2721_v54 = vrot.slane %v8365_v62, 1 }
 0x103   : > { %7334 = vmatprep.mubr.bf16.mxu1 %v2201_v15  ;;  %v5119_v1 = vor.u32 %v5118_v57, %v5115_v55  ;;  %v8356_v15 = vld [vmem:[#allocation2 + $0x40] sm:$0xff]  }
 0x104   : > { %7609 = vmatpush3.bf16.msra.mxu0 %v8355_v12  ;;  %v8357_v12 = vld [vmem:[#allocation2 + $0x98] sm:$0xff]   ;;  %v2715_v21 = vrot.slane %v8356_v15, 1 }
 0x105   : > { %7610 = vmatprep.subr.bf16.mxu0 %v8360_v58  ;;  %v5131_v2 = vshrl.u32 %v8357_v12, 16  ;;  %v5134_v0 = vshll.u32 %v8357_v12, 16  ;;  %v5129_v31 = vsel %vm4977_vm11, %v5119_v1, %v5128_v19  ;;  %v8370_v12 = vld [vmem:[#allocation2 + $0x30] sm:$0xff]  }
 0x106   : > { %v2716_v32 = vsel %vm2166_vm10, %v2713_v20, %v2715_v21  ;;  %v2718_v36 = vsel %vm2166_vm10, %v2715_v21, %v2717_v38  ;;  %v8377_v20 = vld [vmem:[#allocation2 + $0x88] sm:$0xff]  }
 0x107   : > { %7575 = vmatmul.mubr.bf16.gmra.mrb[12].mxu0 %v5057_v3  ;;  %v8359_v3 = vld [vmem:[#allocation2 + $0xa0] ss:$0 sps:$4 sm:$0x77]   ;;  %v5133_v10 = vrot.slane %v5131_v2, 2 }
 0x108   : > { %7578 = vmatprep.mubr.bf16.mxu0 %v5066_v14  ;;  %7611 = vmatpush3.bf16.msra.mxu0 %v8360_v58  ;;  %v2710_v58 = vsel %vm2166_vm10, %v2707_v45, %v2709_v13  ;;  %v5136_v14 = vrot.slane %v5134_v0, 3  ;;  %v5143_v27 = vshll.u32 %v8359_v3, 16  ;;  %v8368_v45 = vld [vmem:[#allocation2 + $0x28] sm:$0xff]  }
 0x109   : > { %7612 = vmatprep.subr.bf16.mxu0 %v8361_v18  ;;  %v5652_v55 = vrot.slane %v8368_v45, 3  ;;  %v8369_v13 = vld [vmem:[#allocation2 + $0x68] sm:$0xff]  }
 0x10a   : > { %7335 = vmatmul.mubr.bf16.gmra.mrb[32].mxu1 %v2203_v33  ;;  %v5137_v7 = vor.u32 %v5136_v14, %v5133_v10  ;;  %v5145_v30 = vrot.slane %v5143_v27, 3  ;;  %v8362_v33 = vld [vmem:[#allocation2 + $0x50] sm:$0xff]   ;;  %v2725_v2 = vrot.slane %v8369_v13, 1  ;;  %v2729_v14 = vrot.slane %v8373_v47, 1  ;;  %v8390_v47 = vld [vmem:[#allocation2 + $0x80] sm:$0xff]  }
 0x10b   : > { %7354 = vmatprep.mubr.bf16.mxu1 %v2704_v40  ;;  %v5647_v40 = vrot.slane %v8363_v29, 3  ;;  %v2719_v41 = vrot.slane %v8362_v33, 1 }
 0x10c   : > { %7613 = vmatpush3.bf16.msra.mxu0 %v8361_v18  ;;  %v5140_v18 = vshrl.u32 %v8359_v3, 16  ;;  %v8374_v3 = vld [vmem:[#allocation2 + $0x40] sm:$0xff]  }
 0x10d   : > { %v5649_v56 = vsel %vm5646_vm13, %v5647_v40, %v5648_v39  ;;  %v2720_v46 = vsel %vm2166_vm10, %v2717_v38, %v2719_v41  ;;  %v5658_v10 = vrot.slane %v8374_v3, 3  ;;  %v8384_v38 = vld [vmem:[#allocation2 + $0x68] sm:$0xff]   ;;  %v8385_v40 = vld [vmem:[#allocation2 + $0x58] sm:$0xff]  }
 0x10e   : > { %v5142_v28 = vrot.slane %v5140_v18, 2  ;;  %v8378_v18 = vld [vmem:[#allocation2 + $0x50] sm:$0xff]   ;;  %v3328_v62 = vshrl.u32 %v8385_v40, 16  ;;  %v3331_v45 = vshll.u32 %v8385_v40, 16 }
 0x10f   : > { %7579 = vmatmul.mubr.bf16.gmra.mrb[16].mxu0 %v5075_v34  ;;  %v5138_v34 = vsel %vm4977_vm11, %v5128_v19, %v5137_v7  ;;  %v8399_v40 = vld [vmem:[#allocation2 + $0x90] sm:$0xff]  }
 0x110   : > { %7582 = vmatprep.mubr.bf16.mxu0 %v5084_v35  ;;  %v8405_v35 = vld [vmem:[%s9250_s1 + $0x120] sm:$0xff]   ;;  %v5146_v37 = vor.u32 %v5145_v30, %v5142_v28  ;;  %v5662_v28 = vrot.slane %v8378_v18, 3  ;;  %v2733_v30 = vrot.slane %v8377_v20, 1 }
 0x111   : > { %v8395_v18 = vld [vmem:[#allocation2 + $0x80] sm:$0xff]  }
 0x112   : > { %7355 = vmatmul.mubr.bf16.vlgmr.msra.gmra.mrb[0].mxu1 %v2706_v59  ;;  %v5147_v42 = vsel %vm4977_vm11, %v5137_v7, %v5146_v37  ;;  %v2723_v59 = vrot.slane %v8367_v48, 1  ;;  %v8380_v7 = vld [vmem:[#allocation2 + $0x58] sm:$0xff]  }
 0x113   : > { %7658 = vmatpush3.bf16.msra.mxu1 %v9048_v11  ;;  %7358 = vmatprep.mubr.bf16.mxu1 %v2708_v61  ;;  %v5120_v11 = vsel %vm4977_vm11, %v5110_v4, %v5119_v1  ;;  %v2722_v61 = vsel %vm2166_vm10, %v2719_v41, %v2721_v54  ;;  %v8372_v4 = vld [vmem:[#allocation2 + $0x38] sm:$0xff]   ;;  %v5654_v1 = vrot.slane %v8370_v12, 3 }
 0x114   : > { %7651 = vmatprep.subr.bf16.mxu1 %v8402_v43  ;;  %v2724_v53 = vsel %vm2166_vm10, %v2721_v54, %v2723_v59  ;;  %v5656_v0 = vrot.slane %v8372_v4, 3  ;;  %v2726_v5 = vsel %vm2166_vm10, %v2723_v59, %v2725_v2  ;;  %v8381_v37 = vld [vmem:[#allocation2 + $0x98] ss:$0 sps:$4 sm:$0x11]   ;;  %v8386_v54 = vld [vmem:[#allocation2 + $0x70] sm:$0xff]  }
 0x115   : > { %v5655_v60 = vsel %vm5646_vm13, %v5652_v55, %v5654_v1  ;;  %v8388_v12 = vld [vmem:[#allocation2 + $0x78] sm:$0xff]  }
 0x116   : > { %v5659_v15 = vsel %vm5646_vm13, %v5656_v0, %v5658_v10 }
 0x117   : > { %7583 = vmatmul.mubr.bf16.gmra.mrb[20].mxu0 %v5093_v49  ;;  %7659 = vmatpush3.bf16.msra.mxu1 %v8402_v43  ;;  %v5650_v49 = vrot.slane %v8366_v50, 3  ;;  %v2727_v43 = vrot.slane %v8371_v51, 1  ;;  %v5670_v51 = vrot.slane %v8386_v54, 3 }
 0x118   : > { %7586 = vmatprep.mubr.bf16.mxu0 %v5102_v24  ;;  %7652 = vmatprep.subr.bf16.mxu1 %v8403_v17  ;;  %v8408_v24 = vld [vmem:[%s9250_s1 + $0x138] sm:$0xff]  }
 0x119   : > { %v5651_v57 = vsel %vm5646_vm13, %v5648_v39, %v5650_v49  ;;  %v5653_v63 = vsel %vm5646_vm13, %v5650_v49, %v5652_v55  ;;  %v2730_v27 = vsel %vm2166_vm10, %v2727_v43, %v2729_v14 }
 0x11a   : > { %7359 = vmatmul.mubr.bf16.gmra.mrb[4].mxu1 %v2710_v58  ;;  %v2728_v58 = vsel %vm2166_vm10, %v2725_v2, %v2727_v43  ;;  %v5672_v2 = vrot.slane %v8388_v12, 3 }
 0x11b   : > { %7362 = vmatprep.mubr.bf16.mxu1 %v2712_v16  ;;  %7660 = vmatpush3.bf16.msra.mxu1 %v8403_v17  ;;  %v5660_v16 = vrot.slane %v8376_v8, 3 }
 0x11c   : > { %7653 = vmatprep.subr.bf16.mxu1 %v8404_v22  ;;  %v5673_v8 = vsel %vm5646_vm13, %v5670_v51, %v5672_v2 }
 0x11d   : > { %v5661_v19 = vsel %vm5646_vm13, %v5658_v10, %v5660_v16  ;;  %v5663_v25 = vsel %vm5646_vm13, %v5660_v16, %v5662_v28  ;;  %v8392_v10 = vld [vmem:[#allocation2 + $0x88] sm:$0xff]  }
 0x11e   : > { %v5676_v20 = vrot.slane %v8392_v10, 3 }
 0x11f   : > { %7587 = vmatmul.mubr.bf16.gmra.mrb[24].mxu0 %v5111_v6  ;;  %7661 = vmatpush3.bf16.msra.mxu1 %v8404_v22  ;;  %v5657_v6 = vsel %vm5646_vm13, %v5654_v1, %v5656_v0  ;;  %v8379_v22 = vld [vmem:[#allocation2 + $0x90] sm:$0xff]  }
 0x120   : > { %7590 = vmatprep.mubr.bf16.mxu0 %v5120_v11  ;;  %7654 = vmatprep.subr.bf16.mxu1 %v8405_v35  ;;  %v8375_v11 = vld [vmem:[#allocation2 + $0x80] sm:$0xff]   ;;  %v2735_v29 = vrot.slane %v8379_v22, 1 }
 0x121   : > { %v2731_v17 = vrot.slane %v8375_v11, 1 }
 0x122   : > { %7363 = vmatmul.mubr.bf16.gmra.mrb[8].mxu1 %v2714_v23  ;;  %v3319_v23 = vshrl.u32 %v8383_v26, 16  ;;  %v2736_v39 = vsel %vm2166_vm10, %v2733_v30, %v2735_v29 }
 0x123   : > { %7366 = vmatprep.mubr.bf16.mxu1 %v2716_v32  ;;  %7662 = vmatpush3.bf16.msra.mxu1 %v8405_v35  ;;  %v2732_v21 = vsel %vm2166_vm10, %v2729_v14, %v2731_v17  ;;  %v8382_v32 = vld [vmem:[#allocation2 + $0x60] sm:$0xff]   ;;  %v2734_v33 = vsel %vm2166_vm10, %v2731_v17, %v2733_v30  ;;  %v8393_v14 = vld [vmem:[#allocation2 + $0x78] sm:$0xff]  }
 0x124   : > { %7655 = vmatprep.subr.bf16.mxu1 %v8406_v44  ;;  %v3321_v41 = vrot.slane %v3319_v23, 1  ;;  %v5666_v50 = vrot.slane %v8382_v32, 3  ;;  %v8396_v32 = vld [vmem:[#allocation2 + $0x98] sm:$0xff]  }
 0x127   : > { %7591 = vmatmul.mubr.bf16.gmra.mrb[28].mxu0 %v5129_v31  ;;  %7663 = vmatpush3.bf16.msra.mxu1 %v8406_v44  ;;  %v5664_v31 = vrot.slane %v8380_v7, 3  ;;  %v3364_v7 = vshrl.u32 %v8393_v14, 16 }
 0x128   : > { %7594 = vmatprep.mubr.bf16.mxu0 %v5138_v34  ;;  %7656 = vmatprep.subr.bf16.mxu1 %v8407_v52  ;;  %v3322_v34 = vshll.u32 %v8383_v26, 16  ;;  %v3373_v26 = vshrl.u32 %v8395_v18, 16 }
 0x129   : > { %v5665_v35 = vsel %vm5646_vm13, %v5662_v28, %v5664_v31  ;;  %v5667_v49 = vsel %vm5646_vm13, %v5664_v31, %v5666_v50  ;;  %v3376_v28 = vshll.u32 %v8395_v18, 16  ;;  %v8394_v31 = vld [vmem:[#allocation2 + $0x90] sm:$0xff]  }
 0x12a   : > { %7367 = vmatmul.mubr.bf16.gmra.mrb[12].mxu1 %v2718_v36  ;;  %v3324_v44 = vrot.slane %v3322_v34, 2  ;;  %v2737_v36 = vrot.slane %v8381_v37, 1  ;;  %v3366_v34 = vrot.slane %v3364_v7, 1  ;;  %v3375_v37 = vrot.slane %v3373_v26, 1 }
 0x12b   : > { %7370 = vmatprep.mubr.bf16.mxu1 %v2720_v46  ;;  %7664 = vmatpush3.bf16.msra.mxu1 %v8407_v52 }
 0x12c   : > { %7657 = vmatprep.subr.bf16.mxu1 %v8408_v24  ;;  %v3325_v46 = vor.u32 %v3324_v44, %v3321_v41  ;;  %v2738_v55 = vsel %vm2166_vm10, %v2735_v29, %v2737_v36  ;;  %v5680_v44 = vrot.slane %v8396_v32, 3 }
 0x12f   : > { %7595 = vmatmul.mubr.bf16.gmra.mrb[32].mxu0 %v5147_v42  ;;  %7665 = vmatpush3.bf16.msra.mxu1 %v8408_v24  ;;  %v8387_v42 = vld [vmem:[#allocation2 + $0x60] sm:$0xff]   ;;  %v3330_v24 = vrot.slane %v3328_v62, 1  ;;  %v3394_v62 = vshll.u32 %v8399_v40, 16 }
 0x130   : > { %7614 = vmatprep.mubr.bf16.mxu0 %v5649_v56  ;;  %v5668_v56 = vrot.slane %v8384_v38, 3  ;;  %v3337_v48 = vshrl.u32 %v8387_v42, 16  ;;  %v3340_v52 = vshll.u32 %v8387_v42, 16  ;;  %v3378_v38 = vrot.slane %v3376_v28, 2 }
 0x132   : > { %7371 = vmatmul.mubr.bf16.gmra.mrb[16].mxu1 %v2722_v61  ;;  %v5669_v59 = vsel %vm5646_vm13, %v5666_v50, %v5668_v56  ;;  %v8389_v61 = vld [vmem:[#allocation2 + $0x68] sm:$0xff]   ;;  %v3339_v13 = vrot.slane %v3337_v48, 1  ;;  %v3342_v4 = vrot.slane %v3340_v52, 2  ;;  %v3379_v36 = vor.u32 %v3378_v38, %v3375_v37 }
 0x133   : > { %7374 = vmatprep.mubr.bf16.mxu1 %v2724_v53  ;;  %v8391_v53 = vld [vmem:[#allocation2 + $0x70] sm:$0xff]   ;;  %v3346_v0 = vshrl.u32 %v8389_v61, 16  ;;  %v3349_v43 = vshll.u32 %v8389_v61, 16 }
 0x134   : > { %v3355_v3 = vshrl.u32 %v8391_v53, 16 }
 0x135   : > { %v3351_v11 = vrot.slane %v3349_v43, 2 }
 0x136   : > { %v3357_v17 = vrot.slane %v3355_v3, 1 }
 0x137   : > { %7615 = vmatmul.mubr.bf16.vlgmr.msra.gmra.mrb[0].mxu0 %v5651_v57  ;;  %v3333_v57 = vrot.slane %v3331_v45, 2 }
 0x138   : > { %7618 = vmatprep.mubr.bf16.mxu0 %v5653_v63  ;;  %v3326_v63 = vsel %vm3237_vm15, %v8737_v9, %v3325_v46 }
 0x139   : > { %v3334_v1 = vor.u32 %v3333_v57, %v3330_v24  ;;  %v3396_v57 = vrot.slane %v3394_v62, 2 }
 0x13a   : > { %7375 = vmatmul.mubr.bf16.gmra.mrb[20].mxu1 %v2726_v5  ;;  %v3358_v5 = vshll.u32 %v8391_v53, 16 }
 0x13b   : > { %7378 = vmatprep.mubr.bf16.mxu1 %v2728_v58  ;;  %v3335_v9 = vsel %vm3237_vm15, %v3325_v46, %v3334_v1  ;;  %v3348_v58 = vrot.slane %v3346_v0, 1  ;;  %v8398_v46 = vld [vmem:[#allocation2 + $0xa0] ss:$0 sps:$4 sm:$0x77]  }
 0x13c   : > { %v5682_v12 = vrot.slane %v8398_v46, 3 }
 0x13e   : > { %v5683_v53 = vsel %vm5646_vm13, %v5680_v44, %v5682_v12 }
 0x13f   : > { %7619 = vmatmul.mubr.bf16.gmra.mrb[4].mxu0 %v5655_v60  ;;  %v3343_v60 = vor.u32 %v3342_v4, %v3339_v13 }
 0x140   : > { %7622 = vmatprep.mubr.bf16.mxu0 %v5657_v6  ;;  %v5671_v6 = vsel %vm5646_vm13, %v5668_v56, %v5670_v51  ;;  %v3391_v56 = vshrl.u32 %v8399_v40, 16 }
 0x141   : > { %v3344_v16 = vsel %vm3237_vm15, %v3334_v1, %v3343_v60 }
 0x142   : > { %7379 = vmatmul.mubr.bf16.gmra.mrb[24].mxu1 %v2730_v27  ;;  %v5674_v27 = vrot.slane %v8390_v47, 3  ;;  %v3393_v24 = vrot.slane %v3391_v56, 1 }
 0x143   : > { %7382 = vmatprep.mubr.bf16.mxu1 %v2732_v21  ;;  %v3367_v21 = vshll.u32 %v8393_v14, 16 }
 0x144   : > { %v5675_v30 = vsel %vm5646_vm13, %v5672_v2, %v5674_v27  ;;  %v5677_v23 = vsel %vm5646_vm13, %v5674_v27, %v5676_v20  ;;  %v3397_v4 = vor.u32 %v3396_v57, %v3393_v24 }
 0x147   : > { %7623 = vmatmul.mubr.bf16.gmra.mrb[8].mxu0 %v5659_v15  ;;  %v3360_v15 = vrot.slane %v3358_v5, 2 }
 0x148   : > { %7626 = vmatprep.mubr.bf16.mxu0 %v5661_v19  ;;  %v3352_v19 = vor.u32 %v3351_v11, %v3348_v58 }
 0x149   : > { %v3361_v22 = vor.u32 %v3360_v15, %v3357_v17 }
 0x14a   : > { %7383 = vmatmul.mubr.bf16.gmra.mrb[28].mxu1 %v2734_v33  ;;  %v3353_v29 = vsel %vm3237_vm15, %v3343_v60, %v3352_v19  ;;  %v8397_v33 = vld [vmem:[#allocation2 + $0x88] sm:$0xff]  }
 0x14b   : > { %7386 = vmatprep.mubr.bf16.mxu1 %v2736_v39  ;;  %v5678_v39 = vrot.slane %v8394_v31, 3  ;;  %v3382_v42 = vshrl.u32 %v8397_v33, 16  ;;  %v3385_v50 = vshll.u32 %v8397_v33, 16 }
 0x14d   : > { %v5679_v45 = vsel %vm5646_vm13, %v5676_v20, %v5678_v39  ;;  %v5681_v52 = vsel %vm5646_vm13, %v5678_v39, %v5680_v44  ;;  %v3387_v54 = vrot.slane %v3385_v50, 2 }
 0x14f   : > { %7627 = vmatmul.mubr.bf16.gmra.mrb[12].mxu0 %v5663_v25  ;;  %v3369_v25 = vrot.slane %v3367_v21, 2 }
 0x150   : > { %7630 = vmatprep.mubr.bf16.mxu0 %v5665_v35  ;;  %v3362_v35 = vsel %vm3237_vm15, %v3352_v19, %v3361_v22  ;;  %v9173_v19 = vld [vmem:[%s9251_s2] ss:$0 sm:$0xff] }
 0x151   : > { %v3370_v41 = vor.u32 %v3369_v25, %v3366_v34 }
 0x152   : > { %7387 = vmatmul.mubr.bf16.gmra.mrb[32].mxu1 %v2738_v55  ;;  %v8400_v55 = vld [vmem:[#allocation2 + $0x98] ss:$0 sps:$4 sm:$0x33]  }
 0x153   : > { %7422 = vmatprep.mubr.bf16.mxu1 %v3326_v63  ;;  %v3371_v48 = vsel %vm3237_vm15, %v3361_v22, %v3370_v41  ;;  %v3400_v63 = vshrl.u32 %v8400_v55, 16  ;;  %v3403_v13 = vshll.u32 %v8400_v55, 16 }
 0x155   : > { %v3402_v1 = vrot.slane %v3400_v63, 1  ;;  %v3405_v2 = vrot.slane %v3403_v13, 2 }
 0x157   : > { %7631 = vmatmul.mubr.bf16.gmra.mrb[16].mxu0 %v5667_v49  ;;  %v3384_v49 = vrot.slane %v3382_v42, 1  ;;  %v3406_v43 = vor.u32 %v3405_v2, %v3402_v1 }
 0x158   : > { %7634 = vmatprep.mubr.bf16.mxu0 %v5669_v59  ;;  %v3380_v59 = vsel %vm3237_vm15, %v3370_v41, %v3379_v36 }
 0x159   : > { %v3388_v61 = vor.u32 %v3387_v54, %v3384_v49  ;;  %v3407_v60 = vsel %vm3237_vm15, %v3397_v4, %v3406_v43 }
 0x15a   : > { %7423 = vmatmul.mubr.bf16.vlgmr.msra.gmra.mrb[16].mxu1 %v3335_v9 }
 0x15b   : > { %7426 = vmatprep.mubr.bf16.mxu1 %v3344_v16  ;;  %v3389_v51 = vsel %vm3237_vm15, %v3379_v36, %v3388_v61  ;;  %v3398_v0 = vsel %vm3237_vm15, %v3388_v61, %v3397_v4 }
 0x15f   : > { %7635 = vmatmul.mubr.bf16.gmra.mrb[20].mxu0 %v5671_v6 }
 0x160   : > { %7638 = vmatprep.mubr.bf16.mxu0 %v5673_v8 }
 0x162   : > { %7427 = vmatmul.mubr.bf16.gmra.mrb[20].mxu1 %v3353_v29 }
 0x163   : > { %7430 = vmatprep.mubr.bf16.mxu1 %v3362_v35 }
 0x167   : > { %7639 = vmatmul.mubr.bf16.gmra.mrb[24].mxu0 %v5675_v30 }
 0x168   : > { %7642 = vmatprep.mubr.bf16.mxu0 %v5677_v23 }
 0x16a   : > { %7431 = vmatmul.mubr.bf16.gmra.mrb[24].mxu1 %v3371_v48 }
 0x16b   : > { %7434 = vmatprep.mubr.bf16.mxu1 %v3380_v59 }
 0x16f   : > { %7643 = vmatmul.mubr.bf16.gmra.mrb[28].mxu0 %v5679_v45 }
 0x170   : > { %7646 = vmatprep.mubr.bf16.mxu0 %v5681_v52 }
 0x172   : > { %7435 = vmatmul.mubr.bf16.gmra.mrb[28].mxu1 %v3389_v51 }
 0x173   : > { %7438 = vmatprep.mubr.bf16.mxu1 %v3398_v0 }
 0x177   : > { %7647 = vmatmul.mubr.bf16.gmra.mrb[32].mxu0 %v5683_v53 }
 0x17a   : > { %7439 = vmatmul.mubr.bf16.gmra.mrb[32].mxu1 %v3407_v60 }
 0x1e5   : > { %v7356_v3 = vpop.f32.mrb[0].mxu1 }
 0x1e6   : > { %v2839_v5 = vpop.f32.mrb[1].mxu1  ;;  %v7668_v7 = vadd.f32 %v7356_v3, %v9173_v19 }
 0x1e7   : > { %v7357_v6 = vpop.f32.mrb[2].mxu1  ;;  %v7674_v21 = vadd.f32 %v9173_v19, %v2839_v5 }
 0x1e8   : > { %v2842_v47 = vpop.f32.mrb[3].mxu1  ;;  %v7680_v26 = vadd.f32 %v7357_v6, %v9173_v19 }
 0x1e9   : > { %v7686_v31 = vadd.f32 %v9173_v19, %v2842_v47 }
 0x1ed   : > { %v7360_v9 = vpop.f32.mrb[4].mxu1 }
 0x1ee   : > { %v2855_v8 = vpop.f32.mrb[5].mxu1  ;;  %v7692_v37 = vadd.f32 %v7360_v9, %v9173_v19 }
 0x1ef   : > { %v7361_v58 = vpop.f32.mrb[6].mxu1  ;;  %v7698_v38 = vadd.f32 %v9173_v19, %v2855_v8 }
 0x1f0   : > { %v2858_v11 = vpop.f32.mrb[7].mxu1  ;;  %v7704_v41 = vadd.f32 %v7361_v58, %v9173_v19 }
 0x1f1   : > { %v7710_v50 = vadd.f32 %v9173_v19, %v2858_v11 }
 0x1f5   : > { %v7364_v10 = vpop.f32.mrb[8].mxu1 }
 0x1f6   : > { %v2871_v14 = vpop.f32.mrb[9].mxu1  ;;  %v7716_v48 = vadd.f32 %v7364_v10, %v9173_v19 }
 0x1f7   : > { %v7365_v16 = vpop.f32.mrb[10].mxu1  ;;  %v7722_v52 = vadd.f32 %v9173_v19, %v2871_v14 }
 0x1f8   : > { %v2874_v17 = vpop.f32.mrb[11].mxu1  ;;  %v7728_v54 = vadd.f32 %v7365_v16, %v9173_v19 }
 0x1f9   : > { %v7734_v57 = vadd.f32 %v9173_v19, %v2874_v17 }
 0x1fd   : > { %v9164_v15 = vpop.f32.mrb[12].mxu1 }
 0x1fe   : > { %v9166_v18 = vpop.f32.mrb[13].mxu1  ;;  %v7740_v47 = vadd.f32 %v9164_v15, %v9173_v19 }
 0x1ff   : > { %v9168_v27 = vpop.f32.mrb[14].mxu1  ;;  %v7746_v9 = vadd.f32 %v9173_v19, %v9166_v18 }
 0x200   : > { %v9175_v20 = vpop.f32.mrb[15].mxu1  ;;  %v7752_v10 = vadd.f32 %v9168_v27, %v9173_v19 }
 0x20a   : > { %v7616_v22 = vpop.f32.mrb[0].mxu0 }
 0x20b   : > { %v7671_v28 = vadd.f32 %v7668_v7, %v7616_v22  ;;  %v5784_v30 = vpop.f32.mrb[1].mxu0  ;;  %v7758_v7 = vadd.f32 %v9173_v19, %v9175_v20 }
 0x20c   : > { %v7677_v29 = vadd.f32 %v7674_v21, %v5784_v30  ;;  %v7617_v23 = vpop.f32.mrb[2].mxu0 }
 0x20d   : > { %5965 = vst [vmem:[#allocation3 + $0x10] sm:$0xff] %v7671_v28  ;;  %v7683_v34 = vadd.f32 %v7680_v26, %v7617_v23  ;;  %v5787_v25 = vpop.f32.mrb[3].mxu0 }
 0x20e   : > { %v7689_v32 = vadd.f32 %v7686_v31, %v5787_v25  ;;  %v6001_v33 = vmax.f32 %v7677_v29, 0.0 }
 0x20f   : > { %5966 = vst [vmem:[#allocation3 + $0x18] sm:$0xff] %v7683_v34 }
 0x210   : > { %v6002_v35 = vmax.f32 %v7689_v32, 0.0 }
 0x212   : > { %v6856_v40 = vpack.c.bf16 %v6002_v35, %v6001_v33  ;;  %v7620_v39 = vpop.f32.mrb[4].mxu0 }
 0x213   : > { %v7695_v44 = vadd.f32 %v7692_v37, %v7620_v39  ;;  %v5800_v42 = vpop.f32.mrb[5].mxu0 }
 0x214   : > { %6857 = vst [vmem:[%s9187_s4] sm:$0xff] %v6856_v40   ;;  %v7701_v36 = vadd.f32 %v7698_v38, %v5800_v42  ;;  %v7621_v56 = vpop.f32.mrb[6].mxu0 }
 0x215   : > { %5969 = vst [vmem:[#allocation3 + $0x30] sm:$0xff] %v7695_v44  ;;  %v7707_v62 = vadd.f32 %v7704_v41, %v7621_v56  ;;  %v5803_v45 = vpop.f32.mrb[7].mxu0 }
 0x216   : > { %5967 = vst [vmem:[#allocation3 + $0x20] sm:$0xff] %v7701_v36  ;;  %v7713_v46 = vadd.f32 %v7710_v50, %v5803_v45  ;;  %v6013_v55 = vld [vmem:[#allocation3 + $0x12] sm:$0xff] }
 0x217   : > { %5970 = vst [vmem:[#allocation3 + $0x38] sm:$0xff] %v7707_v62  ;;  %v6015_v53 = vmax.f32 %v6013_v55, 0.0 }
 0x218   : > { %5968 = vst [vmem:[#allocation3 + $0x28] sm:$0xff] %v7713_v46 }
 0x21a   : > { %v7624_v49 = vpop.f32.mrb[8].mxu0 }
 0x21b   : > { %v7719_v59 = vadd.f32 %v7716_v48, %v7624_v49  ;;  %v5816_v24 = vpop.f32.mrb[9].mxu0 }
 0x21c   : > { %v7725_v12 = vadd.f32 %v7722_v52, %v5816_v24  ;;  %v7625_v61 = vpop.f32.mrb[10].mxu0 }
 0x21d   : > { %v6014_v63 = vld [vmem:[#allocation3 + $0x1a] sm:$0xff]  ;;  %v7731_v13 = vadd.f32 %v7728_v54, %v7625_v61  ;;  %v5819_v4 = vpop.f32.mrb[11].mxu0  ;;  %v6061_v43 = vmax.f32 %v7719_v59, 0.0 }
 0x21e   : > { %v6016_v51 = vmax.f32 %v6014_v63, 0.0  ;;  %5971 = vst [vmem:[#allocation3 + $0x40] sm:$0xff] %v7725_v12  ;;  %v7737_v1 = vadd.f32 %v7734_v57, %v5819_v4  ;;  %v6043_v14 = vld [vmem:[#allocation3 + $0x36] sm:$0xff] }
 0x21f   : > { %v6028_v2 = vld [vmem:[#allocation3 + $0x24] sm:$0xff]  ;;  %v6029_v0 = vld [vmem:[#allocation3 + $0x2c] sm:$0xff]  ;;  %5974 = vst [vmem:[#allocation3 + $0x58] sm:$0xff] %v7731_v13  ;;  %v6045_v28 = vmax.f32 %v6043_v14, 0.0 }
 0x220   : > { %v6861_v60 = vpack.c.bf16 %v6016_v51, %v6015_v53  ;;  %v6030_v3 = vmax.f32 %v6028_v2, 0.0  ;;  %v6031_v5 = vmax.f32 %v6029_v0, 0.0  ;;  %v6060_v6 = vmax.f32 %v7737_v1, 0.0 }
 0x222   : > { %6933 = vst [vmem:[%s9187_s4 + $0x8] sm:$0xff] %v6861_v60   ;;  %v6866_v8 = vpack.c.bf16 %v6031_v5, %v6030_v3  ;;  %v6876_v58 = vpack.c.bf16 %v6061_v43, %v6060_v6  ;;  %v7628_v11 = vpop.f32.mrb[12].mxu0 }
 0x223   : > { %v7743_v16 = vadd.f32 %v7740_v47, %v7628_v11  ;;  %v5832_v17 = vpop.f32.mrb[13].mxu0 }
 0x224   : > { %6934 = vst [vmem:[%s9187_s4 + $0x10] sm:$0xff] %v6866_v8   ;;  %6936 = vst [vmem:[%s9187_s4 + $0x20] sm:$0xff] %v6876_v58   ;;  %v7749_v15 = vadd.f32 %v7746_v9, %v5832_v17  ;;  %v7629_v21 = vpop.f32.mrb[14].mxu0 }
 0x225   : > { %v6044_v22 = vld [vmem:[#allocation3 + $0x3e] sm:$0xff]  ;;  %5977 = vst [vmem:[#allocation3 + $0x70] sm:$0xff] %v7743_v16  ;;  %v7755_v18 = vadd.f32 %v7752_v10, %v7629_v21  ;;  %v5835_v26 = vpop.f32.mrb[15].mxu0 }
 0x226   : > { %v6046_v30 = vmax.f32 %v6044_v22, 0.0  ;;  %5975 = vst [vmem:[#allocation3 + $0x60] sm:$0xff] %v7749_v15  ;;  %v7761_v31 = vadd.f32 %v7758_v7, %v5835_v26 }
 0x227   : > { %5978 = vst [vmem:[#allocation3 + $0x78] sm:$0xff] %v7755_v18 }
 0x228   : > { %v6871_v27 = vpack.c.bf16 %v6046_v30, %v6045_v28  ;;  %5976 = vst [vmem:[#allocation3 + $0x68] sm:$0xff] %v7761_v31 }
 0x22a   : > { %6935 = vst [vmem:[%s9187_s4 + $0x18] sm:$0xff] %v6871_v27   ;;  %v7632_v29 = vpop.f32.mrb[16].mxu0 }
 0x22b   : > { %v5848_v23 = vpop.f32.mrb[17].mxu0 }
 0x22c   : > { %v7633_v20 = vpop.f32.mrb[18].mxu0 }
 0x22d   : > { %v6073_v34 = vld [vmem:[#allocation3 + $0x5a] sm:$0xff]  ;;  %v5851_v25 = vpop.f32.mrb[19].mxu0  ;;  %v7424_v50 = vpop.f32.mrb[16].mxu1 }
 0x22e   : > { %v6089_v32 = vld [vmem:[#allocation3 + $0x74] sm:$0xff]  ;;  %v6075_v38 = vmax.f32 %v6073_v34, 0.0  ;;  %v7764_v56 = vadd.f32 %v7424_v50, %v9173_v19  ;;  %v3572_v62 = vpop.f32.mrb[17].mxu1 }
 0x22f   : > { %v6091_v33 = vmax.f32 %v6089_v32, 0.0  ;;  %v6074_v35 = vld [vmem:[#allocation3 + $0x62] sm:$0xff]  ;;  %v6088_v37 = vld [vmem:[#allocation3 + $0x6c] sm:$0xff]  ;;  %v7770_v46 = vadd.f32 %v9173_v19, %v3572_v62  ;;  %v7425_v48 = vpop.f32.mrb[18].mxu1 }
 0x230   : > { %v6076_v40 = vmax.f32 %v6074_v35, 0.0  ;;  %v6090_v39 = vmax.f32 %v6088_v37, 0.0  ;;  %v7767_v49 = vadd.f32 %v7764_v56, %v7632_v29  ;;  %v7776_v54 = vadd.f32 %v7425_v48, %v9173_v19  ;;  %v3575_v55 = vpop.f32.mrb[19].mxu1 }
 0x231   : > { %v7773_v59 = vadd.f32 %v7770_v46, %v5848_v23  ;;  %v7782_v24 = vadd.f32 %v9173_v19, %v3575_v55 }
 0x232   : > { %v6881_v41 = vpack.c.bf16 %v6076_v40, %v6075_v38  ;;  %v6886_v44 = vpack.c.bf16 %v6091_v33, %v6090_v39  ;;  %v7636_v42 = vpop.f32.mrb[20].mxu0  ;;  %v7779_v57 = vadd.f32 %v7776_v54, %v7633_v20  ;;  %v6120_v61 = vmax.f32 %v7767_v49, 0.0 }
 0x233   : > { %v5864_v36 = vpop.f32.mrb[21].mxu0  ;;  %5979 = vst [vmem:[#allocation3 + $0x80] sm:$0xff] %v7773_v59  ;;  %v7785_v12 = vadd.f32 %v7782_v24, %v5851_v25 }
 0x234   : > { %6937 = vst [vmem:[%s9187_s4 + $0x28] sm:$0xff] %v6881_v41   ;;  %6938 = vst [vmem:[%s9187_s4 + $0x30] sm:$0xff] %v6886_v44   ;;  %v7637_v45 = vpop.f32.mrb[22].mxu0  ;;  %v6121_v63 = vmax.f32 %v7779_v57, 0.0 }
 0x235   : > { %v5867_v52 = vpop.f32.mrb[23].mxu0  ;;  %5980 = vst [vmem:[#allocation3 + $0x88] sm:$0xff] %v7785_v12  ;;  %v7428_v4 = vpop.f32.mrb[20].mxu1 }
 0x236   : > { %v6896_v51 = vpack.c.bf16 %v6121_v63, %v6120_v61  ;;  %v7788_v1 = vadd.f32 %v7428_v4, %v9173_v19  ;;  %v3588_v2 = vpop.f32.mrb[21].mxu1 }
 0x237   : > { %v7794_v43 = vadd.f32 %v9173_v19, %v3588_v2  ;;  %v7429_v60 = vpop.f32.mrb[22].mxu1 }
 0x238   : > { %6940 = vst [vmem:[%s9187_s4 + $0x40] sm:$0xff] %v6896_v51   ;;  %v7791_v5 = vadd.f32 %v7788_v1, %v7636_v42  ;;  %v7800_v6 = vadd.f32 %v7429_v60, %v9173_v19  ;;  %v3591_v47 = vpop.f32.mrb[23].mxu1 }
 0x239   : > { %v7797_v9 = vadd.f32 %v7794_v43, %v5864_v36  ;;  %v7806_v8 = vadd.f32 %v9173_v19, %v3591_v47 }
 0x23a   : > { %v7640_v13 = vpop.f32.mrb[24].mxu0  ;;  %v6103_v58 = vld [vmem:[#allocation3 + $0x7e] sm:$0xff]  ;;  %5985 = vst [vmem:[#allocation3 + $0xb0] sm:$0xff] %v7791_v5  ;;  %v7803_v11 = vadd.f32 %v7800_v6, %v7637_v45 }
 0x23b   : > { %v5880_v53 = vpop.f32.mrb[25].mxu0  ;;  %5983 = vst [vmem:[#allocation3 + $0xa0] sm:$0xff] %v7797_v9  ;;  %v7809_v10 = vadd.f32 %v7806_v8, %v5867_v52  ;;  %v6105_v17 = vmax.f32 %v6103_v58, 0.0 }
 0x23c   : > { %v7641_v0 = vpop.f32.mrb[26].mxu0  ;;  %v6104_v14 = vld [vmem:[#allocation3 + $0x86] sm:$0xff]  ;;  %5986 = vst [vmem:[#allocation3 + $0xb8] sm:$0xff] %v7803_v11 }
 0x23d   : > { %v5883_v3 = vpop.f32.mrb[27].mxu0  ;;  %v6106_v7 = vmax.f32 %v6104_v14, 0.0  ;;  %5984 = vst [vmem:[#allocation3 + $0xa8] sm:$0xff] %v7809_v10  ;;  %v7432_v15 = vpop.f32.mrb[24].mxu1 }
 0x23e   : > { %v7812_v22 = vadd.f32 %v7432_v15, %v9173_v19  ;;  %v3604_v18 = vpop.f32.mrb[25].mxu1 }
 0x23f   : > { %v6891_v28 = vpack.c.bf16 %v6106_v7, %v6105_v17  ;;  %v7818_v30 = vadd.f32 %v9173_v19, %v3604_v18  ;;  %v7433_v31 = vpop.f32.mrb[26].mxu1 }
 0x240   : > { %v7815_v29 = vadd.f32 %v7812_v22, %v7640_v13  ;;  %v7824_v23 = vadd.f32 %v7433_v31, %v9173_v19  ;;  %v3607_v20 = vpop.f32.mrb[27].mxu1 }
 0x241   : > { %6939 = vst [vmem:[%s9187_s4 + $0x38] sm:$0xff] %v6891_v28   ;;  %v7821_v34 = vadd.f32 %v7818_v30, %v5880_v53  ;;  %v7830_v25 = vadd.f32 %v9173_v19, %v3607_v20 }
 0x242   : > { %v7644_v16 = vpop.f32.mrb[28].mxu0  ;;  %5989 = vst [vmem:[#allocation3 + $0xd0] sm:$0xff] %v7815_v29  ;;  %v7827_v32 = vadd.f32 %v7824_v23, %v7641_v0 }
 0x243   : > { %v5896_v21 = vpop.f32.mrb[29].mxu0  ;;  %5987 = vst [vmem:[#allocation3 + $0xc0] sm:$0xff] %v7821_v34  ;;  %v7833_v33 = vadd.f32 %v7830_v25, %v5883_v3  ;;  %v6148_v56 = vld [vmem:[#allocation3 + $0xb4] sm:$0xff] }
 0x244   : > { %v7645_v26 = vpop.f32.mrb[30].mxu0  ;;  %v6133_v35 = vld [vmem:[#allocation3 + $0xa2] sm:$0xff]  ;;  %v6134_v37 = vld [vmem:[#allocation3 + $0xaa] sm:$0xff]  ;;  %v6150_v24 = vmax.f32 %v6148_v56, 0.0  ;;  %v6180_v63 = vmax.f32 %v7827_v32, 0.0 }
 0x245   : > { %v5899_v27 = vpop.f32.mrb[31].mxu0  ;;  %v6135_v40 = vmax.f32 %v6133_v35, 0.0  ;;  %v6136_v39 = vmax.f32 %v6134_v37, 0.0  ;;  %5988 = vst [vmem:[#allocation3 + $0xc8] sm:$0xff] %v7833_v33  ;;  %v7436_v41 = vpop.f32.mrb[28].mxu1 }
 0x246   : > { %v7836_v42 = vadd.f32 %v7436_v41, %v9173_v19  ;;  %v3620_v50 = vpop.f32.mrb[29].mxu1 }
 0x247   : > { %v6901_v62 = vpack.c.bf16 %v6136_v39, %v6135_v40  ;;  %v7842_v45 = vadd.f32 %v9173_v19, %v3620_v50  ;;  %v7437_v46 = vpop.f32.mrb[30].mxu1 }
 0x248   : > { %v7839_v52 = vadd.f32 %v7836_v42, %v7644_v16  ;;  %v7848_v49 = vadd.f32 %v7437_v46, %v9173_v19  ;;  %v3623_v54 = vpop.f32.mrb[31].mxu1 }
 0x249   : > { %6941 = vst [vmem:[%s9187_s4 + $0x48] sm:$0xff] %v6901_v62   ;;  %v7845_v55 = vadd.f32 %v7842_v45, %v5896_v21  ;;  %v7854_v59 = vadd.f32 %v9173_v19, %v3623_v54 }
 0x24a   : > { %v7648_v38 = vpop.f32.mrb[32].mxu0  ;;  %v6149_v57 = vld [vmem:[#allocation3 + $0xbc] sm:$0xff]  ;;  %5993 = vst [vmem:[#allocation3 + $0xf0] sm:$0xff] %v7839_v52  ;;  %v7851_v12 = vadd.f32 %v7848_v49, %v7645_v26 }
 0x24b   : > { %v5912_v44 = vpop.f32.mrb[33].mxu0  ;;  %v6151_v61 = vmax.f32 %v6149_v57, 0.0  ;;  %v6181_v13 = vmax.f32 %v7845_v55, 0.0  ;;  %v7857_v4 = vadd.f32 %v7854_v59, %v5899_v27 }
 0x24c   : > { %v7649_v36 = vpop.f32.mrb[34].mxu0  ;;  %v6163_v53 = vld [vmem:[#allocation3 + $0xc6] sm:$0xff]  ;;  %v6164_v51 = vld [vmem:[#allocation3 + $0xce] sm:$0xff]  ;;  %5994 = vst [vmem:[#allocation3 + $0xf8] sm:$0xff] %v7851_v12 }
 0x24d   : > { %v5915_v48 = vpop.f32.mrb[35].mxu0  ;;  %v6906_v1 = vpack.c.bf16 %v6151_v61, %v6150_v24  ;;  %v6165_v2 = vmax.f32 %v6163_v53, 0.0  ;;  %v6166_v0 = vmax.f32 %v6164_v51, 0.0  ;;  %v6916_v43 = vpack.c.bf16 %v6181_v13, %v6180_v63  ;;  %5992 = vst [vmem:[#allocation3 + $0xe8] sm:$0xff] %v7857_v4  ;;  %v7440_v60 = vpop.f32.mrb[32].mxu1 }
 0x24e   : > { %v7860_v3 = vadd.f32 %v7440_v60, %v9173_v19  ;;  %v3636_v5 = vpop.f32.mrb[33].mxu1 }
 0x24f   : > { %6942 = vst [vmem:[%s9187_s4 + $0x50] sm:$0xff] %v6906_v1   ;;  %v6911_v6 = vpack.c.bf16 %v6166_v0, %v6165_v2  ;;  %6944 = vst [vmem:[%s9187_s4 + $0x60] sm:$0xff] %v6916_v43   ;;  %v7866_v47 = vadd.f32 %v9173_v19, %v3636_v5  ;;  %v7441_v9 = vpop.f32.mrb[34].mxu1 }
 0x250   : > { %v7863_v8 = vadd.f32 %v7860_v3, %v7648_v38  ;;  %v7872_v58 = vadd.f32 %v7441_v9, %v9173_v19  ;;  %v3639_v11 = vpop.f32.mrb[35].mxu1 }
 0x251   : > { %6943 = vst [vmem:[%s9187_s4 + $0x58] sm:$0xff] %v6911_v6   ;;  %v7869_v10 = vadd.f32 %v7866_v47, %v5912_v44  ;;  %v7878_v14 = vadd.f32 %v9173_v19, %v3639_v11 }
 0x252   : > { %5997 = vst [vmem:[#allocation3 + $0x110] sm:$0xff] %v7863_v8  ;;  %v7875_v16 = vadd.f32 %v7872_v58, %v7649_v36 }
 0x253   : > { %v6194_v17 = vld [vmem:[#allocation3 + $0xf2] sm:$0xff]  ;;  %5995 = vst [vmem:[#allocation3 + $0x100] sm:$0xff] %v7869_v10  ;;  %v7881_v7 = vadd.f32 %v7878_v14, %v5915_v48 }
 0x254   : > { %v6196_v15 = vmax.f32 %v6194_v17, 0.0  ;;  %v6193_v21 = vld [vmem:[#allocation3 + $0xea] sm:$0xff]  ;;  %5998 = vst [vmem:[#allocation3 + $0x118] sm:$0xff] %v7875_v16 }
 0x255   : > { %v6195_v22 = vmax.f32 %v6193_v21, 0.0  ;;  %5996 = vst [vmem:[#allocation3 + $0x108] sm:$0xff] %v7881_v7 }
 0x257   : > { %v6921_v18 = vpack.c.bf16 %v6196_v15, %v6195_v22 }
 0x259   : > { %6945 = vst [vmem:[%s9187_s4 + $0x68] sm:$0xff] %v6921_v18  }
 0x25a   : > { %v6208_v26 = vld [vmem:[#allocation3 + $0xfc] sm:$0xff] }
 0x25b   : > { %v6224_v28 = vld [vmem:[#allocation3 + $0x116] sm:$0xff]  ;;  %v6210_v19 = vmax.f32 %v6208_v26, 0.0 }
 0x25c   : > { %v6226_v30 = vmax.f32 %v6224_v28, 0.0  ;;  %v6209_v31 = vld [vmem:[#allocation3 + $0x104] sm:$0xff]  ;;  %v6223_v27 = vld [vmem:[#allocation3 + $0x10e] sm:$0xff] }
 0x25d   : > { %v6211_v29 = vmax.f32 %v6209_v31, 0.0  ;;  %v6225_v23 = vmax.f32 %v6223_v27, 0.0 }
 0x25f   : > { %v6926_v20 = vpack.c.bf16 %v6211_v29, %v6210_v19  ;;  %v6931_v34 = vpack.c.bf16 %v6226_v30, %v6225_v23 }
 0x261   : > { %6946 = vst [vmem:[%s9187_s4 + $0x70] sm:$0xff] %v6926_v20   ;;  %6947 = vst [vmem:[%s9187_s4 + $0x78] sm:$0xff] %v6931_v34  }
 0x262 PF: > { %s13_s14 = sadd.s32 1, %s8431_s14   ;;  %s9277_s12 = smov %s8427_s13 }
 0x263   : > { %p10_p5 = scmp.ge.s32.totalorder %s13_s14, 4   ;;  %s9278_s13 = smov %s9280_s15 }
 0x265   :  { %12 = sbr.rel (!%p10_p5) target bundleno = 2 (0x2), region = 106 }

// kernel: segnet_up3_forward.3
= control target key start
LH: loop header
LB: loop body
LE: loop exit
PB: predicated region body
PF: predicated region fallthrough
CT: control target
= control target key end

     0   :  { %8 = vsyncpa [#allocation5], 0  ;;  %s9755_s12 = smov 0   ;;  %s9757_s13 = smov 0   ;;  %s10659_s0 = inlined_call_operand.vmem [shape: bf16[2,8,8,128], index: 0, kind: input, shape index: {}]   ;;  %s10660_s1 = inlined_call_operand.hbm [shape: bf16[3,3,128,128], index: 1, kind: input, shape index: {}]   ;;  %s10661_s2 = inlined_call_operand.vmem [shape: f32[1,128], index: 2, kind: input, shape index: {}]   ;;  %s10662_s3 = inlined_call_operand.vmem [shape: bf16[2,16,16,128], index: 3, kind: output, shape index: {}]  }
   0x1   :  { %s9759_s14 = smov 0  }
   0x2 LB: > { %s7708_s15 = sadd.s32 4294967295, %s9727_s14   ;;  %s26_s16 = sadd.s32 1, %s9723_s13  ;;  %s9727_s14 = sphi %s9759_s14, %s14_s14   ;;  %s9723_s13 = sphi %s9757_s13, %s10697_s13   ;;  %s9719_s12 = sphi %s9755_s12, %s10696_s12  }
   0x3   : > { %p28_p0 = scmp.ge.s32.totalorder %s26_s16, 2  ;;  %p7710_p1 = scmp.ge.s32.totalorder %s9727_s14, 1 }
   0x4   : > { %p137_p2 = scmp.lt.s32.totalorder %s9727_s14, 3  ;;  %p9780_p4 = scmp.eq.s32.totalorder %s7708_s15, 0 }
   0x5   : > { %s10699_s16 = smov (%p28_p0, %s26_s16), 0  ;;  %s9729_s19 = smov [#allocation4]  }
   0x6   : > { %p9776_p3 = pnand %p7710_p1, %p137_p2  ;;  %s151_s20 = sshll.u32 %s9729_s19, 4  ;;  %s152_s20 = int_to_ptr.vmem [resolvable:$true] %s151_s20 }
   0x7   : > { %s10667_s18 = scalar_select %p9780_p4, 1, 0 }
   0x8   : > { %s10666_s17 = scalar_select %p9776_p3, 1, 0 }
   0x9   : > { %p9386_p5 = pneg %p9776_p3  ;;  %s9673_s24 = scalar_lea.hbm %s10660_s1, 9216 }
   0xa   : > { %p9674_p7 = scmp.ne.s32.totalorder %s10660_s1, %s9673_s24  ;;  %p9680_p11 = scmp.lt.u32.totalorder %s9673_s24, %s10660_s1 }
   0xb   : > { %p9788_p6 = pnand %p9780_p4, %p9386_p5 }
   0xd   : > { %p9675_p8 = pneg %p9788_p6 }
   0xf   : > { %p9676_p9 = pnand %p9675_p8, %p9674_p7 }
  0x11   : > { %p9677_p10 = pneg %p9676_p9 }
  0x13   : > { %p9682_p12 = pnand %p9680_p11, %p9677_p10 }
  0x15   : > { %9685 = shalt.err (!%p9682_p12)
}
  0x16   : > { %s9686_s29 = scalar_lea.vmem %s152_s20, 9216  ;;  %p9694_p2 = scmp.lt.s32.totalorder %s152_s20, %s152_s20 }
  0x17   : > { %p9687_p13 = scmp.ne.s32.totalorder %s152_s20, %s9686_s29  ;;  %p9695_p5 = scmp.lt.s32.totalorder %s9686_s29, %s9686_s29 }
  0x19   : > { %p9689_p0 = pnand %p9687_p13, %p9675_p8  ;;  %p9696_p4 = por %p9695_p5, %p9694_p2 }
  0x1b   : > { %p9690_p1 = pneg %p9689_p0 }
  0x1d   : > { %p9697_p3 = pnand %p9696_p4, %p9690_p1 }
  0x1f   : > { %9700 = shalt.err (!%p9697_p3)
}
  0x20   : > { %s9730_s30 = smov 64   ;;  %s9731_s4 = smov 4  }
  0x21   : > { %9389 = dma.hbm_to_vmem [thread:$0]  (!%p9788_p6), %s10660_s1, 9216, %s152_s20, [#allocation5], %s9730_s30, %s9730_s30, %s9731_s4  }
  0x22   : > { %p10669_p7 = scmp.ne.s32.totalorder %s10666_s17, 0 }
  0x23   : > { %p10670_p9 = scmp.ne.s32.totalorder (!%p10669_p7), %s10667_s18, 0 }
  0x24   : > { %181 = sbr.rel (%p10669_p7) target bundleno = 752 (0x2f0), region = 32 }
  0x2b   : > { %9714 = dma.done.wait (%p10670_p9), [#allocation5], 9216  }
  0x2c   : > { %9716 = vsyncadd (%p10670_p9), [#allocation5], 4294958080  ;;  %v9732_v0 = vmov 0   ;;  %v9422_v1 = vld [vmem:[#allocation4] sm:$0xff]   ;;  %v9423_v2 = vld [vmem:[#allocation4 + $0x8] sm:$0xff]   ;;  %p211_p3 = scmp.lt.s32.totalorder %s9719_s12, 1  ;;  %v298_v8 = vlaneseq }
  0x2d   : > { %228 = vst [vmem:[#allocation2] sm:$0xf] %v9732_v0  ;;  %229 = vst [vmem:[#allocation2 + $0x4] sm:$0xf] %v9732_v0  ;;  %8430 = vmatprep.subr.bf16.mxu1 %v9422_v1  ;;  %v9425_v3 = vld [vmem:[#allocation4 + $0x100] sm:$0xff]   ;;  %v9424_v4 = vld [vmem:[#allocation4 + $0x10] sm:$0xff]  }
  0x2e   : > { %230 = vst [vmem:[#allocation2 + $0x8] sm:$0xf] %v9732_v0  ;;  %231 = vst [vmem:[#allocation2 + $0xc] sm:$0xf] %v9732_v0  ;;  %8431 = vmatpush3.bf16.msra.mxu1 %v9422_v1  ;;  %8638 = vmatprep.subr.bf16.mxu0 %v9425_v3  ;;  %v9427_v5 = vld [vmem:[#allocation4 + $0x108] sm:$0xff]   ;;  %s10701_s12 = smov (!%p211_p3, %s9719_s12), 1 }
  0x2f   : > { %232 = vst [vmem:[#allocation2 + $0x10] sm:$0xf] %v9732_v0  ;;  %233 = vst [vmem:[#allocation2 + $0x14] sm:$0xf] %v9732_v0  ;;  %8432 = vmatprep.subr.bf16.mxu1 %v9423_v2  ;;  %v9733_v6 = vmov 1966171168   ;;  %8639 = vmatpush3.bf16.msra.mxu0 %v9425_v3 }
  0x30   : > { %234 = vst [vmem:[#allocation2 + $0x18] sm:$0xf] %v9732_v0  ;;  %235 = vst [vmem:[#allocation2 + $0x1c] sm:$0xf] %v9732_v0  ;;  %v296_v7 = vunpack.c.l.s4 %v9733_v6  ;;  %8640 = vmatprep.subr.bf16.mxu0 %v9427_v5  ;;  %v9429_v9 = vld [vmem:[#allocation4 + $0x110] sm:$0xff]   ;;  %v9426_v10 = vld [vmem:[#allocation4 + $0x18] sm:$0xff]  }
  0x31   : > { %236 = vst [vmem:[#allocation2 + $0x20] sm:$0xf] %v9732_v0  ;;  %237 = vst [vmem:[#allocation2 + $0x24] sm:$0xf] %v9732_v0  ;;  %v299_v12 = vshrl.u32 %v298_v8, 7  ;;  %s8067_s7 = sshll.u32 %s10701_s12, 5 }
  0x32   : > { %238 = vst [vmem:[#allocation2 + $0x28] sm:$0xf] %v9732_v0  ;;  %239 = vst [vmem:[#allocation2 + $0x2c] sm:$0xf] %v9732_v0  ;;  %8433 = vmatpush3.bf16.msra.mxu1 %v9423_v2  ;;  %v297_v11 = vunpack.c.0.s8 %v296_v7  ;;  %v9431_v13 = vld [vmem:[#allocation4 + $0x118] sm:$0xff]   ;;  %v9428_v14 = vld [vmem:[#allocation4 + $0x20] sm:$0xff]   ;;  %s9822_s10 = scalar_lea.vmem %s10659_s0, %s8067_s7 }
  0x33   : > { %240 = vst [vmem:[#allocation2 + $0x30] sm:$0xf] %v9732_v0  ;;  %241 = vst [vmem:[#allocation2 + $0x34] sm:$0xf] %v9732_v0  ;;  %8434 = vmatprep.subr.bf16.mxu1 %v9424_v4  ;;  %8641 = vmatpush3.bf16.msra.mxu0 %v9427_v5  ;;  %v9734_v15 = vmov 1935823168  }
  0x34   : > { %242 = vst [vmem:[#allocation2 + $0x38] sm:$0xf] %v9732_v0  ;;  %243 = vst [vmem:[#allocation2 + $0x3c] sm:$0xf] %v9732_v0  ;;  %8642 = vmatprep.subr.bf16.mxu0 %v9429_v9  ;;  %v1322_v16 = vunpack.c.l.s4 %v9734_v15  ;;  %v9824_v17 = vsub.s32 %v297_v11, %v299_v12  ;;  %v9436_v18 = vld [vmem:[#allocation2] sm:$0xff]   ;;  %v9433_v19 = vld [vmem:[#allocation4 + $0x120] sm:$0xff]  }
  0x35   : > { %244 = vst [vmem:[#allocation2 + $0x40] sm:$0xf] %v9732_v0  ;;  %245 = vst [vmem:[#allocation2 + $0x44] sm:$0xf] %v9732_v0  ;;  %v9430_v20 = vld [vmem:[#allocation4 + $0x28] sm:$0xff]   ;;  %8446 = vmatprep.mubr.bf16.mxu1 %v9436_v18  ;;  %v9828_v25 = vsub.s32 0, %v299_v12 }
  0x36   : > { %246 = vst [vmem:[#allocation2 + $0x48] sm:$0xf] %v9732_v0  ;;  %247 = vst [vmem:[#allocation2 + $0x4c] sm:$0xf] %v9732_v0  ;;  %8435 = vmatpush3.bf16.msra.mxu1 %v9424_v4  ;;  %v1323_v22 = vunpack.c.0.s8 %v1322_v16  ;;  %v9435_v26 = vld [vmem:[#allocation4 + $0x128] sm:$0xff]   ;;  %v9432_v31 = vld [vmem:[#allocation4 + $0x30] sm:$0xff]  }
  0x37   : > { %248 = vst [vmem:[#allocation2 + $0x50] sm:$0xf] %v9732_v0  ;;  %249 = vst [vmem:[#allocation2 + $0x54] sm:$0xf] %v9732_v0  ;;  %8436 = vmatprep.subr.bf16.mxu1 %v9426_v10  ;;  %8643 = vmatpush3.bf16.msra.mxu0 %v9429_v9  ;;  %v9434_v46 = vld [vmem:[#allocation4 + $0x38] sm:$0xff]   ;;  %v9439_v51 = vld [vmem:[#allocation4 + $0x130] sm:$0xff]  }
  0x38   : > { %250 = vst [vmem:[#allocation2 + $0x58] sm:$0xf] %v9732_v0  ;;  %251 = vst [vmem:[#allocation2 + $0x5c] sm:$0xf] %v9732_v0  ;;  %8644 = vmatprep.subr.bf16.mxu0 %v9431_v13  ;;  %v9831_v32 = vsub.s32 %v1323_v22, %v299_v12  ;;  %v9440_v1 = vld [vmem:[#allocation4 + $0x138] sm:$0xff]   ;;  %v9846_v2 = vld [vmem:[#allocation4 + $0x40] sm:$0xff]  }
  0x39   : > { %252 = vst [vmem:[#allocation2 + $0x60] sm:$0xf] %v9732_v0  ;;  %253 = vst [vmem:[#allocation2 + $0x64] sm:$0xf] %v9732_v0  ;;  %vm1392_vm0 = vcmask 1043457   ;;  %v9859_v18 = vld [vmem:[#allocation4 + $0x140] sm:$0xff]  }
  0x3a   : > { %254 = vst [vmem:[#allocation2 + $0x68] sm:$0xf] %v9732_v0  ;;  %255 = vst [vmem:[#allocation2 + $0x6c] sm:$0xf] %v9732_v0  ;;  %8437 = vmatpush3.bf16.msra.mxu1 %v9426_v10  ;;  %vm1393_vm1 = vsmask.f32 7942 }
  0x3b   : > { %256 = vst [vmem:[#allocation2 + $0x70] sm:$0xf] %v9732_v0  ;;  %257 = vst [vmem:[#allocation2 + $0x74] sm:$0xf] %v9732_v0  ;;  %8438 = vmatprep.subr.bf16.mxu1 %v9428_v14  ;;  %8645 = vmatpush3.bf16.msra.mxu0 %v9431_v13  ;;  %vm1419_vm2 = vcmask 1043458   ;;  %vm1399_vm8 = vcmask 1041408  }
  0x3c   : > { %258 = vst [vmem:[#allocation2 + $0x78] sm:$0xf] %v9732_v0  ;;  %259 = vst [vmem:[#allocation2 + $0x7c] sm:$0xf] %v9732_v0  ;;  %8646 = vmatprep.subr.bf16.mxu0 %v9433_v19  ;;  %vm1420_vm3 = vsmask.f32 7946 }
  0x3d   : > { %260 = vst [vmem:[#allocation2 + $0x80] sm:$0xf] %v9732_v0  ;;  %261 = vst [vmem:[#allocation2 + $0x84] sm:$0xf] %v9732_v0  ;;  %vm1367_vm4 = vsmask.f32 1280 }
  0x3e   : > { %262 = vst [vmem:[#allocation2 + $0x88] sm:$0xf] %v9732_v0  ;;  %263 = vst [vmem:[#allocation2 + $0x8c] sm:$0xf] %v9732_v0  ;;  %8439 = vmatpush3.bf16.msra.mxu1 %v9428_v14  ;;  %vm1368_vm5 = vsmask.f32 5392 }
  0x3f   : > { %264 = vst [vmem:[#allocation2 + $0x90] sm:$0xf] %v9732_v0  ;;  %265 = vst [vmem:[#allocation2 + $0x94] sm:$0xf] %v9732_v0  ;;  %8440 = vmatprep.subr.bf16.mxu1 %v9430_v20  ;;  %8647 = vmatpush3.bf16.msra.mxu0 %v9433_v19  ;;  %vm1404_vm6 = vsmask.f32 2304 }
  0x40   : > { %266 = vst [vmem:[#allocation2 + $0x98] sm:$0xf] %v9732_v0  ;;  %267 = vst [vmem:[#allocation2 + $0x9c] sm:$0xf] %v9732_v0  ;;  %8648 = vmatprep.subr.bf16.mxu0 %v9435_v26  ;;  %vm1405_vm7 = vsmask.f32 6416 }
  0x41   : > { %268 = vst [vmem:[#allocation2 + $0xa0] sm:$0xf] %v9732_v0  ;;  %v7720_v21 = vld.sshfl [vmem:[%s9822_s10] sm:$0x33 pattern:$0x75316420]  ;;  %vm9879_vm10 = vmand %vm1392_vm0, %vm1393_vm1 }
  0x42   : > { %v294_v23 = vcombine.high %v7720_v21, %v7720_v21  ;;  %v301_v24 = vrot.slane %v7720_v21, %v9824_v17  ;;  %v7721_v33 = vld.sshfl [vmem:[%s9822_s10 + $0x4] sm:$0x33 pattern:$0x75316420]  ;;  %8441 = vmatpush3.bf16.msra.mxu1 %v9430_v20  ;;  %vm1426_vm9 = vcmask 1042432   ;;  %vm9887_vm11 = vmand %vm1419_vm2, %vm1420_vm3  ;;  %vm1512_vm0 = vcmask 1043459  }
  0x43   : > { %v318_v41 = vcombine.high %v7721_v33, %v7721_v33  ;;  %8442 = vmatprep.subr.bf16.mxu1 %v9432_v31  ;;  %8649 = vmatpush3.bf16.msra.mxu0 %v9435_v26  ;;  %v9843_v60 = vld.sshfl [vmem:[%s9822_s10 + $0x8] sm:$0x33 pattern:$0x75316420]  ;;  %v325_v11 = vrot.slane %v7721_v33, %v9824_v17  ;;  %vm9893_vm12 = vmor %vm1367_vm4, %vm1368_vm5  ;;  %vm1487_vm1 = vsmask.f32 3328 }
  0x44   : > { %v308_v27 = vrot.slane %v294_v23, %v9824_v17  ;;  %v309_v28 = vcombine.high %v301_v24, %v301_v24  ;;  %v480_v29 = vunpack.i.h.s16 %v301_v24  ;;  %v7728_v30 = vpack.i.b16 %v301_v24, %v301_v24  ;;  %8650 = vmatprep.subr.bf16.mxu0 %v9439_v51  ;;  %vm9902_vm13 = vmor %vm1404_vm6, %vm1405_vm7  ;;  %s8068_s17 = sshll.u32 %s10701_s12, 7 }
  0x45   : > { %v332_v12 = vrot.slane %v318_v41, %v9824_v17  ;;  %v342_v13 = vcombine.high %v9843_v60, %v9843_v60  ;;  %v333_v20 = vcombine.high %v325_v11, %v325_v11  ;;  %v488_v22 = vunpack.i.h.s16 %v325_v11  ;;  %vm9908_vm14 = vmand %vm1399_vm8, %vm1367_vm4  ;;  %s10576_s20 = scalar_lea.vmem %s10662_s3, %s8068_s17 }
  0x46   : > { %v310_v34 = vcombine.high %v308_v27, %v308_v27  ;;  %v482_v35 = vunpack.i.h.s16 %v308_v27  ;;  %v484_v36 = vunpack.i.h.s16 %v309_v28  ;;  %v544_v37 = vpack.i.b16 %v480_v29, %v480_v29  ;;  %8443 = vmatpush3.bf16.msra.mxu1 %v9432_v31  ;;  %vm9920_vm15 = vmand %vm1426_vm9, %vm1404_vm6 }
  0x47   : > { %v7729_v38 = vpack.i.b16 %v308_v27, %v308_v27  ;;  %v7730_v39 = vpack.i.b16 %v309_v28, %v309_v28  ;;  %v610_v40 = vrot.slane %v7728_v30, %v9828_v25  ;;  %8444 = vmatprep.subr.bf16.mxu1 %v9434_v46  ;;  %8651 = vmatpush3.bf16.msra.mxu0 %v9439_v51  ;;  %v490_v27 = vunpack.i.h.s16 %v332_v12 }
  0x48   : > { %v486_v42 = vunpack.i.h.s16 %v310_v34  ;;  %v546_v43 = vpack.i.b16 %v482_v35, %v482_v35  ;;  %v548_v44 = vpack.i.b16 %v484_v36, %v484_v36  ;;  %v7731_v45 = vpack.i.b16 %v310_v34, %v310_v34  ;;  %8652 = vmatprep.subr.bf16.mxu0 %v9440_v1 }
  0x49   : > { %v614_v47 = vrot.slane %v544_v37, %v9828_v25  ;;  %v618_v48 = vrot.slane %v7729_v38, %v9828_v25  ;;  %v626_v49 = vrot.slane %v7730_v39, %v9828_v25  ;;  %v864_v50 = vpack.i.b16 %v610_v40, %v610_v40 }
  0x4a   : > { %v550_v52 = vpack.i.b16 %v486_v42, %v486_v42  ;;  %v622_v53 = vrot.slane %v546_v43, %v9828_v25  ;;  %v630_v54 = vrot.slane %v548_v44, %v9828_v25  ;;  %v634_v55 = vrot.slane %v7731_v45, %v9828_v25  ;;  %8445 = vmatpush3.bf16.msra.mxu1 %v9434_v46 }
  0x4b   : > { %v869_v56 = vrot.slane %v864_v50, %v9828_v25  ;;  %v871_v57 = vpack.i.b16 %v614_v47, %v614_v47  ;;  %v878_v58 = vpack.i.b16 %v618_v48, %v618_v48  ;;  %v892_v59 = vpack.i.b16 %v626_v49, %v626_v49  ;;  %8482 = vmatprep.subr.bf16.mxu1 %v9846_v2 }
  0x4c   : > { %v638_v61 = vrot.slane %v550_v52, %v9828_v25  ;;  %v885_v62 = vpack.i.b16 %v622_v53, %v622_v53  ;;  %v899_v63 = vpack.i.b16 %v630_v54, %v630_v54  ;;  %v906_v0 = vpack.i.b16 %v634_v55, %v634_v55  ;;  %8653 = vmatpush3.bf16.msra.mxu0 %v9440_v1 }
  0x4d   : > { %v876_v3 = vrot.slane %v871_v57, %v9828_v25  ;;  %v883_v4 = vrot.slane %v878_v58, %v9828_v25  ;;  %v897_v5 = vrot.slane %v892_v59, %v9828_v25  ;;  %v334_v21 = vcombine.high %v332_v12, %v332_v12  ;;  %8690 = vmatprep.subr.bf16.mxu0 %v9859_v18 }
  0x4e   : > { %v890_v6 = vrot.slane %v885_v62, %v9828_v25  ;;  %v904_v7 = vrot.slane %v899_v63, %v9828_v25  ;;  %v911_v8 = vrot.slane %v906_v0, %v9828_v25  ;;  %v913_v9 = vpack.i.b16 %v638_v61, %v638_v61  ;;  %v1395_v62 = vld [vmem:[#allocation2 + $0x8] sm:$0xe] }
  0x4f   : > { %v1319_v10 = vcombine.low %v869_v56, %v883_v4  ;;  %v492_v28 = vunpack.i.h.s16 %v333_v20  ;;  %v494_v29 = vunpack.i.h.s16 %v334_v21  ;;  %v7732_v30 = vpack.i.b16 %v325_v11, %v325_v11 }
  0x50   : > { %v918_v14 = vrot.slane %v913_v9, %v9828_v25  ;;  %v1320_v15 = vcombine.low %v876_v3, %v890_v6  ;;  %v1343_v16 = vcombine.low %v897_v5, %v911_v8  ;;  %v552_v31 = vpack.i.b16 %v488_v22, %v488_v22  ;;  %v1422_v3 = vld [vmem:[#allocation2 + $0x10] sm:$0xc] }
  0x51   : > { %v1327_v19 = vrot.slane %v1319_v10, %v9831_v32  ;;  %v7733_v35 = vpack.i.b16 %v332_v12, %v332_v12  ;;  %v554_v36 = vpack.i.b16 %v490_v27, %v490_v27  ;;  %v7734_v37 = vpack.i.b16 %v333_v20, %v333_v20 }
  0x52   : > { %v1334_v23 = vrot.slane %v1320_v15, %v9831_v32  ;;  %v1344_v24 = vcombine.low %v904_v7, %v918_v14  ;;  %v1351_v26 = vrot.slane %v1343_v16, %v9831_v32  ;;  %v556_v38 = vpack.i.b16 %v492_v28, %v492_v28 }
  0x53   : > { %v7735_v39 = vpack.i.b16 %v334_v21, %v334_v21  ;;  %v558_v40 = vpack.i.b16 %v494_v29, %v494_v29  ;;  %v642_v43 = vrot.slane %v7732_v30, %v9828_v25  ;;  %v646_v44 = vrot.slane %v552_v31, %v9828_v25  ;;  %v1428_v31 = vld [vmem:[#allocation2 + $0x18] sm:$0x7] }
  0x54   : > { %v1335_v33 = vcombine.low %v1327_v19, %v1334_v23  ;;  %v1358_v34 = vrot.slane %v1344_v24, %v9831_v32  ;;  %v650_v45 = vrot.slane %v7733_v35, %v9828_v25  ;;  %v654_v46 = vrot.slane %v554_v36, %v9828_v25  ;;  %v2142_v24 = vld [vmem:[#allocation2 + $0x84] sm:$0x8] }
  0x55   : > { %v658_v47 = vrot.slane %v7734_v37, %v9828_v25  ;;  %v662_v48 = vrot.slane %v556_v38, %v9828_v25  ;;  %v666_v52 = vrot.slane %v7735_v39, %v9828_v25  ;;  %v670_v53 = vrot.slane %v558_v40, %v9828_v25 }
  0x56   : > { %v1342_v41 = vrot.slane %v1335_v33, %v9831_v32  ;;  %v1359_v42 = vcombine.low %v1351_v26, %v1358_v34  ;;  %v920_v54 = vpack.i.b16 %v642_v43, %v642_v43  ;;  %v927_v55 = vpack.i.b16 %v646_v44, %v646_v44  ;;  %v1401_v26 = vld [vmem:[#allocation2 + $0x10] sm:$0x3] }
  0x57   : > { %v934_v56 = vpack.i.b16 %v650_v45, %v650_v45  ;;  %v941_v16 = vpack.i.b16 %v654_v46, %v654_v46  ;;  %v948_v23 = vpack.i.b16 %v658_v47, %v658_v47  ;;  %v955_v36 = vpack.i.b16 %v662_v48, %v662_v48 }
  0x58   : > { %v1366_v49 = vrot.slane %v1359_v42, %v9831_v32  ;;  %v1371_v50 = vshrl.u32 %v1342_v41, 16  ;;  %v1374_v51 = vshll.u32 %v1342_v41, 16  ;;  %v925_v4 = vrot.slane %v920_v54, %v9828_v25 }
  0x59   : > { %v932_v5 = vrot.slane %v927_v55, %v9828_v25  ;;  %v939_v15 = vrot.slane %v934_v56, %v9828_v25  ;;  %v946_v30 = vrot.slane %v941_v16, %v9828_v25  ;;  %v953_v35 = vrot.slane %v948_v23, %v9828_v25 }
  0x5a   : > { %v1373_v57 = vrot.slane %v1371_v50, 6  ;;  %v1376_v58 = vrot.slane %v1374_v51, 7  ;;  %v1380_v59 = vshrl.u32 %v1366_v49, 16  ;;  %v1383_v61 = vshll.u32 %v1366_v49, 16 }
  0x5b   : > { %v1407_v0 = vrot.slane %v1371_v50, 5  ;;  %v1408_v1 = vrot.slane %v1374_v51, 6  ;;  %v962_v39 = vpack.i.b16 %v666_v52, %v666_v52  ;;  %v969_v40 = vpack.i.b16 %v670_v53, %v670_v53 }
  0x5c   : > { %v1377_v6 = vor.u32 %v1376_v58, %v1373_v57  ;;  %v1382_v7 = vrot.slane %v1380_v59, 6  ;;  %v1385_v8 = vrot.slane %v1383_v61, 7  ;;  %v1411_v9 = vrot.slane %v1380_v59, 5  ;;  %v9443_v58 = vld [vmem:[#allocation4 + $0x48] sm:$0xff]  }
  0x5d   : > { %v1409_v12 = vor.u32 %v1408_v1, %v1407_v0  ;;  %v1412_v14 = vrot.slane %v1383_v61, 6  ;;  %v960_v43 = vrot.slane %v955_v36, %v9828_v25  ;;  %v1439_v44 = vcombine.low %v925_v4, %v939_v15 }
  0x5e   : > { %v1378_v19 = vrot.slane %v1377_v6, 4  ;;  %v1386_v20 = vor.u32 %v1385_v8, %v1382_v7  ;;  %v1396_v21 = vsel %vm9879_vm10, %v1377_v6, %v1395_v62  ;;  %v1440_v45 = vcombine.low %v932_v5, %v946_v30 }
  0x5f   : > { %1397 = vst [vmem:[#allocation2 + $0x8] sm:$0xe] %v1396_v21  ;;  %v1410_v27 = vrot.slane %v1409_v12, 4  ;;  %v1413_v28 = vor.u32 %v1412_v14, %v1411_v9  ;;  %v1423_v29 = vsel %vm9887_vm11, %v1409_v12, %v1422_v3  ;;  %v967_v46 = vrot.slane %v962_v39, %v9828_v25  ;;  %v1515_v9 = vld [vmem:[#allocation2 + $0x18] sm:$0x8] }
  0x60   : > { %v1387_v33 = vsel %vm9893_vm12, %v1378_v19, %v1386_v20  ;;  %v1388_v34 = vrot.slane %v1386_v20, 4  ;;  %1424 = vst [vmem:[#allocation2 + $0x10] sm:$0xc] %v1423_v29  ;;  %v974_v47 = vrot.slane %v969_v40, %v9828_v25  ;;  %v349_v49 = vrot.slane %v9843_v60, %v9824_v17 }
  0x61   : > { %1398 = vst [vmem:[#allocation2 + $0xc] sm:$0xf] %v1387_v33  ;;  %v1414_v38 = vsel %vm9902_vm13, %v1410_v27, %v1413_v28  ;;  %v1415_v41 = vrot.slane %v1413_v28, 4  ;;  %v1447_v50 = vrot.slane %v1439_v44, %v9831_v32  ;;  %v1454_v51 = vrot.slane %v1440_v45, %v9831_v32  ;;  %v9451_v28 = vld [vmem:[#allocation4 + $0x50] sm:$0xff]  }
  0x62   : > { %v1402_v42 = vsel %vm9908_vm14, %v1388_v34, %v1401_v26  ;;  %1425 = vst [vmem:[#allocation2 + $0x14] sm:$0xf] %v1414_v38  ;;  %vm1488_vm2 = vsmask.f32 7440  ;;  %vm1513_vm3 = vsmask.f32 7950  ;;  %v356_v52 = vrot.slane %v342_v13, %v9824_v17 }
  0x63   : > { %1403 = vst [vmem:[#allocation2 + $0x10] sm:$0x3] %v1402_v42  ;;  %v1429_v48 = vsel %vm9920_vm15, %v1415_v41, %v1428_v31  ;;  %v1463_v53 = vcombine.low %v953_v35, %v967_v46  ;;  %v1464_v54 = vcombine.low %v960_v43, %v974_v47  ;;  %vm1519_vm4 = vcmask 1043456   ;;  %vm9957_vm9 = vmand %vm1512_vm0, %vm1513_vm3 }
  0x64   : > { %1430 = vst [vmem:[#allocation2 + $0x18] sm:$0x7] %v1429_v48  ;;  %vm1537_vm5 = vsmask.f32 7938  ;;  %v496_v55 = vunpack.i.h.s16 %v349_v49  ;;  %v7736_v56 = vpack.i.b16 %v349_v49, %v349_v49  ;;  %v1455_v57 = vcombine.low %v1447_v50, %v1454_v51  ;;  %vm9966_vm0 = vmor %vm1487_vm1, %vm1488_vm2 }
  0x65   : > { %v498_v59 = vunpack.i.h.s16 %v356_v52  ;;  %v7737_v61 = vpack.i.b16 %v356_v52, %v356_v52  ;;  %v9941_v62 = vcombine.high %v349_v49, %v349_v49  ;;  %v1471_v0 = vrot.slane %v1463_v53, %v9831_v32  ;;  %vm9974_vm3 = vmand %vm1519_vm4, %vm1537_vm5 }
  0x66   : > { %v1478_v1 = vrot.slane %v1464_v54, %v9831_v32  ;;  %vm4603_vm6 = vsmask.f32 6400  ;;  %v560_v3 = vpack.i.b16 %v496_v55, %v496_v55  ;;  %v674_v60 = vrot.slane %v7736_v56, %v9828_v25  ;;  %vm9981_vm2 = vmand %vm1519_vm4, %vm1487_vm1 }
  0x67   : > { %vm1524_vm7 = vsmask.f32 256  ;;  %vm1543_vm8 = vcmask 1040384   ;;  %v1462_v4 = vrot.slane %v1455_v57, %v9831_v32  ;;  %v562_v5 = vpack.i.b16 %v498_v59, %v498_v59  ;;  %v9459_v59 = vld [vmem:[#allocation4 + $0x58] sm:$0xff]  }
  0x68   : > { %v9438_v13 = vld [vmem:[#allocation2 + $0x8] sm:$0xff]   ;;  %v682_v6 = vrot.slane %v7737_v61, %v9828_v25  ;;  %v9948_v7 = vcombine.high %v356_v52, %v356_v52  ;;  %v1479_v8 = vcombine.low %v1471_v0, %v1478_v1  ;;  %v678_v14 = vrot.slane %v560_v3, %v9828_v25  ;;  %v1539_v52 = vld [vmem:[#allocation2 + $0x24] sm:$0xf]  ;;  %v1521_v0 = vld [vmem:[#allocation2 + $0x20] sm:$0xf] }
  0x69   : > { %v9444_v12 = vld [vmem:[#allocation2 + $0x8] sm:$0xfe]   ;;  %v976_v15 = vpack.i.b16 %v674_v60, %v674_v60  ;;  %v500_v16 = vunpack.i.h.s16 %v9941_v62  ;;  %8447 = vmatmul.mubr.bf16.vlgmr.msra.gmra.mrb[0].mxu1 %v9438_v13  ;;  %v1491_v20 = vshll.u32 %v1462_v4, 16  ;;  %v1494_v21 = vshrl.u32 %v1462_v4, 16  ;;  %vm9992_vm1 = vmand %vm1543_vm8, %vm1524_vm7 }
  0x6a   : > { %v9441_v19 = vld [vmem:[#allocation2 + $0x10] sm:$0xff]   ;;  %v686_v26 = vrot.slane %v562_v5, %v9828_v25  ;;  %v990_v27 = vpack.i.b16 %v682_v6, %v682_v6  ;;  %8483 = vmatpush3.bf16.msra.mxu1 %v9846_v2  ;;  %v1486_v29 = vrot.slane %v1479_v8, %v9831_v32  ;;  %v4605_v31 = vshrl.u32 %v9444_v12, 16  ;;  %v1545_v13 = vld [vmem:[#allocation2 + $0x2c] sm:$0x1] }
  0x6b   : > { %v9445_v23 = vld [vmem:[#allocation2 + $0x10] sm:$0xff]   ;;  %v4608_v33 = vshll.u32 %v9444_v12, 16  ;;  %v981_v34 = vrot.slane %v976_v15, %v9828_v25  ;;  %8450 = vmatprep.mubr.bf16.mxu1 %v9441_v19  ;;  %v1493_v35 = vrot.slane %v1491_v20, 5  ;;  %v1496_v36 = vrot.slane %v1494_v21, 4  ;;  %8484 = vmatprep.subr.bf16.mxu1 %v9443_v58 }
  0x6c   : > { %v4613_v38 = vshrl.u32 %v9445_v23, 16  ;;  %v4616_v39 = vshll.u32 %v9445_v23, 16  ;;  %v1500_v40 = vshll.u32 %v1486_v29, 16  ;;  %v1504_v2 = vshrl.u32 %v1486_v29, 16 }
  0x6d   : > { %v4607_v41 = vrot.slane %v4605_v31, 1  ;;  %v4610_v42 = vrot.slane %v4608_v33, 2  ;;  %v1497_v43 = vor.u32 %v1496_v36, %v1493_v35  ;;  %v1516_v44 = vsel %vm9957_vm9, %v1493_v35, %v1515_v9  ;;  %v7723_v12 = vld.sshfl [vmem:[%s9822_s10 + $0xc] sm:$0x33 pattern:$0x75316420] }
  0x6e   : > { %v4615_v45 = vrot.slane %v4613_v38, 1  ;;  %v4618_v46 = vrot.slane %v4616_v39, 2  ;;  %v1502_v48 = vrot.slane %v1500_v40, 5  ;;  %v1506_v49 = vrot.slane %v1504_v2, 4  ;;  %1517 = vst [vmem:[#allocation2 + $0x18] sm:$0x8] %v1516_v44  ;;  %8485 = vmatpush3.bf16.msra.mxu1 %v9443_v58 }
  0x6f   : > { %v4611_v50 = vor.u32 %v4610_v42, %v4607_v41  ;;  %v1527_v51 = vrot.slane %v1494_v21, 7  ;;  %v1498_v53 = vrot.slane %v1497_v43, 4  ;;  %v983_v56 = vpack.i.b16 %v678_v14, %v678_v14  ;;  %8486 = vmatprep.subr.bf16.mxu1 %v9451_v28  ;;  %v10007_v23 = vld.sshfl [vmem:[%s9822_s10 + $0x10] sm:$0x33 pattern:$0x75316420] }
  0x70   : > { %v9970_v54 = vor.u32 %v4618_v46, %v4615_v45  ;;  %v995_v57 = vrot.slane %v990_v27, %v9828_v25  ;;  %v1507_v61 = vor.u32 %v1506_v49, %v1502_v48  ;;  %v997_v3 = vpack.i.b16 %v686_v26, %v686_v26  ;;  %v9468_v33 = vld [vmem:[#allocation4 + $0x60] sm:$0xff]   ;;  %v9475_v43 = vld [vmem:[#allocation4 + $0x68] sm:$0xff]  }
  0x71   : > { %v1528_v1 = vor.u32 %v1527_v51, %v1491_v20  ;;  %v1529_v60 = vrot.slane %v1527_v51, 4  ;;  %v1503_v4 = vsel %vm9966_vm0, %v1498_v53, %v1502_v48  ;;  %v988_v6 = vrot.slane %v983_v56, %v9828_v25  ;;  %v9526_v9 = vld [vmem:[#allocation2 + $0x10] sm:$0xfc]  }
  0x72   : > { %v4620_v5 = vsel %vm4603_vm6, %v4611_v50, %v9970_v54  ;;  %v1530_v8 = vrot.slane %v1504_v2, 7  ;;  %1518 = vst [vmem:[#allocation2 + $0x1c] sm:$0xf] %v1503_v4  ;;  %v1508_v14 = vrot.slane %v1507_v61, 4  ;;  %v1002_v19 = vrot.slane %v997_v3, %v9828_v25  ;;  %8487 = vmatpush3.bf16.msra.mxu1 %v9451_v28 }
  0x73   : > { %8654 = vmatprep.mubr.bf16.mxu0 %v4620_v5  ;;  %v1540_v15 = vsel %vm9974_vm3, %v1528_v1, %v1539_v52  ;;  %vm10693_vm4 = vsmask.f32 4368  ;;  %v1556_v21 = vcombine.low %v981_v34, %v995_v57  ;;  %v502_v29 = vunpack.i.h.s16 %v9948_v7  ;;  %8488 = vmatprep.subr.bf16.mxu1 %v9459_v59 }
  0x74   : > { %vm10002_vm5 = vmor %vm1524_vm7, %vm10693_vm4  ;;  %1541 = vst [vmem:[#allocation2 + $0x24] sm:$0xf] %v1540_v15  ;;  %v1531_v26 = vor.u32 %v1530_v8, %v1500_v40  ;;  %v1533_v27 = vrot.slane %v1530_v8, 4  ;;  %v7738_v31 = vpack.i.b16 %v9941_v62, %v9941_v62  ;;  %v1522_v35 = vsel %vm9981_vm2, %v1508_v14, %v1521_v0  ;;  %v9481_v8 = vld [vmem:[#allocation4 + $0x70] sm:$0xff]  }
  0x75   : > { %v1557_v36 = vcombine.low %v988_v6, %v1002_v19  ;;  %v1564_v38 = vrot.slane %v1556_v21, %v9831_v32  ;;  %v564_v28 = vpack.i.b16 %v500_v16, %v500_v16  ;;  %1523 = vst [vmem:[#allocation2 + $0x20] sm:$0xf] %v1522_v35  ;;  %v7739_v40 = vpack.i.b16 %v9948_v7, %v9948_v7 }
  0x76   : > { %v1532_v34 = vsel %vm10002_vm5, %v1529_v60, %v1531_v26  ;;  %v1546_v39 = vsel %vm9992_vm1, %v1533_v27, %v1545_v13  ;;  %v566_v2 = vpack.i.b16 %v502_v29, %v502_v29  ;;  %v690_v42 = vrot.slane %v7738_v31, %v9828_v25  ;;  %8489 = vmatpush3.bf16.msra.mxu1 %v9459_v59 }
  0x77   : > { %1542 = vst [vmem:[#allocation2 + $0x28] sm:$0xf] %v1532_v34  ;;  %1547 = vst [vmem:[#allocation2 + $0x2c] sm:$0x1] %v1546_v39  ;;  %v1571_v41 = vrot.slane %v1557_v36, %v9831_v32  ;;  %v694_v62 = vrot.slane %v564_v28, %v9828_v25  ;;  %v366_v16 = vcombine.high %v7723_v12, %v7723_v12  ;;  %8490 = vmatprep.subr.bf16.mxu1 %v9468_v33  ;;  %v1626_v28 = vld [vmem:[#allocation2 + $0x2c] sm:$0xe] }
  0x78   : > { %v698_v44 = vrot.slane %v7739_v40, %v9828_v25  ;;  %v702_v45 = vrot.slane %v566_v2, %v9828_v25  ;;  %v10030_v46 = vrot.slane %v7723_v12, %v9824_v17  ;;  %v390_v7 = vcombine.high %v10007_v23, %v10007_v23 }
  0x79   : > { %v1572_v48 = vcombine.low %v1564_v38, %v1571_v41  ;;  %v1004_v49 = vpack.i.b16 %v690_v42, %v690_v42  ;;  %v1011_v50 = vpack.i.b16 %v694_v62, %v694_v62  ;;  %v10035_v51 = vrot.slane %v366_v16, %v9824_v17  ;;  %v9442_v52 = vld [vmem:[#allocation2 + $0x18] sm:$0xff]   ;;  %v9487_v42 = vld [vmem:[#allocation4 + $0x78] sm:$0xff]  }
  0x7a   : > { %v1018_v53 = vpack.i.b16 %v698_v44, %v698_v44  ;;  %v1025_v56 = vpack.i.b16 %v702_v45, %v702_v45  ;;  %v504_v57 = vunpack.i.h.s16 %v10030_v46  ;;  %v7740_v59 = vpack.i.b16 %v10030_v46, %v10030_v46  ;;  %v9446_v61 = vld [vmem:[#allocation2 + $0x18] sm:$0xff]   ;;  %8491 = vmatpush3.bf16.msra.mxu1 %v9468_v33 }
  0x7b   : > { %v1579_v0 = vrot.slane %v1572_v48, %v9831_v32  ;;  %v1009_v1 = vrot.slane %v1004_v49, %v9828_v25  ;;  %v1016_v3 = vrot.slane %v1011_v50, %v9828_v25  ;;  %v506_v60 = vunpack.i.h.s16 %v10035_v51  ;;  %8451 = vmatmul.mubr.bf16.gmra.mrb[4].mxu1 %v9442_v52  ;;  %8492 = vmatprep.subr.bf16.mxu1 %v9475_v43  ;;  %v9448_v16 = vld [vmem:[#allocation4 + $0x148] sm:$0xff]  }
  0x7c   : > { %v1023_v13 = vrot.slane %v1018_v53, %v9828_v25  ;;  %v1030_v4 = vrot.slane %v1025_v56, %v9828_v25  ;;  %v568_v5 = vpack.i.b16 %v504_v57, %v504_v57  ;;  %v7741_v6 = vpack.i.b16 %v10035_v51, %v10035_v51  ;;  %v9449_v15 = vld [vmem:[#allocation2 + $0x20] sm:$0xff]   ;;  %v1645_v48 = vld [vmem:[#allocation2 + $0x34] sm:$0xc] }
  0x7d   : > { %v4622_v12 = vshrl.u32 %v9446_v61, 16  ;;  %v4625_v14 = vshll.u32 %v9446_v61, 16  ;;  %v1605_v19 = vshrl.u32 %v1579_v0, 16  ;;  %v570_v21 = vpack.i.b16 %v506_v60, %v506_v60  ;;  %v9452_v27 = vld [vmem:[#allocation2 + $0x20] sm:$0xff]   ;;  %8454 = vmatprep.mubr.bf16.mxu1 %v9449_v15 }
  0x7e   : > { %v1608_v26 = vshll.u32 %v1579_v0, 16  ;;  %v1580_v29 = vcombine.low %v1009_v1, %v1023_v13  ;;  %v1581_v31 = vcombine.low %v1016_v3, %v1030_v4  ;;  %v706_v33 = vrot.slane %v7740_v59, %v9828_v25  ;;  %8493 = vmatpush3.bf16.msra.mxu1 %v9475_v43 }
  0x7f   : > { %v4624_v35 = vrot.slane %v4622_v12, 1  ;;  %v4627_v36 = vrot.slane %v4625_v14, 2  ;;  %v1607_v38 = vrot.slane %v1605_v19, 6  ;;  %v1633_v34 = vrot.slane %v1605_v19, 5  ;;  %8494 = vmatprep.subr.bf16.mxu1 %v9481_v8 }
  0x80   : > { %v1610_v39 = vrot.slane %v1608_v26, 7  ;;  %v4631_v40 = vshrl.u32 %v9452_v27, 16  ;;  %v4634_v2 = vshll.u32 %v9452_v27, 16  ;;  %v1588_v41 = vrot.slane %v1580_v29, %v9831_v32 }
  0x81   : > { %v4628_v62 = vor.u32 %v4627_v36, %v4624_v35  ;;  %v1595_v44 = vrot.slane %v1581_v31, %v9831_v32  ;;  %v1634_v45 = vrot.slane %v1608_v26, 6  ;;  %v710_v49 = vrot.slane %v568_v5, %v9828_v25  ;;  %v9455_v35 = vld [vmem:[#allocation4 + $0x158] sm:$0xff]  }
  0x82   : > { %v10052_v50 = vor.u32 %v1610_v39, %v1607_v38  ;;  %v4633_v52 = vrot.slane %v4631_v40, 1  ;;  %v4636_v53 = vrot.slane %v4634_v2, 2  ;;  %v714_v43 = vrot.slane %v7741_v6, %v9828_v25  ;;  %8495 = vmatpush3.bf16.msra.mxu1 %v9481_v8  ;;  %v9454_v8 = vld [vmem:[#allocation4 + $0x150] sm:$0xff]   ;;  %v9495_v39 = vld [vmem:[#allocation4 + $0x80] sm:$0xff]   ;;  %v1630_v40 = vld [vmem:[#allocation2 + $0x34] sm:$0x3] }
  0x83   : > { %v4629_v56 = vsel %vm4603_vm6, %v9970_v54, %v4628_v62  ;;  %v1596_v57 = vcombine.low %v1588_v41, %v1595_v44  ;;  %v1635_v59 = vor.u32 %v1634_v45, %v1633_v34  ;;  %v718_v61 = vrot.slane %v570_v21, %v9828_v25  ;;  %8496 = vmatprep.subr.bf16.mxu1 %v9487_v42  ;;  %v1649_v2 = vld [vmem:[#allocation2 + $0x3c] sm:$0x7] }
  0x84   : > { %8655 = vmatmul.mubr.bf16.vlgmr.msra.gmra.mrb[0].mxu0 %v4629_v56  ;;  %v1627_v0 = vsel %vm9879_vm10, %v10052_v50, %v1626_v28  ;;  %v10061_v1 = vor.u32 %v4636_v53, %v4633_v52  ;;  %v1612_v3 = vrot.slane %v10052_v50, 4  ;;  %v1032_v60 = vpack.i.b16 %v706_v33, %v706_v33 }
  0x85   : > { %8691 = vmatpush3.bf16.msra.mxu0 %v9859_v18  ;;  %1628 = vst [vmem:[#allocation2 + $0x2c] sm:$0xe] %v1627_v0  ;;  %v1603_v54 = vrot.slane %v1596_v57, %v9831_v32  ;;  %v1646_v13 = vsel %vm9887_vm11, %v1635_v59, %v1645_v48  ;;  %v1039_v4 = vpack.i.b16 %v710_v49, %v710_v49  ;;  %v1636_v15 = vrot.slane %v1635_v59, 4  ;;  %v9461_v0 = vld [vmem:[#allocation4 + $0x160] sm:$0xff]  }
  0x86   : > { %v1046_v5 = vpack.i.b16 %v714_v43, %v714_v43  ;;  %8692 = vmatprep.subr.bf16.mxu0 %v9448_v16  ;;  %v4638_v6 = vsel %vm4603_vm6, %v4628_v62, %v10061_v1  ;;  %1647 = vst [vmem:[#allocation2 + $0x34] sm:$0xc] %v1646_v13  ;;  %v1037_v12 = vrot.slane %v1032_v60, %v9828_v25  ;;  %vm5272_vm7 = vcmask 1045504  }
  0x87   : > { %v1053_v14 = vpack.i.b16 %v718_v61, %v718_v61  ;;  %8658 = vmatprep.mubr.bf16.mxu0 %v4638_v6  ;;  %v1614_v18 = vshrl.u32 %v1603_v54, 16  ;;  %v1617_v19 = vshll.u32 %v1603_v54, 16  ;;  %v1044_v21 = vrot.slane %v1039_v4, %v9828_v25  ;;  %8497 = vmatpush3.bf16.msra.mxu1 %v9487_v42 }
  0x88   : > { %v1051_v26 = vrot.slane %v1046_v5, %v9828_v25  ;;  %v381_v29 = vcombine.high %v10030_v46, %v10030_v46  ;;  %v382_v31 = vcombine.high %v10035_v51, %v10035_v51  ;;  %v10080_v33 = vrot.slane %v10007_v23, %v9824_v17  ;;  %8534 = vmatprep.subr.bf16.mxu1 %v9495_v39 }
  0x89   : > { %v1058_v27 = vrot.slane %v1053_v14, %v9828_v25  ;;  %8693 = vmatpush3.bf16.msra.mxu0 %v9448_v16  ;;  %v1616_v36 = vrot.slane %v1614_v18, 6  ;;  %v1619_v38 = vrot.slane %v1617_v19, 7  ;;  %v1637_v28 = vrot.slane %v1614_v18, 5 }
  0x8a   : > { %v1638_v34 = vrot.slane %v1617_v19, 6  ;;  %8694 = vmatprep.subr.bf16.mxu0 %v9454_v8  ;;  %v1660_v41 = vcombine.low %v1037_v12, %v1051_v26  ;;  %v508_v46 = vunpack.i.h.s16 %v381_v29  ;;  %v510_v62 = vunpack.i.h.s16 %v382_v31  ;;  %v1730_v26 = vld [vmem:[#allocation2 + $0x3c] sm:$0x8] }
  0x8b   : > { %v1661_v42 = vcombine.low %v1044_v21, %v1058_v27  ;;  %v1620_v44 = vor.u32 %v1619_v38, %v1616_v36  ;;  %v7742_v45 = vpack.i.b16 %v381_v29, %v381_v29  ;;  %v7743_v48 = vpack.i.b16 %v382_v31, %v382_v31  ;;  %v9462_v36 = vld [vmem:[#allocation4 + $0x168] sm:$0xff]  }
  0x8c   : > { %v1639_v51 = vor.u32 %v1638_v34, %v1637_v28  ;;  %v9450_v49 = vld [vmem:[#allocation2 + $0x28] sm:$0xff]   ;;  %v1668_v16 = vrot.slane %v1660_v41, %v9831_v32  ;;  %v572_v52 = vpack.i.b16 %v508_v46, %v508_v46  ;;  %v574_v53 = vpack.i.b16 %v510_v62, %v510_v62 }
  0x8d   : > { %v1675_v50 = vrot.slane %v1661_v42, %v9831_v32  ;;  %v9453_v43 = vld [vmem:[#allocation2 + $0x28] sm:$0xff]   ;;  %8695 = vmatpush3.bf16.msra.mxu0 %v9454_v8  ;;  %v1621_v56 = vsel %vm9893_vm12, %v1612_v3, %v1620_v44  ;;  %v1622_v57 = vrot.slane %v1620_v44, 4  ;;  %8455 = vmatmul.mubr.bf16.gmra.mrb[8].mxu1 %v9450_v49  ;;  %v722_v54 = vrot.slane %v7742_v45, %v9828_v25 }
  0x8e   : > { %v1640_v59 = vsel %vm9902_vm13, %v1636_v15, %v1639_v51  ;;  %v1641_v61 = vrot.slane %v1639_v51, 4  ;;  %8696 = vmatprep.subr.bf16.mxu0 %v9455_v35  ;;  %1629 = vst [vmem:[#allocation2 + $0x30] sm:$0xf] %v1621_v56  ;;  %v726_v13 = vrot.slane %v572_v52, %v9828_v25  ;;  %v512_v4 = vunpack.i.h.s16 %v10080_v33  ;;  %v9506_v20 = vld [vmem:[#allocation2 + $0x28] sm:$0xff]  }
  0x8f   : > { %1648 = vst [vmem:[#allocation2 + $0x38] sm:$0xf] %v1640_v59  ;;  %v1676_v60 = vcombine.low %v1668_v16, %v1675_v50  ;;  %v4640_v5 = vshrl.u32 %v9453_v43, 16  ;;  %v4643_v6 = vshll.u32 %v9453_v43, 16  ;;  %v1631_v3 = vsel %vm9908_vm14, %v1622_v57, %v1630_v40  ;;  %v9467_v50 = vld [vmem:[#allocation4 + $0x170] sm:$0xff]  }
  0x90   : > { %v1650_v8 = vsel %vm9920_vm15, %v1641_v61, %v1649_v2  ;;  %1632 = vst [vmem:[#allocation2 + $0x34] sm:$0x3] %v1631_v3  ;;  %v730_v14 = vrot.slane %v7743_v48, %v9828_v25  ;;  %v734_v15 = vrot.slane %v574_v53, %v9828_v25  ;;  %v1060_v18 = vpack.i.b16 %v722_v54, %v722_v54 }
  0x91   : > { %1651 = vst [vmem:[#allocation2 + $0x3c] sm:$0x7] %v1650_v8  ;;  %v1683_v12 = vrot.slane %v1676_v60, %v9831_v32  ;;  %v4642_v19 = vrot.slane %v4640_v5, 1  ;;  %v4645_v21 = vrot.slane %v4643_v6, 2  ;;  %8697 = vmatpush3.bf16.msra.mxu0 %v9455_v35  ;;  %v1067_v27 = vpack.i.b16 %v726_v13, %v726_v13 }
  0x92   : > { %v10102_v29 = vrot.slane %v390_v7, %v9824_v17  ;;  %8698 = vmatprep.subr.bf16.mxu0 %v9461_v0  ;;  %v1065_v38 = vrot.slane %v1060_v18, %v9828_v25  ;;  %v1074_v28 = vpack.i.b16 %v730_v14, %v730_v14  ;;  %v1081_v34 = vpack.i.b16 %v734_v15, %v734_v15  ;;  %v9469_v14 = vld [vmem:[#allocation4 + $0x178] sm:$0xff]  }
  0x93   : > { %v1709_v31 = vshll.u32 %v1683_v12, 16  ;;  %v10105_v39 = vor.u32 %v4645_v21, %v4642_v19  ;;  %v1072_v40 = vrot.slane %v1067_v27, %v9828_v25  ;;  %v1712_v35 = vshrl.u32 %v1683_v12, 16 }
  0x94   : > { %v405_v2 = vcombine.high %v10080_v33, %v10080_v33  ;;  %v1079_v23 = vrot.slane %v1074_v28, %v9828_v25  ;;  %v1086_v7 = vrot.slane %v1081_v34, %v9828_v25  ;;  %v406_v42 = vcombine.high %v10102_v29, %v10102_v29 }
  0x95   : > { %v1711_v41 = vrot.slane %v1709_v31, 5  ;;  %v4647_v46 = vsel %vm4603_vm6, %v10061_v1, %v10105_v39  ;;  %8699 = vmatpush3.bf16.msra.mxu0 %v9461_v0  ;;  %v514_v62 = vunpack.i.h.s16 %v10102_v29  ;;  %v7744_v51 = vpack.i.b16 %v10080_v33, %v10080_v33  ;;  %v1747_v0 = vld [vmem:[#allocation2 + $0x48] sm:$0xf] }
  0x96   : > { %v516_v44 = vunpack.i.h.s16 %v405_v2  ;;  %8659 = vmatmul.mubr.bf16.gmra.mrb[4].mxu0 %v4647_v46  ;;  %8700 = vmatprep.subr.bf16.mxu0 %v9462_v36  ;;  %v1684_v48 = vcombine.low %v1065_v38, %v1079_v23  ;;  %v1685_v49 = vcombine.low %v1072_v40, %v1086_v7  ;;  %v1714_v16 = vrot.slane %v1712_v35, 4 }
  0x97   : > { %v1731_v45 = vsel %vm9957_vm9, %v1711_v41, %v1730_v26  ;;  %v9456_v52 = vld [vmem:[#allocation2 + $0x30] sm:$0xff]   ;;  %v10122_v53 = vrot.slane %v1712_v35, 7  ;;  %v518_v1 = vunpack.i.h.s16 %v406_v42  ;;  %v576_v43 = vpack.i.b16 %v512_v4, %v512_v4 }
  0x98   : > { %1732 = vst [vmem:[#allocation2 + $0x3c] sm:$0x8] %v1731_v45  ;;  %v7745_v56 = vpack.i.b16 %v10102_v29, %v10102_v29  ;;  %v9458_v57 = vld [vmem:[#allocation2 + $0x30] sm:$0xff]   ;;  %v1692_v33 = vrot.slane %v1684_v48, %v9831_v32  ;;  %v1699_v59 = vrot.slane %v1685_v49, %v9831_v32  ;;  %v1715_v61 = vor.u32 %v1714_v16, %v1711_v41 }
  0x99   : > { %v578_v60 = vpack.i.b16 %v514_v62, %v514_v62  ;;  %8458 = vmatprep.mubr.bf16.mxu1 %v9456_v52  ;;  %8701 = vmatpush3.bf16.msra.mxu0 %v9462_v36  ;;  %v1738_v54 = vor.u32 %v10122_v53, %v1709_v31  ;;  %v1739_v13 = vrot.slane %v10122_v53, 4  ;;  %v7746_v5 = vpack.i.b16 %v405_v2, %v405_v2  ;;  %v10135_v36 = vld [vmem:[#allocation4 + $0x180] sm:$0xff]  }
  0x9a   : > { %v580_v6 = vpack.i.b16 %v516_v44, %v516_v44  ;;  %v4649_v4 = vshrl.u32 %v9458_v57, 16  ;;  %v4652_v3 = vshll.u32 %v9458_v57, 16  ;;  %v1700_v8 = vcombine.low %v1692_v33, %v1699_v59  ;;  %8702 = vmatprep.subr.bf16.mxu0 %v9467_v50  ;;  %v1734_v57 = vld [vmem:[#allocation2 + $0x44] sm:$0xf] }
  0x9b   : > { %v1716_v12 = vrot.slane %v1715_v61, 4  ;;  %v1748_v15 = vsel %vm9974_vm3, %v1738_v54, %v1747_v0  ;;  %v7747_v18 = vpack.i.b16 %v406_v42, %v406_v42  ;;  %v582_v19 = vpack.i.b16 %v518_v1, %v518_v1 }
  0x9c   : > { %v738_v21 = vrot.slane %v7744_v51, %v9828_v25  ;;  %v4651_v26 = vrot.slane %v4649_v4, 1  ;;  %v4654_v27 = vrot.slane %v4652_v3, 2  ;;  %v1707_v29 = vrot.slane %v1700_v8, %v9831_v32  ;;  %1749 = vst [vmem:[#allocation2 + $0x48] sm:$0xf] %v1748_v15 }
  0x9d   : > { %v742_v31 = vrot.slane %v576_v43, %v9828_v25  ;;  %8703 = vmatpush3.bf16.msra.mxu0 %v9467_v50  ;;  %v746_v38 = vrot.slane %v7745_v56, %v9828_v25  ;;  %v750_v28 = vrot.slane %v578_v60, %v9828_v25  ;;  %v754_v34 = vrot.slane %v7746_v5, %v9828_v25  ;;  %v1751_v5 = vld [vmem:[#allocation2 + $0x50] sm:$0x1] }
  0x9e   : > { %v758_v40 = vrot.slane %v580_v6, %v9828_v25  ;;  %v4655_v2 = vor.u32 %v4654_v27, %v4651_v26  ;;  %v1718_v41 = vshll.u32 %v1707_v29, 16  ;;  %8704 = vmatprep.subr.bf16.mxu0 %v9469_v14  ;;  %v762_v23 = vrot.slane %v7747_v18, %v9828_v25  ;;  %v9474_v26 = vld [vmem:[#allocation2 + $0x18] sm:$0xff]   ;;  %v7725_v27 = vld.sshfl [vmem:[%s9822_s10 + $0x14] sm:$0x33 pattern:$0x75316420] }
  0x9f   : > { %v9457_v35 = vld [vmem:[#allocation2 + $0x38] sm:$0xff]   ;;  %v766_v7 = vrot.slane %v582_v19, %v9828_v25  ;;  %v1722_v46 = vshrl.u32 %v1707_v29, 16  ;;  %v1088_v62 = vpack.i.b16 %v738_v21, %v738_v21  ;;  %v1095_v44 = vpack.i.b16 %v742_v31, %v742_v31  ;;  %v9473_v21 = vld [vmem:[#allocation2 + $0x10] sm:$0xff]  }
  0xa0   : > { %v9460_v42 = vld [vmem:[#allocation2 + $0x38] sm:$0xff]   ;;  %v1102_v51 = vpack.i.b16 %v746_v38, %v746_v38  ;;  %8459 = vmatmul.mubr.bf16.gmra.mrb[12].mxu1 %v9457_v35  ;;  %v4656_v45 = vsel %vm4603_vm6, %v10105_v39, %v4655_v2  ;;  %v1720_v48 = vrot.slane %v1718_v41, 5  ;;  %v1109_v49 = vpack.i.b16 %v750_v28, %v750_v28 }
  0xa1   : > { %v1116_v16 = vpack.i.b16 %v754_v34, %v754_v34  ;;  %8662 = vmatprep.mubr.bf16.mxu0 %v4656_v45  ;;  %v4658_v50 = vshrl.u32 %v9460_v42, 16  ;;  %v4661_v52 = vshll.u32 %v9460_v42, 16  ;;  %v1724_v1 = vrot.slane %v1722_v46, 4  ;;  %8705 = vmatpush3.bf16.msra.mxu0 %v9469_v14  ;;  %v10162_v34 = vld [vmem:[#allocation2 + $0x20] sm:$0xff]  }
  0xa2   : > { %v1740_v43 = vrot.slane %v1722_v46, 7  ;;  %v1721_v56 = vsel %vm9966_vm0, %v1716_v12, %v1720_v48  ;;  %v1093_v33 = vrot.slane %v1088_v62, %v9828_v25  ;;  %v1100_v59 = vrot.slane %v1095_v44, %v9828_v25  ;;  %8742 = vmatprep.subr.bf16.mxu0 %v10135_v36  ;;  %v9472_v12 = vld [vmem:[#allocation2 + $0x8] sm:$0xfc]  }
  0xa3   : > { %v1107_v39 = vrot.slane %v1102_v51, %v9828_v25  ;;  %v4660_v61 = vrot.slane %v4658_v50, 1  ;;  %v4663_v0 = vrot.slane %v4661_v52, 2  ;;  %v1725_v60 = vor.u32 %v1724_v1, %v1720_v48  ;;  %1733 = vst [vmem:[#allocation2 + $0x40] sm:$0xf] %v1721_v56  ;;  %v10173_v51 = vld [vmem:[#allocation2 + $0x28] sm:$0xff]  }
  0xa4   : > { %v1741_v54 = vor.u32 %v1740_v43, %v1718_v41  ;;  %v1114_v6 = vrot.slane %v1109_v49, %v9828_v25  ;;  %v1121_v4 = vrot.slane %v1116_v16, %v9828_v25  ;;  %v1123_v3 = vpack.i.b16 %v758_v40, %v758_v40 }
  0xa5   : > { %v1130_v8 = vpack.i.b16 %v762_v23, %v762_v23  ;;  %v10153_v14 = vor.u32 %v4663_v0, %v4660_v61  ;;  %v1726_v15 = vrot.slane %v1725_v60, 4  ;;  %v1137_v19 = vpack.i.b16 %v766_v7, %v766_v7 }
  0xa6   : > { %v1742_v18 = vsel %vm10002_vm5, %v1739_v13, %v1741_v54  ;;  %v1128_v29 = vrot.slane %v1123_v3, %v9828_v25  ;;  %v1743_v38 = vrot.slane %v1740_v43, 4  ;;  %v1762_v28 = vcombine.low %v1093_v33, %v1107_v39 }
  0xa7   : > { %1750 = vst [vmem:[#allocation2 + $0x4c] sm:$0xf] %v1742_v18  ;;  %v1135_v31 = vrot.slane %v1130_v8, %v9828_v25  ;;  %v4665_v40 = vsel %vm4603_vm6, %v4655_v2, %v10153_v14  ;;  %v1735_v53 = vsel %vm9981_vm2, %v1726_v15, %v1734_v57  ;;  %v1142_v13 = vrot.slane %v1137_v19, %v9828_v25 }
  0xa8   : > { %v1763_v35 = vcombine.low %v1100_v59, %v1114_v6  ;;  %8663 = vmatmul.mubr.bf16.gmra.mrb[8].mxu0 %v4665_v40  ;;  %1736 = vst [vmem:[#allocation2 + $0x44] sm:$0xf] %v1735_v53  ;;  %v1752_v41 = vsel %vm9992_vm1, %v1743_v38, %v1751_v5  ;;  %v1770_v23 = vrot.slane %v1762_v28, %v9831_v32  ;;  %v5273_v42 = vrot.slane %v9472_v12, 2 }
  0xa9   : > { %v1786_v7 = vcombine.low %v1121_v4, %v1135_v31  ;;  %1753 = vst [vmem:[#allocation2 + $0x50] sm:$0x1] %v1752_v41  ;;  %v1787_v62 = vcombine.low %v1128_v29, %v1142_v13  ;;  %v5274_v2 = vrot.slane %v9473_v21, 2  ;;  %v5276_v44 = vrot.slane %v9474_v26, 2 }
  0xaa   : > { %v1777_v46 = vrot.slane %v1763_v35, %v9831_v32  ;;  %v414_v48 = vcombine.high %v7725_v27, %v7725_v27  ;;  %v10177_v49 = vrot.slane %v7725_v27, %v9824_v17  ;;  %v5278_v16 = vrot.slane %v10162_v34, 2 }
  0xab   : > { %v1794_v45 = vrot.slane %v1786_v7, %v9831_v32  ;;  %v1801_v52 = vrot.slane %v1787_v62, %v9831_v32  ;;  %v10182_v1 = vsel %vm5272_vm7, %v5273_v42, %v5274_v2  ;;  %v10185_v43 = vsel %vm5272_vm7, %v5274_v2, %v5276_v44 }
  0xac   : > { %v1778_v50 = vcombine.low %v1770_v23, %v1777_v46  ;;  %v10188_v56 = vrot.slane %v414_v48, %v9824_v17  ;;  %v10192_v57 = vcombine.high %v10177_v49, %v10177_v49  ;;  %v520_v33 = vunpack.i.h.s16 %v10177_v49 }
  0xad   : > { %v7748_v59 = vpack.i.b16 %v10177_v49, %v10177_v49  ;;  %v1802_v61 = vcombine.low %v1794_v45, %v1801_v52  ;;  %v10201_v0 = vsel %vm5272_vm7, %v5276_v44, %v5278_v16  ;;  %v5280_v60 = vrot.slane %v10173_v51, 2 }
  0xae   : > { %v1785_v39 = vrot.slane %v1778_v50, %v9831_v32  ;;  %v9464_v54 = vld [vmem:[#allocation2 + $0x48] sm:$0xff]   ;;  %v10206_v6 = vcombine.high %v10188_v56, %v10188_v56  ;;  %v522_v4 = vunpack.i.h.s16 %v10188_v56  ;;  %v524_v3 = vunpack.i.h.s16 %v10192_v57  ;;  %v1832_v50 = vld [vmem:[#allocation2 + $0x50] sm:$0xe] }
  0xaf   : > { %v9466_v5 = vld [vmem:[#allocation2 + $0x48] sm:$0xff]   ;;  %v584_v8 = vpack.i.b16 %v520_v33, %v520_v33  ;;  %v9463_v12 = vld [vmem:[#allocation2 + $0x40] sm:$0xff]   ;;  %v1809_v15 = vrot.slane %v1802_v61, %v9831_v32  ;;  %v7749_v19 = vpack.i.b16 %v10188_v56, %v10188_v56  ;;  %v7750_v21 = vpack.i.b16 %v10192_v57, %v10192_v57  ;;  %v1836_v33 = vld [vmem:[#allocation2 + $0x58] sm:$0x3] }
  0xb0   : > { %v1811_v18 = vshrl.u32 %v1785_v39, 16  ;;  %v9465_v26 = vld [vmem:[#allocation2 + $0x40] sm:$0xff]   ;;  %v4676_v27 = vshrl.u32 %v9466_v5, 16  ;;  %v4679_v29 = vshll.u32 %v9466_v5, 16  ;;  %v1814_v31 = vshll.u32 %v1785_v39, 16  ;;  %8462 = vmatprep.mubr.bf16.mxu1 %v9463_v12 }
  0xb1   : > { %v526_v38 = vunpack.i.h.s16 %v10206_v6  ;;  %v1820_v40 = vshrl.u32 %v1809_v15, 16  ;;  %v1823_v53 = vshll.u32 %v1809_v15, 16  ;;  %8463 = vmatmul.mubr.bf16.gmra.mrb[16].mxu1 %v9464_v54  ;;  %v4667_v35 = vshrl.u32 %v9465_v26, 16  ;;  %v1851_v54 = vld [vmem:[#allocation2 + $0x58] sm:$0xc] }
  0xb2   : > { %v1813_v28 = vrot.slane %v1811_v18, 6  ;;  %v1839_v13 = vrot.slane %v1811_v18, 5  ;;  %v4670_v41 = vshll.u32 %v9465_v26, 16  ;;  %v4678_v23 = vrot.slane %v4676_v27, 1 }
  0xb3   : > { %v4681_v7 = vrot.slane %v4679_v29, 2  ;;  %v1816_v42 = vrot.slane %v1814_v31, 7  ;;  %v1822_v46 = vrot.slane %v1820_v40, 6  ;;  %v1825_v62 = vrot.slane %v1823_v53, 7 }
  0xb4   : > { %v1840_v2 = vrot.slane %v1814_v31, 6  ;;  %v4669_v44 = vrot.slane %v4667_v35, 1  ;;  %v4672_v45 = vrot.slane %v4670_v41, 2  ;;  %v1843_v52 = vrot.slane %v1820_v40, 5 }
  0xb5   : > { %v10216_v48 = vor.u32 %v4681_v7, %v4678_v23  ;;  %v1817_v56 = vor.u32 %v1816_v42, %v1813_v28  ;;  %v1826_v57 = vor.u32 %v1825_v62, %v1822_v46  ;;  %v1844_v61 = vrot.slane %v1823_v53, 6 }
  0xb6   : > { %v1841_v39 = vor.u32 %v1840_v2, %v1839_v13  ;;  %v4673_v5 = vor.u32 %v4672_v45, %v4669_v44  ;;  %v586_v12 = vpack.i.b16 %v522_v4, %v522_v4  ;;  %v588_v15 = vpack.i.b16 %v524_v3, %v524_v3 }
  0xb7   : > { %v7751_v18 = vpack.i.b16 %v10206_v6, %v10206_v6  ;;  %v1818_v26 = vrot.slane %v1817_v56, 4  ;;  %v1833_v27 = vsel %vm9879_vm10, %v1817_v56, %v1832_v50  ;;  %v1828_v29 = vrot.slane %v1826_v57, 4  ;;  %v1855_v56 = vld [vmem:[#allocation2 + $0x60] sm:$0x7] }
  0xb8   : > { %v1842_v31 = vrot.slane %v1841_v39, 4  ;;  %v4674_v28 = vsel %vm4603_vm6, %v10153_v14, %v4673_v5  ;;  %v4683_v40 = vsel %vm4603_vm6, %v4673_v5, %v10216_v48  ;;  %1834 = vst [vmem:[#allocation2 + $0x50] sm:$0xe] %v1833_v27  ;;  %v1845_v53 = vor.u32 %v1844_v61, %v1843_v52 }
  0xb9   : > { %v1852_v4 = vsel %vm9887_vm11, %v1841_v39, %v1851_v54  ;;  %8666 = vmatprep.mubr.bf16.mxu0 %v4674_v28  ;;  %v1827_v6 = vsel %vm9893_vm12, %v1818_v26, %v1826_v57  ;;  %v1837_v3 = vsel %vm9908_vm14, %v1828_v29, %v1836_v33  ;;  %v590_v13 = vpack.i.b16 %v526_v38, %v526_v38  ;;  %v10247_v57 = vld [vmem:[#allocation2 + $0x30] sm:$0xff]   ;;  %v10262_v29 = vld [vmem:[#allocation2 + $0x38] sm:$0xff]  }
  0xba   : > { %1853 = vst [vmem:[#allocation2 + $0x58] sm:$0xc] %v1852_v4  ;;  %v770_v14 = vrot.slane %v7748_v59, %v9828_v25  ;;  %8667 = vmatmul.mubr.bf16.gmra.mrb[12].mxu0 %v4683_v40  ;;  %1835 = vst [vmem:[#allocation2 + $0x54] sm:$0xf] %v1827_v6  ;;  %v1846_v35 = vsel %vm9902_vm13, %v1842_v31, %v1845_v53  ;;  %v774_v41 = vrot.slane %v584_v8, %v9828_v25  ;;  %v9486_v31 = vld [vmem:[#allocation4 + $0x188] sm:$0xff]  }
  0xbb   : > { %1838 = vst [vmem:[#allocation2 + $0x58] sm:$0x3] %v1837_v3  ;;  %v778_v23 = vrot.slane %v7749_v19, %v9828_v25  ;;  %v782_v7 = vrot.slane %v586_v12, %v9828_v25  ;;  %1854 = vst [vmem:[#allocation2 + $0x5c] sm:$0xf] %v1846_v35  ;;  %8706 = vmatprep.mubr.bf16.mxu0 %v10182_v1  ;;  %v786_v38 = vrot.slane %v7750_v21, %v9828_v25 }
  0xbc   : > { %v790_v49 = vrot.slane %v588_v15, %v9828_v25  ;;  %v794_v59 = vrot.slane %v7751_v18, %v9828_v25  ;;  %v798_v42 = vrot.slane %v590_v13, %v9828_v25  ;;  %v1144_v46 = vpack.i.b16 %v770_v14, %v770_v14  ;;  %v7726_v8 = vld.sshfl [vmem:[%s9822_s10 + $0x18] sm:$0x33 pattern:$0x75316420] }
  0xbd   : > { %v1151_v62 = vpack.i.b16 %v774_v41, %v774_v41  ;;  %v1158_v2 = vpack.i.b16 %v778_v23, %v778_v23  ;;  %v1165_v44 = vpack.i.b16 %v782_v7, %v782_v7  ;;  %v1172_v45 = vpack.i.b16 %v786_v38, %v786_v38 }
  0xbe   : > { %v1179_v19 = vpack.i.b16 %v790_v49, %v790_v49  ;;  %v1186_v50 = vpack.i.b16 %v794_v59, %v794_v59  ;;  %v1193_v52 = vpack.i.b16 %v798_v42, %v798_v42  ;;  %v1149_v1 = vrot.slane %v1144_v46, %v9828_v25 }
  0xbf   : > { %v1156_v21 = vrot.slane %v1151_v62, %v9828_v25  ;;  %v1163_v33 = vrot.slane %v1158_v2, %v9828_v25  ;;  %v1170_v39 = vrot.slane %v1165_v44, %v9828_v25  ;;  %v1177_v61 = vrot.slane %v1172_v45, %v9828_v25  ;;  %v9492_v44 = vld [vmem:[#allocation4 + $0x190] sm:$0xff]  }
  0xc0   : > { %v1184_v54 = vrot.slane %v1179_v19, %v9828_v25  ;;  %v1191_v5 = vrot.slane %v1186_v50, %v9828_v25  ;;  %v1198_v12 = vrot.slane %v1193_v52, %v9828_v25  ;;  %v1847_v15 = vrot.slane %v1845_v53, 4  ;;  %v1936_v50 = vld [vmem:[#allocation2 + $0x60] sm:$0x8] }
  0xc1   : > { %v1866_v18 = vcombine.low %v1149_v1, %v1163_v33  ;;  %v1867_v26 = vcombine.low %v1156_v21, %v1170_v39  ;;  %v5281_v27 = vsel %vm5272_vm7, %v5278_v16, %v5280_v60  ;;  %v9470_v28 = vld [vmem:[#allocation2 + $0x50] sm:$0xff]   ;;  %v438_v6 = vcombine.high %v7726_v8, %v7726_v8 }
  0xc2   : > { %v1890_v40 = vcombine.low %v1177_v61, %v1191_v5  ;;  %v1891_v4 = vcombine.low %v1184_v54, %v1198_v12  ;;  %v445_v3 = vrot.slane %v7726_v8, %v9824_v17  ;;  %v9471_v13 = vld [vmem:[#allocation2 + $0x58] sm:$0xff]   ;;  %8707 = vmatmul.mubr.bf16.vlgmr.msra.gmra.mrb[0].mxu0 %v10185_v43  ;;  %v1856_v53 = vsel %vm9920_vm15, %v1847_v15, %v1855_v56  ;;  %v9499_v54 = vld [vmem:[#allocation4 + $0x198] sm:$0xff]   ;;  %v1953_v15 = vld [vmem:[#allocation2 + $0x6c] sm:$0xf] }
  0xc3   : > { %v1874_v14 = vrot.slane %v1866_v18, %v9831_v32  ;;  %v1881_v34 = vrot.slane %v1867_v26, %v9831_v32  ;;  %v5282_v16 = vrot.slane %v10247_v57, 2  ;;  %8466 = vmatprep.mubr.bf16.mxu1 %v9470_v28  ;;  %1857 = vst [vmem:[#allocation2 + $0x60] sm:$0x7] %v1856_v53  ;;  %8710 = vmatprep.mubr.bf16.mxu0 %v10201_v0  ;;  %v5284_v59 = vrot.slane %v10262_v29, 2 }
  0xc4   : > { %v1898_v35 = vrot.slane %v1890_v40, %v9831_v32  ;;  %v1905_v41 = vrot.slane %v1891_v4, %v9831_v32  ;;  %v452_v23 = vrot.slane %v438_v6, %v9824_v17  ;;  %v528_v43 = vunpack.i.h.s16 %v445_v3  ;;  %8467 = vmatmul.mubr.bf16.gmra.mrb[20].mxu1 %v9471_v13  ;;  %8743 = vmatpush3.bf16.msra.mxu0 %v10135_v36 }
  0xc5   : > { %v1882_v7 = vcombine.low %v1874_v14, %v1881_v34  ;;  %v7752_v38 = vpack.i.b16 %v445_v3, %v445_v3  ;;  %v10276_v49 = vcombine.high %v445_v3, %v445_v3  ;;  %8744 = vmatprep.subr.bf16.mxu0 %v9486_v31 }
  0xc6   : > { %v1906_v42 = vcombine.low %v1898_v35, %v1905_v41  ;;  %v530_v46 = vunpack.i.h.s16 %v452_v23  ;;  %v592_v62 = vpack.i.b16 %v528_v43, %v528_v43  ;;  %v7753_v2 = vpack.i.b16 %v452_v23, %v452_v23  ;;  %v1940_v35 = vld [vmem:[#allocation2 + $0x68] sm:$0xf]  ;;  %v1957_v43 = vld [vmem:[#allocation2 + $0x74] sm:$0x1] }
  0xc7   : > { %v1889_v0 = vrot.slane %v1882_v7, %v9831_v32  ;;  %v802_v8 = vrot.slane %v7752_v38, %v9828_v25  ;;  %v10281_v45 = vcombine.high %v452_v23, %v452_v23  ;;  %v532_v19 = vunpack.i.h.s16 %v10276_v49 }
  0xc8   : > { %v1913_v36 = vrot.slane %v1906_v42, %v9831_v32  ;;  %v594_v52 = vpack.i.b16 %v530_v46, %v530_v46  ;;  %v806_v56 = vrot.slane %v592_v62, %v9828_v25  ;;  %v810_v1 = vrot.slane %v7753_v2, %v9828_v25  ;;  %8745 = vmatpush3.bf16.msra.mxu0 %v9486_v31  ;;  %v9505_v46 = vld [vmem:[#allocation4 + $0x1a0] sm:$0xff]  }
  0xc9   : > { %v1915_v21 = vshll.u32 %v1889_v0, 16  ;;  %v1918_v33 = vshrl.u32 %v1889_v0, 16  ;;  %v1200_v39 = vpack.i.b16 %v802_v8, %v802_v8  ;;  %v534_v61 = vunpack.i.h.s16 %v10281_v45  ;;  %8746 = vmatprep.subr.bf16.mxu0 %v9492_v44 }
  0xca   : > { %v1924_v5 = vshll.u32 %v1913_v36, 16  ;;  %v1928_v12 = vshrl.u32 %v1913_v36, 16  ;;  %v814_v18 = vrot.slane %v594_v52, %v9828_v25  ;;  %v1207_v26 = vpack.i.b16 %v806_v56, %v806_v56  ;;  %8711 = vmatmul.mubr.bf16.gmra.mrb[4].mxu0 %v5281_v27 }
  0xcb   : > { %v1917_v28 = vrot.slane %v1915_v21, 5  ;;  %v1920_v40 = vrot.slane %v1918_v33, 4  ;;  %v1943_v4 = vrot.slane %v1918_v33, 7  ;;  %v1205_v6 = vrot.slane %v1200_v39, %v9828_v25 }
  0xcc   : > { %v1926_v3 = vrot.slane %v1924_v5, 5  ;;  %v1930_v13 = vrot.slane %v1928_v12, 4  ;;  %v1212_v53 = vrot.slane %v1207_v26, %v9828_v25  ;;  %v1214_v14 = vpack.i.b16 %v810_v1, %v810_v1  ;;  %8747 = vmatpush3.bf16.msra.mxu0 %v9492_v44  ;;  %v7727_v39 = vld.sshfl [vmem:[%s9822_s10 + $0x1c] sm:$0x33 pattern:$0x75316420] }
  0xcd   : > { %v1921_v31 = vor.u32 %v1920_v40, %v1917_v28  ;;  %v1937_v34 = vsel %vm9957_vm9, %v1917_v28, %v1936_v50  ;;  %v1944_v41 = vor.u32 %v1943_v4, %v1915_v21  ;;  %v1221_v23 = vpack.i.b16 %v814_v18, %v814_v18  ;;  %8748 = vmatprep.subr.bf16.mxu0 %v9499_v54  ;;  %v10311_v18 = vld [vmem:[#allocation2 + $0x40] sm:$0xff]  }
  0xce   : > { %v1931_v7 = vor.u32 %v1930_v13, %v1926_v3  ;;  %1938 = vst [vmem:[#allocation2 + $0x60] sm:$0x8] %v1937_v34  ;;  %v1219_v27 = vrot.slane %v1214_v14, %v9828_v25  ;;  %v1945_v38 = vrot.slane %v1943_v4, 4  ;;  %v1946_v42 = vrot.slane %v1928_v12, 7 }
  0xcf   : > { %v1922_v62 = vrot.slane %v1921_v31, 4  ;;  %v1954_v2 = vsel %vm9974_vm3, %v1944_v41, %v1953_v15  ;;  %v1226_v0 = vrot.slane %v1221_v23, %v9828_v25  ;;  %v7754_v8 = vpack.i.b16 %v10276_v49, %v10276_v49 }
  0xd0   : > { %v1932_v36 = vrot.slane %v1931_v7, 4  ;;  %1955 = vst [vmem:[#allocation2 + $0x6c] sm:$0xf] %v1954_v2  ;;  %v1947_v44 = vor.u32 %v1946_v42, %v1924_v5  ;;  %v1949_v50 = vrot.slane %v1946_v42, 4  ;;  %v1968_v52 = vcombine.low %v1205_v6, %v1219_v27  ;;  %8749 = vmatpush3.bf16.msra.mxu0 %v9499_v54 }
  0xd1   : > { %v1927_v56 = vsel %vm9966_vm0, %v1922_v62, %v1926_v3  ;;  %v1969_v1 = vcombine.low %v1212_v53, %v1226_v0  ;;  %v596_v21 = vpack.i.b16 %v532_v19, %v532_v19  ;;  %v7755_v33 = vpack.i.b16 %v10281_v45, %v10281_v45  ;;  %8750 = vmatprep.subr.bf16.mxu0 %v9505_v46  ;;  %v9511_v19 = vld [vmem:[#allocation4 + $0x1a8] sm:$0xff]  }
  0xd2   : > { %1939 = vst [vmem:[#allocation2 + $0x64] sm:$0xf] %v1927_v56  ;;  %v1941_v12 = vsel %vm9981_vm2, %v1932_v36, %v1940_v35  ;;  %v1948_v49 = vsel %vm10002_vm5, %v1945_v38, %v1947_v44  ;;  %v1958_v5 = vsel %vm9992_vm1, %v1949_v50, %v1957_v43  ;;  %v1976_v15 = vrot.slane %v1968_v52, %v9831_v32  ;;  %v9518_v35 = vld [vmem:[#allocation4 + $0x1b0] sm:$0xff]   ;;  %v2038_v36 = vld [vmem:[#allocation2 + $0x74] sm:$0xe] }
  0xd3   : > { %1942 = vst [vmem:[#allocation2 + $0x68] sm:$0xf] %v1941_v12  ;;  %1956 = vst [vmem:[#allocation2 + $0x70] sm:$0xf] %v1948_v49  ;;  %v1983_v45 = vrot.slane %v1969_v1, %v9831_v32  ;;  %v598_v54 = vpack.i.b16 %v534_v61, %v534_v61  ;;  %v818_v26 = vrot.slane %v7754_v8, %v9828_v25 }
  0xd4   : > { %1959 = vst [vmem:[#allocation2 + $0x74] sm:$0x1] %v1958_v5  ;;  %v822_v28 = vrot.slane %v596_v21, %v9828_v25  ;;  %v826_v40 = vrot.slane %v7755_v33, %v9828_v25  ;;  %v5283_v4 = vsel %vm5272_vm7, %v5280_v60, %v5282_v16  ;;  %v5285_v6 = vsel %vm5272_vm7, %v5282_v16, %v5284_v59 }
  0xd5   : > { %v462_v3 = vcombine.high %v7727_v39, %v7727_v39  ;;  %v1984_v61 = vcombine.low %v1976_v15, %v1983_v45  ;;  %v830_v13 = vrot.slane %v598_v54, %v9828_v25  ;;  %v1228_v53 = vpack.i.b16 %v818_v26, %v818_v26  ;;  %8714 = vmatprep.mubr.bf16.mxu0 %v5283_v4  ;;  %v9523_v15 = vld [vmem:[#allocation4 + $0x1b8] sm:$0xff]   ;;  %v2057_v26 = vld [vmem:[#allocation2 + $0x7c] sm:$0xc] }
  0xd6   : > { %v1235_v14 = vpack.i.b16 %v822_v28, %v822_v28  ;;  %v1242_v31 = vpack.i.b16 %v826_v40, %v826_v40  ;;  %8715 = vmatmul.mubr.bf16.gmra.mrb[8].mxu0 %v5285_v6  ;;  %v469_v34 = vrot.slane %v7727_v39, %v9824_v17  ;;  %v5286_v60 = vrot.slane %v10311_v18, 2 }
  0xd7   : > { %v476_v51 = vrot.slane %v462_v3, %v9824_v17  ;;  %v1991_v57 = vrot.slane %v1984_v61, %v9831_v32  ;;  %v1233_v16 = vrot.slane %v1228_v53, %v9828_v25  ;;  %v1249_v23 = vpack.i.b16 %v830_v13, %v830_v13  ;;  %8751 = vmatpush3.bf16.msra.mxu0 %v9505_v46 }
  0xd8   : > { %v1240_v41 = vrot.slane %v1235_v14, %v9828_v25  ;;  %v1247_v43 = vrot.slane %v1242_v31, %v9828_v25  ;;  %v536_v7 = vunpack.i.h.s16 %v469_v34  ;;  %v7756_v38 = vpack.i.b16 %v469_v34, %v469_v34  ;;  %8752 = vmatprep.subr.bf16.mxu0 %v9511_v19 }
  0xd9   : > { %v538_v27 = vunpack.i.h.s16 %v476_v51  ;;  %v9476_v42 = vld [vmem:[#allocation2 + $0x60] sm:$0xff]   ;;  %v2017_v62 = vshrl.u32 %v1991_v57, 16  ;;  %v2020_v17 = vshll.u32 %v1991_v57, 16  ;;  %v1254_v2 = vrot.slane %v1249_v23, %v9828_v25 }
  0xda   : > { %v7757_v0 = vpack.i.b16 %v476_v51, %v476_v51  ;;  %v9477_v8 = vld [vmem:[#allocation2 + $0x68] sm:$0xff]   ;;  %v1992_v44 = vcombine.low %v1233_v16, %v1247_v43  ;;  %v600_v50 = vpack.i.b16 %v536_v7, %v536_v7  ;;  %v834_v56 = vrot.slane %v7756_v38, %v9828_v25  ;;  %8470 = vmatprep.mubr.bf16.mxu1 %v9476_v42 }
  0xdb   : > { %v602_v52 = vpack.i.b16 %v538_v27, %v538_v27  ;;  %v2019_v46 = vrot.slane %v2017_v62, 6  ;;  %v2022_v1 = vrot.slane %v2020_v17, 7  ;;  %v1993_v21 = vcombine.low %v1240_v41, %v1254_v2  ;;  %8753 = vmatpush3.bf16.msra.mxu0 %v9511_v19  ;;  %8471 = vmatmul.mubr.bf16.gmra.mrb[24].mxu1 %v9477_v8  ;;  %v10362_v42 = vld [vmem:[#allocation2 + $0x48] sm:$0xff]  }
  0xdc   : > { %v2045_v33 = vrot.slane %v2017_v62, 5  ;;  %v2000_v39 = vrot.slane %v1992_v44, %v9831_v32  ;;  %v2046_v12 = vrot.slane %v2020_v17, 6  ;;  %v838_v49 = vrot.slane %v600_v50, %v9828_v25  ;;  %8754 = vmatprep.subr.bf16.mxu0 %v9518_v35 }
  0xdd   : > { %v842_v5 = vrot.slane %v7757_v0, %v9828_v25  ;;  %v10340_v45 = vor.u32 %v2022_v1, %v2019_v46  ;;  %v2007_v54 = vrot.slane %v1993_v21, %v9831_v32  ;;  %v846_v28 = vrot.slane %v602_v52, %v9828_v25 }
  0xde   : > { %v1256_v40 = vpack.i.b16 %v834_v56, %v834_v56  ;;  %v2047_v4 = vor.u32 %v2046_v12, %v2045_v33  ;;  %v1263_v19 = vpack.i.b16 %v838_v49, %v838_v49  ;;  %v477_v3 = vcombine.high %v469_v34, %v469_v34  ;;  %v10353_v34 = vld [vmem:[#allocation4 + $0x1c0] sm:$0xff]  }
  0xdf   : > { %v1270_v6 = vpack.i.b16 %v842_v5, %v842_v5  ;;  %v2039_v61 = vsel %vm9879_vm10, %v10340_v45, %v2038_v36  ;;  %v2008_v13 = vcombine.low %v2000_v39, %v2007_v54  ;;  %v2024_v53 = vrot.slane %v10340_v45, 4  ;;  %8755 = vmatpush3.bf16.msra.mxu0 %v9518_v35  ;;  %v2061_v45 = vld [vmem:[#allocation2 + $0x84] sm:$0x7] }
  0xe0   : > { %v1261_v14 = vrot.slane %v1256_v40, %v9828_v25  ;;  %2040 = vst [vmem:[#allocation2 + $0x74] sm:$0xe] %v2039_v61  ;;  %v2058_v31 = vsel %vm9887_vm11, %v2047_v4, %v2057_v26  ;;  %v1268_v57 = vrot.slane %v1263_v19, %v9828_v25  ;;  %v1277_v41 = vpack.i.b16 %v846_v28, %v846_v28 }
  0xe1   : > { %v1275_v16 = vrot.slane %v1270_v6, %v9828_v25  ;;  %8756 = vmatprep.subr.bf16.mxu0 %v9523_v15  ;;  %v2015_v63 = vrot.slane %v2008_v13, %v9831_v32  ;;  %2059 = vst [vmem:[#allocation2 + $0x7c] sm:$0xc] %v2058_v31  ;;  %v2048_v23 = vrot.slane %v2047_v4, 4  ;;  %v478_v43 = vcombine.high %v476_v51, %v476_v51 }
  0xe2   : > { %v540_v7 = vunpack.i.h.s16 %v477_v3  ;;  %v1282_v35 = vrot.slane %v1277_v41, %v9828_v25  ;;  %v7758_v38 = vpack.i.b16 %v477_v3, %v477_v3  ;;  %v5287_v10 = vsel %vm5272_vm7, %v5284_v59, %v5286_v60 }
  0xe3   : > { %v2072_v27 = vcombine.low %v1261_v14, %v1275_v16  ;;  %v2026_v62 = vshrl.u32 %v2015_v63, 16  ;;  %v2029_v17 = vshll.u32 %v2015_v63, 16  ;;  %v542_v2 = vunpack.i.h.s16 %v478_v43  ;;  %8718 = vmatprep.mubr.bf16.mxu0 %v5287_v10  ;;  %8757 = vmatpush3.bf16.msra.mxu0 %v9523_v15  ;;  %v2042_v15 = vld [vmem:[#allocation2 + $0x7c] sm:$0x3] }
  0xe4   : > { %v604_v0 = vpack.i.b16 %v540_v7, %v540_v7  ;;  %v2073_v51 = vcombine.low %v1268_v57, %v1282_v35  ;;  %v7759_v36 = vpack.i.b16 %v478_v43, %v478_v43  ;;  %v850_v44 = vrot.slane %v7758_v38, %v9828_v25  ;;  %8794 = vmatprep.subr.bf16.mxu0 %v10353_v34  ;;  %v9498_v43 = vld [vmem:[#allocation2 + $0x58] sm:$0xff]  }
  0xe5   : > { %v2080_v8 = vrot.slane %v2072_v27, %v9831_v32  ;;  %v2028_v50 = vrot.slane %v2026_v62, 6  ;;  %v2031_v29 = vrot.slane %v2029_v17, 7  ;;  %v2049_v52 = vrot.slane %v2026_v62, 5  ;;  %v9503_v27 = vld [vmem:[#allocation2 + $0x60] sm:$0xff]  }
  0xe6   : > { %v2050_v59 = vrot.slane %v2029_v17, 6  ;;  %v2087_v56 = vrot.slane %v2073_v51, %v9831_v32  ;;  %v606_v46 = vpack.i.b16 %v542_v2, %v542_v2  ;;  %v854_v1 = vrot.slane %v604_v0, %v9828_v25  ;;  %v9504_v17 = vld [vmem:[#allocation2 + $0x68] sm:$0xff]  }
  0xe7   : > { %v858_v21 = vrot.slane %v7759_v36, %v9828_v25  ;;  %v9482_v33 = vld [vmem:[#allocation2 + $0x70] sm:$0xff]   ;;  %v2032_v39 = vor.u32 %v2031_v29, %v2028_v50  ;;  %v1284_v49 = vpack.i.b16 %v850_v44, %v850_v44  ;;  %v5288_v5 = vrot.slane %v10362_v42, 2 }
  0xe8   : > { %v2051_v12 = vor.u32 %v2050_v59, %v2049_v52  ;;  %v2088_v54 = vcombine.low %v2080_v8, %v2087_v56  ;;  %v862_v26 = vrot.slane %v606_v46, %v9828_v25  ;;  %v1291_v28 = vpack.i.b16 %v854_v1, %v854_v1  ;;  %8474 = vmatprep.mubr.bf16.mxu1 %v9482_v33  ;;  %v9509_v50 = vld [vmem:[#allocation2 + $0x70] sm:$0xff]   ;;  %v9493_v52 = vld [vmem:[#allocation2] sm:$0xff]  }
  0xe9   : > { %v1298_v40 = vpack.i.b16 %v858_v21, %v858_v21  ;;  %v2033_v4 = vsel %vm9893_vm12, %v2024_v53, %v2032_v39  ;;  %v2034_v19 = vrot.slane %v2032_v39, 4  ;;  %v1289_v13 = vrot.slane %v1284_v49, %v9828_v25 }
  0xea   : > { %v2052_v6 = vsel %vm9902_vm13, %v2048_v23, %v2051_v12  ;;  %v2053_v3 = vrot.slane %v2051_v12, 4  ;;  %2041 = vst [vmem:[#allocation2 + $0x78] sm:$0xf] %v2033_v4  ;;  %v10377_v61 = vrot.slane %v2088_v54, %v9831_v32  ;;  %v1296_v14 = vrot.slane %v1291_v28, %v9828_v25  ;;  %v9497_v23 = vld [vmem:[#allocation2 + $0x50] sm:$0xff]   ;;  %v2146_v28 = vld [vmem:[#allocation2 + $0x8c] sm:$0xf] }
  0xeb   : > { %2060 = vst [vmem:[#allocation2 + $0x80] sm:$0xf] %v2052_v6  ;;  %v1303_v31 = vrot.slane %v1298_v40, %v9828_v25  ;;  %v2043_v11 = vsel %vm9908_vm14, %v2034_v19, %v2042_v15  ;;  %v1305_v22 = vpack.i.b16 %v862_v26, %v862_v26  ;;  %v5289_v57 = vsel %vm5272_vm7, %v5286_v60, %v5288_v5 }
  0xec   : > { %v2062_v53 = vsel %vm9920_vm15, %v2053_v3, %v2061_v45  ;;  %2044 = vst [vmem:[#allocation2 + $0x7c] sm:$0x3] %v2043_v11  ;;  %v2121_v16 = vshll.u32 %v10377_v61, 16  ;;  %v2124_v63 = vshrl.u32 %v10377_v61, 16  ;;  %8719 = vmatmul.mubr.bf16.gmra.mrb[12].mxu0 %v5289_v57  ;;  %v5290_v10 = vrot.slane %v9497_v23, 2  ;;  %v9494_v45 = vld [vmem:[#allocation2 + $0x8] sm:$0xff]  }
  0xed   : > { %2063 = vst [vmem:[#allocation2 + $0x84] sm:$0x7] %v2062_v53  ;;  %v2096_v41 = vcombine.low %v1289_v13, %v1303_v31  ;;  %v1310_v7 = vrot.slane %v1305_v22, %v9828_v25  ;;  %v5292_v42 = vrot.slane %v9498_v43, 2  ;;  %v5294_v36 = vrot.slane %v9503_v27, 2  ;;  %v9496_v31 = vld [vmem:[#allocation2 + $0x10] sm:$0xff]   ;;  %v9500_v57 = vld [vmem:[#allocation2 + $0x18] sm:$0xff]  }
  0xee   : > { %v2123_v37 = vrot.slane %v2121_v16, 5  ;;  %v2126_v35 = vrot.slane %v2124_v63, 4  ;;  %v5291_v25 = vsel %vm5272_vm7, %v5288_v5, %v5290_v10  ;;  %v5296_v44 = vrot.slane %v9504_v17, 2  ;;  %v2159_v22 = vld [vmem:[#allocation2 + $0x90] sm:$0xf]  ;;  %v9501_v17 = vld [vmem:[#allocation2 + $0x20] sm:$0xff]  }
  0xef   : > { %v2097_v18 = vcombine.low %v1296_v14, %v1310_v7  ;;  %v2104_v60 = vrot.slane %v2096_v41, %v9831_v32  ;;  %v5293_v0 = vsel %vm5272_vm7, %v5290_v10, %v5292_v42  ;;  %8722 = vmatprep.mubr.bf16.mxu0 %v5291_v25  ;;  %v5295_v59 = vsel %vm5272_vm7, %v5292_v42, %v5294_v36 }
  0xf0   : > { %v2143_v38 = vsel %vm9957_vm9, %v2123_v37, %v2142_v24  ;;  %v2127_v2 = vor.u32 %v2126_v35, %v2123_v37  ;;  %v5297_v39 = vsel %vm5272_vm7, %v5294_v36, %v5296_v44  ;;  %v5298_v12 = vrot.slane %v9509_v50, 2  ;;  %v2163_v24 = vld [vmem:[#allocation2 + $0x98] sm:$0x1] }
  0xf1   : > { %2144 = vst [vmem:[#allocation2 + $0x84] sm:$0x8] %v2143_v38  ;;  %v2111_v62 = vrot.slane %v2097_v18, %v9831_v32  ;;  %v2889_v54 = vshll.u32 %v9493_v52, 16  ;;  %v2887_v3 = vshrl.u32 %v9493_v52, 16  ;;  %v2894_v14 = vshll.u32 %v9494_v45, 16 }
  0xf2   : > { %v2128_v29 = vrot.slane %v2127_v2, 4  ;;  %v5299_v26 = vsel %vm5272_vm7, %v5296_v44, %v5298_v12  ;;  %v2149_v47 = vrot.slane %v2124_v63, 7  ;;  %vm2885_vm10 = vsmask.f32 7424 }
  0xf3   : > { %v9483_v51 = vld [vmem:[#allocation2 + $0x78] sm:$0xff]   ;;  %v2112_v8 = vcombine.low %v2104_v60, %v2111_v62  ;;  %v2891_v13 = vrot.slane %v2889_v54, 1  ;;  %v2896_v7 = vrot.slane %v2894_v14, 1  ;;  %v2902_v18 = vshll.u32 %v9496_v31, 16 }
  0xf4   : > { %8723 = vmatmul.mubr.bf16.gmra.mrb[16].mxu0 %v5293_v0  ;;  %8475 = vmatmul.mubr.bf16.gmra.mrb[28].mxu1 %v9483_v51  ;;  %v9510_v49 = vld [vmem:[#allocation2 + $0x78] sm:$0xff]   ;;  %v2150_v23 = vor.u32 %v2149_v47, %v2121_v16  ;;  %v2151_v43 = vrot.slane %v2149_v47, 4  ;;  %v2898_v16 = vshrl.u32 %v9494_v45, 16  ;;  %v2906_v27 = vshrl.u32 %v9496_v31, 16 }
  0xf5   : > { %v2119_v30 = vrot.slane %v2112_v8, %v9831_v32  ;;  %8726 = vmatprep.mubr.bf16.mxu0 %v5295_v59  ;;  %v5300_v4 = vrot.slane %v9510_v49, 2  ;;  %v2892_v58 = vor.u32 %v2891_v13, %v2887_v3  ;;  %v2910_v42 = vshll.u32 %v9500_v57, 16  ;;  %v9527_v8 = vld [vmem:[#allocation2 + $0x18] sm:$0xff]   ;;  %v9532_v3 = vld [vmem:[#allocation2 + $0x28] sm:$0xff]  }
  0xf6   : > { %v2160_v63 = vsel %vm9974_vm3, %v2150_v23, %v2159_v22  ;;  %v2904_v55 = vrot.slane %v2902_v18, 1  ;;  %v2900_v2 = vor.u32 %v2898_v16, %v2896_v7  ;;  %v2922_v52 = vshrl.u32 %v9501_v17, 16  ;;  %v9508_v54 = vld [vmem:[#allocation4 + $0x90] sm:$0xff]   ;;  %v9522_v18 = vld [vmem:[#allocation4 + $0xa0] sm:$0xff]   ;;  %v9540_v16 = vld [vmem:[#allocation4 + $0x1c8] sm:$0xff]  }
  0xf7   : > { %v2130_v56 = vshll.u32 %v2119_v30, 16  ;;  %v2134_v46 = vshrl.u32 %v2119_v30, 16  ;;  %v5301_v11 = vsel %vm5272_vm7, %v5298_v12, %v5300_v4  ;;  %2161 = vst [vmem:[#allocation2 + $0x90] sm:$0xf] %v2160_v63  ;;  %v2897_v10 = vsel %vm2885_vm10, %v2892_v58, %v2896_v7  ;;  %v10427_v58 = vld [vmem:[#allocation2 + $0x48] sm:$0xff]  }
  0xf8   : > { %v9488_v1 = vld [vmem:[#allocation2 + $0x80] sm:$0xff]   ;;  %v2908_v0 = vor.u32 %v2906_v27, %v2904_v55  ;;  %v2912_v51 = vrot.slane %v2910_v42, 1  ;;  %v2918_v30 = vshll.u32 %v9501_v17, 16  ;;  %v2905_v50 = vsel %vm2885_vm10, %v2900_v2, %v2904_v55  ;;  %v9529_v2 = vld [vmem:[#allocation4 + $0xa8] sm:$0xff]  }
  0xf9   : > { %v2132_v21 = vrot.slane %v2130_v56, 5  ;;  %v2136_v33 = vrot.slane %v2134_v46, 4  ;;  %8478 = vmatprep.mubr.bf16.mxu1 %v9488_v1  ;;  %v9514_v5 = vld [vmem:[#allocation2 + $0x80] sm:$0xff]   ;;  %v2152_v53 = vrot.slane %v2134_v46, 7  ;;  %v2926_v59 = vshll.u32 %v9506_v20, 16  ;;  %v9502_v1 = vld [vmem:[#allocation4 + $0x88] sm:$0xff]  }
  0xfa   : > { %v5302_v19 = vrot.slane %v9514_v5, 2  ;;  %v2913_v46 = vsel %vm2885_vm10, %v2908_v0, %v2912_v51  ;;  %v2920_v49 = vrot.slane %v2918_v30, 1  ;;  %v9507_v5 = vld [vmem:[#allocation2 + $0x30] sm:$0xff]   ;;  %v2930_v47 = vshrl.u32 %v9506_v20, 16 }
  0xfb   : > { %v2133_v32 = vsel %vm9966_vm0, %v2128_v29, %v2132_v21  ;;  %v2137_v15 = vor.u32 %v2136_v33, %v2132_v21  ;;  %v2153_v37 = vor.u32 %v2152_v53, %v2130_v56  ;;  %v2155_v35 = vrot.slane %v2152_v53, 4 }
  0xfc   : > { %2145 = vst [vmem:[#allocation2 + $0x88] sm:$0xf] %v2133_v32  ;;  %8727 = vmatmul.mubr.bf16.gmra.mrb[20].mxu0 %v5297_v39  ;;  %v5303_v41 = vsel %vm5272_vm7, %v5300_v4, %v5302_v19  ;;  %v2914_v29 = vshrl.u32 %v9500_v57, 16  ;;  %v5808_v33 = vrot.slane %v9526_v9, 2  ;;  %v5809_v39 = vrot.slane %v9527_v8, 2 }
  0xfd   : > { %v2138_v40 = vrot.slane %v2137_v15, 4  ;;  %8730 = vmatprep.mubr.bf16.mxu0 %v5299_v26  ;;  %v2154_v60 = vsel %vm10002_vm5, %v2151_v43, %v2153_v37  ;;  %v2164_v61 = vsel %vm9992_vm1, %v2155_v35, %v2163_v24  ;;  %v9664_v15 = vld [vmem:[#allocation4 + $0x80] sm:$0xff]   ;;  %v2928_v4 = vrot.slane %v2926_v59, 1  ;;  %v9513_v43 = vld [vmem:[#allocation2 + $0x40] sm:$0xff]  }
  0xfe   : > { %2162 = vst [vmem:[#allocation2 + $0x94] sm:$0xf] %v2154_v60  ;;  %2165 = vst [vmem:[#allocation2 + $0x98] sm:$0x1] %v2164_v61  ;;  %v2916_v45 = vor.u32 %v2914_v29, %v2912_v51  ;;  %v2934_v13 = vshll.u32 %v9507_v5, 16  ;;  %v2938_v31 = vshrl.u32 %v9507_v5, 16 }
  0xff   : > { %v2147_v6 = vsel %vm9981_vm2, %v2138_v40, %v2146_v28  ;;  %v9528_v28 = vld [vmem:[#allocation2 + $0x20] sm:$0xff]   ;;  %v2924_v40 = vor.u32 %v2922_v52, %v2920_v49  ;;  %v2932_v24 = vor.u32 %v2930_v47, %v2928_v4  ;;  %v9534_v37 = vld [vmem:[#allocation2 + $0x30] sm:$0xff]   ;;  %v9538_v61 = vld [vmem:[#allocation2 + $0x38] sm:$0xff]   ;;  %v2950_v27 = vshll.u32 %v9513_v43, 16 }
 0x100   : > { %2148 = vst [vmem:[#allocation2 + $0x8c] sm:$0xf] %v2147_v6  ;;  %v5810_v6 = vsel %vm5272_vm7, %v5808_v33, %v5809_v39  ;;  %v2921_v14 = vsel %vm2885_vm10, %v2916_v45, %v2920_v49  ;;  %v5811_v53 = vrot.slane %v9528_v28, 2  ;;  %v2936_v23 = vrot.slane %v2934_v13, 1  ;;  %v9519_v51 = vld [vmem:[#allocation2 + $0x50] sm:$0xff]   ;;  %v9535_v29 = vld [vmem:[#allocation4 + $0xb0] sm:$0xff]  }
 0x101   : > { %v2929_v22 = vsel %vm2885_vm10, %v2924_v40, %v2928_v4  ;;  %v5815_v42 = vrot.slane %v9534_v37, 2  ;;  %v2954_v55 = vshrl.u32 %v9513_v43, 16  ;;  %v2958_v17 = vshll.u32 %v10427_v58, 16  ;;  %v9553_v59 = vld [vmem:[#allocation4 + $0x1d8] sm:$0xff]   ;;  %v9545_v28 = vld [vmem:[#allocation2 + $0x50] sm:$0xff]   ;;  %v9551_v13 = vld [vmem:[#allocation2 + $0x58] sm:$0xff]  }
 0x102   : > { %v5812_v7 = vsel %vm5272_vm7, %v5809_v39, %v5811_v53  ;;  %v2940_v35 = vor.u32 %v2938_v31, %v2936_v23  ;;  %v5817_v20 = vrot.slane %v9538_v61, 2  ;;  %v2952_v0 = vrot.slane %v2950_v27, 1  ;;  %v9541_v49 = vld [vmem:[#allocation4 + $0xb8] sm:$0xff]   ;;  %v10441_v40 = vld [vmem:[#allocation4 + $0xc0] sm:$0xff]   ;;  %v9572_v43 = vld [vmem:[#allocation4 + $0x1f0] sm:$0xff]  }
 0x103   : > { %v2970_v39 = vshrl.u32 %v9519_v51, 16  ;;  %v9525_v45 = vld [vmem:[#allocation2 + $0x60] sm:$0xff]   ;;  %vm3532_vm11 = vcmask 1046528   ;;  %vm6343_vm12 = vsmask.f32 5376  ;;  %vm7012_vm13 = vcmask 1044480  }
 0x104   : > { %8731 = vmatmul.mubr.bf16.gmra.mrb[24].mxu0 %v5301_v11  ;;  %v9515_v11 = vld [vmem:[#allocation4 + $0x98] sm:$0xff]   ;;  %v2956_v30 = vor.u32 %v2954_v55, %v2952_v0  ;;  %v5818_v52 = vsel %vm5272_vm7, %v5815_v42, %v5817_v20  ;;  %v2982_v47 = vshll.u32 %v9525_v45, 16 }
 0x105   : > { %8734 = vmatprep.mubr.bf16.mxu0 %v5303_v41  ;;  %v9520_v44 = vld [vmem:[#allocation2 + $0x90] sm:$0xff]   ;;  %v9521_v56 = vld [vmem:[#allocation2 + $0x98] ss:$0 sps:$4 sm:$0x33]   ;;  %v5813_v41 = vrot.slane %v9532_v3, 2  ;;  %v9577_v27 = vld [vmem:[#allocation4 + $0x1f8] sm:$0xff]  }
 0x106   : > { %v5306_v21 = vrot.slane %v9520_v44, 2  ;;  %v5308_v12 = vrot.slane %v9521_v56, 2  ;;  %v2960_v44 = vrot.slane %v2958_v17, 1  ;;  %v2966_v56 = vshll.u32 %v9519_v51, 16  ;;  %v9537_v51 = vld [vmem:[#allocation2 + $0x80] sm:$0xff]  }
 0x107   : > { %v9489_v38 = vld [vmem:[#allocation2 + $0x88] sm:$0xff]   ;;  %v5814_v60 = vsel %vm5272_vm7, %v5811_v53, %v5813_v41  ;;  %v5816_v8 = vsel %vm5272_vm7, %v5813_v41, %v5815_v42  ;;  %v5823_v53 = vrot.slane %v9545_v28, 2 }
 0x108   : > { %v9516_v62 = vld [vmem:[#allocation2 + $0x88] sm:$0xff]   ;;  %8479 = vmatmul.mubr.bf16.gmra.mrb[32].mxu1 %v9489_v38  ;;  %v5309_v26 = vsel %vm5272_vm7, %v5306_v21, %v5308_v12  ;;  %v2937_v38 = vsel %vm2885_vm10, %v2932_v24, %v2936_v23  ;;  %v2961_v33 = vsel %vm2885_vm10, %v2956_v30, %v2960_v44  ;;  %v5825_v23 = vrot.slane %v9551_v13, 2 }
 0x109   : > { %8498 = vmatprep.mubr.bf16.mxu1 %v2897_v10  ;;  %v5304_v25 = vrot.slane %v9516_v62, 2  ;;  %v2984_v24 = vrot.slane %v2982_v47, 1  ;;  %v9568_v28 = vld [vmem:[#allocation2 + $0x88] sm:$0xff]  }
 0x10a   : > { %v5826_v61 = vsel %vm5272_vm7, %v5823_v53, %v5825_v23  ;;  %v9548_v47 = vld [vmem:[#allocation2 + $0x8] sm:$0xff]  }
 0x10b   : > { %v5305_v36 = vsel %vm5272_vm7, %v5302_v19, %v5304_v25  ;;  %v5307_v32 = vsel %vm5272_vm7, %v5304_v25, %v5306_v21  ;;  %v9512_v19 = vld [vmem:[#allocation2 + $0x38] sm:$0xff]  }
 0x10c   : > { %8735 = vmatmul.mubr.bf16.gmra.mrb[28].mxu0 %v5305_v36  ;;  %v2942_v57 = vshll.u32 %v9512_v19, 16  ;;  %v2946_v10 = vshrl.u32 %v9512_v19, 16  ;;  %v9546_v25 = vld [vmem:[#allocation4 + $0x1d0] sm:$0xff]  }
 0x10d   : > { %8738 = vmatprep.mubr.bf16.mxu0 %v5307_v32  ;;  %v9539_v36 = vld [vmem:[#allocation2 + $0x40] sm:$0xff]   ;;  %v9559_v32 = vld [vmem:[#allocation4 + $0x1e0] sm:$0xff]  }
 0x10e   : > { %v2944_v63 = vrot.slane %v2942_v57, 1  ;;  %v5819_v21 = vrot.slane %v9539_v36, 2  ;;  %v2986_v57 = vshrl.u32 %v9525_v45, 16  ;;  %v9558_v36 = vld [vmem:[#allocation2 + $0x70] sm:$0xff]  }
 0x110   : > { %8499 = vmatmul.mubr.bf16.vlgmr.msra.gmra.mrb[0].mxu1 %v2905_v50  ;;  %v2945_v62 = vsel %vm2885_vm10, %v2940_v35, %v2944_v63  ;;  %v2948_v9 = vor.u32 %v2946_v10, %v2944_v63  ;;  %v9524_v50 = vld [vmem:[#allocation2 + $0x58] sm:$0xff]   ;;  %v9552_v35 = vld [vmem:[#allocation2 + $0x60] sm:$0xff]   ;;  %v2988_v63 = vor.u32 %v2986_v57, %v2984_v24 }
 0x111   : > { %8535 = vmatpush3.bf16.msra.mxu1 %v9664_v15  ;;  %8502 = vmatprep.mubr.bf16.mxu1 %v2913_v46  ;;  %v2974_v12 = vshll.u32 %v9524_v50, 16  ;;  %v2968_v15 = vrot.slane %v2966_v56, 1 }
 0x112   : > { %8536 = vmatprep.subr.bf16.mxu1 %v9502_v1  ;;  %v2953_v46 = vsel %vm2885_vm10, %v2948_v9, %v2952_v0 }
 0x113   : > { %v2972_v4 = vor.u32 %v2970_v39, %v2968_v15  ;;  %v2976_v19 = vrot.slane %v2974_v12, 1 }
 0x114   : > { %8739 = vmatmul.mubr.bf16.gmra.mrb[32].mxu0 %v5309_v26  ;;  %v5820_v26 = vsel %vm5272_vm7, %v5817_v20, %v5819_v21 }
 0x115   : > { %8537 = vmatpush3.bf16.msra.mxu1 %v9502_v1  ;;  %8758 = vmatprep.mubr.bf16.mxu0 %v5810_v6  ;;  %v2962_v1 = vshrl.u32 %v10427_v58, 16  ;;  %v9530_v6 = vld [vmem:[#allocation2 + $0x68] sm:$0xff]   ;;  %v9531_v58 = vld [vmem:[#allocation2 + $0x70] sm:$0xff]  }
 0x116   : > { %8538 = vmatprep.subr.bf16.mxu1 %v9508_v54  ;;  %v2990_v41 = vshll.u32 %v9530_v6, 16  ;;  %v2994_v42 = vshrl.u32 %v9530_v6, 16  ;;  %v3002_v17 = vshrl.u32 %v9531_v58, 16 }
 0x118   : > { %8503 = vmatmul.mubr.bf16.gmra.mrb[4].mxu1 %v2921_v14  ;;  %v9565_v14 = vld [vmem:[#allocation4 + $0x1e8] sm:$0xff]  }
 0x119   : > { %8506 = vmatprep.mubr.bf16.mxu1 %v2929_v22  ;;  %8539 = vmatpush3.bf16.msra.mxu1 %v9508_v54  ;;  %v2964_v54 = vor.u32 %v2962_v1, %v2960_v44  ;;  %v2977_v22 = vsel %vm2885_vm10, %v2972_v4, %v2976_v19 }
 0x11a   : > { %8540 = vmatprep.subr.bf16.mxu1 %v9515_v11 }
 0x11b   : > { %v2969_v31 = vsel %vm2885_vm10, %v2964_v54, %v2968_v15  ;;  %v9564_v15 = vld [vmem:[#allocation2 + $0x80] sm:$0xff]  }
 0x11c   : > { %8759 = vmatmul.mubr.bf16.vlgmr.msra.gmra.mrb[0].mxu0 %v5812_v7  ;;  %v5835_v13 = vrot.slane %v9564_v15, 2 }
 0x11d   : > { %8541 = vmatpush3.bf16.msra.mxu1 %v9515_v11  ;;  %8762 = vmatprep.mubr.bf16.mxu0 %v5814_v60  ;;  %v2978_v11 = vshrl.u32 %v9524_v50, 16  ;;  %v9536_v60 = vld [vmem:[#allocation2 + $0x78] sm:$0xff]   ;;  %v9542_v50 = vld [vmem:[#allocation2 + $0x88] sm:$0xff]  }
 0x11e   : > { %8542 = vmatprep.subr.bf16.mxu1 %v9522_v18  ;;  %8795 = vmatpush3.bf16.msra.mxu0 %v10353_v34  ;;  %v9544_v34 = vld [vmem:[#allocation2 + $0x48] sm:$0xff]   ;;  %v3010_v56 = vshrl.u32 %v9536_v60, 16  ;;  %v3026_v4 = vshrl.u32 %v9542_v50, 16 }
 0x11f   : > { %8796 = vmatprep.subr.bf16.mxu0 %v9540_v16  ;;  %v5821_v5 = vrot.slane %v9544_v34, 2  ;;  %v2980_v7 = vor.u32 %v2978_v11, %v2976_v19  ;;  %v3014_v34 = vshll.u32 %v9537_v51, 16  ;;  %v9547_v19 = vld [vmem:[#allocation2] sm:$0xfe]   ;;  %v9570_v11 = vld [vmem:[#allocation2 + $0x90] sm:$0xff]  }
 0x120   : > { %8507 = vmatmul.mubr.bf16.gmra.mrb[8].mxu1 %v2937_v38  ;;  %v2998_v38 = vshll.u32 %v9531_v58, 16  ;;  %v3534_v58 = vrot.slane %v9548_v47, 1 }
 0x121   : > { %8510 = vmatprep.mubr.bf16.mxu1 %v2945_v62  ;;  %8543 = vmatpush3.bf16.msra.mxu1 %v9522_v18  ;;  %v5822_v3 = vsel %vm5272_vm7, %v5819_v21, %v5821_v5  ;;  %v5824_v37 = vsel %vm5272_vm7, %v5821_v5, %v5823_v53  ;;  %v2992_v18 = vrot.slane %v2990_v41, 1  ;;  %v2985_v10 = vsel %vm2885_vm10, %v2980_v7, %v2984_v24  ;;  %v9580_v53 = vld [vmem:[#allocation2 + $0x10] sm:$0xfc]  }
 0x122   : > { %8544 = vmatprep.subr.bf16.mxu1 %v9529_v2  ;;  %8797 = vmatpush3.bf16.msra.mxu0 %v9540_v16  ;;  %v9557_v16 = vld [vmem:[#allocation2 + $0x68] sm:$0xff]   ;;  %v5827_v62 = vrot.slane %v9552_v35, 2  ;;  %v3000_v0 = vrot.slane %v2998_v38, 1  ;;  %v3018_v21 = vshrl.u32 %v9537_v51, 16  ;;  %v3016_v12 = vrot.slane %v3014_v34, 1  ;;  %v9550_v7 = vld [vmem:[#allocation2 + $0x10] sm:$0xff]  }
 0x123   : > { %8798 = vmatprep.subr.bf16.mxu0 %v9546_v25  ;;  %v2993_v55 = vsel %vm2885_vm10, %v2988_v63, %v2992_v18  ;;  %v5829_v20 = vrot.slane %v9557_v16, 2  ;;  %v2996_v9 = vor.u32 %v2994_v42, %v2992_v18  ;;  %v3533_v24 = vrot.slane %v9547_v19, 1  ;;  %v9554_v35 = vld [vmem:[#allocation2 + $0x18] sm:$0xff]   ;;  %v9575_v38 = vld [vmem:[#allocation2 + $0xa0] ss:$0 sps:$4 sm:$0x33]  }
 0x124   : > { %8763 = vmatmul.mubr.bf16.gmra.mrb[4].mxu0 %v5816_v8  ;;  %v5828_v8 = vsel %vm5272_vm7, %v5825_v23, %v5827_v62  ;;  %v3004_v30 = vor.u32 %v3002_v17, %v3000_v0  ;;  %v3020_v45 = vor.u32 %v3018_v21, %v3016_v12  ;;  %v5839_v63 = vrot.slane %v9570_v11, 2 }
 0x125   : > { %8545 = vmatpush3.bf16.msra.mxu1 %v9529_v2  ;;  %8766 = vmatprep.mubr.bf16.mxu0 %v5818_v52  ;;  %v3006_v2 = vshll.u32 %v9536_v60, 16  ;;  %v9563_v52 = vld [vmem:[#allocation2 + $0x78] sm:$0xff]   ;;  %v6348_v16 = vshll.u32 %v9580_v53, 16  ;;  %v3538_v17 = vrot.slane %v9554_v35, 1 }
 0x126   : > { %8546 = vmatprep.subr.bf16.mxu1 %v9535_v29  ;;  %8799 = vmatpush3.bf16.msra.mxu0 %v9546_v25  ;;  %v10451_v25 = vld [vmem:[#allocation4 + $0x200] sm:$0xff]   ;;  %v5833_v39 = vrot.slane %v9563_v52, 2 }
 0x127   : > { %8800 = vmatprep.subr.bf16.mxu0 %v9553_v59  ;;  %v3008_v44 = vrot.slane %v3006_v2, 1  ;;  %v9586_v2 = vld [vmem:[#allocation2 + $0x28] sm:$0xff]   ;;  %v6350_v51 = vrot.slane %v6348_v16, 3  ;;  %v9567_v16 = vld [vmem:[#allocation2 + $0x40] sm:$0xff]  }
 0x128   : > { %8511 = vmatmul.mubr.bf16.gmra.mrb[12].mxu1 %v2953_v46  ;;  %v5831_v46 = vrot.slane %v9558_v36, 2  ;;  %v5836_v23 = vsel %vm5272_vm7, %v5833_v39, %v5835_v13  ;;  %v6371_v21 = vshrl.u32 %v9586_v2, 16 }
 0x129   : > { %8514 = vmatprep.mubr.bf16.mxu1 %v2961_v33  ;;  %8547 = vmatpush3.bf16.msra.mxu1 %v9535_v29  ;;  %v5830_v29 = vsel %vm5272_vm7, %v5827_v62, %v5829_v20  ;;  %v3009_v1 = vsel %vm2885_vm10, %v3004_v30, %v3008_v44  ;;  %v3022_v33 = vshll.u32 %v9542_v50, 16  ;;  %v3012_v5 = vor.u32 %v3010_v56, %v3008_v44  ;;  %v9582_v62 = vld [vmem:[#allocation2 + $0x20] sm:$0xff]   ;;  %v9556_v44 = vld [vmem:[#allocation4 + $0xc8] sm:$0xff]   ;;  %v9560_v50 = vld [vmem:[#allocation2 + $0x28] sm:$0xff]  }
 0x12a   : > { %8548 = vmatprep.subr.bf16.mxu1 %v9541_v49  ;;  %8801 = vmatpush3.bf16.msra.mxu0 %v9553_v59  ;;  %v3001_v59 = vsel %vm2885_vm10, %v2996_v9, %v3000_v0  ;;  %v9555_v30 = vld [vmem:[#allocation2 + $0x20] sm:$0xff]   ;;  %v6365_v56 = vshll.u32 %v9582_v62, 16 }
 0x12b   : > { %8802 = vmatprep.subr.bf16.mxu0 %v9559_v32  ;;  %v3024_v54 = vrot.slane %v3022_v33, 1  ;;  %v3017_v6 = vsel %vm2885_vm10, %v3012_v5, %v3016_v12  ;;  %v6374_v33 = vshll.u32 %v9586_v2, 16  ;;  %v9562_v12 = vld [vmem:[#allocation4 + $0xd0] sm:$0xff]   ;;  %v3542_v5 = vrot.slane %v9560_v50, 1 }
 0x12c   : > { %8767 = vmatmul.mubr.bf16.gmra.mrb[8].mxu0 %v5820_v26  ;;  %v5834_v26 = vsel %vm5272_vm7, %v5831_v46, %v5833_v39  ;;  %v3540_v39 = vrot.slane %v9555_v30, 1  ;;  %v9599_v30 = vld [vmem:[#allocation2 + $0x50] sm:$0xff]   ;;  %v9589_v50 = vld [vmem:[#allocation4 + $0xf0] sm:$0xff]  }
 0x12d   : > { %8549 = vmatpush3.bf16.msra.mxu1 %v9541_v49  ;;  %8770 = vmatprep.mubr.bf16.mxu0 %v5822_v3  ;;  %v9543_v49 = vld [vmem:[#allocation2 + $0x90] ss:$0 sps:$4 sm:$0x11]   ;;  %v3028_v57 = vor.u32 %v3026_v4, %v3024_v54  ;;  %v6373_v4 = vrot.slane %v6371_v21, 2  ;;  %v6376_v19 = vrot.slane %v6374_v33, 3  ;;  %v6416_v21 = vshrl.u32 %v9599_v30, 16 }
 0x12e   : > { %8586 = vmatprep.subr.bf16.mxu1 %v10441_v40  ;;  %8803 = vmatpush3.bf16.msra.mxu0 %v9559_v32  ;;  %v5832_v32 = vsel %vm5272_vm7, %v5829_v20, %v5831_v46  ;;  %v3030_v3 = vshll.u32 %v9543_v49, 16  ;;  %v9588_v49 = vld [vmem:[#allocation2 + $0x30] sm:$0xff]   ;;  %v6419_v33 = vshll.u32 %v9599_v30, 16 }
 0x12f   : > { %8804 = vmatprep.subr.bf16.mxu0 %v9565_v14  ;;  %v6383_v47 = vshll.u32 %v9588_v49, 16  ;;  %v6377_v11 = vor.u32 %v6376_v19, %v6373_v4  ;;  %v9605_v19 = vld [vmem:[#allocation2 + $0x60] sm:$0xff]  }
 0x130   : > { %8515 = vmatmul.mubr.bf16.gmra.mrb[16].mxu1 %v2969_v31  ;;  %v5837_v31 = vrot.slane %v9568_v28, 2  ;;  %v3032_v41 = vrot.slane %v3030_v3, 1  ;;  %v9569_v3 = vld [vmem:[#allocation4 + $0xd8] sm:$0xff]   ;;  %v6421_v4 = vrot.slane %v6419_v33, 3 }
 0x131   : > { %8518 = vmatprep.mubr.bf16.mxu1 %v2977_v22  ;;  %v9574_v22 = vld [vmem:[#allocation2 + $0x98] sm:$0xff]   ;;  %v9591_v33 = vld [vmem:[#allocation2 + $0x80] sm:$0xff]  }
 0x132   : > { %8805 = vmatpush3.bf16.msra.mxu0 %v9565_v14  ;;  %v3025_v14 = vsel %vm2885_vm10, %v3020_v45, %v3024_v54  ;;  %v5841_v18 = vrot.slane %v9574_v22, 2  ;;  %v3033_v60 = vsel %vm2885_vm10, %v3028_v57, %v3032_v41  ;;  %v5840_v20 = vsel %vm5272_vm7, %v5837_v31, %v5839_v63  ;;  %v9592_v54 = vld [vmem:[#allocation2 + $0x38] sm:$0xff]   ;;  %v9593_v57 = vld [vmem:[#allocation2 + $0x40] sm:$0xff]  }
 0x133   : > { %8806 = vmatprep.subr.bf16.mxu0 %v9572_v43  ;;  %v6367_v45 = vrot.slane %v6365_v56, 3  ;;  %v6392_v22 = vshll.u32 %v9592_v54, 16 }
 0x134   : > { %8771 = vmatmul.mubr.bf16.gmra.mrb[12].mxu0 %v5824_v37  ;;  %v5838_v37 = vsel %vm5272_vm7, %v5835_v13, %v5837_v31  ;;  %v5842_v9 = vsel %vm5272_vm7, %v5839_v63, %v5841_v18  ;;  %v3541_v13 = vsel %vm3532_vm11, %v3538_v17, %v3540_v39  ;;  %v3543_v31 = vsel %vm3532_vm11, %v3540_v39, %v3542_v5 }
 0x135   : > { %8774 = vmatprep.mubr.bf16.mxu0 %v5826_v61  ;;  %v6345_v61 = vshrl.u32 %v9580_v53, 16  ;;  %v6389_v53 = vshrl.u32 %v9592_v54, 16 }
 0x136   : > { %8807 = vmatpush3.bf16.msra.mxu0 %v9572_v43  ;;  %v9581_v43 = vld [vmem:[#allocation2 + $0x18] sm:$0xff]  }
 0x137   : > { %8808 = vmatprep.subr.bf16.mxu0 %v9577_v27  ;;  %v6356_v42 = vshll.u32 %v9581_v43, 16  ;;  %v6347_v0 = vrot.slane %v6345_v61, 2  ;;  %v6391_v63 = vrot.slane %v6389_v53, 2 }
 0x138   : > { %8519 = vmatmul.mubr.bf16.gmra.mrb[20].mxu1 %v2985_v10  ;;  %v6353_v10 = vshrl.u32 %v9581_v43, 16  ;;  %v9576_v43 = vld [vmem:[#allocation4 + $0xe0] sm:$0xff]  }
 0x139   : > { %8522 = vmatprep.mubr.bf16.mxu1 %v2993_v55  ;;  %v3536_v55 = vrot.slane %v9550_v7, 1  ;;  %v6358_v36 = vrot.slane %v6356_v42, 3  ;;  %v6351_v46 = vor.u32 %v6350_v51, %v6347_v0  ;;  %v9600_v0 = vld [vmem:[#allocation4 + $0x210] sm:$0xff]   ;;  %v3548_v51 = vrot.slane %v9567_v16, 1 }
 0x13a   : > { %8809 = vmatpush3.bf16.msra.mxu0 %v9577_v27  ;;  %v3535_v27 = vsel %vm3532_vm11, %v3533_v24, %v3534_v58  ;;  %v9598_v24 = vld [vmem:[#allocation2 + $0x48] sm:$0xff]  }
 0x13b   : > { %8846 = vmatprep.subr.bf16.mxu0 %v10451_v25  ;;  %v3537_v52 = vsel %vm3532_vm11, %v3534_v58, %v3536_v55  ;;  %v3539_v34 = vsel %vm3532_vm11, %v3536_v55, %v3538_v17  ;;  %v9583_v55 = vld [vmem:[#allocation4 + $0xe8] sm:$0xff]   ;;  %v6407_v2 = vshrl.u32 %v9598_v24, 16 }
 0x13c   : > { %8775 = vmatmul.mubr.bf16.gmra.mrb[16].mxu0 %v5828_v8  ;;  %v6355_v8 = vrot.slane %v6353_v10, 2  ;;  %v6401_v10 = vshll.u32 %v9593_v57, 16 }
 0x13d   : > { %8778 = vmatprep.mubr.bf16.mxu0 %v5830_v29  ;;  %v5843_v29 = vrot.slane %v9575_v38, 2  ;;  %v6398_v38 = vshrl.u32 %v9593_v57, 16  ;;  %v6437_v57 = vshll.u32 %v9605_v19, 16 }
 0x140   : > { %8523 = vmatmul.mubr.bf16.gmra.mrb[24].mxu1 %v3001_v59  ;;  %v6362_v59 = vshrl.u32 %v9582_v62, 16  ;;  %v10482_v62 = vld [vmem:[#allocation2 + $0x48] sm:$0xff]  }
 0x141   : > { %8526 = vmatprep.mubr.bf16.mxu1 %v3009_v1  ;;  %v6359_v1 = vor.u32 %v6358_v36, %v6355_v8  ;;  %v6400_v8 = vrot.slane %v6398_v38, 2  ;;  %v6403_v36 = vrot.slane %v6401_v10, 3 }
 0x142   : > { %v6364_v15 = vrot.slane %v6362_v59, 2  ;;  %v9606_v59 = vld [vmem:[#allocation4 + $0x218] sm:$0xff]  }
 0x143   : > { %v6360_v28 = vsel %vm6343_vm12, %v6351_v46, %v6359_v1  ;;  %v9573_v46 = vld [vmem:[#allocation2 + $0x50] sm:$0xff]  }
 0x144   : > { %8779 = vmatmul.mubr.bf16.gmra.mrb[20].mxu0 %v5832_v32  ;;  %v5844_v32 = vsel %vm5272_vm7, %v5841_v18, %v5843_v29  ;;  %v6394_v18 = vrot.slane %v6392_v22, 3  ;;  %v6409_v29 = vrot.slane %v6407_v2, 2  ;;  %v3552_v54 = vrot.slane %v9573_v46, 1 }
 0x145   : > { %8782 = vmatprep.mubr.bf16.mxu0 %v5834_v26  ;;  %v9561_v26 = vld [vmem:[#allocation2 + $0x30] sm:$0xff]   ;;  %v6434_v22 = vshrl.u32 %v9605_v19, 16 }
 0x146   : > { %v3544_v41 = vrot.slane %v9561_v26, 1  ;;  %v6395_v17 = vor.u32 %v6394_v18, %v6391_v63 }
 0x147   : > { %v6436_v18 = vrot.slane %v6434_v22, 2 }
 0x148   : > { %8527 = vmatmul.mubr.bf16.gmra.mrb[28].mxu1 %v3017_v6  ;;  %v10473_v6 = vld [vmem:[#allocation2 + $0x38] sm:$0xff]   ;;  %v3545_v61 = vsel %vm3532_vm11, %v3542_v5, %v3544_v41 }
 0x149   : > { %8530 = vmatprep.mubr.bf16.mxu1 %v3025_v14  ;;  %v6380_v14 = vshrl.u32 %v9588_v49, 16  ;;  %v9595_v49 = vld [vmem:[#allocation4 + $0xf8] sm:$0xff]  }
 0x14b   : > { %v6382_v7 = vrot.slane %v6380_v14, 2  ;;  %v9609_v14 = vld [vmem:[#allocation2 + $0x68] sm:$0xff]  }
 0x14c   : > { %8783 = vmatmul.mubr.bf16.gmra.mrb[24].mxu0 %v5836_v23  ;;  %v3546_v23 = vrot.slane %v10473_v6, 1 }
 0x14d   : > { %8786 = vmatprep.mubr.bf16.mxu0 %v5838_v37  ;;  %v6385_v37 = vrot.slane %v6383_v47, 3  ;;  %v9616_v47 = vld [vmem:[#allocation4 + $0x228] sm:$0xff]  }
 0x14e   : > { %v3547_v42 = vsel %vm3532_vm11, %v3544_v41, %v3546_v23  ;;  %v3549_v56 = vsel %vm3532_vm11, %v3546_v23, %v3548_v51  ;;  %v9584_v23 = vld [vmem:[#allocation2 + $0x68] sm:$0xff]  }
 0x14f   : > { %v3558_v16 = vrot.slane %v9584_v23, 1 }
 0x150   : > { %8531 = vmatmul.mubr.bf16.gmra.mrb[32].mxu1 %v3033_v60  ;;  %v9594_v60 = vld [vmem:[#allocation4 + $0x208] sm:$0xff]  }
 0x151   : > { %8550 = vmatprep.mubr.bf16.mxu1 %v3535_v27  ;;  %v6386_v27 = vor.u32 %v6385_v37, %v6382_v7  ;;  %v6446_v7 = vshll.u32 %v9609_v14, 16  ;;  %v9622_v37 = vld [vmem:[#allocation4 + $0x230] sm:$0xff]  }
 0x153   : > { %v6448_v10 = vrot.slane %v6446_v7, 3 }
 0x154   : > { %8787 = vmatmul.mubr.bf16.gmra.mrb[28].mxu0 %v5840_v20  ;;  %v6410_v20 = vshll.u32 %v9598_v24, 16 }
 0x155   : > { %8790 = vmatprep.mubr.bf16.mxu0 %v5842_v9  ;;  %v6387_v9 = vsel %vm6343_vm12, %v6377_v11, %v6386_v27 }
 0x158   : > { %8551 = vmatmul.mubr.bf16.vlgmr.msra.gmra.mrb[0].mxu1 %v3537_v52  ;;  %v6412_v52 = vrot.slane %v6410_v20, 3 }
 0x159   : > { %8587 = vmatpush3.bf16.msra.mxu1 %v10441_v40  ;;  %8554 = vmatprep.mubr.bf16.mxu1 %v3539_v34  ;;  %v6368_v40 = vor.u32 %v6367_v45, %v6364_v15  ;;  %v9604_v34 = vld [vmem:[#allocation2 + $0x58] sm:$0xff]   ;;  %v9611_v45 = vld [vmem:[#allocation4 + $0x220] sm:$0xff]  }
 0x15a   : > { %8588 = vmatprep.subr.bf16.mxu1 %v9556_v44  ;;  %v6413_v5 = vor.u32 %v6412_v52, %v6409_v29  ;;  %v6428_v15 = vshll.u32 %v9604_v34, 16  ;;  %v9615_v52 = vld [vmem:[#allocation2 + $0x80] sm:$0xff]  }
 0x15b   : > { %v6369_v58 = vsel %vm6343_vm12, %v6359_v1, %v6368_v40  ;;  %v6378_v35 = vsel %vm6343_vm12, %v6368_v40, %v6377_v11  ;;  %v6404_v1 = vor.u32 %v6403_v36, %v6400_v8  ;;  %v9579_v11 = vld [vmem:[#allocation2 + $0x60] sm:$0xff]  }
 0x15c   : > { %8791 = vmatmul.mubr.bf16.gmra.mrb[32].mxu0 %v5844_v32  ;;  %v6425_v32 = vshrl.u32 %v9604_v34, 16  ;;  %v6430_v40 = vrot.slane %v6428_v15, 3 }
 0x15d   : > { %8589 = vmatpush3.bf16.msra.mxu1 %v9556_v44  ;;  %8810 = vmatprep.mubr.bf16.mxu0 %v6360_v28  ;;  %v3550_v44 = vrot.slane %v10482_v62, 1  ;;  %v6405_v26 = vsel %vm6343_vm12, %v6395_v17, %v6404_v1  ;;  %v6418_v28 = vrot.slane %v6416_v21, 2  ;;  %v9626_v62 = vld [vmem:[#allocation4 + $0x238] sm:$0xff]  }
 0x15e   : > { %8590 = vmatprep.subr.bf16.mxu1 %v9562_v12 }
 0x15f   : > { %v3551_v39 = vsel %vm3532_vm11, %v3548_v51, %v3550_v44  ;;  %v6422_v53 = vor.u32 %v6421_v4, %v6418_v28 }
 0x160   : > { %8555 = vmatmul.mubr.bf16.gmra.mrb[4].mxu1 %v3541_v13  ;;  %v6427_v13 = vrot.slane %v6425_v32, 2  ;;  %v9596_v32 = vld [vmem:[#allocation2 + $0x88] sm:$0xff]  }
 0x161   : > { %8558 = vmatprep.mubr.bf16.mxu1 %v3543_v31  ;;  %8591 = vmatpush3.bf16.msra.mxu1 %v9562_v12  ;;  %v9578_v12 = vld [vmem:[#allocation2 + $0x58] sm:$0xff]   ;;  %v3553_v31 = vsel %vm3532_vm11, %v3550_v44, %v3552_v54  ;;  %v6423_v63 = vsel %vm6343_vm12, %v6413_v5, %v6422_v53 }
 0x162   : > { %8592 = vmatprep.subr.bf16.mxu1 %v9569_v3  ;;  %v3554_v6 = vrot.slane %v9578_v12, 1  ;;  %v6431_v24 = vor.u32 %v6430_v40, %v6427_v13  ;;  %v6470_v12 = vshrl.u32 %v9615_v52, 16 }
 0x164   : > { %8811 = vmatmul.mubr.bf16.vlgmr.msra.gmra.mrb[0].mxu0 %v6369_v58  ;;  %v3555_v41 = vsel %vm3532_vm11, %v3552_v54, %v3554_v6  ;;  %v6443_v58 = vshrl.u32 %v9609_v14, 16  ;;  %v6472_v4 = vrot.slane %v6470_v12, 2 }
 0x165   : > { %8593 = vmatpush3.bf16.msra.mxu1 %v9569_v3  ;;  %8814 = vmatprep.mubr.bf16.mxu0 %v6378_v35  ;;  %v6414_v3 = vsel %vm6343_vm12, %v6404_v1, %v6413_v5  ;;  %v3556_v35 = vrot.slane %v9579_v11, 1  ;;  %v9619_v1 = vld [vmem:[#allocation2 + $0x88] sm:$0xff]  }
 0x166   : > { %8594 = vmatprep.subr.bf16.mxu1 %v9576_v43  ;;  %8847 = vmatpush3.bf16.msra.mxu0 %v10451_v25  ;;  %v6396_v25 = vsel %vm6343_vm12, %v6386_v27, %v6395_v17  ;;  %v6432_v27 = vsel %vm6343_vm12, %v6422_v53, %v6431_v24  ;;  %v6445_v38 = vrot.slane %v6443_v58, 2  ;;  %v9585_v17 = vld [vmem:[#allocation2 + $0x70] sm:$0xff]   ;;  %v6482_v54 = vshll.u32 %v9619_v1, 16  ;;  %v9601_v53 = vld [vmem:[#allocation2 + $0x8] sm:$0xfe]  }
 0x167   : > { %8848 = vmatprep.subr.bf16.mxu0 %v9594_v60  ;;  %v3559_v51 = vsel %vm3532_vm11, %v3556_v35, %v3558_v16  ;;  %v3560_v44 = vrot.slane %v9585_v17, 1 }
 0x168   : > { %8559 = vmatmul.mubr.bf16.gmra.mrb[8].mxu1 %v3545_v61  ;;  %v9610_v61 = vld [vmem:[#allocation2 + $0x70] sm:$0xff]   ;;  %v6449_v8 = vor.u32 %v6448_v10, %v6445_v38  ;;  %v6484_v14 = vrot.slane %v6482_v54, 3 }
 0x169   : > { %8562 = vmatprep.mubr.bf16.mxu1 %v3547_v42  ;;  %8595 = vmatpush3.bf16.msra.mxu1 %v9576_v43  ;;  %v10494_v43 = vld [vmem:[#allocation4 + $0x100] sm:$0xff]   ;;  %v9614_v42 = vld [vmem:[#allocation2 + $0x78] sm:$0xff]   ;;  %v6452_v20 = vshrl.u32 %v9610_v61, 16  ;;  %v3561_v21 = vsel %vm3532_vm11, %v3558_v16, %v3560_v44  ;;  %v9625_v16 = vld [vmem:[#allocation2 + $0xa0] ss:$0 sps:$4 sm:$0x77]  }
 0x16a   : > { %8596 = vmatprep.subr.bf16.mxu1 %v9583_v55  ;;  %8849 = vmatpush3.bf16.msra.mxu0 %v9594_v60  ;;  %v6439_v60 = vrot.slane %v6437_v57, 3  ;;  %v6461_v36 = vshrl.u32 %v9614_v42, 16  ;;  %v6464_v30 = vshll.u32 %v9614_v42, 16 }
 0x16b   : > { %8850 = vmatprep.subr.bf16.mxu0 %v9600_v0 }
 0x16c   : > { %8815 = vmatmul.mubr.bf16.gmra.mrb[4].mxu0 %v6387_v9  ;;  %v6440_v2 = vor.u32 %v6439_v60, %v6436_v18  ;;  %v9590_v9 = vld [vmem:[#allocation2 + $0x78] sm:$0xff]   ;;  %v6466_v46 = vrot.slane %v6464_v30, 3 }
 0x16d   : > { %8597 = vmatpush3.bf16.msra.mxu1 %v9583_v55  ;;  %8818 = vmatprep.mubr.bf16.mxu0 %v6396_v25  ;;  %v3557_v55 = vsel %vm3532_vm11, %v3554_v6, %v3556_v35  ;;  %v6454_v25 = vrot.slane %v6452_v20, 2  ;;  %v3562_v34 = vrot.slane %v9590_v9, 1  ;;  %v9620_v6 = vld [vmem:[#allocation2 + $0x90] sm:$0xff]   ;;  %v6509_v20 = vshll.u32 %v9625_v16, 16 }
 0x16e   : > { %8598 = vmatprep.subr.bf16.mxu1 %v9589_v50  ;;  %8851 = vmatpush3.bf16.msra.mxu0 %v9600_v0  ;;  %v6455_v0 = vshll.u32 %v9610_v61, 16  ;;  %v6488_v57 = vshrl.u32 %v9620_v6, 16 }
 0x16f   : > { %8852 = vmatprep.subr.bf16.mxu0 %v9606_v59  ;;  %v3563_v5 = vsel %vm3532_vm11, %v3560_v44, %v3562_v34  ;;  %v6511_v44 = vrot.slane %v6509_v20, 3  ;;  %v9643_v20 = vld [vmem:[#allocation2 + $0x50] sm:$0xff]  }
 0x170   : > { %8563 = vmatmul.mubr.bf16.gmra.mrb[12].mxu1 %v3549_v56  ;;  %v6457_v29 = vrot.slane %v6455_v0, 3  ;;  %v6463_v56 = vrot.slane %v6461_v36, 2  ;;  %v6490_v60 = vrot.slane %v6488_v57, 2 }
 0x171   : > { %8566 = vmatprep.mubr.bf16.mxu1 %v3551_v39  ;;  %8599 = vmatpush3.bf16.msra.mxu1 %v9589_v50  ;;  %v6441_v50 = vsel %vm6343_vm12, %v6431_v24, %v6440_v2  ;;  %v9602_v24 = vld [vmem:[#allocation2 + $0x10] sm:$0xff]  }
 0x172   : > { %8600 = vmatprep.subr.bf16.mxu1 %v9595_v49  ;;  %8853 = vmatpush3.bf16.msra.mxu0 %v9606_v59  ;;  %v6450_v59 = vsel %vm6343_vm12, %v6440_v2, %v6449_v8  ;;  %v6458_v39 = vor.u32 %v6457_v29, %v6454_v25  ;;  %v6467_v15 = vor.u32 %v6466_v46, %v6463_v56  ;;  %v6506_v2 = vshrl.u32 %v9625_v16, 16  ;;  %v9629_v29 = vld [vmem:[#allocation2 + $0x10] sm:$0xf8]  }
 0x173   : > { %8854 = vmatprep.subr.bf16.mxu0 %v9611_v45 }
 0x174   : > { %8819 = vmatmul.mubr.bf16.gmra.mrb[8].mxu0 %v6405_v26  ;;  %v3564_v26 = vrot.slane %v9591_v33, 1  ;;  %v6459_v28 = vsel %vm6343_vm12, %v6449_v8, %v6458_v39  ;;  %v6468_v13 = vsel %vm6343_vm12, %v6458_v39, %v6467_v15  ;;  %v6508_v30 = vrot.slane %v6506_v2, 2 }
 0x175   : > { %8601 = vmatpush3.bf16.msra.mxu1 %v9595_v49  ;;  %8822 = vmatprep.mubr.bf16.mxu0 %v6414_v3  ;;  %v6473_v49 = vshll.u32 %v9615_v52, 16  ;;  %v3566_v3 = vrot.slane %v9596_v32, 1  ;;  %v9630_v52 = vld [vmem:[#allocation2 + $0x18] sm:$0xff]  }
 0x176   : > { %8898 = vmatprep.subr.bf16.mxu1 %v10494_v43  ;;  %8855 = vmatpush3.bf16.msra.mxu0 %v9611_v45  ;;  %v6479_v45 = vshrl.u32 %v9619_v1, 16  ;;  %v3565_v11 = vsel %vm3532_vm11, %v3562_v34, %v3564_v26  ;;  %v6512_v56 = vor.u32 %v6511_v44, %v6508_v30  ;;  %v9612_v1 = vld [vmem:[#allocation2 + $0x30] sm:$0xff]   ;;  %v7014_v33 = vrot.slane %v9630_v52, 3  ;;  %v9628_v30 = vld [vmem:[#allocation2 + $0x68] sm:$0xff]  }
 0x177   : > { %8856 = vmatprep.subr.bf16.mxu0 %v9616_v47  ;;  %v6475_v19 = vrot.slane %v6473_v49, 3  ;;  %v3567_v23 = vsel %vm3532_vm11, %v3564_v26, %v3566_v3  ;;  %v9631_v49 = vld [vmem:[#allocation2 + $0x20] sm:$0xff]   ;;  %v4077_v32 = vrot.slane %v9612_v1, 1  ;;  %v9613_v26 = vld [vmem:[#allocation2 + $0x38] sm:$0xff]   ;;  %v7028_v44 = vrot.slane %v9643_v20, 3  ;;  %v9650_v1 = vld [vmem:[#allocation2 + $0x68] sm:$0xff]  }
 0x178   : > { %8567 = vmatmul.mubr.bf16.gmra.mrb[16].mxu1 %v3553_v31  ;;  %v6481_v40 = vrot.slane %v6479_v45, 2  ;;  %v9597_v31 = vld [vmem:[#allocation2 + $0x90] ss:$0 sps:$4 sm:$0x11]   ;;  %v9634_v45 = vld [vmem:[#allocation2 + $0x28] sm:$0xff]   ;;  %v4091_v52 = vrot.slane %v9628_v30, 1 }
 0x179   : > { %8570 = vmatprep.mubr.bf16.mxu1 %v3555_v41  ;;  %v6476_v22 = vor.u32 %v6475_v19, %v6472_v4  ;;  %v6491_v41 = vshll.u32 %v9620_v6, 16  ;;  %v3568_v35 = vrot.slane %v9597_v31, 1  ;;  %v9667_v4 = vld [vmem:[#allocation4 + $0x110] sm:$0xff]   ;;  %v7018_v6 = vrot.slane %v9634_v45, 3  ;;  %v9651_v45 = vld [vmem:[#allocation2 + $0x70] sm:$0xff]  }
 0x17a   : > { %8857 = vmatpush3.bf16.msra.mxu0 %v9616_v47  ;;  %v9624_v47 = vld [vmem:[#allocation2 + $0x98] sm:$0xff]   ;;  %v6485_v58 = vor.u32 %v6484_v14, %v6481_v40  ;;  %v9617_v19 = vld [vmem:[#allocation2 + $0x40] sm:$0xff]   ;;  %v9635_v40 = vld [vmem:[#allocation2 + $0x30] sm:$0xff]  }
 0x17b   : > { %8858 = vmatprep.subr.bf16.mxu0 %v9622_v37  ;;  %v6497_v7 = vshrl.u32 %v9624_v47, 16  ;;  %v6477_v18 = vsel %vm6343_vm12, %v6467_v15, %v6476_v22  ;;  %v6493_v61 = vrot.slane %v6491_v41, 3  ;;  %v4081_v14 = vrot.slane %v9617_v19, 1 }
 0x17c   : > { %8823 = vmatmul.mubr.bf16.gmra.mrb[12].mxu0 %v6423_v63  ;;  %v4068_v63 = vrot.slane %v9601_v53, 1  ;;  %v6486_v38 = vsel %vm6343_vm12, %v6476_v22, %v6485_v58  ;;  %v9618_v22 = vld [vmem:[#allocation2 + $0x48] sm:$0xff]   ;;  %v7020_v57 = vrot.slane %v9635_v40, 3  ;;  %v7036_v19 = vrot.slane %v9651_v45, 3 }
 0x17d   : > { %8826 = vmatprep.mubr.bf16.mxu0 %v6432_v27  ;;  %v4069_v27 = vrot.slane %v9602_v24, 1  ;;  %v6499_v10 = vrot.slane %v6497_v7, 2  ;;  %v6494_v17 = vor.u32 %v6493_v61, %v6490_v60  ;;  %v9669_v24 = vld [vmem:[#allocation4 + $0x120] sm:$0xff]   ;;  %v4083_v7 = vrot.slane %v9618_v22, 1 }
 0x17e   : > { %8859 = vmatpush3.bf16.msra.mxu0 %v9622_v37  ;;  %v6500_v37 = vshll.u32 %v9624_v47, 16  ;;  %v9668_v47 = vld [vmem:[#allocation4 + $0x118] sm:$0xff]  }
 0x17f   : > { %8860 = vmatprep.subr.bf16.mxu0 %v9626_v62  ;;  %v4070_v0 = vsel %vm3532_vm11, %v4068_v63, %v4069_v27  ;;  %v6495_v36 = vsel %vm6343_vm12, %v6485_v58, %v6494_v17  ;;  %v9642_v61 = vld [vmem:[#allocation2 + $0x48] sm:$0xff]   ;;  %v4084_v16 = vsel %vm3532_vm11, %v4081_v14, %v4083_v7 }
 0x180   : > { %8571 = vmatmul.mubr.bf16.gmra.mrb[20].mxu1 %v3557_v55  ;;  %v6502_v42 = vrot.slane %v6500_v37, 3  ;;  %v9603_v55 = vld [vmem:[#allocation2 + $0x18] sm:$0xff]   ;;  %v7021_v37 = vsel %vm7012_vm13, %v7018_v6, %v7020_v57 }
 0x181   : > { %8574 = vmatprep.mubr.bf16.mxu1 %v3559_v51  ;;  %v9607_v51 = vld [vmem:[#allocation2 + $0x20] sm:$0xff]   ;;  %v4071_v8 = vrot.slane %v9603_v55, 1  ;;  %v7026_v55 = vrot.slane %v9642_v61, 3 }
 0x182   : > { %8861 = vmatpush3.bf16.msra.mxu0 %v9626_v62  ;;  %v3569_v62 = vsel %vm3532_vm11, %v3566_v3, %v3568_v35  ;;  %v6503_v9 = vor.u32 %v6502_v42, %v6499_v10  ;;  %v4079_v3 = vrot.slane %v9613_v26, 1  ;;  %v9639_v35 = vld [vmem:[#allocation2 + $0x40] sm:$0xff]  }
 0x183   : > { %v4072_v34 = vsel %vm3532_vm11, %v4069_v27, %v4071_v8  ;;  %v9623_v27 = vld [vmem:[#allocation2 + $0x58] sm:$0xff]   ;;  %v9627_v42 = vld [vmem:[#allocation2 + $0x60] sm:$0xff]  }
 0x184   : > { %8827 = vmatmul.mubr.bf16.gmra.mrb[16].mxu0 %v6441_v50  ;;  %v4073_v50 = vrot.slane %v9607_v51, 1  ;;  %v6504_v25 = vsel %vm6343_vm12, %v6494_v17, %v6503_v9  ;;  %v6513_v12 = vsel %vm6343_vm12, %v6503_v9, %v6512_v56  ;;  %v4080_v53 = vsel %vm3532_vm11, %v4077_v32, %v4079_v3  ;;  %v9672_v51 = vld [vmem:[#allocation4 + $0x138] sm:$0xff]  }
 0x185   : > { %8830 = vmatprep.mubr.bf16.mxu0 %v6450_v59  ;;  %v9608_v59 = vld [vmem:[#allocation2 + $0x28] sm:$0xff]   ;;  %v4082_v41 = vsel %vm3532_vm11, %v4079_v3, %v4081_v14  ;;  %v4087_v17 = vrot.slane %v9623_v27, 1  ;;  %v9640_v3 = vld [vmem:[#allocation2 + $0x90] sm:$0xff]  }
 0x186   : > { %v4074_v46 = vsel %vm3532_vm11, %v4071_v8, %v4073_v50  ;;  %v4075_v39 = vrot.slane %v9608_v59, 1  ;;  %v9646_v8 = vld [vmem:[#allocation2 + $0x58] sm:$0xff]   ;;  %v9647_v59 = vld [vmem:[#allocation2 + $0x60] sm:$0xff]  }
 0x188   : > { %8575 = vmatmul.mubr.bf16.gmra.mrb[24].mxu1 %v3561_v21  ;;  %v7013_v21 = vrot.slane %v9629_v29, 3  ;;  %v4076_v54 = vsel %vm3532_vm11, %v4073_v50, %v4075_v39  ;;  %v7030_v29 = vrot.slane %v9646_v8, 3 }
 0x189   : > { %8578 = vmatprep.mubr.bf16.mxu1 %v3563_v5  ;;  %v9666_v5 = vld [vmem:[#allocation4 + $0x108] sm:$0xff]  }
 0x18a   : > { %v7015_v15 = vsel %vm7012_vm13, %v7013_v21, %v7014_v33 }
 0x18c   : > { %8831 = vmatmul.mubr.bf16.gmra.mrb[20].mxu0 %v6459_v28  ;;  %v7016_v28 = vrot.slane %v9631_v49, 3  ;;  %v9636_v49 = vld [vmem:[#allocation2 + $0x80] sm:$0xff]  }
 0x18d   : > { %8834 = vmatprep.mubr.bf16.mxu0 %v6468_v13 }
 0x18e   : > { %v7017_v13 = vsel %vm7012_vm13, %v7014_v33, %v7016_v28  ;;  %v7019_v31 = vsel %vm7012_vm13, %v7016_v28, %v7018_v6  ;;  %v9633_v33 = vld [vmem:[#allocation2 + $0x78] sm:$0xff]  }
 0x18f   : > { %v9654_v28 = vld [vmem:[#allocation2 + $0x78] sm:$0xff]  }
 0x190   : > { %8579 = vmatmul.mubr.bf16.gmra.mrb[28].mxu1 %v3565_v11  ;;  %v9638_v11 = vld [vmem:[#allocation2 + $0x38] sm:$0xff]   ;;  %v7038_v40 = vrot.slane %v9654_v28, 3 }
 0x191   : > { %8582 = vmatprep.mubr.bf16.mxu1 %v3567_v23  ;;  %v9621_v23 = vld [vmem:[#allocation2 + $0x50] sm:$0xff]   ;;  %v7022_v58 = vrot.slane %v9638_v11, 3  ;;  %v4101_v11 = vrot.slane %v9640_v3, 1 }
 0x192   : > { %v4085_v63 = vrot.slane %v9621_v23, 1 }
 0x193   : > { %v7023_v60 = vsel %vm7012_vm13, %v7020_v57, %v7022_v58  ;;  %v7039_v57 = vsel %vm7012_vm13, %v7036_v19, %v7038_v40 }
 0x194   : > { %8835 = vmatmul.mubr.bf16.gmra.mrb[24].mxu0 %v6477_v18  ;;  %v9670_v18 = vld [vmem:[#allocation4 + $0x128] sm:$0xff]   ;;  %v4086_v10 = vsel %vm3532_vm11, %v4083_v7, %v4085_v63 }
 0x195   : > { %8838 = vmatprep.mubr.bf16.mxu0 %v6486_v38  ;;  %v7024_v38 = vrot.slane %v9639_v35, 3 }
 0x197   : > { %v7025_v2 = vsel %vm7012_vm13, %v7022_v58, %v7024_v38  ;;  %v7027_v9 = vsel %vm7012_vm13, %v7024_v38, %v7026_v55  ;;  %v9645_v58 = vld [vmem:[#allocation2 + $0x58] sm:$0xff]  }
 0x198   : > { %8583 = vmatmul.mubr.bf16.gmra.mrb[32].mxu1 %v3569_v62  ;;  %v9671_v62 = vld [vmem:[#allocation4 + $0x130] sm:$0xff]   ;;  %v4697_v27 = vshll.u32 %v9645_v58, 16 }
 0x199   : > { %8602 = vmatprep.mubr.bf16.mxu1 %v4070_v0  ;;  %v4089_v0 = vrot.slane %v9627_v42, 1 }
 0x19b   : > { %v4090_v50 = vsel %vm3532_vm11, %v4087_v17, %v4089_v0  ;;  %v4092_v21 = vsel %vm3532_vm11, %v4089_v0, %v4091_v52 }
 0x19c   : > { %8839 = vmatmul.mubr.bf16.gmra.mrb[28].mxu0 %v6495_v36  ;;  %v4088_v36 = vsel %vm3532_vm11, %v4085_v63, %v4087_v17 }
 0x19d   : > { %8842 = vmatprep.mubr.bf16.mxu0 %v6504_v25  ;;  %v9632_v25 = vld [vmem:[#allocation2 + $0x70] sm:$0xff]  }
 0x19e   : > { %v4093_v56 = vrot.slane %v9632_v25, 1 }
 0x1a0   : > { %8603 = vmatmul.mubr.bf16.vlgmr.msra.gmra.mrb[0].mxu1 %v4072_v34  ;;  %v7029_v34 = vsel %vm7012_vm13, %v7026_v55, %v7028_v44 }
 0x1a1   : > { %8906 = vmatpush3.bf16.msra.mxu1 %v10494_v43  ;;  %8606 = vmatprep.mubr.bf16.mxu1 %v4074_v46  ;;  %v4078_v43 = vsel %vm3532_vm11, %v4075_v39, %v4077_v32  ;;  %v7031_v46 = vsel %vm7012_vm13, %v7028_v44, %v7030_v29  ;;  %v7032_v39 = vrot.slane %v9647_v59, 3  ;;  %v4095_v32 = vrot.slane %v9633_v33, 1 }
 0x1a2   : > { %8899 = vmatprep.subr.bf16.mxu1 %v9666_v5 }
 0x1a4   : > { %8843 = vmatmul.mubr.bf16.gmra.mrb[32].mxu0 %v6513_v12  ;;  %v4094_v12 = vsel %vm3532_vm11, %v4091_v52, %v4093_v56 }
 0x1a5   : > { %8907 = vmatpush3.bf16.msra.mxu1 %v9666_v5  ;;  %8862 = vmatprep.mubr.bf16.mxu0 %v7015_v15  ;;  %v7034_v5 = vrot.slane %v9650_v1, 3  ;;  %v7033_v15 = vsel %vm7012_vm13, %v7030_v29, %v7032_v39 }
 0x1a6   : > { %8900 = vmatprep.subr.bf16.mxu1 %v9667_v4 }
 0x1a7   : > { %v7035_v26 = vsel %vm7012_vm13, %v7032_v39, %v7034_v5 }
 0x1a8   : > { %8607 = vmatmul.mubr.bf16.gmra.mrb[4].mxu1 %v4076_v54  ;;  %v4097_v54 = vrot.slane %v9636_v49, 1  ;;  %v9653_v49 = vld [vmem:[#allocation2 + $0x78] sm:$0xff]  }
 0x1a9   : > { %8610 = vmatprep.mubr.bf16.mxu1 %v4078_v43  ;;  %8908 = vmatpush3.bf16.msra.mxu1 %v9667_v4  ;;  %v4096_v43 = vsel %vm3532_vm11, %v4093_v56, %v4095_v32  ;;  %v9637_v4 = vld [vmem:[#allocation2 + $0x88] sm:$0xff]   ;;  %v9663_v56 = vld [vmem:[#allocation2 + $0xa0] ss:$0 sps:$4 sm:$0x77]   ;;  %v4730_v28 = vshrl.u32 %v9653_v49, 16 }
 0x1aa   : > { %8901 = vmatprep.subr.bf16.mxu1 %v9668_v47  ;;  %v4098_v6 = vsel %vm3532_vm11, %v4095_v32, %v4097_v54  ;;  %v4099_v14 = vrot.slane %v9637_v4, 1 }
 0x1ac   : > { %8863 = vmatmul.mubr.bf16.vlgmr.msra.gmra.mrb[0].mxu0 %v7017_v13  ;;  %v9644_v13 = vld [vmem:[#allocation2 + $0x50] sm:$0xff]   ;;  %v4100_v23 = vsel %vm3532_vm11, %v4097_v54, %v4099_v14  ;;  %v9656_v54 = vld [vmem:[#allocation2 + $0x80] sm:$0xff]  }
 0x1ad   : > { %8909 = vmatpush3.bf16.msra.mxu1 %v9668_v47  ;;  %8866 = vmatprep.mubr.bf16.mxu0 %v7019_v31  ;;  %v7037_v47 = vsel %vm7012_vm13, %v7034_v5, %v7036_v19  ;;  %v9655_v31 = vld [vmem:[#allocation2 + $0x80] sm:$0xff]   ;;  %v4688_v22 = vshll.u32 %v9644_v13, 16  ;;  %v7048_v5 = vrot.slane %v9663_v56, 3  ;;  %v4742_v3 = vshll.u32 %v9656_v54, 16 }
 0x1ae   : > { %8902 = vmatprep.subr.bf16.mxu1 %v9669_v24  ;;  %v7040_v7 = vrot.slane %v9655_v31, 3 }
 0x1af   : > { %v4690_v63 = vrot.slane %v4688_v22, 2  ;;  %v9660_v22 = vld [vmem:[#allocation2 + $0x90] sm:$0xff]  }
 0x1b0   : > { %8611 = vmatmul.mubr.bf16.gmra.mrb[8].mxu1 %v4080_v53  ;;  %v4685_v53 = vshrl.u32 %v9644_v13, 16  ;;  %v7041_v38 = vsel %vm7012_vm13, %v7038_v40, %v7040_v7  ;;  %v4732_v40 = vrot.slane %v4730_v28, 1 }
 0x1b1   : > { %8614 = vmatprep.mubr.bf16.mxu1 %v4082_v41  ;;  %8910 = vmatpush3.bf16.msra.mxu1 %v9669_v24  ;;  %v9658_v41 = vld [vmem:[#allocation2 + $0x88] sm:$0xff]   ;;  %v9641_v24 = vld [vmem:[#allocation2 + $0x98] ss:$0 sps:$4 sm:$0x11]  }
 0x1b2   : > { %8903 = vmatprep.subr.bf16.mxu1 %v9670_v18  ;;  %v4687_v35 = vrot.slane %v4685_v53, 1  ;;  %v4103_v61 = vrot.slane %v9641_v24, 1  ;;  %v4744_v53 = vrot.slane %v4742_v3, 2 }
 0x1b4   : > { %8867 = vmatmul.mubr.bf16.gmra.mrb[4].mxu0 %v7021_v37  ;;  %v4102_v37 = vsel %vm3532_vm11, %v4099_v14, %v4101_v11  ;;  %v4691_v42 = vor.u32 %v4690_v63, %v4687_v35  ;;  %v4104_v20 = vsel %vm3532_vm11, %v4101_v11, %v4103_v61 }
 0x1b5   : > { %8911 = vmatpush3.bf16.msra.mxu1 %v9670_v18  ;;  %8870 = vmatprep.mubr.bf16.mxu0 %v7023_v60  ;;  %v9648_v18 = vld [vmem:[#allocation2 + $0x60] sm:$0xff]   ;;  %v7042_v60 = vrot.slane %v9658_v41, 3 }
 0x1b6   : > { %8904 = vmatprep.subr.bf16.mxu1 %v9671_v62  ;;  %v4706_v55 = vshll.u32 %v9648_v18, 16 }
 0x1b7   : > { %v7043_v17 = vsel %vm7012_vm13, %v7040_v7, %v7042_v60  ;;  %v4760_v7 = vshll.u32 %v9660_v22, 16 }
 0x1b8   : > { %8615 = vmatmul.mubr.bf16.gmra.mrb[12].mxu1 %v4084_v16  ;;  %v4694_v16 = vshrl.u32 %v9645_v58, 16  ;;  %v4708_v44 = vrot.slane %v4706_v55, 2  ;;  %v4757_v58 = vshrl.u32 %v9660_v22, 16 }
 0x1b9   : > { %8618 = vmatprep.mubr.bf16.mxu1 %v4086_v10  ;;  %8912 = vmatpush3.bf16.msra.mxu1 %v9671_v62  ;;  %v9659_v10 = vld [vmem:[#allocation2 + $0x90] sm:$0xff]   ;;  %v4703_v62 = vshrl.u32 %v9648_v18, 16  ;;  %v9661_v18 = vld [vmem:[#allocation2 + $0x98] ss:$0 sps:$4 sm:$0x33]  }
 0x1ba   : > { %8905 = vmatprep.subr.bf16.mxu1 %v9672_v51  ;;  %v4696_v0 = vrot.slane %v4694_v16, 1  ;;  %v7044_v8 = vrot.slane %v9659_v10, 3  ;;  %v4759_v61 = vrot.slane %v4757_v58, 1  ;;  %v4762_v16 = vrot.slane %v4760_v7, 2 }
 0x1bb   : > { %v4705_v30 = vrot.slane %v4703_v62, 1  ;;  %v4769_v10 = vshll.u32 %v9661_v18, 16 }
 0x1bc   : > { %8871 = vmatmul.mubr.bf16.gmra.mrb[8].mxu0 %v7025_v2  ;;  %v9662_v2 = vld [vmem:[#allocation2 + $0x98] sm:$0xff]   ;;  %v7045_v59 = vsel %vm7012_vm13, %v7042_v60, %v7044_v8 }
 0x1bd   : > { %8913 = vmatpush3.bf16.msra.mxu1 %v9672_v51  ;;  %8874 = vmatprep.mubr.bf16.mxu0 %v7027_v9  ;;  %v4699_v51 = vrot.slane %v4697_v27, 2  ;;  %v9649_v9 = vld [vmem:[#allocation2 + $0x68] sm:$0xff]   ;;  %v7046_v25 = vrot.slane %v9662_v2, 3 }
 0x1be   : > { %v4712_v52 = vshrl.u32 %v9649_v9, 16 }
 0x1bf   : > { %v4700_v29 = vor.u32 %v4699_v51, %v4696_v0  ;;  %v7047_v33 = vsel %vm7012_vm13, %v7044_v8, %v7046_v25  ;;  %v7049_v4 = vsel %vm7012_vm13, %v7046_v25, %v7048_v5 }
 0x1c0   : > { %8619 = vmatmul.mubr.bf16.gmra.mrb[16].mxu1 %v4088_v36  ;;  %v4692_v36 = vsel %vm4603_vm6, %v10216_v48, %v4691_v42  ;;  %v4714_v39 = vrot.slane %v4712_v52, 1 }
 0x1c1   : > { %8622 = vmatprep.mubr.bf16.mxu1 %v4090_v50  ;;  %v9652_v50 = vld [vmem:[#allocation2 + $0x70] sm:$0xff]   ;;  %v4701_v48 = vsel %vm4603_vm6, %v4691_v42, %v4700_v29  ;;  %v4763_v42 = vor.u32 %v4762_v16, %v4759_v61 }
 0x1c2   : > { %v4721_v1 = vshrl.u32 %v9652_v50, 16 }
 0x1c4   : > { %8875 = vmatmul.mubr.bf16.gmra.mrb[12].mxu0 %v7029_v34  ;;  %v4715_v34 = vshll.u32 %v9649_v9, 16 }
 0x1c5   : > { %8878 = vmatprep.mubr.bf16.mxu0 %v7031_v46  ;;  %v4709_v46 = vor.u32 %v4708_v44, %v4705_v30  ;;  %v10566_v30 = vld [vmem:[%s10661_s2] ss:$0 sm:$0xff] }
 0x1c7   : > { %v4710_v32 = vsel %vm4603_vm6, %v4700_v29, %v4709_v46 }
 0x1c8   : > { %8623 = vmatmul.mubr.bf16.gmra.mrb[20].mxu1 %v4092_v21  ;;  %v4724_v21 = vshll.u32 %v9652_v50, 16 }
 0x1c9   : > { %8626 = vmatprep.mubr.bf16.mxu1 %v4094_v12  ;;  %v4717_v12 = vrot.slane %v4715_v34, 2 }
 0x1ca   : > { %v4726_v45 = vrot.slane %v4724_v21, 2 }
 0x1cc   : > { %8879 = vmatmul.mubr.bf16.gmra.mrb[16].mxu0 %v7033_v15  ;;  %v4723_v15 = vrot.slane %v4721_v1, 1 }
 0x1cd   : > { %8882 = vmatprep.mubr.bf16.mxu0 %v7035_v26  ;;  %v4718_v26 = vor.u32 %v4717_v12, %v4714_v39 }
 0x1ce   : > { %v4727_v19 = vor.u32 %v4726_v45, %v4723_v15 }
 0x1cf   : > { %v4719_v13 = vsel %vm4603_vm6, %v4709_v46, %v4718_v26 }
 0x1d0   : > { %8627 = vmatmul.mubr.bf16.gmra.mrb[24].mxu1 %v4096_v43  ;;  %v4733_v43 = vshll.u32 %v9653_v49, 16  ;;  %v4728_v31 = vsel %vm4603_vm6, %v4718_v26, %v4727_v19 }
 0x1d1   : > { %8630 = vmatprep.mubr.bf16.mxu1 %v4098_v6  ;;  %v4739_v6 = vshrl.u32 %v9656_v54, 16 }
 0x1d2   : > { %v4735_v14 = vrot.slane %v4733_v43, 2 }
 0x1d3   : > { %v4741_v11 = vrot.slane %v4739_v6, 1 }
 0x1d4   : > { %8883 = vmatmul.mubr.bf16.gmra.mrb[20].mxu0 %v7037_v47  ;;  %v9657_v47 = vld [vmem:[#allocation2 + $0x88] sm:$0xff]  }
 0x1d5   : > { %8886 = vmatprep.mubr.bf16.mxu0 %v7039_v57  ;;  %v4736_v57 = vor.u32 %v4735_v14, %v4732_v40  ;;  %v4748_v41 = vshrl.u32 %v9657_v47, 16  ;;  %v4745_v24 = vor.u32 %v4744_v53, %v4741_v11 }
 0x1d7   : > { %v4750_v35 = vrot.slane %v4748_v41, 1  ;;  %v4746_v60 = vsel %vm4603_vm6, %v4736_v57, %v4745_v24 }
 0x1d8   : > { %8631 = vmatmul.mubr.bf16.gmra.mrb[28].mxu1 %v4100_v23  ;;  %v4751_v23 = vshll.u32 %v9657_v47, 16 }
 0x1d9   : > { %8634 = vmatprep.mubr.bf16.mxu1 %v4102_v37  ;;  %v4737_v37 = vsel %vm4603_vm6, %v4727_v19, %v4736_v57 }
 0x1da   : > { %v4753_v63 = vrot.slane %v4751_v23, 2 }
 0x1dc   : > { %8887 = vmatmul.mubr.bf16.gmra.mrb[24].mxu0 %v7041_v38  ;;  %v4754_v27 = vor.u32 %v4753_v63, %v4750_v35  ;;  %v4766_v38 = vshrl.u32 %v9661_v18, 16 }
 0x1dd   : > { %8890 = vmatprep.mubr.bf16.mxu0 %v7043_v17  ;;  %v4771_v17 = vrot.slane %v4769_v10, 2 }
 0x1de   : > { %v4755_v62 = vsel %vm4603_vm6, %v4745_v24, %v4754_v27  ;;  %v4768_v55 = vrot.slane %v4766_v38, 1  ;;  %v4764_v2 = vsel %vm4603_vm6, %v4754_v27, %v4763_v42 }
 0x1e0   : > { %8635 = vmatmul.mubr.bf16.gmra.mrb[32].mxu1 %v4104_v20  ;;  %v4772_v20 = vor.u32 %v4771_v17, %v4768_v55 }
 0x1e1   : > { %8670 = vmatprep.mubr.bf16.mxu1 %v4692_v36 }
 0x1e2   : > { %v4773_v0 = vsel %vm4603_vm6, %v4763_v42, %v4772_v20 }
 0x1e4   : > { %8891 = vmatmul.mubr.bf16.gmra.mrb[28].mxu0 %v7045_v59 }
 0x1e5   : > { %8894 = vmatprep.mubr.bf16.mxu0 %v7047_v33 }
 0x1e8   : > { %8671 = vmatmul.mubr.bf16.vlgmr.msra.gmra.mrb[16].mxu1 %v4701_v48 }
 0x1e9   : > { %8674 = vmatprep.mubr.bf16.mxu1 %v4710_v32 }
 0x1ec   : > { %8895 = vmatmul.mubr.bf16.gmra.mrb[32].mxu0 %v7049_v4 }
 0x1f0   : > { %8675 = vmatmul.mubr.bf16.gmra.mrb[20].mxu1 %v4719_v13 }
 0x1f1   : > { %8678 = vmatprep.mubr.bf16.mxu1 %v4728_v31 }
 0x1f8   : > { %8679 = vmatmul.mubr.bf16.gmra.mrb[24].mxu1 %v4737_v37 }
 0x1f9   : > { %8682 = vmatprep.mubr.bf16.mxu1 %v4746_v60 }
 0x200   : > { %8683 = vmatmul.mubr.bf16.gmra.mrb[28].mxu1 %v4755_v62 }
 0x201   : > { %8686 = vmatprep.mubr.bf16.mxu1 %v4764_v2 }
 0x208   : > { %8687 = vmatmul.mubr.bf16.gmra.mrb[32].mxu1 %v4773_v0 }
 0x273   : > { %v8604_v51 = vpop.f32.mrb[0].mxu1 }
 0x274   : > { %v4205_v9 = vpop.f32.mrb[1].mxu1  ;;  %v8916_v29 = vadd.f32 %v8604_v51, %v10566_v30 }
 0x275   : > { %v8605_v8 = vpop.f32.mrb[2].mxu1  ;;  %v8922_v34 = vadd.f32 %v10566_v30, %v4205_v9 }
 0x276   : > { %v4208_v36 = vpop.f32.mrb[3].mxu1  ;;  %v8928_v56 = vadd.f32 %v8605_v8, %v10566_v30 }
 0x277   : > { %v8934_v21 = vadd.f32 %v10566_v30, %v4208_v36 }
 0x27b   : > { %v8608_v44 = vpop.f32.mrb[4].mxu1 }
 0x27c   : > { %v4221_v50 = vpop.f32.mrb[5].mxu1  ;;  %v8940_v26 = vadd.f32 %v8608_v44, %v10566_v30 }
 0x27d   : > { %v8609_v25 = vpop.f32.mrb[6].mxu1  ;;  %v8946_v43 = vadd.f32 %v10566_v30, %v4221_v50 }
 0x27e   : > { %v4224_v52 = vpop.f32.mrb[7].mxu1  ;;  %v8952_v6 = vadd.f32 %v8609_v25, %v10566_v30 }
 0x27f   : > { %v8864_v59 = vpop.f32.mrb[0].mxu0  ;;  %v8958_v40 = vadd.f32 %v10566_v30, %v4224_v52 }
 0x280   : > { %v8919_v46 = vadd.f32 %v8916_v29, %v8864_v59  ;;  %v7150_v1 = vpop.f32.mrb[1].mxu0 }
 0x281   : > { %v8925_v33 = vadd.f32 %v8922_v34, %v7150_v1  ;;  %v8865_v48 = vpop.f32.mrb[2].mxu0 }
 0x282   : > { %7331 = vst [vmem:[#allocation3 + $0x10] sm:$0xff] %v8919_v46  ;;  %v8931_v39 = vadd.f32 %v8928_v56, %v8865_v48  ;;  %v7153_v12 = vpop.f32.mrb[3].mxu0 }
 0x283   : > { %v8612_v49 = vpop.f32.mrb[8].mxu1  ;;  %v8937_v5 = vadd.f32 %v8934_v21, %v7153_v12  ;;  %v7367_v45 = vmax.f32 %v8925_v33, 0.0 }
 0x284   : > { %v4237_v32 = vpop.f32.mrb[9].mxu1  ;;  %7332 = vst [vmem:[#allocation3 + $0x18] sm:$0xff] %v8931_v39  ;;  %v8964_v23 = vadd.f32 %v8612_v49, %v10566_v30 }
 0x285   : > { %v8613_v15 = vpop.f32.mrb[10].mxu1  ;;  %v7368_v54 = vmax.f32 %v8937_v5, 0.0  ;;  %v8970_v58 = vadd.f32 %v10566_v30, %v4237_v32 }
 0x286   : > { %v4240_v28 = vpop.f32.mrb[11].mxu1  ;;  %v8976_v37 = vadd.f32 %v8613_v15, %v10566_v30 }
 0x287   : > { %v8104_v4 = vpack.c.bf16 %v7368_v54, %v7367_v45  ;;  %v8868_v19 = vpop.f32.mrb[4].mxu0  ;;  %v8982_v60 = vadd.f32 %v10566_v30, %v4240_v28 }
 0x288   : > { %v8943_v3 = vadd.f32 %v8940_v26, %v8868_v19  ;;  %v7166_v13 = vpop.f32.mrb[5].mxu0 }
 0x289   : > { %8105 = vst [vmem:[%s10576_s20] sm:$0xff] %v8104_v4   ;;  %v8949_v14 = vadd.f32 %v8946_v43, %v7166_v13  ;;  %v8869_v47 = vpop.f32.mrb[6].mxu0 }
 0x28a   : > { %7335 = vst [vmem:[#allocation3 + $0x30] sm:$0xff] %v8943_v3  ;;  %v8955_v31 = vadd.f32 %v8952_v6, %v8869_v47  ;;  %v7169_v11 = vpop.f32.mrb[7].mxu0 }
 0x28b   : > { %v8616_v53 = vpop.f32.mrb[12].mxu1  ;;  %7333 = vst [vmem:[#allocation3 + $0x20] sm:$0xff] %v8949_v14  ;;  %v8961_v22 = vadd.f32 %v8958_v40, %v7169_v11  ;;  %v7379_v35 = vld [vmem:[#allocation3 + $0x12] sm:$0xff] }
 0x28c   : > { %v4253_v57 = vpop.f32.mrb[13].mxu1  ;;  %7336 = vst [vmem:[#allocation3 + $0x38] sm:$0xff] %v8955_v31  ;;  %v7381_v42 = vmax.f32 %v7379_v35, 0.0  ;;  %v8988_v36 = vadd.f32 %v8616_v53, %v10566_v30 }
 0x28d   : > { %v8617_v41 = vpop.f32.mrb[14].mxu1  ;;  %7334 = vst [vmem:[#allocation3 + $0x28] sm:$0xff] %v8961_v22  ;;  %v8994_v44 = vadd.f32 %v10566_v30, %v4253_v57 }
 0x28e   : > { %v4256_v24 = vpop.f32.mrb[15].mxu1  ;;  %v9000_v52 = vadd.f32 %v8617_v41, %v10566_v30 }
 0x28f   : > { %v8872_v7 = vpop.f32.mrb[8].mxu0  ;;  %v9006_v46 = vadd.f32 %v10566_v30, %v4256_v24 }
 0x290   : > { %v8967_v63 = vadd.f32 %v8964_v23, %v8872_v7  ;;  %v7182_v18 = vpop.f32.mrb[9].mxu0 }
 0x291   : > { %v8973_v61 = vadd.f32 %v8970_v58, %v7182_v18  ;;  %v8873_v16 = vpop.f32.mrb[10].mxu0 }
 0x292   : > { %v7380_v27 = vld [vmem:[#allocation3 + $0x1a] sm:$0xff]  ;;  %v8979_v38 = vadd.f32 %v8976_v37, %v8873_v16  ;;  %v7185_v10 = vpop.f32.mrb[11].mxu0  ;;  %v7427_v20 = vmax.f32 %v8967_v63, 0.0 }
 0x293   : > { %v7382_v62 = vmax.f32 %v7380_v27, 0.0  ;;  %7337 = vst [vmem:[#allocation3 + $0x40] sm:$0xff] %v8973_v61  ;;  %v8985_v55 = vadd.f32 %v8982_v60, %v7185_v10  ;;  %v7409_v34 = vld [vmem:[#allocation3 + $0x36] sm:$0xff] }
 0x294   : > { %v7394_v17 = vld [vmem:[#allocation3 + $0x24] sm:$0xff]  ;;  %v7395_v2 = vld [vmem:[#allocation3 + $0x2c] sm:$0xff]  ;;  %7340 = vst [vmem:[#allocation3 + $0x58] sm:$0xff] %v8979_v38  ;;  %v7411_v12 = vmax.f32 %v7409_v34, 0.0 }
 0x295   : > { %v8109_v0 = vpack.c.bf16 %v7382_v62, %v7381_v42  ;;  %v7396_v51 = vmax.f32 %v7394_v17, 0.0  ;;  %v7397_v9 = vmax.f32 %v7395_v2, 0.0  ;;  %v7426_v8 = vmax.f32 %v8985_v55, 0.0 }
 0x297   : > { %8181 = vst [vmem:[%s10576_s20 + $0x8] sm:$0xff] %v8109_v0   ;;  %v8114_v50 = vpack.c.bf16 %v7397_v9, %v7396_v51  ;;  %v8124_v25 = vpack.c.bf16 %v7427_v20, %v7426_v8  ;;  %v8876_v29 = vpop.f32.mrb[12].mxu0 }
 0x298   : > { %v8991_v59 = vadd.f32 %v8988_v36, %v8876_v29  ;;  %v7198_v56 = vpop.f32.mrb[13].mxu0 }
 0x299   : > { %8182 = vst [vmem:[%s10576_s20 + $0x10] sm:$0xff] %v8114_v50   ;;  %8184 = vst [vmem:[%s10576_s20 + $0x20] sm:$0xff] %v8124_v25   ;;  %v8997_v1 = vadd.f32 %v8994_v44, %v7198_v56  ;;  %v8877_v21 = vpop.f32.mrb[14].mxu0 }
 0x29a   : > { %v7410_v33 = vld [vmem:[#allocation3 + $0x3e] sm:$0xff]  ;;  %7343 = vst [vmem:[#allocation3 + $0x70] sm:$0xff] %v8991_v59  ;;  %v9003_v48 = vadd.f32 %v9000_v52, %v8877_v21  ;;  %v7201_v39 = vpop.f32.mrb[15].mxu0 }
 0x29b   : > { %v7412_v49 = vmax.f32 %v7410_v33, 0.0  ;;  %7341 = vst [vmem:[#allocation3 + $0x60] sm:$0xff] %v8997_v1  ;;  %v9009_v5 = vadd.f32 %v9006_v46, %v7201_v39 }
 0x29c   : > { %7344 = vst [vmem:[#allocation3 + $0x78] sm:$0xff] %v9003_v48 }
 0x29d   : > { %v8119_v32 = vpack.c.bf16 %v7412_v49, %v7411_v12  ;;  %7342 = vst [vmem:[#allocation3 + $0x68] sm:$0xff] %v9009_v5 }
 0x29f   : > { %8183 = vst [vmem:[%s10576_s20 + $0x18] sm:$0xff] %v8119_v32   ;;  %v8880_v15 = vpop.f32.mrb[16].mxu0 }
 0x2a0   : > { %v7214_v45 = vpop.f32.mrb[17].mxu0 }
 0x2a1   : > { %v8881_v54 = vpop.f32.mrb[18].mxu0 }
 0x2a2   : > { %v7439_v26 = vld [vmem:[#allocation3 + $0x5a] sm:$0xff]  ;;  %v7217_v28 = vpop.f32.mrb[19].mxu0 }
 0x2a3   : > { %v7455_v43 = vld [vmem:[#allocation3 + $0x74] sm:$0xff]  ;;  %v7441_v3 = vmax.f32 %v7439_v26, 0.0 }
 0x2a4   : > { %v7457_v4 = vmax.f32 %v7455_v43, 0.0  ;;  %v7440_v19 = vld [vmem:[#allocation3 + $0x62] sm:$0xff]  ;;  %v7454_v6 = vld [vmem:[#allocation3 + $0x6c] sm:$0xff] }
 0x2a5   : > { %v7442_v13 = vmax.f32 %v7440_v19, 0.0  ;;  %v7456_v40 = vmax.f32 %v7454_v6, 0.0 }
 0x2a7   : > { %v8129_v14 = vpack.c.bf16 %v7442_v13, %v7441_v3  ;;  %v8134_v47 = vpack.c.bf16 %v7457_v4, %v7456_v40  ;;  %v8884_v31 = vpop.f32.mrb[20].mxu0 }
 0x2a8   : > { %v7230_v11 = vpop.f32.mrb[21].mxu0 }
 0x2a9   : > { %8185 = vst [vmem:[%s10576_s20 + $0x28] sm:$0xff] %v8129_v14   ;;  %8186 = vst [vmem:[%s10576_s20 + $0x30] sm:$0xff] %v8134_v47   ;;  %v8885_v53 = vpop.f32.mrb[22].mxu0 }
 0x2aa   : > { %v7233_v22 = vpop.f32.mrb[23].mxu0 }
 0x2af   : > { %v8888_v57 = vpop.f32.mrb[24].mxu0 }
 0x2b0   : > { %v7246_v41 = vpop.f32.mrb[25].mxu0 }
 0x2b1   : > { %v8889_v23 = vpop.f32.mrb[26].mxu0 }
 0x2b2   : > { %v7249_v24 = vpop.f32.mrb[27].mxu0 }
 0x2b7   : > { %v10597_v58 = vpop.f32.mrb[28].mxu0 }
 0x2b8   : > { %v10599_v7 = vpop.f32.mrb[29].mxu0 }
 0x2b9   : > { %v10601_v37 = vpop.f32.mrb[30].mxu0 }
 0x2ba   : > { %v10603_v35 = vpop.f32.mrb[31].mxu0 }
 0x2bb   : > { %v8672_v63 = vpop.f32.mrb[16].mxu1 }
 0x2bc   : > { %v9012_v18 = vadd.f32 %v8672_v63, %v10566_v30  ;;  %v4938_v60 = vpop.f32.mrb[17].mxu1 }
 0x2bd   : > { %v9018_v61 = vadd.f32 %v10566_v30, %v4938_v60  ;;  %v8673_v16 = vpop.f32.mrb[18].mxu1 }
 0x2be   : > { %v9024_v27 = vadd.f32 %v8673_v16, %v10566_v30  ;;  %v9015_v38 = vadd.f32 %v9012_v18, %v8880_v15  ;;  %v4941_v10 = vpop.f32.mrb[19].mxu1 }
 0x2bf   : > { %v9030_v42 = vadd.f32 %v10566_v30, %v4941_v10  ;;  %v9021_v62 = vadd.f32 %v9018_v61, %v7214_v45  ;;  %v10609_v55 = vpop.f32.mrb[32].mxu0 }
 0x2c0   : > { %v9027_v17 = vadd.f32 %v9024_v27, %v8881_v54  ;;  %v10611_v2 = vpop.f32.mrb[33].mxu0  ;;  %v7486_v51 = vmax.f32 %v9015_v38, 0.0 }
 0x2c1   : > { %7345 = vst [vmem:[#allocation3 + $0x80] sm:$0xff] %v9021_v62  ;;  %v9033_v20 = vadd.f32 %v9030_v42, %v7217_v28  ;;  %v10613_v0 = vpop.f32.mrb[34].mxu0 }
 0x2c2   : > { %v7487_v9 = vmax.f32 %v9027_v17, 0.0  ;;  %v10615_v8 = vpop.f32.mrb[35].mxu0 }
 0x2c3   : > { %7346 = vst [vmem:[#allocation3 + $0x88] sm:$0xff] %v9033_v20  ;;  %v8676_v36 = vpop.f32.mrb[20].mxu1 }
 0x2c4   : > { %v8144_v44 = vpack.c.bf16 %v7487_v9, %v7486_v51  ;;  %v9036_v50 = vadd.f32 %v8676_v36, %v10566_v30  ;;  %v4954_v25 = vpop.f32.mrb[21].mxu1 }
 0x2c5   : > { %v9042_v29 = vadd.f32 %v10566_v30, %v4954_v25  ;;  %v8677_v52 = vpop.f32.mrb[22].mxu1 }
 0x2c6   : > { %8188 = vst [vmem:[%s10576_s20 + $0x40] sm:$0xff] %v8144_v44   ;;  %v9048_v34 = vadd.f32 %v8677_v52, %v10566_v30  ;;  %v9039_v59 = vadd.f32 %v9036_v50, %v8884_v31  ;;  %v4957_v56 = vpop.f32.mrb[23].mxu1 }
 0x2c7   : > { %v9054_v46 = vadd.f32 %v10566_v30, %v4957_v56  ;;  %v9045_v1 = vadd.f32 %v9042_v29, %v7230_v11 }
 0x2c8   : > { %v7469_v21 = vld [vmem:[#allocation3 + $0x7e] sm:$0xff]  ;;  %7351 = vst [vmem:[#allocation3 + $0xb0] sm:$0xff] %v9039_v59  ;;  %v9051_v33 = vadd.f32 %v9048_v34, %v8885_v53 }
 0x2c9   : > { %7349 = vst [vmem:[#allocation3 + $0xa0] sm:$0xff] %v9045_v1  ;;  %v9057_v48 = vadd.f32 %v9054_v46, %v7233_v22  ;;  %v7471_v12 = vmax.f32 %v7469_v21, 0.0 }
 0x2ca   : > { %v7470_v39 = vld [vmem:[#allocation3 + $0x86] sm:$0xff]  ;;  %7352 = vst [vmem:[#allocation3 + $0xb8] sm:$0xff] %v9051_v33 }
 0x2cb   : > { %v7472_v49 = vmax.f32 %v7470_v39, 0.0  ;;  %7350 = vst [vmem:[#allocation3 + $0xa8] sm:$0xff] %v9057_v48  ;;  %v8680_v5 = vpop.f32.mrb[24].mxu1 }
 0x2cc   : > { %v9060_v32 = vadd.f32 %v8680_v5, %v10566_v30  ;;  %v4970_v15 = vpop.f32.mrb[25].mxu1 }
 0x2cd   : > { %v8139_v45 = vpack.c.bf16 %v7472_v49, %v7471_v12  ;;  %v9066_v54 = vadd.f32 %v10566_v30, %v4970_v15  ;;  %v8681_v26 = vpop.f32.mrb[26].mxu1 }
 0x2ce   : > { %v9072_v28 = vadd.f32 %v8681_v26, %v10566_v30  ;;  %v9063_v43 = vadd.f32 %v9060_v32, %v8888_v57  ;;  %v4973_v4 = vpop.f32.mrb[27].mxu1 }
 0x2cf   : > { %8187 = vst [vmem:[%s10576_s20 + $0x38] sm:$0xff] %v8139_v45   ;;  %v9078_v19 = vadd.f32 %v10566_v30, %v4973_v4  ;;  %v9069_v6 = vadd.f32 %v9066_v54, %v7246_v41 }
 0x2d0   : > { %7355 = vst [vmem:[#allocation3 + $0xd0] sm:$0xff] %v9063_v43  ;;  %v9075_v3 = vadd.f32 %v9072_v28, %v8889_v23 }
 0x2d1   : > { %7353 = vst [vmem:[#allocation3 + $0xc0] sm:$0xff] %v9069_v6  ;;  %v9081_v13 = vadd.f32 %v9078_v19, %v7249_v24  ;;  %v7514_v57 = vld [vmem:[#allocation3 + $0xb4] sm:$0xff] }
 0x2d2   : > { %v7499_v40 = vld [vmem:[#allocation3 + $0xa2] sm:$0xff]  ;;  %v7500_v14 = vld [vmem:[#allocation3 + $0xaa] sm:$0xff]  ;;  %v7516_v27 = vmax.f32 %v7514_v57, 0.0  ;;  %v7546_v62 = vmax.f32 %v9075_v3, 0.0 }
 0x2d3   : > { %v7501_v47 = vmax.f32 %v7499_v40, 0.0  ;;  %v7502_v31 = vmax.f32 %v7500_v14, 0.0  ;;  %7354 = vst [vmem:[#allocation3 + $0xc8] sm:$0xff] %v9081_v13  ;;  %v8684_v11 = vpop.f32.mrb[28].mxu1 }
 0x2d4   : > { %v9084_v53 = vadd.f32 %v8684_v11, %v10566_v30  ;;  %v4986_v22 = vpop.f32.mrb[29].mxu1 }
 0x2d5   : > { %v8149_v63 = vpack.c.bf16 %v7502_v31, %v7501_v47  ;;  %v9090_v18 = vadd.f32 %v10566_v30, %v4986_v22  ;;  %v8685_v60 = vpop.f32.mrb[30].mxu1 }
 0x2d6   : > { %v9096_v41 = vadd.f32 %v8685_v60, %v10566_v30  ;;  %v9087_v23 = vadd.f32 %v9084_v53, %v10597_v58  ;;  %v4989_v24 = vpop.f32.mrb[31].mxu1 }
 0x2d7   : > { %8189 = vst [vmem:[%s10576_s20 + $0x48] sm:$0xff] %v8149_v63   ;;  %v9102_v61 = vadd.f32 %v10566_v30, %v4989_v24  ;;  %v9093_v16 = vadd.f32 %v9090_v18, %v10599_v7 }
 0x2d8   : > { %v7515_v38 = vld [vmem:[#allocation3 + $0xbc] sm:$0xff]  ;;  %7359 = vst [vmem:[#allocation3 + $0xf0] sm:$0xff] %v9087_v23  ;;  %v9099_v10 = vadd.f32 %v9096_v41, %v10601_v37 }
 0x2d9   : > { %v7517_v42 = vmax.f32 %v7515_v38, 0.0  ;;  %v7547_v17 = vmax.f32 %v9093_v16, 0.0  ;;  %v9105_v20 = vadd.f32 %v9102_v61, %v10603_v35 }
 0x2da   : > { %v7529_v51 = vld [vmem:[#allocation3 + $0xc6] sm:$0xff]  ;;  %v7530_v58 = vld [vmem:[#allocation3 + $0xce] sm:$0xff]  ;;  %7360 = vst [vmem:[#allocation3 + $0xf8] sm:$0xff] %v9099_v10 }
 0x2db   : > { %v8154_v9 = vpack.c.bf16 %v7517_v42, %v7516_v27  ;;  %v7531_v36 = vmax.f32 %v7529_v51, 0.0  ;;  %v7532_v44 = vmax.f32 %v7530_v58, 0.0  ;;  %v8164_v7 = vpack.c.bf16 %v7547_v17, %v7546_v62  ;;  %7358 = vst [vmem:[#allocation3 + $0xe8] sm:$0xff] %v9105_v20  ;;  %v8688_v50 = vpop.f32.mrb[32].mxu1 }
 0x2dc   : > { %v9108_v25 = vadd.f32 %v8688_v50, %v10566_v30  ;;  %v5002_v37 = vpop.f32.mrb[33].mxu1 }
 0x2dd   : > { %8190 = vst [vmem:[%s10576_s20 + $0x50] sm:$0xff] %v8154_v9   ;;  %v8159_v29 = vpack.c.bf16 %v7532_v44, %v7531_v36  ;;  %8192 = vst [vmem:[%s10576_s20 + $0x60] sm:$0xff] %v8164_v7   ;;  %v9114_v52 = vadd.f32 %v10566_v30, %v5002_v37  ;;  %v8689_v34 = vpop.f32.mrb[34].mxu1 }
 0x2de   : > { %v9120_v35 = vadd.f32 %v8689_v34, %v10566_v30  ;;  %v9111_v59 = vadd.f32 %v9108_v25, %v10609_v55  ;;  %v5005_v56 = vpop.f32.mrb[35].mxu1 }
 0x2df   : > { %8191 = vst [vmem:[%s10576_s20 + $0x58] sm:$0xff] %v8159_v29   ;;  %v9126_v46 = vadd.f32 %v10566_v30, %v5005_v56  ;;  %v9117_v1 = vadd.f32 %v9114_v52, %v10611_v2 }
 0x2e0   : > { %7363 = vst [vmem:[#allocation3 + $0x110] sm:$0xff] %v9111_v59  ;;  %v9123_v21 = vadd.f32 %v9120_v35, %v10613_v0 }
 0x2e1   : > { %v7560_v33 = vld [vmem:[#allocation3 + $0xf2] sm:$0xff]  ;;  %7361 = vst [vmem:[#allocation3 + $0x100] sm:$0xff] %v9117_v1  ;;  %v9129_v48 = vadd.f32 %v9126_v46, %v10615_v8 }
 0x2e2   : > { %v7562_v39 = vmax.f32 %v7560_v33, 0.0  ;;  %v7559_v12 = vld [vmem:[#allocation3 + $0xea] sm:$0xff]  ;;  %7364 = vst [vmem:[#allocation3 + $0x118] sm:$0xff] %v9123_v21 }
 0x2e3   : > { %v7561_v55 = vmax.f32 %v7559_v12, 0.0  ;;  %7362 = vst [vmem:[#allocation3 + $0x108] sm:$0xff] %v9129_v48 }
 0x2e5   : > { %v8169_v49 = vpack.c.bf16 %v7562_v39, %v7561_v55 }
 0x2e7   : > { %8193 = vst [vmem:[%s10576_s20 + $0x68] sm:$0xff] %v8169_v49  }
 0x2e8   : > { %v7574_v5 = vld [vmem:[#allocation3 + $0xfc] sm:$0xff] }
 0x2e9   : > { %v7590_v30 = vld [vmem:[#allocation3 + $0x116] sm:$0xff]  ;;  %v7576_v45 = vmax.f32 %v7574_v5, 0.0 }
 0x2ea   : > { %v7592_v32 = vmax.f32 %v7590_v30, 0.0  ;;  %v7575_v2 = vld [vmem:[#allocation3 + $0x104] sm:$0xff]  ;;  %v7589_v15 = vld [vmem:[#allocation3 + $0x10e] sm:$0xff] }
 0x2eb   : > { %v7577_v0 = vmax.f32 %v7575_v2, 0.0  ;;  %v7591_v54 = vmax.f32 %v7589_v15, 0.0 }
 0x2ed   : > { %v8174_v26 = vpack.c.bf16 %v7577_v0, %v7576_v45  ;;  %v8179_v28 = vpack.c.bf16 %v7592_v32, %v7591_v54 }
 0x2ef   : > { %8194 = vst [vmem:[%s10576_s20 + $0x70] sm:$0xff] %v8174_v26   ;;  %8195 = vst [vmem:[%s10576_s20 + $0x78] sm:$0xff] %v8179_v28  }
 0x2f0 PF: > { %s14_s14 = sadd.s32 1, %s9727_s14   ;;  %s10696_s12 = smov %s9723_s13 }
 0x2f1   : > { %p11_p4 = scmp.ge.s32.totalorder %s14_s14, 4   ;;  %s10697_s13 = smov %s10699_s16 }
 0x2f3   :  { %13 = sbr.rel (!%p11_p4) target bundleno = 2 (0x2), region = 94 }
 0x2fa   :  { %7631 = vsyncpa [#allocation5], 1 }
 0x2fb   :  { %7633 = vsyncpa [#allocation5 + $0x1], 1 }

</bundles_post_ra>
